<compile_context>
chip_gen: v7x
topology: tpu7x:2x2x1
jax: 0.10.0
libtpu: 0.0.40
codegen_flags: <defaults>
</compile_context>

<pallas_src>
import functools

import jax
import jax.numpy as jnp
from jax.experimental import pallas as pl
from jax.experimental.pallas import tpu as pltpu


def _round_up(x, m):
    return (x + m - 1) // m * m


@functools.lru_cache(maxsize=None)
def _vmem_bytes():
    """Physical VMEM per core (v5e/v6e: 128 MiB, v7x: 64 MiB); conservative fallback."""
    try:
        info = pltpu.get_tpu_info()
        cap = getattr(info, "vmem_capacity_bytes", None)
        if cap:
            return int(cap)
    except Exception:
        pass
    return 64 * 1024 * 1024


def _tile_footprint(tm, tk, tn, *, has_res, out_bytes, needs_acc):
    """Approximate VMEM bytes for one double-buffered matmul tile pipeline."""
    per_step = (tm * tk * 2 + tk * tn * 2 + tm * tn * out_bytes
                + (tm * tn * 2 if has_res else 0) + 2 * tn * 4)
    total = 2 * per_step                      # double-buffered in/out
    if needs_acc:
        total += tm * tn * 4                  # resident f32 accumulator
    return total


def _vmem_limit(footprint):
    """vmem_limit_bytes derived from the actual tile footprint (plus headroom),
    capped well below physical VMEM (v7x has only 64 MiB)."""
    phys = _vmem_bytes()
    return int(min(max(2 * footprint + 4 * 1024 * 1024, 16 * 1024 * 1024),
                   0.7 * phys))


def _pick_tn(N):
    # Full-N tiles (<=512 lanes): A is read once per M tile, stores are
    # lane-dense, grid steps are minimized.  Every layer width here is <=512.
    if N <= 512:
        return N
    for cand in (512, 384, 256, 128):
        if N % cand == 0:
            return cand
    return N


def _pick_tk(K):
    # Single-K block whenever it fits: one reduction step (no f32 scratch) and
    # no short remainder pass per step on the 256-deep MXU (v6e/v7x).
    if K <= 4608:
        return K
    for cand in (2048, 1536, 1024, 512, 256, 768, 384, 128):
        if K % cand == 0:
            return cand
    return K


def _pick_tm(M, tk, tn, *, has_res, out_bytes):
    # VMEM-derived cap: biggest tile whose double-buffered footprint stays well
    # inside physical VMEM (amortizes the ~0.35us per-grid-step overhead).
    budget = int(0.4 * _vmem_bytes())
    cap = 1024
    while cap > 64 and _tile_footprint(cap, tk, tn, has_res=has_res,
                                       out_bytes=out_bytes, needs_acc=True) > budget:
        cap //= 2
    if M <= cap:
        return M
    for cand in range(cap - cap % 8, 7, -8):
        if M % cand == 0:
            return cand
    return cap                                # fallback: caller pads M


# ---------------------------------------------------------------------------
# Fused Pallas matmul:  out = [relu]( (A @ B) * scale + bias [+ residual] )
# bf16 (or f32) operands, f32 accumulation, fused epilogue.
# ---------------------------------------------------------------------------
def _epilogue(acc, s_ref, c_ref, res, relu):
    y = acc * s_ref[...] + c_ref[...]                 # folded BatchNorm affine
    if res is not None:
        y = y + res.astype(jnp.float32)               # residual add
    if relu:
        y = jnp.maximum(y, 0.0)
    return y


def _matmul_kernel_single(a_ref, b_ref, s_ref, c_ref, *rest, relu, has_res):
    # Single reduction step: no accumulator scratch, no init/finalize pl.when.
    if has_res:
        res_ref, o_ref = rest
        res = res_ref[...]
    else:
        (o_ref,) = rest
        res = None
    acc = jnp.dot(a_ref[...], b_ref[...], preferred_element_type=jnp.float32)
    o_ref[...] = _epilogue(acc, s_ref, c_ref, res, relu).astype(o_ref.dtype)


def _matmul_kernel_multi(a_ref, b_ref, s_ref, c_ref, *rest, relu, has_res):
    if has_res:
        res_ref, o_ref, acc_ref = rest
    else:
        o_ref, acc_ref = rest

    @pl.when(pl.program_id(2) == 0)
    def _():
        acc_ref[...] = jnp.zeros_like(acc_ref)

    acc_ref[...] += jnp.dot(a_ref[...], b_ref[...],
                            preferred_element_type=jnp.float32)

    @pl.when(pl.program_id(2) == pl.num_programs(2) - 1)
    def _():
        res = res_ref[...] if has_res else None
        o_ref[...] = _epilogue(acc_ref[...], s_ref, c_ref, res,
                               relu).astype(o_ref.dtype)


def fused_matmul(a, b, scale, bias, *, relu=False, residual=None,
                 out_dtype=jnp.bfloat16, operand_dtype=jnp.bfloat16):
    """(M, K) @ (K, N) with folded-BN scale/bias, optional residual add and
    optional ReLU fused into the MXU epilogue."""
    M, K = a.shape
    K2, N = b.shape
    assert K == K2
    a = a.astype(operand_dtype)
    b = b.astype(operand_dtype)
    scale = scale.reshape(1, N).astype(jnp.float32)
    bias = bias.reshape(1, N).astype(jnp.float32)
    has_res = residual is not None
    if has_res:
        residual = residual.astype(jnp.bfloat16)

    # Keep the contraction dim packing friendly (only the 7x7 stem, K=147, pads).
    k_align = 16 if operand_dtype == jnp.bfloat16 else 8
    if K % k_align != 0:
        Kp = _round_up(K, 128)
        a = jnp.pad(a, ((0, 0), (0, Kp - K)))
        b = jnp.pad(b, ((0, Kp - K), (0, 0)))
        K = Kp

    out_bytes = jnp.dtype(out_dtype).itemsize
    tn = _pick_tn(N)
    tk = _pick_tk(K)
    tm = _pick_tm(M, tk, tn, has_res=has_res, out_bytes=out_bytes)

    Mp = _round_up(M, tm)
    Np = _round_up(N, tn)
    # v7x megacore: keep >=2 parallel grid iterations whenever the shape allows.
    if Mp // tm == 1 and Np // tn == 1 and M >= 16 and (M // 2) % 8 == 0:
        tm = M // 2
        Mp = M

    if Mp != M:
        a = jnp.pad(a, ((0, Mp - M), (0, 0)))
        if has_res:
            residual = jnp.pad(residual, ((0, Mp - M), (0, 0)))
    if Np != N:
        b = jnp.pad(b, ((0, 0), (0, Np - N)))
        scale = jnp.pad(scale, ((0, 0), (0, Np - N)))
        bias = jnp.pad(bias, ((0, 0), (0, Np - N)))
        if has_res:
            residual = jnp.pad(residual, ((0, 0), (0, Np - N)))

    grid_k = K // tk
    footprint = _tile_footprint(tm, tk, tn, has_res=has_res,
                                out_bytes=out_bytes, needs_acc=grid_k > 1)
    inputs = [a, b, scale, bias]

    if grid_k == 1:
        in_specs = [pl.BlockSpec((tm, tk), lambda i, j: (i, 0)),
                    pl.BlockSpec((tk, tn), lambda i, j: (0, j)),
                    pl.BlockSpec((1, tn), lambda i, j: (0, j)),
                    pl.BlockSpec((1, tn), lambda i, j: (0, j))]
        if has_res:
            in_specs.append(pl.BlockSpec((tm, tn), lambda i, j: (i, j)))
            inputs.append(residual)
        grid = (Mp // tm, Np // tn)
        out_spec = pl.BlockSpec((tm, tn), lambda i, j: (i, j))
        kernel = functools.partial(_matmul_kernel_single, relu=relu,
                                   has_res=has_res)
        scratch = []
        semantics = ("parallel", "parallel")
    else:
        in_specs = [pl.BlockSpec((tm, tk), lambda i, j, k: (i, k)),
                    pl.BlockSpec((tk, tn), lambda i, j, k: (k, j)),
                    pl.BlockSpec((1, tn), lambda i, j, k: (0, j)),
                    pl.BlockSpec((1, tn), lambda i, j, k: (0, j))]
        if has_res:
            # Constant block index across k -> fetched once per (i, j).
            in_specs.append(pl.BlockSpec((tm, tn), lambda i, j, k: (i, j)))
            inputs.append(residual)
        grid = (Mp // tm, Np // tn, grid_k)
        out_spec = pl.BlockSpec((tm, tn), lambda i, j, k: (i, j))
        kernel = functools.partial(_matmul_kernel_multi, relu=relu,
                                   has_res=has_res)
        scratch = [pltpu.VMEM((tm, tn), jnp.float32)]
        semantics = ("parallel", "parallel", "arbitrary")

    out = pl.pallas_call(
        kernel,
        out_shape=jax.ShapeDtypeStruct((Mp, Np), out_dtype),
        grid_spec=pltpu.PrefetchScalarGridSpec(
            num_scalar_prefetch=0,
            grid=grid,
            in_specs=in_specs,
            out_specs=out_spec,
            scratch_shapes=scratch),
        compiler_params=pltpu.CompilerParams(
            dimension_semantics=semantics,
            vmem_limit_bytes=_vmem_limit(footprint)),
    )(*inputs)

    if Mp != M or Np != N:
        out = out[:M, :N]
    return out


# ---------------------------------------------------------------------------
# Direct 3x3 / stride-1 / pad-1 Pallas convolution (no im2col patch matrix).
# Grid = (output_row, cout_tile, kernel_row); kernel_row is an "arbitrary"
# reduction axis; the 3 kernel columns are unrolled in-kernel as static shifts
# of the padded input row.  Folded-BN / residual / ReLU fused in the epilogue.
# ---------------------------------------------------------------------------
def _conv3x3_kernel(x_ref, w_ref, s_ref, c_ref, *rest, n, width, relu, has_res):
    if has_res:
        res_ref, o_ref, acc_ref = rest
    else:
        o_ref, acc_ref = rest
    kr = pl.program_id(2)

    @pl.when(kr == 0)
    def _():
        acc_ref[...] = jnp.zeros_like(acc_ref)

    partial = None
    for dj in range(3):                               # static column taps
        xs = x_ref[:, 0, dj:dj + width, :].reshape(n * width, -1)
        d = jnp.dot(xs, w_ref[0, dj], preferred_element_type=jnp.float32)
        partial = d if partial is None else partial + d
    acc_ref[...] += partial

    @pl.when(kr == pl.num_programs(2) - 1)
    def _():
        y = acc_ref[...] * s_ref[...] + c_ref[...]    # folded BatchNorm affine
        if has_res:
            y = y + res_ref[...].reshape(n * width, -1).astype(jnp.float32)
        if relu:
            y = jnp.maximum(y, 0.0)
        o_ref[...] = y.reshape(o_ref.shape).astype(o_ref.dtype)


def conv3x3_s1_bn_act(x, w, scale, bias, *, relu, residual=None,
                      out_dtype=jnp.bfloat16):
    N, H, W, Cin = x.shape
    kh, kw, cin2, Cout = w.shape
    assert (kh, kw, cin2) == (3, 3, Cin)
    x_pad = jnp.pad(x.astype(jnp.bfloat16), ((0, 0), (1, 1), (1, 1), (0, 0)))
    Wp = W + 2
    w = w.astype(jnp.bfloat16)
    scale = scale.reshape(1, Cout).astype(jnp.float32)
    bias = bias.reshape(1, Cout).astype(jnp.float32)
    has_res = residual is not None
    if has_res:
        residual = residual.astype(jnp.bfloat16)

    tn = _pick_tn(Cout)
    # v7x megacore: if the feature map has a single row, split Cout instead so
    # both TensorCores still get parallel work.
    if H * (Cout // tn) < 2 and Cout % 256 == 0:
        tn = Cout // 2
    grid = (H, Cout // tn, 3)

    in_specs = [
        pl.BlockSpec((N, 1, Wp, Cin), lambda oh, j, kr: (0, oh + kr, 0, 0)),
        pl.BlockSpec((1, 3, Cin, tn), lambda oh, j, kr: (kr, 0, 0, j)),
        pl.BlockSpec((1, tn), lambda oh, j, kr: (0, j)),
        pl.BlockSpec((1, tn), lambda oh, j, kr: (0, j)),
    ]
    inputs = [x_pad, w, scale, bias]
    if has_res:
        # Constant block index across kr -> fetched once per (oh, j).
        in_specs.append(pl.BlockSpec((N, 1, W, tn),
                                     lambda oh, j, kr: (0, oh, 0, j)))
        inputs.append(residual)

    out_bytes = jnp.dtype(out_dtype).itemsize
    footprint = (2 * (N * Wp * Cin * 2 + 3 * Cin * tn * 2
                      + N * W * tn * out_bytes
                      + (N * W * tn * 2 if has_res else 0) + 2 * tn * 4)
                 + N * W * tn * 4)

    return pl.pallas_call(
        functools.partial(_conv3x3_kernel, n=N, width=W, relu=relu,
                          has_res=has_res),
        out_shape=jax.ShapeDtypeStruct((N, H, W, Cout), out_dtype),
        grid_spec=pltpu.PrefetchScalarGridSpec(
            num_scalar_prefetch=0,
            grid=grid,
            in_specs=in_specs,
            out_specs=pl.BlockSpec((N, 1, W, tn),
                                   lambda oh, j, kr: (0, oh, 0, j)),
            scratch_shapes=[pltpu.VMEM((N * W, tn), jnp.float32)]),
        compiler_params=pltpu.CompilerParams(
            dimension_semantics=("parallel", "parallel", "arbitrary"),
            vmem_limit_bytes=_vmem_limit(footprint)),
    )(*inputs)


# ---------------------------------------------------------------------------
# Conv dispatcher
# ---------------------------------------------------------------------------
def _im2col(x, kh, kw, stride, pad):
    N, H, W, C = x.shape
    if pad > 0:
        x = jnp.pad(x, ((0, 0), (pad, pad), (pad, pad), (0, 0)))
    Ho = (H + 2 * pad - kh) // stride + 1
    Wo = (W + 2 * pad - kw) // stride + 1
    cols = []
    for i in range(kh):
        for j in range(kw):
            cols.append(jax.lax.slice(
                x, (0, i, j, 0),
                (N, i + (Ho - 1) * stride + 1, j + (Wo - 1) * stride + 1, C),
                (1, stride, stride, 1)))
    cols = jnp.concatenate(cols, axis=-1)        # (N, Ho, Wo, kh*kw*C), bf16
    return cols.reshape(N * Ho * Wo, kh * kw * C), Ho, Wo


def conv_bn_act(x, w, scale, bias, *, stride, pad, relu, residual=None,
                out_dtype=jnp.bfloat16):
    """Conv2d (weights (kh,kw,Cin,Cout)) with folded-BN affine, optional residual
    add and optional ReLU — all fused into the Pallas epilogue."""
    N = x.shape[0]
    kh, kw, cin, cout = w.shape

    if kh == 3 and kw == 3 and stride == 1 and pad == 1:
        # Direct Pallas conv: reads the NHWC activation, no patch matrix.
        return conv3x3_s1_bn_act(x, w, scale, bias, relu=relu,
                                 residual=residual, out_dtype=out_dtype)

    if kh == 1 and kw == 1:
        # 1x1 conv: strided subsample + plain fused matmul (no patch blowup).
        xs = x[:, ::stride, ::stride, :] if stride > 1 else x
        n, ho, wo, _ = xs.shape
        res2d = residual.reshape(n * ho * wo, cout) if residual is not None else None
        y = fused_matmul(xs.reshape(n * ho * wo, cin), w.reshape(cin, cout),
                         scale, bias, relu=relu, residual=res2d,
                         out_dtype=out_dtype)
        return y.reshape(n, ho, wo, cout)

    # TODO(synk): stride-2 3x3 convs and the 7x7 stem still materialize their
    # (much smaller) im2col patch matrix in XLA before the fused matmul.
    cols, Ho, Wo = _im2col(x.astype(jnp.bfloat16), kh, kw, stride, pad)
    res2d = residual.reshape(N * Ho * Wo, cout) if residual is not None else None
    y = fused_matmul(cols, w.reshape(kh * kw * cin, cout), scale, bias,
                     relu=relu, residual=res2d, out_dtype=out_dtype)
    return y.reshape(N, Ho, Wo, cout)


# ---------------------------------------------------------------------------
# Pooling
# ---------------------------------------------------------------------------
def maxpool_3x3_s2_p1(x):
    """MaxPool2d(kernel=3, stride=2, padding=1) on NHWC.
    TODO(synk): kept as fused XLA elementwise ops (running max over the 9
    strided taps) — pure bandwidth, no MXU work to fuse."""
    N, H, W, C = x.shape
    xp = jnp.pad(x, ((0, 0), (1, 1), (1, 1), (0, 0)),
                 constant_values=-jnp.inf)
    Ho = (H + 2 - 3) // 2 + 1
    Wo = (W + 2 - 3) // 2 + 1
    out = None
    for i in range(3):
        for j in range(3):
            tap = jax.lax.slice(
                xp, (0, i, j, 0),
                (N, i + (Ho - 1) * 2 + 1, j + (Wo - 1) * 2 + 1, C),
                (1, 2, 2, 1))
            out = tap if out is None else jnp.maximum(out, tap)
    return out


def _avgpool_kernel(x_ref, o_ref):
    o_ref[...] = jnp.mean(x_ref[...].astype(jnp.float32), axis=1)


def global_avgpool(x):
    """AdaptiveAvgPool2d(1) + Flatten on NHWC -> (N, C) float32 (channel-tiled)."""
    N, H, W, C = x.shape
    HW = H * W
    tc = 128 if C % 128 == 0 else C
    return pl.pallas_call(
        _avgpool_kernel,
        out_shape=jax.ShapeDtypeStruct((N, C), jnp.float32),
        grid=(C // tc,),
        in_specs=[pl.BlockSpec((N, HW, tc), lambda c: (0, 0, c))],
        out_specs=pl.BlockSpec((N, tc), lambda c: (0, c)),
        compiler_params=pltpu.CompilerParams(
            dimension_semantics=("parallel",)),
    )(x.reshape(N, HW, C))


# ---------------------------------------------------------------------------
# ResNet structure
# ---------------------------------------------------------------------------
def basic_block_forward(x, p, stride):
    if "w_sc" in p:
        sc = conv_bn_act(x, p["w_sc"], p["s_sc"], p["b_sc"],
                         stride=stride, pad=0, relu=False)
    else:
        sc = x
    h = conv_bn_act(x, p["w1"], p["s1"], p["b1"], stride=stride, pad=1, relu=True)
    # Second conv: BN affine + residual add + final ReLU fused into the epilogue.
    return conv_bn_act(h, p["w2"], p["s2"], p["b2"], stride=1, pad=1,
                       relu=True, residual=sc)


_LAYER_STRIDES = {"conv2": 1, "conv3": 2, "conv4": 2, "conv5": 2}


def resnet_forward(x_nchw, params):
    x = jnp.transpose(x_nchw, (0, 2, 3, 1)).astype(jnp.bfloat16)   # NCHW -> NHWC
    x = conv_bn_act(x, params["conv1_w"], params["bn1_s"], params["bn1_b"],
                    stride=2, pad=3, relu=True)
    x = maxpool_3x3_s2_p1(x)
    for layer in ("conv2", "conv3", "conv4", "conv5"):
        for bi, p in enumerate(params[layer]):
            stride = _LAYER_STRIDES[layer] if bi == 0 else 1
            x = basic_block_forward(x, p, stride)
    feat = global_avgpool(x)                                        # (N, 512) f32
    n_classes = params["fc_b"].shape[0]
    logits = fused_matmul(feat, params["fc_w"],                     # fc bias fused
                          jnp.ones((n_classes,), jnp.float32), params["fc_b"],
                          relu=False, out_dtype=jnp.float32,
                          operand_dtype=jnp.float32)
    return logits


# ---------------------------------------------------------------------------
# Deterministic parameter initialization (synthetic, no checkpoint)
# ---------------------------------------------------------------------------
def _bn_fold(gamma, beta, running_mean, running_var, conv_bias=None, eps=1e-5):
    scale = gamma / jnp.sqrt(running_var + eps)
    cb = conv_bias if conv_bias is not None else 0.0
    bias = (cb - running_mean) * scale + beta
    return scale, bias


def init_params(key, n_blocks_lst=(1, 1, 1, 1), n_classes=10):
    keys = iter(jax.random.split(key, 512))

    def conv_w(kh, kw, cin, cout):
        fan_in = kh * kw * cin
        return jax.random.normal(next(keys), (kh, kw, cin, cout),
                                 jnp.float32) / jnp.sqrt(fan_in)

    def bn_params(c):
        gamma = 1.0 + 0.05 * jax.random.normal(next(keys), (c,), jnp.float32)
        beta = 0.05 * jax.random.normal(next(keys), (c,), jnp.float32)
        return gamma, beta, jnp.zeros((c,), jnp.float32), jnp.ones((c,), jnp.float32)

    params = {}
    params["conv1_w"] = conv_w(7, 7, 3, 64)
    conv1_b = 0.05 * jax.random.normal(next(keys), (64,), jnp.float32)
    params["bn1_s"], params["bn1_b"] = _bn_fold(*bn_params(64), conv_bias=conv1_b)

    def make_block(cin, cout, stride):
        p = {}
        p["w1"] = conv_w(3, 3, cin, cout)
        p["s1"], p["b1"] = _bn_fold(*bn_params(cout))
        p["w2"] = conv_w(3, 3, cout, cout)
        p["s2"], p["b2"] = _bn_fold(*bn_params(cout))
        if stride != 1 or cin != cout:
            p["w_sc"] = conv_w(1, 1, cin, cout)
            p["s_sc"], p["b_sc"] = _bn_fold(*bn_params(cout))
        return p

    def make_layer(cin, cout, n_blocks, stride):
        blocks = [make_block(cin, cout, stride)]
        for _ in range(1, n_blocks):
            blocks.append(make_block(cout, cout, 1))
        return blocks

    params["conv2"] = make_layer(64, 64, n_blocks_lst[0], 1)
    params["conv3"] = make_layer(64, 128, n_blocks_lst[1], 2)
    params["conv4"] = make_layer(128, 256, n_blocks_lst[2], 2)
    params["conv5"] = make_layer(256, 512, n_blocks_lst[3], 2)

    params["fc_w"] = jax.random.normal(next(keys), (512, n_classes),
                                       jnp.float32) / jnp.sqrt(512.0)
    params["fc_b"] = 0.05 * jax.random.normal(next(keys), (n_classes,), jnp.float32)
    return params


if __name__ == "__main__":
    root = jax.random.PRNGKey(0)
    xkey, pkey = jax.random.split(root)
    x = jax.random.normal(xkey, (2, 3, 32, 32), jnp.float32)   # NCHW, like PyTorch
    params = init_params(pkey, n_blocks_lst=(1, 1, 1, 1), n_classes=10)
    fwd = jax.jit(resnet_forward)
    out = jax.block_until_ready(fwd(x, params))
    assert out.shape == (2, 10) and out.dtype == jnp.float32
    assert bool(jnp.all(jnp.isfinite(out)))
    print("KERNEL_OK")
</pallas_src>

<mosaic_0001>
module attributes {stable_mosaic.version = 11 : i64} {
  func.func @_matmul_kernel_single(%arg0: i32, %arg1: i32, %arg2: memref<256x256xbf16, #tpu.memory_space<vmem>>, %arg3: memref<256x64xbf16, #tpu.memory_space<vmem>>, %arg4: memref<1x64xf32, #tpu.memory_space<vmem>>, %arg5: memref<1x64xf32, #tpu.memory_space<vmem>>, %arg6: memref<256x64xbf16, #tpu.memory_space<vmem>>) attributes {dimension_semantics = [#tpu.dimension_semantics<parallel>, #tpu.dimension_semantics<parallel>], iteration_bounds = array<i64: 2, 1>, scalar_prefetch = 0 : i64, scratch_operands = 0 : i64, tpu.core_type = #tpu.core_type<tc>, window_params = [{transform_indices = @transform_0, window_bounds = array<i64: 256, 256>}, {transform_indices = @transform_1, window_bounds = array<i64: 256, 64>}, {transform_indices = @transform_2, window_bounds = array<i64: 1, 64>}, {transform_indices = @transform_3, window_bounds = array<i64: 1, 64>}, {transform_indices = @transform_4, window_bounds = array<i64: 256, 64>}]} {
    %c0 = arith.constant 0 : index
    %c0_0 = arith.constant 0 : index
    %0 = vector.load %arg2[%c0, %c0_0] : memref<256x256xbf16, #tpu.memory_space<vmem>>, vector<256x256xbf16>
    %c0_1 = arith.constant 0 : index
    %c0_2 = arith.constant 0 : index
    %1 = vector.load %arg3[%c0_1, %c0_2] : memref<256x64xbf16, #tpu.memory_space<vmem>>, vector<256x64xbf16>
    %cst = arith.constant dense<0.000000e+00> : vector<256x64xf32>
    %2 = tpu.matmul %0, %1, %cst {dimension_numbers = #tpu.dot_dimension_numbers<[1], [0], [0], [1], [0, 0, 1, 1], [], []>} : vector<256x256xbf16>, vector<256x64xbf16>, vector<256x64xf32> -> vector<256x64xf32>
    %c0_3 = arith.constant 0 : index
    %c0_4 = arith.constant 0 : index
    %3 = vector.load %arg4[%c0_3, %c0_4] : memref<1x64xf32, #tpu.memory_space<vmem>>, vector<1x64xf32>
    %4 = vector.broadcast %3 : vector<1x64xf32> to vector<256x64xf32>
    %5 = arith.mulf %2, %4 : vector<256x64xf32>
    %c0_5 = arith.constant 0 : index
    %c0_6 = arith.constant 0 : index
    %6 = vector.load %arg5[%c0_5, %c0_6] : memref<1x64xf32, #tpu.memory_space<vmem>>, vector<1x64xf32>
    %7 = vector.broadcast %6 : vector<1x64xf32> to vector<256x64xf32>
    %8 = arith.addf %5, %7 : vector<256x64xf32>
    %cst_7 = arith.constant 0.000000e+00 : f32
    %9 = vector.broadcast %cst_7 : f32 to vector<256x64xf32>
    %10 = arith.maximumf %8, %9 : vector<256x64xf32>
    %11 = arith.truncf %10 : vector<256x64xf32> to vector<256x64xbf16>
    %c0_8 = arith.constant 0 : index
    %c0_9 = arith.constant 0 : index
    %12 = vector.load %arg6[%c0_8, %c0_9] : memref<256x64xbf16, #tpu.memory_space<vmem>>, vector<256x64xbf16>
    tpu.vector_store %arg6[%c0_8, %c0_9], %11 {strides = array<i32>} : memref<256x64xbf16, #tpu.memory_space<vmem>>, vector<256x64xbf16>,
    return
  }
  func.func @transform_0(%arg0: i32, %arg1: i32) -> (i32, i32) {
    %c0_i32 = arith.constant 0 : i32
    %c0_i32_0 = arith.constant 0 : i32
    return %arg0, %c0_i32 : i32, i32
  }
  func.func @transform_1(%arg0: i32, %arg1: i32) -> (i32, i32) {
    %c0_i32 = arith.constant 0 : i32
    %c0_i32_0 = arith.constant 0 : i32
    return %c0_i32, %arg1 : i32, i32
  }
  func.func @transform_2(%arg0: i32, %arg1: i32) -> (i32, i32) {
    %c0_i32 = arith.constant 0 : i32
    %c0_i32_0 = arith.constant 0 : i32
    return %c0_i32, %arg1 : i32, i32
  }
  func.func @transform_3(%arg0: i32, %arg1: i32) -> (i32, i32) {
    %c0_i32 = arith.constant 0 : i32
    %c0_i32_0 = arith.constant 0 : i32
    return %c0_i32, %arg1 : i32, i32
  }
  func.func @transform_4(%arg0: i32, %arg1: i32) -> (i32, i32) {
    %c0_i32 = arith.constant 0 : i32
    return %arg0, %arg1 : i32, i32
  }
}

module attributes {stable_mosaic.version = 11 : i64} {
  func.func @_conv3x3_kernel(%arg0: i32, %arg1: i32, %arg2: i32, %arg3: memref<2x1x10x64xbf16, #tpu.memory_space<vmem>>, %arg4: memref<1x3x64x64xbf16, #tpu.memory_space<vmem>>, %arg5: memref<1x64xf32, #tpu.memory_space<vmem>>, %arg6: memref<1x64xf32, #tpu.memory_space<vmem>>, %arg7: memref<2x1x8x64xbf16, #tpu.memory_space<vmem>>, %arg8: memref<16x64xf32, #tpu.memory_space<vmem>>) attributes {dimension_semantics = [#tpu.dimension_semantics<parallel>, #tpu.dimension_semantics<parallel>, #tpu.dimension_semantics<arbitrary>], iteration_bounds = array<i64: 8, 1, 3>, scalar_prefetch = 0 : i64, scratch_operands = 1 : i64, tpu.core_type = #tpu.core_type<tc>, window_params = [{transform_indices = @transform_0, window_bounds = array<i64: 2, 1, 10, 64>}, {transform_indices = @transform_1, window_bounds = array<i64: 1, 3, 64, 64>}, {transform_indices = @transform_2, window_bounds = array<i64: 1, 64>}, {transform_indices = @transform_3, window_bounds = array<i64: 1, 64>}, {transform_indices = @transform_4, window_bounds = array<i64: 2, 1, 8, 64>}]} {
    %c0_i32 = arith.constant 0 : i32
    %0 = arith.cmpi eq, %arg2, %c0_i32 : i32
    %1 = arith.extui %0 : i1 to i32
    %c0_i32_0 = arith.constant 0 : i32
    %2 = arith.cmpi ne, %1, %c0_i32_0 : i32
    scf.if %2 {
      %cst_29 = arith.constant 0.000000e+00 : f32
      %29 = vector.broadcast %cst_29 : f32 to vector<16x64xf32>
      %c0_30 = arith.constant 0 : index
      %c0_31 = arith.constant 0 : index
      %30 = vector.load %arg8[%c0_30, %c0_31] : memref<16x64xf32, #tpu.memory_space<vmem>>, vector<16x64xf32>
      tpu.vector_store %arg8[%c0_30, %c0_31], %29 {strides = array<i32>} : memref<16x64xf32, #tpu.memory_space<vmem>>, vector<16x64xf32>,
    } else {
    }
    %c0 = arith.constant 0 : index
    %c0_1 = arith.constant 0 : index
    %c0_2 = arith.constant 0 : index
    %c0_3 = arith.constant 0 : index
    %3 = vector.load %arg3[%c0, %c0_1, %c0_2, %c0_3] : memref<2x1x10x64xbf16, #tpu.memory_space<vmem>>, vector<2x1x8x64xbf16>
    %4 = vector.shape_cast %3 : vector<2x1x8x64xbf16> to vector<2x8x64xbf16>
    %5 = vector.shape_cast %4 : vector<2x8x64xbf16> to vector<16x64xbf16>
    %c0_4 = arith.constant 0 : index
    %c0_5 = arith.constant 0 : index
    %c0_6 = arith.constant 0 : index
    %c0_7 = arith.constant 0 : index
    %6 = vector.load %arg4[%c0_4, %c0_5, %c0_6, %c0_7] : memref<1x3x64x64xbf16, #tpu.memory_space<vmem>>, vector<1x1x64x64xbf16>
    %7 = vector.shape_cast %6 : vector<1x1x64x64xbf16> to vector<64x64xbf16>
    %cst = arith.constant dense<0.000000e+00> : vector<16x64xf32>
    %8 = tpu.matmul %5, %7, %cst {dimension_numbers = #tpu.dot_dimension_numbers<[1], [0], [0], [1], [0, 0, 1, 1], [], []>} : vector<16x64xbf16>, vector<64x64xbf16>, vector<16x64xf32> -> vector<16x64xf32>
    %c0_8 = arith.constant 0 : index
    %c0_9 = arith.constant 0 : index
    %c1 = arith.constant 1 : index
    %c0_10 = arith.constant 0 : index
    %9 = vector.load %arg3[%c0_8, %c0_9, %c1, %c0_10] : memref<2x1x10x64xbf16, #tpu.memory_space<vmem>>, vector<2x1x8x64xbf16>
    %10 = vector.shape_cast %9 : vector<2x1x8x64xbf16> to vector<2x8x64xbf16>
    %11 = vector.shape_cast %10 : vector<2x8x64xbf16> to vector<16x64xbf16>
    %c0_11 = arith.constant 0 : index
    %c1_12 = arith.constant 1 : index
    %c0_13 = arith.constant 0 : index
    %c0_14 = arith.constant 0 : index
    %12 = vector.load %arg4[%c0_11, %c1_12, %c0_13, %c0_14] : memref<1x3x64x64xbf16, #tpu.memory_space<vmem>>, vector<1x1x64x64xbf16>
    %13 = vector.shape_cast %12 : vector<1x1x64x64xbf16> to vector<64x64xbf16>
    %cst_15 = arith.constant dense<0.000000e+00> : vector<16x64xf32>
    %14 = tpu.matmul %11, %13, %cst_15 {dimension_numbers = #tpu.dot_dimension_numbers<[1], [0], [0], [1], [0, 0, 1, 1], [], []>} : vector<16x64xbf16>, vector<64x64xbf16>, vector<16x64xf32> -> vector<16x64xf32>
    %15 = arith.addf %8, %14 : vector<16x64xf32>
    %c0_16 = arith.constant 0 : index
    %c0_17 = arith.constant 0 : index
    %c2 = arith.constant 2 : index
    %c0_18 = arith.constant 0 : index
    %16 = vector.load %arg3[%c0_16, %c0_17, %c2, %c0_18] : memref<2x1x10x64xbf16, #tpu.memory_space<vmem>>, vector<2x1x8x64xbf16>
    %17 = vector.shape_cast %16 : vector<2x1x8x64xbf16> to vector<2x8x64xbf16>
    %18 = vector.shape_cast %17 : vector<2x8x64xbf16> to vector<16x64xbf16>
    %c0_19 = arith.constant 0 : index
    %c2_20 = arith.constant 2 : index
    %c0_21 = arith.constant 0 : index
    %c0_22 = arith.constant 0 : index
    %19 = vector.load %arg4[%c0_19, %c2_20, %c0_21, %c0_22] : memref<1x3x64x64xbf16, #tpu.memory_space<vmem>>, vector<1x1x64x64xbf16>
    %20 = vector.shape_cast %19 : vector<1x1x64x64xbf16> to vector<64x64xbf16>
    %cst_23 = arith.constant dense<0.000000e+00> : vector<16x64xf32>
    %21 = tpu.matmul %18, %20, %cst_23 {dimension_numbers = #tpu.dot_dimension_numbers<[1], [0], [0], [1], [0, 0, 1, 1], [], []>} : vector<16x64xbf16>, vector<64x64xbf16>, vector<16x64xf32> -> vector<16x64xf32>
    %22 = arith.addf %15, %21 : vector<16x64xf32>
    %c0_24 = arith.constant 0 : index
    %c0_25 = arith.constant 0 : index
    %23 = vector.load %arg8[%c0_24, %c0_25] : memref<16x64xf32, #tpu.memory_space<vmem>>, vector<16x64xf32>
    %24 = arith.addf %23, %22 : vector<16x64xf32>
    %c0_26 = arith.constant 0 : index
    %c0_27 = arith.constant 0 : index
    %25 = vector.load %arg8[%c0_26, %c0_27] : memref<16x64xf32, #tpu.memory_space<vmem>>, vector<16x64xf32>
    tpu.vector_store %arg8[%c0_26, %c0_27], %24 {strides = array<i32>} : memref<16x64xf32, #tpu.memory_space<vmem>>, vector<16x64xf32>,
    %c2_i32 = arith.constant 2 : i32
    %26 = arith.cmpi eq, %arg2, %c2_i32 : i32
    %27 = arith.extui %26 : i1 to i32
    %c0_i32_28 = arith.constant 0 : i32
    %28 = arith.cmpi ne, %27, %c0_i32_28 : i32
    scf.if %28 {
      %c0_29 = arith.constant 0 : index
      %c0_30 = arith.constant 0 : index
      %29 = vector.load %arg8[%c0_29, %c0_30] : memref<16x64xf32, #tpu.memory_space<vmem>>, vector<16x64xf32>
      %c0_31 = arith.constant 0 : index
      %c0_32 = arith.constant 0 : index
      %30 = vector.load %arg5[%c0_31, %c0_32] : memref<1x64xf32, #tpu.memory_space<vmem>>, vector<1x64xf32>
      %31 = vector.broadcast %30 : vector<1x64xf32> to vector<16x64xf32>
      %32 = arith.mulf %29, %31 : vector<16x64xf32>
      %c0_33 = arith.constant 0 : index
      %c0_34 = arith.constant 0 : index
      %33 = vector.load %arg6[%c0_33, %c0_34] : memref<1x64xf32, #tpu.memory_space<vmem>>, vector<1x64xf32>
      %34 = vector.broadcast %33 : vector<1x64xf32> to vector<16x64xf32>
      %35 = arith.addf %32, %34 : vector<16x64xf32>
      %cst_35 = arith.constant 0.000000e+00 : f32
      %36 = vector.broadcast %cst_35 : f32 to vector<16x64xf32>
      %37 = arith.maximumf %35, %36 : vector<16x64xf32>
      %38 = vector.shape_cast %37 : vector<16x64xf32> to vector<2x1x8x64xf32>
      %39 = arith.truncf %38 : vector<2x1x8x64xf32> to vector<2x1x8x64xbf16>
      %c0_36 = arith.constant 0 : index
      %c0_37 = arith.constant 0 : index
      %c0_38 = arith.constant 0 : index
      %c0_39 = arith.constant 0 : index
      %40 = vector.load %arg7[%c0_36, %c0_37, %c0_38, %c0_39] : memref<2x1x8x64xbf16, #tpu.memory_space<vmem>>, vector<2x1x8x64xbf16>
      tpu.vector_store %arg7[%c0_36, %c0_37, %c0_38, %c0_39], %39 {strides = array<i32>} : memref<2x1x8x64xbf16, #tpu.memory_space<vmem>>, vector<2x1x8x64xbf16>,
    } else {
    }
    return
  }
  func.func @transform_0(%arg0: i32, %arg1: i32, %arg2: i32) -> (i32, i32, i32, i32) {
    %0 = arith.addi %arg0, %arg2 : i32
    %c0_i32 = arith.constant 0 : i32
    %c0_i32_0 = arith.constant 0 : i32
    %c0_i32_1 = arith.constant 0 : i32
    %c0_i32_2 = arith.constant 0 : i32
    return %c0_i32, %0, %c0_i32_0, %c0_i32_1 : i32, i32, i32, i32
  }
  func.func @transform_1(%arg0: i32, %arg1: i32, %arg2: i32) -> (i32, i32, i32, i32) {
    %c0_i32 = arith.constant 0 : i32
    %c0_i32_0 = arith.constant 0 : i32
    %c0_i32_1 = arith.constant 0 : i32
    return %arg2, %c0_i32, %c0_i32_0, %arg1 : i32, i32, i32, i32
  }
  func.func @transform_2(%arg0: i32, %arg1: i32, %arg2: i32) -> (i32, i32) {
    %c0_i32 = arith.constant 0 : i32
    %c0_i32_0 = arith.constant 0 : i32
    return %c0_i32, %arg1 : i32, i32
  }
  func.func @transform_3(%arg0: i32, %arg1: i32, %arg2: i32) -> (i32, i32) {
    %c0_i32 = arith.constant 0 : i32
    %c0_i32_0 = arith.constant 0 : i32
    return %c0_i32, %arg1 : i32, i32
  }
  func.func @transform_4(%arg0: i32, %arg1: i32, %arg2: i32) -> (i32, i32, i32, i32) {
    %c0_i32 = arith.constant 0 : i32
    %c0_i32_0 = arith.constant 0 : i32
    %c0_i32_1 = arith.constant 0 : i32
    return %c0_i32, %arg0, %c0_i32_0, %arg1 : i32, i32, i32, i32
  }
}

module attributes {stable_mosaic.version = 11 : i64} {
  func.func @_conv3x3_kernel(%arg0: i32, %arg1: i32, %arg2: i32, %arg3: memref<2x1x10x64xbf16, #tpu.memory_space<vmem>>, %arg4: memref<1x3x64x64xbf16, #tpu.memory_space<vmem>>, %arg5: memref<1x64xf32, #tpu.memory_space<vmem>>, %arg6: memref<1x64xf32, #tpu.memory_space<vmem>>, %arg7: memref<2x1x8x64xbf16, #tpu.memory_space<vmem>>, %arg8: memref<2x1x8x64xbf16, #tpu.memory_space<vmem>>, %arg9: memref<16x64xf32, #tpu.memory_space<vmem>>) attributes {dimension_semantics = [#tpu.dimension_semantics<parallel>, #tpu.dimension_semantics<parallel>, #tpu.dimension_semantics<arbitrary>], iteration_bounds = array<i64: 8, 1, 3>, scalar_prefetch = 0 : i64, scratch_operands = 1 : i64, tpu.core_type = #tpu.core_type<tc>, window_params = [{transform_indices = @transform_0, window_bounds = array<i64: 2, 1, 10, 64>}, {transform_indices = @transform_1, window_bounds = array<i64: 1, 3, 64, 64>}, {transform_indices = @transform_2, window_bounds = array<i64: 1, 64>}, {transform_indices = @transform_3, window_bounds = array<i64: 1, 64>}, {transform_indices = @transform_4, window_bounds = array<i64: 2, 1, 8, 64>}, {transform_indices = @transform_5, window_bounds = array<i64: 2, 1, 8, 64>}]} {
    %c0_i32 = arith.constant 0 : i32
    %0 = arith.cmpi eq, %arg2, %c0_i32 : i32
    %1 = arith.extui %0 : i1 to i32
    %c0_i32_0 = arith.constant 0 : i32
    %2 = arith.cmpi ne, %1, %c0_i32_0 : i32
    scf.if %2 {
      %cst_29 = arith.constant 0.000000e+00 : f32
      %29 = vector.broadcast %cst_29 : f32 to vector<16x64xf32>
      %c0_30 = arith.constant 0 : index
      %c0_31 = arith.constant 0 : index
      %30 = vector.load %arg9[%c0_30, %c0_31] : memref<16x64xf32, #tpu.memory_space<vmem>>, vector<16x64xf32>
      tpu.vector_store %arg9[%c0_30, %c0_31], %29 {strides = array<i32>} : memref<16x64xf32, #tpu.memory_space<vmem>>, vector<16x64xf32>,
    } else {
    }
    %c0 = arith.constant 0 : index
    %c0_1 = arith.constant 0 : index
    %c0_2 = arith.constant 0 : index
    %c0_3 = arith.constant 0 : index
    %3 = vector.load %arg3[%c0, %c0_1, %c0_2, %c0_3] : memref<2x1x10x64xbf16, #tpu.memory_space<vmem>>, vector<2x1x8x64xbf16>
    %4 = vector.shape_cast %3 : vector<2x1x8x64xbf16> to vector<2x8x64xbf16>
    %5 = vector.shape_cast %4 : vector<2x8x64xbf16> to vector<16x64xbf16>
    %c0_4 = arith.constant 0 : index
    %c0_5 = arith.constant 0 : index
    %c0_6 = arith.constant 0 : index
    %c0_7 = arith.constant 0 : index
    %6 = vector.load %arg4[%c0_4, %c0_5, %c0_6, %c0_7] : memref<1x3x64x64xbf16, #tpu.memory_space<vmem>>, vector<1x1x64x64xbf16>
    %7 = vector.shape_cast %6 : vector<1x1x64x64xbf16> to vector<64x64xbf16>
    %cst = arith.constant dense<0.000000e+00> : vector<16x64xf32>
    %8 = tpu.matmul %5, %7, %cst {dimension_numbers = #tpu.dot_dimension_numbers<[1], [0], [0], [1], [0, 0, 1, 1], [], []>} : vector<16x64xbf16>, vector<64x64xbf16>, vector<16x64xf32> -> vector<16x64xf32>
    %c0_8 = arith.constant 0 : index
    %c0_9 = arith.constant 0 : index
    %c1 = arith.constant 1 : index
    %c0_10 = arith.constant 0 : index
    %9 = vector.load %arg3[%c0_8, %c0_9, %c1, %c0_10] : memref<2x1x10x64xbf16, #tpu.memory_space<vmem>>, vector<2x1x8x64xbf16>
    %10 = vector.shape_cast %9 : vector<2x1x8x64xbf16> to vector<2x8x64xbf16>
    %11 = vector.shape_cast %10 : vector<2x8x64xbf16> to vector<16x64xbf16>
    %c0_11 = arith.constant 0 : index
    %c1_12 = arith.constant 1 : index
    %c0_13 = arith.constant 0 : index
    %c0_14 = arith.constant 0 : index
    %12 = vector.load %arg4[%c0_11, %c1_12, %c0_13, %c0_14] : memref<1x3x64x64xbf16, #tpu.memory_space<vmem>>, vector<1x1x64x64xbf16>
    %13 = vector.shape_cast %12 : vector<1x1x64x64xbf16> to vector<64x64xbf16>
    %cst_15 = arith.constant dense<0.000000e+00> : vector<16x64xf32>
    %14 = tpu.matmul %11, %13, %cst_15 {dimension_numbers = #tpu.dot_dimension_numbers<[1], [0], [0], [1], [0, 0, 1, 1], [], []>} : vector<16x64xbf16>, vector<64x64xbf16>, vector<16x64xf32> -> vector<16x64xf32>
    %15 = arith.addf %8, %14 : vector<16x64xf32>
    %c0_16 = arith.constant 0 : index
    %c0_17 = arith.constant 0 : index
    %c2 = arith.constant 2 : index
    %c0_18 = arith.constant 0 : index
    %16 = vector.load %arg3[%c0_16, %c0_17, %c2, %c0_18] : memref<2x1x10x64xbf16, #tpu.memory_space<vmem>>, vector<2x1x8x64xbf16>
    %17 = vector.shape_cast %16 : vector<2x1x8x64xbf16> to vector<2x8x64xbf16>
    %18 = vector.shape_cast %17 : vector<2x8x64xbf16> to vector<16x64xbf16>
    %c0_19 = arith.constant 0 : index
    %c2_20 = arith.constant 2 : index
    %c0_21 = arith.constant 0 : index
    %c0_22 = arith.constant 0 : index
    %19 = vector.load %arg4[%c0_19, %c2_20, %c0_21, %c0_22] : memref<1x3x64x64xbf16, #tpu.memory_space<vmem>>, vector<1x1x64x64xbf16>
    %20 = vector.shape_cast %19 : vector<1x1x64x64xbf16> to vector<64x64xbf16>
    %cst_23 = arith.constant dense<0.000000e+00> : vector<16x64xf32>
    %21 = tpu.matmul %18, %20, %cst_23 {dimension_numbers = #tpu.dot_dimension_numbers<[1], [0], [0], [1], [0, 0, 1, 1], [], []>} : vector<16x64xbf16>, vector<64x64xbf16>, vector<16x64xf32> -> vector<16x64xf32>
    %22 = arith.addf %15, %21 : vector<16x64xf32>
    %c0_24 = arith.constant 0 : index
    %c0_25 = arith.constant 0 : index
    %23 = vector.load %arg9[%c0_24, %c0_25] : memref<16x64xf32, #tpu.memory_space<vmem>>, vector<16x64xf32>
    %24 = arith.addf %23, %22 : vector<16x64xf32>
    %c0_26 = arith.constant 0 : index
    %c0_27 = arith.constant 0 : index
    %25 = vector.load %arg9[%c0_26, %c0_27] : memref<16x64xf32, #tpu.memory_space<vmem>>, vector<16x64xf32>
    tpu.vector_store %arg9[%c0_26, %c0_27], %24 {strides = array<i32>} : memref<16x64xf32, #tpu.memory_space<vmem>>, vector<16x64xf32>,
    %c2_i32 = arith.constant 2 : i32
    %26 = arith.cmpi eq, %arg2, %c2_i32 : i32
    %27 = arith.extui %26 : i1 to i32
    %c0_i32_28 = arith.constant 0 : i32
    %28 = arith.cmpi ne, %27, %c0_i32_28 : i32
    scf.if %28 {
      %c0_29 = arith.constant 0 : index
      %c0_30 = arith.constant 0 : index
      %29 = vector.load %arg9[%c0_29, %c0_30] : memref<16x64xf32, #tpu.memory_space<vmem>>, vector<16x64xf32>
      %c0_31 = arith.constant 0 : index
      %c0_32 = arith.constant 0 : index
      %30 = vector.load %arg5[%c0_31, %c0_32] : memref<1x64xf32, #tpu.memory_space<vmem>>, vector<1x64xf32>
      %31 = vector.broadcast %30 : vector<1x64xf32> to vector<16x64xf32>
      %32 = arith.mulf %29, %31 : vector<16x64xf32>
      %c0_33 = arith.constant 0 : index
      %c0_34 = arith.constant 0 : index
      %33 = vector.load %arg6[%c0_33, %c0_34] : memref<1x64xf32, #tpu.memory_space<vmem>>, vector<1x64xf32>
      %34 = vector.broadcast %33 : vector<1x64xf32> to vector<16x64xf32>
      %35 = arith.addf %32, %34 : vector<16x64xf32>
      %c0_35 = arith.constant 0 : index
      %c0_36 = arith.constant 0 : index
      %c0_37 = arith.constant 0 : index
      %c0_38 = arith.constant 0 : index
      %36 = vector.load %arg7[%c0_35, %c0_36, %c0_37, %c0_38] : memref<2x1x8x64xbf16, #tpu.memory_space<vmem>>, vector<2x1x8x64xbf16>
      %37 = vector.shape_cast %36 : vector<2x1x8x64xbf16> to vector<16x64xbf16>
      %38 = arith.extf %37 : vector<16x64xbf16> to vector<16x64xf32>
      %39 = arith.addf %35, %38 : vector<16x64xf32>
      %cst_39 = arith.constant 0.000000e+00 : f32
      %40 = vector.broadcast %cst_39 : f32 to vector<16x64xf32>
      %41 = arith.maximumf %39, %40 : vector<16x64xf32>
      %42 = vector.shape_cast %41 : vector<16x64xf32> to vector<2x1x8x64xf32>
      %43 = arith.truncf %42 : vector<2x1x8x64xf32> to vector<2x1x8x64xbf16>
      %c0_40 = arith.constant 0 : index
      %c0_41 = arith.constant 0 : index
      %c0_42 = arith.constant 0 : index
      %c0_43 = arith.constant 0 : index
      %44 = vector.load %arg8[%c0_40, %c0_41, %c0_42, %c0_43] : memref<2x1x8x64xbf16, #tpu.memory_space<vmem>>, vector<2x1x8x64xbf16>
      tpu.vector_store %arg8[%c0_40, %c0_41, %c0_42, %c0_43], %43 {strides = array<i32>} : memref<2x1x8x64xbf16, #tpu.memory_space<vmem>>, vector<2x1x8x64xbf16>,
    } else {
    }
    return
  }
  func.func @transform_0(%arg0: i32, %arg1: i32, %arg2: i32) -> (i32, i32, i32, i32) {
    %0 = arith.addi %arg0, %arg2 : i32
    %c0_i32 = arith.constant 0 : i32
    %c0_i32_0 = arith.constant 0 : i32
    %c0_i32_1 = arith.constant 0 : i32
    %c0_i32_2 = arith.constant 0 : i32
    return %c0_i32, %0, %c0_i32_0, %c0_i32_1 : i32, i32, i32, i32
  }
  func.func @transform_1(%arg0: i32, %arg1: i32, %arg2: i32) -> (i32, i32, i32, i32) {
    %c0_i32 = arith.constant 0 : i32
    %c0_i32_0 = arith.constant 0 : i32
    %c0_i32_1 = arith.constant 0 : i32
    return %arg2, %c0_i32, %c0_i32_0, %arg1 : i32, i32, i32, i32
  }
  func.func @transform_2(%arg0: i32, %arg1: i32, %arg2: i32) -> (i32, i32) {
    %c0_i32 = arith.constant 0 : i32
    %c0_i32_0 = arith.constant 0 : i32
    return %c0_i32, %arg1 : i32, i32
  }
  func.func @transform_3(%arg0: i32, %arg1: i32, %arg2: i32) -> (i32, i32) {
    %c0_i32 = arith.constant 0 : i32
    %c0_i32_0 = arith.constant 0 : i32
    return %c0_i32, %arg1 : i32, i32
  }
  func.func @transform_4(%arg0: i32, %arg1: i32, %arg2: i32) -> (i32, i32, i32, i32) {
    %c0_i32 = arith.constant 0 : i32
    %c0_i32_0 = arith.constant 0 : i32
    %c0_i32_1 = arith.constant 0 : i32
    return %c0_i32, %arg0, %c0_i32_0, %arg1 : i32, i32, i32, i32
  }
  func.func @transform_5(%arg0: i32, %arg1: i32, %arg2: i32) -> (i32, i32, i32, i32) {
    %c0_i32 = arith.constant 0 : i32
    %c0_i32_0 = arith.constant 0 : i32
    %c0_i32_1 = arith.constant 0 : i32
    return %c0_i32, %arg0, %c0_i32_0, %arg1 : i32, i32, i32, i32
  }
}

module attributes {stable_mosaic.version = 11 : i64} {
  func.func @_matmul_kernel_single(%arg0: i32, %arg1: i32, %arg2: memref<16x576xbf16, #tpu.memory_space<vmem>>, %arg3: memref<576x128xbf16, #tpu.memory_space<vmem>>, %arg4: memref<1x128xf32, #tpu.memory_space<vmem>>, %arg5: memref<1x128xf32, #tpu.memory_space<vmem>>, %arg6: memref<16x128xbf16, #tpu.memory_space<vmem>>) attributes {dimension_semantics = [#tpu.dimension_semantics<parallel>, #tpu.dimension_semantics<parallel>], iteration_bounds = array<i64: 2, 1>, scalar_prefetch = 0 : i64, scratch_operands = 0 : i64, tpu.core_type = #tpu.core_type<tc>, window_params = [{transform_indices = @transform_0, window_bounds = array<i64: 16, 576>}, {transform_indices = @transform_1, window_bounds = array<i64: 576, 128>}, {transform_indices = @transform_2, window_bounds = array<i64: 1, 128>}, {transform_indices = @transform_3, window_bounds = array<i64: 1, 128>}, {transform_indices = @transform_4, window_bounds = array<i64: 16, 128>}]} {
    %c0 = arith.constant 0 : index
    %c0_0 = arith.constant 0 : index
    %0 = vector.load %arg2[%c0, %c0_0] : memref<16x576xbf16, #tpu.memory_space<vmem>>, vector<16x576xbf16>
    %c0_1 = arith.constant 0 : index
    %c0_2 = arith.constant 0 : index
    %1 = vector.load %arg3[%c0_1, %c0_2] : memref<576x128xbf16, #tpu.memory_space<vmem>>, vector<576x128xbf16>
    %cst = arith.constant dense<0.000000e+00> : vector<16x128xf32>
    %2 = tpu.matmul %0, %1, %cst {dimension_numbers = #tpu.dot_dimension_numbers<[1], [0], [0], [1], [0, 0, 1, 1], [], []>} : vector<16x576xbf16>, vector<576x128xbf16>, vector<16x128xf32> -> vector<16x128xf32>
    %c0_3 = arith.constant 0 : index
    %c0_4 = arith.constant 0 : index
    %3 = vector.load %arg4[%c0_3, %c0_4] : memref<1x128xf32, #tpu.memory_space<vmem>>, vector<1x128xf32>
    %4 = vector.broadcast %3 : vector<1x128xf32> to vector<16x128xf32>
    %5 = arith.mulf %2, %4 : vector<16x128xf32>
    %c0_5 = arith.constant 0 : index
    %c0_6 = arith.constant 0 : index
    %6 = vector.load %arg5[%c0_5, %c0_6] : memref<1x128xf32, #tpu.memory_space<vmem>>, vector<1x128xf32>
    %7 = vector.broadcast %6 : vector<1x128xf32> to vector<16x128xf32>
    %8 = arith.addf %5, %7 : vector<16x128xf32>
    %cst_7 = arith.constant 0.000000e+00 : f32
    %9 = vector.broadcast %cst_7 : f32 to vector<16x128xf32>
    %10 = arith.maximumf %8, %9 : vector<16x128xf32>
    %11 = arith.truncf %10 : vector<16x128xf32> to vector<16x128xbf16>
    %c0_8 = arith.constant 0 : index
    %c0_9 = arith.constant 0 : index
    %12 = vector.load %arg6[%c0_8, %c0_9] : memref<16x128xbf16, #tpu.memory_space<vmem>>, vector<16x128xbf16>
    tpu.vector_store %arg6[%c0_8, %c0_9], %11 {strides = array<i32>} : memref<16x128xbf16, #tpu.memory_space<vmem>>, vector<16x128xbf16>,
    return
  }
  func.func @transform_0(%arg0: i32, %arg1: i32) -> (i32, i32) {
    %c0_i32 = arith.constant 0 : i32
    %c0_i32_0 = arith.constant 0 : i32
    return %arg0, %c0_i32 : i32, i32
  }
  func.func @transform_1(%arg0: i32, %arg1: i32) -> (i32, i32) {
    %c0_i32 = arith.constant 0 : i32
    %c0_i32_0 = arith.constant 0 : i32
    return %c0_i32, %arg1 : i32, i32
  }
  func.func @transform_2(%arg0: i32, %arg1: i32) -> (i32, i32) {
    %c0_i32 = arith.constant 0 : i32
    %c0_i32_0 = arith.constant 0 : i32
    return %c0_i32, %arg1 : i32, i32
  }
  func.func @transform_3(%arg0: i32, %arg1: i32) -> (i32, i32) {
    %c0_i32 = arith.constant 0 : i32
    %c0_i32_0 = arith.constant 0 : i32
    return %c0_i32, %arg1 : i32, i32
  }
  func.func @transform_4(%arg0: i32, %arg1: i32) -> (i32, i32) {
    %c0_i32 = arith.constant 0 : i32
    return %arg0, %arg1 : i32, i32
  }
}

module attributes {stable_mosaic.version = 11 : i64} {
  func.func @_conv3x3_kernel(%arg0: i32, %arg1: i32, %arg2: i32, %arg3: memref<2x1x6x128xbf16, #tpu.memory_space<vmem>>, %arg4: memref<1x3x128x128xbf16, #tpu.memory_space<vmem>>, %arg5: memref<1x128xf32, #tpu.memory_space<vmem>>, %arg6: memref<1x128xf32, #tpu.memory_space<vmem>>, %arg7: memref<2x1x4x128xbf16, #tpu.memory_space<vmem>>, %arg8: memref<2x1x4x128xbf16, #tpu.memory_space<vmem>>, %arg9: memref<8x128xf32, #tpu.memory_space<vmem>>) attributes {dimension_semantics = [#tpu.dimension_semantics<parallel>, #tpu.dimension_semantics<parallel>, #tpu.dimension_semantics<arbitrary>], iteration_bounds = array<i64: 4, 1, 3>, scalar_prefetch = 0 : i64, scratch_operands = 1 : i64, tpu.core_type = #tpu.core_type<tc>, window_params = [{transform_indices = @transform_0, window_bounds = array<i64: 2, 1, 6, 128>}, {transform_indices = @transform_1, window_bounds = array<i64: 1, 3, 128, 128>}, {transform_indices = @transform_2, window_bounds = array<i64: 1, 128>}, {transform_indices = @transform_3, window_bounds = array<i64: 1, 128>}, {transform_indices = @transform_4, window_bounds = array<i64: 2, 1, 4, 128>}, {transform_indices = @transform_5, window_bounds = array<i64: 2, 1, 4, 128>}]} {
    %c0_i32 = arith.constant 0 : i32
    %0 = arith.cmpi eq, %arg2, %c0_i32 : i32
    %1 = arith.extui %0 : i1 to i32
    %c0_i32_0 = arith.constant 0 : i32
    %2 = arith.cmpi ne, %1, %c0_i32_0 : i32
    scf.if %2 {
      %cst_29 = arith.constant 0.000000e+00 : f32
      %29 = vector.broadcast %cst_29 : f32 to vector<8x128xf32>
      %c0_30 = arith.constant 0 : index
      %c0_31 = arith.constant 0 : index
      %30 = vector.load %arg9[%c0_30, %c0_31] : memref<8x128xf32, #tpu.memory_space<vmem>>, vector<8x128xf32>
      tpu.vector_store %arg9[%c0_30, %c0_31], %29 {strides = array<i32>} : memref<8x128xf32, #tpu.memory_space<vmem>>, vector<8x128xf32>,
    } else {
    }
    %c0 = arith.constant 0 : index
    %c0_1 = arith.constant 0 : index
    %c0_2 = arith.constant 0 : index
    %c0_3 = arith.constant 0 : index
    %3 = vector.load %arg3[%c0, %c0_1, %c0_2, %c0_3] : memref<2x1x6x128xbf16, #tpu.memory_space<vmem>>, vector<2x1x4x128xbf16>
    %4 = vector.shape_cast %3 : vector<2x1x4x128xbf16> to vector<2x4x128xbf16>
    %5 = vector.shape_cast %4 : vector<2x4x128xbf16> to vector<8x128xbf16>
    %c0_4 = arith.constant 0 : index
    %c0_5 = arith.constant 0 : index
    %c0_6 = arith.constant 0 : index
    %c0_7 = arith.constant 0 : index
    %6 = vector.load %arg4[%c0_4, %c0_5, %c0_6, %c0_7] : memref<1x3x128x128xbf16, #tpu.memory_space<vmem>>, vector<1x1x128x128xbf16>
    %7 = vector.shape_cast %6 : vector<1x1x128x128xbf16> to vector<128x128xbf16>
    %cst = arith.constant dense<0.000000e+00> : vector<8x128xf32>
    %8 = tpu.matmul %5, %7, %cst {dimension_numbers = #tpu.dot_dimension_numbers<[1], [0], [0], [1], [0, 0, 1, 1], [], []>} : vector<8x128xbf16>, vector<128x128xbf16>, vector<8x128xf32> -> vector<8x128xf32>
    %c0_8 = arith.constant 0 : index
    %c0_9 = arith.constant 0 : index
    %c1 = arith.constant 1 : index
    %c0_10 = arith.constant 0 : index
    %9 = vector.load %arg3[%c0_8, %c0_9, %c1, %c0_10] : memref<2x1x6x128xbf16, #tpu.memory_space<vmem>>, vector<2x1x4x128xbf16>
    %10 = vector.shape_cast %9 : vector<2x1x4x128xbf16> to vector<2x4x128xbf16>
    %11 = vector.shape_cast %10 : vector<2x4x128xbf16> to vector<8x128xbf16>
    %c0_11 = arith.constant 0 : index
    %c1_12 = arith.constant 1 : index
    %c0_13 = arith.constant 0 : index
    %c0_14 = arith.constant 0 : index
    %12 = vector.load %arg4[%c0_11, %c1_12, %c0_13, %c0_14] : memref<1x3x128x128xbf16, #tpu.memory_space<vmem>>, vector<1x1x128x128xbf16>
    %13 = vector.shape_cast %12 : vector<1x1x128x128xbf16> to vector<128x128xbf16>
    %cst_15 = arith.constant dense<0.000000e+00> : vector<8x128xf32>
    %14 = tpu.matmul %11, %13, %cst_15 {dimension_numbers = #tpu.dot_dimension_numbers<[1], [0], [0], [1], [0, 0, 1, 1], [], []>} : vector<8x128xbf16>, vector<128x128xbf16>, vector<8x128xf32> -> vector<8x128xf32>
    %15 = arith.addf %8, %14 : vector<8x128xf32>
    %c0_16 = arith.constant 0 : index
    %c0_17 = arith.constant 0 : index
    %c2 = arith.constant 2 : index
    %c0_18 = arith.constant 0 : index
    %16 = vector.load %arg3[%c0_16, %c0_17, %c2, %c0_18] : memref<2x1x6x128xbf16, #tpu.memory_space<vmem>>, vector<2x1x4x128xbf16>
    %17 = vector.shape_cast %16 : vector<2x1x4x128xbf16> to vector<2x4x128xbf16>
    %18 = vector.shape_cast %17 : vector<2x4x128xbf16> to vector<8x128xbf16>
    %c0_19 = arith.constant 0 : index
    %c2_20 = arith.constant 2 : index
    %c0_21 = arith.constant 0 : index
    %c0_22 = arith.constant 0 : index
    %19 = vector.load %arg4[%c0_19, %c2_20, %c0_21, %c0_22] : memref<1x3x128x128xbf16, #tpu.memory_space<vmem>>, vector<1x1x128x128xbf16>
    %20 = vector.shape_cast %19 : vector<1x1x128x128xbf16> to vector<128x128xbf16>
    %cst_23 = arith.constant dense<0.000000e+00> : vector<8x128xf32>
    %21 = tpu.matmul %18, %20, %cst_23 {dimension_numbers = #tpu.dot_dimension_numbers<[1], [0], [0], [1], [0, 0, 1, 1], [], []>} : vector<8x128xbf16>, vector<128x128xbf16>, vector<8x128xf32> -> vector<8x128xf32>
    %22 = arith.addf %15, %21 : vector<8x128xf32>
    %c0_24 = arith.constant 0 : index
    %c0_25 = arith.constant 0 : index
    %23 = vector.load %arg9[%c0_24, %c0_25] : memref<8x128xf32, #tpu.memory_space<vmem>>, vector<8x128xf32>
    %24 = arith.addf %23, %22 : vector<8x128xf32>
    %c0_26 = arith.constant 0 : index
    %c0_27 = arith.constant 0 : index
    %25 = vector.load %arg9[%c0_26, %c0_27] : memref<8x128xf32, #tpu.memory_space<vmem>>, vector<8x128xf32>
    tpu.vector_store %arg9[%c0_26, %c0_27], %24 {strides = array<i32>} : memref<8x128xf32, #tpu.memory_space<vmem>>, vector<8x128xf32>,
    %c2_i32 = arith.constant 2 : i32
    %26 = arith.cmpi eq, %arg2, %c2_i32 : i32
    %27 = arith.extui %26 : i1 to i32
    %c0_i32_28 = arith.constant 0 : i32
    %28 = arith.cmpi ne, %27, %c0_i32_28 : i32
    scf.if %28 {
      %c0_29 = arith.constant 0 : index
      %c0_30 = arith.constant 0 : index
      %29 = vector.load %arg9[%c0_29, %c0_30] : memref<8x128xf32, #tpu.memory_space<vmem>>, vector<8x128xf32>
      %c0_31 = arith.constant 0 : index
      %c0_32 = arith.constant 0 : index
      %30 = vector.load %arg5[%c0_31, %c0_32] : memref<1x128xf32, #tpu.memory_space<vmem>>, vector<1x128xf32>
      %31 = vector.broadcast %30 : vector<1x128xf32> to vector<8x128xf32>
      %32 = arith.mulf %29, %31 : vector<8x128xf32>
      %c0_33 = arith.constant 0 : index
      %c0_34 = arith.constant 0 : index
      %33 = vector.load %arg6[%c0_33, %c0_34] : memref<1x128xf32, #tpu.memory_space<vmem>>, vector<1x128xf32>
      %34 = vector.broadcast %33 : vector<1x128xf32> to vector<8x128xf32>
      %35 = arith.addf %32, %34 : vector<8x128xf32>
      %c0_35 = arith.constant 0 : index
      %c0_36 = arith.constant 0 : index
      %c0_37 = arith.constant 0 : index
      %c0_38 = arith.constant 0 : index
      %36 = vector.load %arg7[%c0_35, %c0_36, %c0_37, %c0_38] : memref<2x1x4x128xbf16, #tpu.memory_space<vmem>>, vector<2x1x4x128xbf16>
      %37 = vector.shape_cast %36 : vector<2x1x4x128xbf16> to vector<8x128xbf16>
      %38 = arith.extf %37 : vector<8x128xbf16> to vector<8x128xf32>
      %39 = arith.addf %35, %38 : vector<8x128xf32>
      %cst_39 = arith.constant 0.000000e+00 : f32
      %40 = vector.broadcast %cst_39 : f32 to vector<8x128xf32>
      %41 = arith.maximumf %39, %40 : vector<8x128xf32>
      %42 = vector.shape_cast %41 : vector<8x128xf32> to vector<2x1x4x128xf32>
      %43 = arith.truncf %42 : vector<2x1x4x128xf32> to vector<2x1x4x128xbf16>
      %c0_40 = arith.constant 0 : index
      %c0_41 = arith.constant 0 : index
      %c0_42 = arith.constant 0 : index
      %c0_43 = arith.constant 0 : index
      %44 = vector.load %arg8[%c0_40, %c0_41, %c0_42, %c0_43] : memref<2x1x4x128xbf16, #tpu.memory_space<vmem>>, vector<2x1x4x128xbf16>
      tpu.vector_store %arg8[%c0_40, %c0_41, %c0_42, %c0_43], %43 {strides = array<i32>} : memref<2x1x4x128xbf16, #tpu.memory_space<vmem>>, vector<2x1x4x128xbf16>,
    } else {
    }
    return
  }
  func.func @transform_0(%arg0: i32, %arg1: i32, %arg2: i32) -> (i32, i32, i32, i32) {
    %0 = arith.addi %arg0, %arg2 : i32
    %c0_i32 = arith.constant 0 : i32
    %c0_i32_0 = arith.constant 0 : i32
    %c0_i32_1 = arith.constant 0 : i32
    %c0_i32_2 = arith.constant 0 : i32
    return %c0_i32, %0, %c0_i32_0, %c0_i32_1 : i32, i32, i32, i32
  }
  func.func @transform_1(%arg0: i32, %arg1: i32, %arg2: i32) -> (i32, i32, i32, i32) {
    %c0_i32 = arith.constant 0 : i32
    %c0_i32_0 = arith.constant 0 : i32
    %c0_i32_1 = arith.constant 0 : i32
    return %arg2, %c0_i32, %c0_i32_0, %arg1 : i32, i32, i32, i32
  }
  func.func @transform_2(%arg0: i32, %arg1: i32, %arg2: i32) -> (i32, i32) {
    %c0_i32 = arith.constant 0 : i32
    %c0_i32_0 = arith.constant 0 : i32
    return %c0_i32, %arg1 : i32, i32
  }
  func.func @transform_3(%arg0: i32, %arg1: i32, %arg2: i32) -> (i32, i32) {
    %c0_i32 = arith.constant 0 : i32
    %c0_i32_0 = arith.constant 0 : i32
    return %c0_i32, %arg1 : i32, i32
  }
  func.func @transform_4(%arg0: i32, %arg1: i32, %arg2: i32) -> (i32, i32, i32, i32) {
    %c0_i32 = arith.constant 0 : i32
    %c0_i32_0 = arith.constant 0 : i32
    %c0_i32_1 = arith.constant 0 : i32
    return %c0_i32, %arg0, %c0_i32_0, %arg1 : i32, i32, i32, i32
  }
  func.func @transform_5(%arg0: i32, %arg1: i32, %arg2: i32) -> (i32, i32, i32, i32) {
    %c0_i32 = arith.constant 0 : i32
    %c0_i32_0 = arith.constant 0 : i32
    %c0_i32_1 = arith.constant 0 : i32
    return %c0_i32, %arg0, %c0_i32_0, %arg1 : i32, i32, i32, i32
  }
}

module attributes {stable_mosaic.version = 11 : i64} {
  func.func @_matmul_kernel_single(%arg0: i32, %arg1: i32, %arg2: memref<16x64xbf16, #tpu.memory_space<vmem>>, %arg3: memref<64x128xbf16, #tpu.memory_space<vmem>>, %arg4: memref<1x128xf32, #tpu.memory_space<vmem>>, %arg5: memref<1x128xf32, #tpu.memory_space<vmem>>, %arg6: memref<16x128xbf16, #tpu.memory_space<vmem>>) attributes {dimension_semantics = [#tpu.dimension_semantics<parallel>, #tpu.dimension_semantics<parallel>], iteration_bounds = array<i64: 2, 1>, scalar_prefetch = 0 : i64, scratch_operands = 0 : i64, tpu.core_type = #tpu.core_type<tc>, window_params = [{transform_indices = @transform_0, window_bounds = array<i64: 16, 64>}, {transform_indices = @transform_1, window_bounds = array<i64: 64, 128>}, {transform_indices = @transform_2, window_bounds = array<i64: 1, 128>}, {transform_indices = @transform_3, window_bounds = array<i64: 1, 128>}, {transform_indices = @transform_4, window_bounds = array<i64: 16, 128>}]} {
    %c0 = arith.constant 0 : index
    %c0_0 = arith.constant 0 : index
    %0 = vector.load %arg2[%c0, %c0_0] : memref<16x64xbf16, #tpu.memory_space<vmem>>, vector<16x64xbf16>
    %c0_1 = arith.constant 0 : index
    %c0_2 = arith.constant 0 : index
    %1 = vector.load %arg3[%c0_1, %c0_2] : memref<64x128xbf16, #tpu.memory_space<vmem>>, vector<64x128xbf16>
    %cst = arith.constant dense<0.000000e+00> : vector<16x128xf32>
    %2 = tpu.matmul %0, %1, %cst {dimension_numbers = #tpu.dot_dimension_numbers<[1], [0], [0], [1], [0, 0, 1, 1], [], []>} : vector<16x64xbf16>, vector<64x128xbf16>, vector<16x128xf32> -> vector<16x128xf32>
    %c0_3 = arith.constant 0 : index
    %c0_4 = arith.constant 0 : index
    %3 = vector.load %arg4[%c0_3, %c0_4] : memref<1x128xf32, #tpu.memory_space<vmem>>, vector<1x128xf32>
    %4 = vector.broadcast %3 : vector<1x128xf32> to vector<16x128xf32>
    %5 = arith.mulf %2, %4 : vector<16x128xf32>
    %c0_5 = arith.constant 0 : index
    %c0_6 = arith.constant 0 : index
    %6 = vector.load %arg5[%c0_5, %c0_6] : memref<1x128xf32, #tpu.memory_space<vmem>>, vector<1x128xf32>
    %7 = vector.broadcast %6 : vector<1x128xf32> to vector<16x128xf32>
    %8 = arith.addf %5, %7 : vector<16x128xf32>
    %9 = arith.truncf %8 : vector<16x128xf32> to vector<16x128xbf16>
    %c0_7 = arith.constant 0 : index
    %c0_8 = arith.constant 0 : index
    %10 = vector.load %arg6[%c0_7, %c0_8] : memref<16x128xbf16, #tpu.memory_space<vmem>>, vector<16x128xbf16>
    tpu.vector_store %arg6[%c0_7, %c0_8], %9 {strides = array<i32>} : memref<16x128xbf16, #tpu.memory_space<vmem>>, vector<16x128xbf16>,
    return
  }
  func.func @transform_0(%arg0: i32, %arg1: i32) -> (i32, i32) {
    %c0_i32 = arith.constant 0 : i32
    %c0_i32_0 = arith.constant 0 : i32
    return %arg0, %c0_i32 : i32, i32
  }
  func.func @transform_1(%arg0: i32, %arg1: i32) -> (i32, i32) {
    %c0_i32 = arith.constant 0 : i32
    %c0_i32_0 = arith.constant 0 : i32
    return %c0_i32, %arg1 : i32, i32
  }
  func.func @transform_2(%arg0: i32, %arg1: i32) -> (i32, i32) {
    %c0_i32 = arith.constant 0 : i32
    %c0_i32_0 = arith.constant 0 : i32
    return %c0_i32, %arg1 : i32, i32
  }
  func.func @transform_3(%arg0: i32, %arg1: i32) -> (i32, i32) {
    %c0_i32 = arith.constant 0 : i32
    %c0_i32_0 = arith.constant 0 : i32
    return %c0_i32, %arg1 : i32, i32
  }
  func.func @transform_4(%arg0: i32, %arg1: i32) -> (i32, i32) {
    %c0_i32 = arith.constant 0 : i32
    return %arg0, %arg1 : i32, i32
  }
}

module attributes {stable_mosaic.version = 11 : i64} {
  func.func @_matmul_kernel_single(%arg0: i32, %arg1: i32, %arg2: memref<8x1152xbf16, #tpu.memory_space<vmem>>, %arg3: memref<1152x256xbf16, #tpu.memory_space<vmem>>, %arg4: memref<1x256xf32, #tpu.memory_space<vmem>>, %arg5: memref<1x256xf32, #tpu.memory_space<vmem>>, %arg6: memref<8x256xbf16, #tpu.memory_space<vmem>>) attributes {dimension_semantics = [#tpu.dimension_semantics<parallel>, #tpu.dimension_semantics<parallel>], iteration_bounds = array<i64: 1, 1>, scalar_prefetch = 0 : i64, scratch_operands = 0 : i64, tpu.core_type = #tpu.core_type<tc>, window_params = [{transform_indices = @transform_0, window_bounds = array<i64: 8, 1152>}, {transform_indices = @transform_1, window_bounds = array<i64: 1152, 256>}, {transform_indices = @transform_2, window_bounds = array<i64: 1, 256>}, {transform_indices = @transform_3, window_bounds = array<i64: 1, 256>}, {transform_indices = @transform_4, window_bounds = array<i64: 8, 256>}]} {
    %c0 = arith.constant 0 : index
    %c0_0 = arith.constant 0 : index
    %0 = vector.load %arg2[%c0, %c0_0] : memref<8x1152xbf16, #tpu.memory_space<vmem>>, vector<8x1152xbf16>
    %c0_1 = arith.constant 0 : index
    %c0_2 = arith.constant 0 : index
    %1 = vector.load %arg3[%c0_1, %c0_2] : memref<1152x256xbf16, #tpu.memory_space<vmem>>, vector<1152x256xbf16>
    %cst = arith.constant dense<0.000000e+00> : vector<8x256xf32>
    %2 = tpu.matmul %0, %1, %cst {dimension_numbers = #tpu.dot_dimension_numbers<[1], [0], [0], [1], [0, 0, 1, 1], [], []>} : vector<8x1152xbf16>, vector<1152x256xbf16>, vector<8x256xf32> -> vector<8x256xf32>
    %c0_3 = arith.constant 0 : index
    %c0_4 = arith.constant 0 : index
    %3 = vector.load %arg4[%c0_3, %c0_4] : memref<1x256xf32, #tpu.memory_space<vmem>>, vector<1x256xf32>
    %4 = vector.broadcast %3 : vector<1x256xf32> to vector<8x256xf32>
    %5 = arith.mulf %2, %4 : vector<8x256xf32>
    %c0_5 = arith.constant 0 : index
    %c0_6 = arith.constant 0 : index
    %6 = vector.load %arg5[%c0_5, %c0_6] : memref<1x256xf32, #tpu.memory_space<vmem>>, vector<1x256xf32>
    %7 = vector.broadcast %6 : vector<1x256xf32> to vector<8x256xf32>
    %8 = arith.addf %5, %7 : vector<8x256xf32>
    %cst_7 = arith.constant 0.000000e+00 : f32
    %9 = vector.broadcast %cst_7 : f32 to vector<8x256xf32>
    %10 = arith.maximumf %8, %9 : vector<8x256xf32>
    %11 = arith.truncf %10 : vector<8x256xf32> to vector<8x256xbf16>
    %c0_8 = arith.constant 0 : index
    %c0_9 = arith.constant 0 : index
    %12 = vector.load %arg6[%c0_8, %c0_9] : memref<8x256xbf16, #tpu.memory_space<vmem>>, vector<8x256xbf16>
    tpu.vector_store %arg6[%c0_8, %c0_9], %11 {strides = array<i32>} : memref<8x256xbf16, #tpu.memory_space<vmem>>, vector<8x256xbf16>,
    return
  }
  func.func @transform_0(%arg0: i32, %arg1: i32) -> (i32, i32) {
    %c0_i32 = arith.constant 0 : i32
    %c0_i32_0 = arith.constant 0 : i32
    return %arg0, %c0_i32 : i32, i32
  }
  func.func @transform_1(%arg0: i32, %arg1: i32) -> (i32, i32) {
    %c0_i32 = arith.constant 0 : i32
    %c0_i32_0 = arith.constant 0 : i32
    return %c0_i32, %arg1 : i32, i32
  }
  func.func @transform_2(%arg0: i32, %arg1: i32) -> (i32, i32) {
    %c0_i32 = arith.constant 0 : i32
    %c0_i32_0 = arith.constant 0 : i32
    return %c0_i32, %arg1 : i32, i32
  }
  func.func @transform_3(%arg0: i32, %arg1: i32) -> (i32, i32) {
    %c0_i32 = arith.constant 0 : i32
    %c0_i32_0 = arith.constant 0 : i32
    return %c0_i32, %arg1 : i32, i32
  }
  func.func @transform_4(%arg0: i32, %arg1: i32) -> (i32, i32) {
    %c0_i32 = arith.constant 0 : i32
    return %arg0, %arg1 : i32, i32
  }
}

module attributes {stable_mosaic.version = 11 : i64} {
  func.func @_conv3x3_kernel(%arg0: i32, %arg1: i32, %arg2: i32, %arg3: memref<2x1x4x256xbf16, #tpu.memory_space<vmem>>, %arg4: memref<1x3x256x256xbf16, #tpu.memory_space<vmem>>, %arg5: memref<1x256xf32, #tpu.memory_space<vmem>>, %arg6: memref<1x256xf32, #tpu.memory_space<vmem>>, %arg7: memref<2x1x2x256xbf16, #tpu.memory_space<vmem>>, %arg8: memref<2x1x2x256xbf16, #tpu.memory_space<vmem>>, %arg9: memref<4x256xf32, #tpu.memory_space<vmem>>) attributes {dimension_semantics = [#tpu.dimension_semantics<parallel>, #tpu.dimension_semantics<parallel>, #tpu.dimension_semantics<arbitrary>], iteration_bounds = array<i64: 2, 1, 3>, scalar_prefetch = 0 : i64, scratch_operands = 1 : i64, tpu.core_type = #tpu.core_type<tc>, window_params = [{transform_indices = @transform_0, window_bounds = array<i64: 2, 1, 4, 256>}, {transform_indices = @transform_1, window_bounds = array<i64: 1, 3, 256, 256>}, {transform_indices = @transform_2, window_bounds = array<i64: 1, 256>}, {transform_indices = @transform_3, window_bounds = array<i64: 1, 256>}, {transform_indices = @transform_4, window_bounds = array<i64: 2, 1, 2, 256>}, {transform_indices = @transform_5, window_bounds = array<i64: 2, 1, 2, 256>}]} {
    %c0_i32 = arith.constant 0 : i32
    %0 = arith.cmpi eq, %arg2, %c0_i32 : i32
    %1 = arith.extui %0 : i1 to i32
    %c0_i32_0 = arith.constant 0 : i32
    %2 = arith.cmpi ne, %1, %c0_i32_0 : i32
    scf.if %2 {
      %cst_29 = arith.constant 0.000000e+00 : f32
      %29 = vector.broadcast %cst_29 : f32 to vector<4x256xf32>
      %c0_30 = arith.constant 0 : index
      %c0_31 = arith.constant 0 : index
      %30 = vector.load %arg9[%c0_30, %c0_31] : memref<4x256xf32, #tpu.memory_space<vmem>>, vector<4x256xf32>
      tpu.vector_store %arg9[%c0_30, %c0_31], %29 {strides = array<i32>} : memref<4x256xf32, #tpu.memory_space<vmem>>, vector<4x256xf32>,
    } else {
    }
    %c0 = arith.constant 0 : index
    %c0_1 = arith.constant 0 : index
    %c0_2 = arith.constant 0 : index
    %c0_3 = arith.constant 0 : index
    %3 = vector.load %arg3[%c0, %c0_1, %c0_2, %c0_3] : memref<2x1x4x256xbf16, #tpu.memory_space<vmem>>, vector<2x1x2x256xbf16>
    %4 = vector.shape_cast %3 : vector<2x1x2x256xbf16> to vector<2x2x256xbf16>
    %5 = vector.shape_cast %4 : vector<2x2x256xbf16> to vector<4x256xbf16>
    %c0_4 = arith.constant 0 : index
    %c0_5 = arith.constant 0 : index
    %c0_6 = arith.constant 0 : index
    %c0_7 = arith.constant 0 : index
    %6 = vector.load %arg4[%c0_4, %c0_5, %c0_6, %c0_7] : memref<1x3x256x256xbf16, #tpu.memory_space<vmem>>, vector<1x1x256x256xbf16>
    %7 = vector.shape_cast %6 : vector<1x1x256x256xbf16> to vector<256x256xbf16>
    %cst = arith.constant dense<0.000000e+00> : vector<4x256xf32>
    %8 = tpu.matmul %5, %7, %cst {dimension_numbers = #tpu.dot_dimension_numbers<[1], [0], [0], [1], [0, 0, 1, 1], [], []>} : vector<4x256xbf16>, vector<256x256xbf16>, vector<4x256xf32> -> vector<4x256xf32>
    %c0_8 = arith.constant 0 : index
    %c0_9 = arith.constant 0 : index
    %c1 = arith.constant 1 : index
    %c0_10 = arith.constant 0 : index
    %9 = vector.load %arg3[%c0_8, %c0_9, %c1, %c0_10] : memref<2x1x4x256xbf16, #tpu.memory_space<vmem>>, vector<2x1x2x256xbf16>
    %10 = vector.shape_cast %9 : vector<2x1x2x256xbf16> to vector<2x2x256xbf16>
    %11 = vector.shape_cast %10 : vector<2x2x256xbf16> to vector<4x256xbf16>
    %c0_11 = arith.constant 0 : index
    %c1_12 = arith.constant 1 : index
    %c0_13 = arith.constant 0 : index
    %c0_14 = arith.constant 0 : index
    %12 = vector.load %arg4[%c0_11, %c1_12, %c0_13, %c0_14] : memref<1x3x256x256xbf16, #tpu.memory_space<vmem>>, vector<1x1x256x256xbf16>
    %13 = vector.shape_cast %12 : vector<1x1x256x256xbf16> to vector<256x256xbf16>
    %cst_15 = arith.constant dense<0.000000e+00> : vector<4x256xf32>
    %14 = tpu.matmul %11, %13, %cst_15 {dimension_numbers = #tpu.dot_dimension_numbers<[1], [0], [0], [1], [0, 0, 1, 1], [], []>} : vector<4x256xbf16>, vector<256x256xbf16>, vector<4x256xf32> -> vector<4x256xf32>
    %15 = arith.addf %8, %14 : vector<4x256xf32>
    %c0_16 = arith.constant 0 : index
    %c0_17 = arith.constant 0 : index
    %c2 = arith.constant 2 : index
    %c0_18 = arith.constant 0 : index
    %16 = vector.load %arg3[%c0_16, %c0_17, %c2, %c0_18] : memref<2x1x4x256xbf16, #tpu.memory_space<vmem>>, vector<2x1x2x256xbf16>
    %17 = vector.shape_cast %16 : vector<2x1x2x256xbf16> to vector<2x2x256xbf16>
    %18 = vector.shape_cast %17 : vector<2x2x256xbf16> to vector<4x256xbf16>
    %c0_19 = arith.constant 0 : index
    %c2_20 = arith.constant 2 : index
    %c0_21 = arith.constant 0 : index
    %c0_22 = arith.constant 0 : index
    %19 = vector.load %arg4[%c0_19, %c2_20, %c0_21, %c0_22] : memref<1x3x256x256xbf16, #tpu.memory_space<vmem>>, vector<1x1x256x256xbf16>
    %20 = vector.shape_cast %19 : vector<1x1x256x256xbf16> to vector<256x256xbf16>
    %cst_23 = arith.constant dense<0.000000e+00> : vector<4x256xf32>
    %21 = tpu.matmul %18, %20, %cst_23 {dimension_numbers = #tpu.dot_dimension_numbers<[1], [0], [0], [1], [0, 0, 1, 1], [], []>} : vector<4x256xbf16>, vector<256x256xbf16>, vector<4x256xf32> -> vector<4x256xf32>
    %22 = arith.addf %15, %21 : vector<4x256xf32>
    %c0_24 = arith.constant 0 : index
    %c0_25 = arith.constant 0 : index
    %23 = vector.load %arg9[%c0_24, %c0_25] : memref<4x256xf32, #tpu.memory_space<vmem>>, vector<4x256xf32>
    %24 = arith.addf %23, %22 : vector<4x256xf32>
    %c0_26 = arith.constant 0 : index
    %c0_27 = arith.constant 0 : index
    %25 = vector.load %arg9[%c0_26, %c0_27] : memref<4x256xf32, #tpu.memory_space<vmem>>, vector<4x256xf32>
    tpu.vector_store %arg9[%c0_26, %c0_27], %24 {strides = array<i32>} : memref<4x256xf32, #tpu.memory_space<vmem>>, vector<4x256xf32>,
    %c2_i32 = arith.constant 2 : i32
    %26 = arith.cmpi eq, %arg2, %c2_i32 : i32
    %27 = arith.extui %26 : i1 to i32
    %c0_i32_28 = arith.constant 0 : i32
    %28 = arith.cmpi ne, %27, %c0_i32_28 : i32
    scf.if %28 {
      %c0_29 = arith.constant 0 : index
      %c0_30 = arith.constant 0 : index
      %29 = vector.load %arg9[%c0_29, %c0_30] : memref<4x256xf32, #tpu.memory_space<vmem>>, vector<4x256xf32>
      %c0_31 = arith.constant 0 : index
      %c0_32 = arith.constant 0 : index
      %30 = vector.load %arg5[%c0_31, %c0_32] : memref<1x256xf32, #tpu.memory_space<vmem>>, vector<1x256xf32>
      %31 = vector.broadcast %30 : vector<1x256xf32> to vector<4x256xf32>
      %32 = arith.mulf %29, %31 : vector<4x256xf32>
      %c0_33 = arith.constant 0 : index
      %c0_34 = arith.constant 0 : index
      %33 = vector.load %arg6[%c0_33, %c0_34] : memref<1x256xf32, #tpu.memory_space<vmem>>, vector<1x256xf32>
      %34 = vector.broadcast %33 : vector<1x256xf32> to vector<4x256xf32>
      %35 = arith.addf %32, %34 : vector<4x256xf32>
      %c0_35 = arith.constant 0 : index
      %c0_36 = arith.constant 0 : index
      %c0_37 = arith.constant 0 : index
      %c0_38 = arith.constant 0 : index
      %36 = vector.load %arg7[%c0_35, %c0_36, %c0_37, %c0_38] : memref<2x1x2x256xbf16, #tpu.memory_space<vmem>>, vector<2x1x2x256xbf16>
      %37 = vector.shape_cast %36 : vector<2x1x2x256xbf16> to vector<4x256xbf16>
      %38 = arith.extf %37 : vector<4x256xbf16> to vector<4x256xf32>
      %39 = arith.addf %35, %38 : vector<4x256xf32>
      %cst_39 = arith.constant 0.000000e+00 : f32
      %40 = vector.broadcast %cst_39 : f32 to vector<4x256xf32>
      %41 = arith.maximumf %39, %40 : vector<4x256xf32>
      %42 = vector.shape_cast %41 : vector<4x256xf32> to vector<2x1x2x256xf32>
      %43 = arith.truncf %42 : vector<2x1x2x256xf32> to vector<2x1x2x256xbf16>
      %c0_40 = arith.constant 0 : index
      %c0_41 = arith.constant 0 : index
      %c0_42 = arith.constant 0 : index
      %c0_43 = arith.constant 0 : index
      %44 = vector.load %arg8[%c0_40, %c0_41, %c0_42, %c0_43] : memref<2x1x2x256xbf16, #tpu.memory_space<vmem>>, vector<2x1x2x256xbf16>
      tpu.vector_store %arg8[%c0_40, %c0_41, %c0_42, %c0_43], %43 {strides = array<i32>} : memref<2x1x2x256xbf16, #tpu.memory_space<vmem>>, vector<2x1x2x256xbf16>,
    } else {
    }
    return
  }
  func.func @transform_0(%arg0: i32, %arg1: i32, %arg2: i32) -> (i32, i32, i32, i32) {
    %0 = arith.addi %arg0, %arg2 : i32
    %c0_i32 = arith.constant 0 : i32
    %c0_i32_0 = arith.constant 0 : i32
    %c0_i32_1 = arith.constant 0 : i32
    %c0_i32_2 = arith.constant 0 : i32
    return %c0_i32, %0, %c0_i32_0, %c0_i32_1 : i32, i32, i32, i32
  }
  func.func @transform_1(%arg0: i32, %arg1: i32, %arg2: i32) -> (i32, i32, i32, i32) {
    %c0_i32 = arith.constant 0 : i32
    %c0_i32_0 = arith.constant 0 : i32
    %c0_i32_1 = arith.constant 0 : i32
    return %arg2, %c0_i32, %c0_i32_0, %arg1 : i32, i32, i32, i32
  }
  func.func @transform_2(%arg0: i32, %arg1: i32, %arg2: i32) -> (i32, i32) {
    %c0_i32 = arith.constant 0 : i32
    %c0_i32_0 = arith.constant 0 : i32
    return %c0_i32, %arg1 : i32, i32
  }
  func.func @transform_3(%arg0: i32, %arg1: i32, %arg2: i32) -> (i32, i32) {
    %c0_i32 = arith.constant 0 : i32
    %c0_i32_0 = arith.constant 0 : i32
    return %c0_i32, %arg1 : i32, i32
  }
  func.func @transform_4(%arg0: i32, %arg1: i32, %arg2: i32) -> (i32, i32, i32, i32) {
    %c0_i32 = arith.constant 0 : i32
    %c0_i32_0 = arith.constant 0 : i32
    %c0_i32_1 = arith.constant 0 : i32
    return %c0_i32, %arg0, %c0_i32_0, %arg1 : i32, i32, i32, i32
  }
  func.func @transform_5(%arg0: i32, %arg1: i32, %arg2: i32) -> (i32, i32, i32, i32) {
    %c0_i32 = arith.constant 0 : i32
    %c0_i32_0 = arith.constant 0 : i32
    %c0_i32_1 = arith.constant 0 : i32
    return %c0_i32, %arg0, %c0_i32_0, %arg1 : i32, i32, i32, i32
  }
}

module attributes {stable_mosaic.version = 11 : i64} {
  func.func @_matmul_kernel_single(%arg0: i32, %arg1: i32, %arg2: memref<8x128xbf16, #tpu.memory_space<vmem>>, %arg3: memref<128x256xbf16, #tpu.memory_space<vmem>>, %arg4: memref<1x256xf32, #tpu.memory_space<vmem>>, %arg5: memref<1x256xf32, #tpu.memory_space<vmem>>, %arg6: memref<8x256xbf16, #tpu.memory_space<vmem>>) attributes {dimension_semantics = [#tpu.dimension_semantics<parallel>, #tpu.dimension_semantics<parallel>], iteration_bounds = array<i64: 1, 1>, scalar_prefetch = 0 : i64, scratch_operands = 0 : i64, tpu.core_type = #tpu.core_type<tc>, window_params = [{transform_indices = @transform_0, window_bounds = array<i64: 8, 128>}, {transform_indices = @transform_1, window_bounds = array<i64: 128, 256>}, {transform_indices = @transform_2, window_bounds = array<i64: 1, 256>}, {transform_indices = @transform_3, window_bounds = array<i64: 1, 256>}, {transform_indices = @transform_4, window_bounds = array<i64: 8, 256>}]} {
    %c0 = arith.constant 0 : index
    %c0_0 = arith.constant 0 : index
    %0 = vector.load %arg2[%c0, %c0_0] : memref<8x128xbf16, #tpu.memory_space<vmem>>, vector<8x128xbf16>
    %c0_1 = arith.constant 0 : index
    %c0_2 = arith.constant 0 : index
    %1 = vector.load %arg3[%c0_1, %c0_2] : memref<128x256xbf16, #tpu.memory_space<vmem>>, vector<128x256xbf16>
    %cst = arith.constant dense<0.000000e+00> : vector<8x256xf32>
    %2 = tpu.matmul %0, %1, %cst {dimension_numbers = #tpu.dot_dimension_numbers<[1], [0], [0], [1], [0, 0, 1, 1], [], []>} : vector<8x128xbf16>, vector<128x256xbf16>, vector<8x256xf32> -> vector<8x256xf32>
    %c0_3 = arith.constant 0 : index
    %c0_4 = arith.constant 0 : index
    %3 = vector.load %arg4[%c0_3, %c0_4] : memref<1x256xf32, #tpu.memory_space<vmem>>, vector<1x256xf32>
    %4 = vector.broadcast %3 : vector<1x256xf32> to vector<8x256xf32>
    %5 = arith.mulf %2, %4 : vector<8x256xf32>
    %c0_5 = arith.constant 0 : index
    %c0_6 = arith.constant 0 : index
    %6 = vector.load %arg5[%c0_5, %c0_6] : memref<1x256xf32, #tpu.memory_space<vmem>>, vector<1x256xf32>
    %7 = vector.broadcast %6 : vector<1x256xf32> to vector<8x256xf32>
    %8 = arith.addf %5, %7 : vector<8x256xf32>
    %9 = arith.truncf %8 : vector<8x256xf32> to vector<8x256xbf16>
    %c0_7 = arith.constant 0 : index
    %c0_8 = arith.constant 0 : index
    %10 = vector.load %arg6[%c0_7, %c0_8] : memref<8x256xbf16, #tpu.memory_space<vmem>>, vector<8x256xbf16>
    tpu.vector_store %arg6[%c0_7, %c0_8], %9 {strides = array<i32>} : memref<8x256xbf16, #tpu.memory_space<vmem>>, vector<8x256xbf16>,
    return
  }
  func.func @transform_0(%arg0: i32, %arg1: i32) -> (i32, i32) {
    %c0_i32 = arith.constant 0 : i32
    %c0_i32_0 = arith.constant 0 : i32
    return %arg0, %c0_i32 : i32, i32
  }
  func.func @transform_1(%arg0: i32, %arg1: i32) -> (i32, i32) {
    %c0_i32 = arith.constant 0 : i32
    %c0_i32_0 = arith.constant 0 : i32
    return %c0_i32, %arg1 : i32, i32
  }
  func.func @transform_2(%arg0: i32, %arg1: i32) -> (i32, i32) {
    %c0_i32 = arith.constant 0 : i32
    %c0_i32_0 = arith.constant 0 : i32
    return %c0_i32, %arg1 : i32, i32
  }
  func.func @transform_3(%arg0: i32, %arg1: i32) -> (i32, i32) {
    %c0_i32 = arith.constant 0 : i32
    %c0_i32_0 = arith.constant 0 : i32
    return %c0_i32, %arg1 : i32, i32
  }
  func.func @transform_4(%arg0: i32, %arg1: i32) -> (i32, i32) {
    %c0_i32 = arith.constant 0 : i32
    return %arg0, %arg1 : i32, i32
  }
}

module attributes {stable_mosaic.version = 11 : i64} {
  func.func @_matmul_kernel_single(%arg0: i32, %arg1: i32, %arg2: memref<2x2304xbf16, #tpu.memory_space<vmem>>, %arg3: memref<2304x512xbf16, #tpu.memory_space<vmem>>, %arg4: memref<1x512xf32, #tpu.memory_space<vmem>>, %arg5: memref<1x512xf32, #tpu.memory_space<vmem>>, %arg6: memref<2x512xbf16, #tpu.memory_space<vmem>>) attributes {dimension_semantics = [#tpu.dimension_semantics<parallel>, #tpu.dimension_semantics<parallel>], iteration_bounds = array<i64: 1, 1>, scalar_prefetch = 0 : i64, scratch_operands = 0 : i64, tpu.core_type = #tpu.core_type<tc>, window_params = [{transform_indices = @transform_0, window_bounds = array<i64: 2, 2304>}, {transform_indices = @transform_1, window_bounds = array<i64: 2304, 512>}, {transform_indices = @transform_2, window_bounds = array<i64: 1, 512>}, {transform_indices = @transform_3, window_bounds = array<i64: 1, 512>}, {transform_indices = @transform_4, window_bounds = array<i64: 2, 512>}]} {
    %c0 = arith.constant 0 : index
    %c0_0 = arith.constant 0 : index
    %0 = vector.load %arg2[%c0, %c0_0] : memref<2x2304xbf16, #tpu.memory_space<vmem>>, vector<2x2304xbf16>
    %c0_1 = arith.constant 0 : index
    %c0_2 = arith.constant 0 : index
    %1 = vector.load %arg3[%c0_1, %c0_2] : memref<2304x512xbf16, #tpu.memory_space<vmem>>, vector<2304x512xbf16>
    %cst = arith.constant dense<0.000000e+00> : vector<2x512xf32>
    %2 = tpu.matmul %0, %1, %cst {dimension_numbers = #tpu.dot_dimension_numbers<[1], [0], [0], [1], [0, 0, 1, 1], [], []>} : vector<2x2304xbf16>, vector<2304x512xbf16>, vector<2x512xf32> -> vector<2x512xf32>
    %c0_3 = arith.constant 0 : index
    %c0_4 = arith.constant 0 : index
    %3 = vector.load %arg4[%c0_3, %c0_4] : memref<1x512xf32, #tpu.memory_space<vmem>>, vector<1x512xf32>
    %4 = vector.broadcast %3 : vector<1x512xf32> to vector<2x512xf32>
    %5 = arith.mulf %2, %4 : vector<2x512xf32>
    %c0_5 = arith.constant 0 : index
    %c0_6 = arith.constant 0 : index
    %6 = vector.load %arg5[%c0_5, %c0_6] : memref<1x512xf32, #tpu.memory_space<vmem>>, vector<1x512xf32>
    %7 = vector.broadcast %6 : vector<1x512xf32> to vector<2x512xf32>
    %8 = arith.addf %5, %7 : vector<2x512xf32>
    %cst_7 = arith.constant 0.000000e+00 : f32
    %9 = vector.broadcast %cst_7 : f32 to vector<2x512xf32>
    %10 = arith.maximumf %8, %9 : vector<2x512xf32>
    %11 = arith.truncf %10 : vector<2x512xf32> to vector<2x512xbf16>
    %c0_8 = arith.constant 0 : index
    %c0_9 = arith.constant 0 : index
    %12 = vector.load %arg6[%c0_8, %c0_9] : memref<2x512xbf16, #tpu.memory_space<vmem>>, vector<2x512xbf16>
    tpu.vector_store %arg6[%c0_8, %c0_9], %11 {strides = array<i32>} : memref<2x512xbf16, #tpu.memory_space<vmem>>, vector<2x512xbf16>,
    return
  }
  func.func @transform_0(%arg0: i32, %arg1: i32) -> (i32, i32) {
    %c0_i32 = arith.constant 0 : i32
    %c0_i32_0 = arith.constant 0 : i32
    return %arg0, %c0_i32 : i32, i32
  }
  func.func @transform_1(%arg0: i32, %arg1: i32) -> (i32, i32) {
    %c0_i32 = arith.constant 0 : i32
    %c0_i32_0 = arith.constant 0 : i32
    return %c0_i32, %arg1 : i32, i32
  }
  func.func @transform_2(%arg0: i32, %arg1: i32) -> (i32, i32) {
    %c0_i32 = arith.constant 0 : i32
    %c0_i32_0 = arith.constant 0 : i32
    return %c0_i32, %arg1 : i32, i32
  }
  func.func @transform_3(%arg0: i32, %arg1: i32) -> (i32, i32) {
    %c0_i32 = arith.constant 0 : i32
    %c0_i32_0 = arith.constant 0 : i32
    return %c0_i32, %arg1 : i32, i32
  }
  func.func @transform_4(%arg0: i32, %arg1: i32) -> (i32, i32) {
    %c0_i32 = arith.constant 0 : i32
    return %arg0, %arg1 : i32, i32
  }
}

module attributes {stable_mosaic.version = 11 : i64} {
  func.func @_matmul_kernel_single(%arg0: i32, %arg1: i32, %arg2: memref<2x256xbf16, #tpu.memory_space<vmem>>, %arg3: memref<256x512xbf16, #tpu.memory_space<vmem>>, %arg4: memref<1x512xf32, #tpu.memory_space<vmem>>, %arg5: memref<1x512xf32, #tpu.memory_space<vmem>>, %arg6: memref<2x512xbf16, #tpu.memory_space<vmem>>) attributes {dimension_semantics = [#tpu.dimension_semantics<parallel>, #tpu.dimension_semantics<parallel>], iteration_bounds = array<i64: 1, 1>, scalar_prefetch = 0 : i64, scratch_operands = 0 : i64, tpu.core_type = #tpu.core_type<tc>, window_params = [{transform_indices = @transform_0, window_bounds = array<i64: 2, 256>}, {transform_indices = @transform_1, window_bounds = array<i64: 256, 512>}, {transform_indices = @transform_2, window_bounds = array<i64: 1, 512>}, {transform_indices = @transform_3, window_bounds = array<i64: 1, 512>}, {transform_indices = @transform_4, window_bounds = array<i64: 2, 512>}]} {
    %c0 = arith.constant 0 : index
    %c0_0 = arith.constant 0 : index
    %0 = vector.load %arg2[%c0, %c0_0] : memref<2x256xbf16, #tpu.memory_space<vmem>>, vector<2x256xbf16>
    %c0_1 = arith.constant 0 : index
    %c0_2 = arith.constant 0 : index
    %1 = vector.load %arg3[%c0_1, %c0_2] : memref<256x512xbf16, #tpu.memory_space<vmem>>, vector<256x512xbf16>
    %cst = arith.constant dense<0.000000e+00> : vector<2x512xf32>
    %2 = tpu.matmul %0, %1, %cst {dimension_numbers = #tpu.dot_dimension_numbers<[1], [0], [0], [1], [0, 0, 1, 1], [], []>} : vector<2x256xbf16>, vector<256x512xbf16>, vector<2x512xf32> -> vector<2x512xf32>
    %c0_3 = arith.constant 0 : index
    %c0_4 = arith.constant 0 : index
    %3 = vector.load %arg4[%c0_3, %c0_4] : memref<1x512xf32, #tpu.memory_space<vmem>>, vector<1x512xf32>
    %4 = vector.broadcast %3 : vector<1x512xf32> to vector<2x512xf32>
    %5 = arith.mulf %2, %4 : vector<2x512xf32>
    %c0_5 = arith.constant 0 : index
    %c0_6 = arith.constant 0 : index
    %6 = vector.load %arg5[%c0_5, %c0_6] : memref<1x512xf32, #tpu.memory_space<vmem>>, vector<1x512xf32>
    %7 = vector.broadcast %6 : vector<1x512xf32> to vector<2x512xf32>
    %8 = arith.addf %5, %7 : vector<2x512xf32>
    %9 = arith.truncf %8 : vector<2x512xf32> to vector<2x512xbf16>
    %c0_7 = arith.constant 0 : index
    %c0_8 = arith.constant 0 : index
    %10 = vector.load %arg6[%c0_7, %c0_8] : memref<2x512xbf16, #tpu.memory_space<vmem>>, vector<2x512xbf16>
    tpu.vector_store %arg6[%c0_7, %c0_8], %9 {strides = array<i32>} : memref<2x512xbf16, #tpu.memory_space<vmem>>, vector<2x512xbf16>,
    return
  }
  func.func @transform_0(%arg0: i32, %arg1: i32) -> (i32, i32) {
    %c0_i32 = arith.constant 0 : i32
    %c0_i32_0 = arith.constant 0 : i32
    return %arg0, %c0_i32 : i32, i32
  }
  func.func @transform_1(%arg0: i32, %arg1: i32) -> (i32, i32) {
    %c0_i32 = arith.constant 0 : i32
    %c0_i32_0 = arith.constant 0 : i32
    return %c0_i32, %arg1 : i32, i32
  }
  func.func @transform_2(%arg0: i32, %arg1: i32) -> (i32, i32) {
    %c0_i32 = arith.constant 0 : i32
    %c0_i32_0 = arith.constant 0 : i32
    return %c0_i32, %arg1 : i32, i32
  }
  func.func @transform_3(%arg0: i32, %arg1: i32) -> (i32, i32) {
    %c0_i32 = arith.constant 0 : i32
    %c0_i32_0 = arith.constant 0 : i32
    return %c0_i32, %arg1 : i32, i32
  }
  func.func @transform_4(%arg0: i32, %arg1: i32) -> (i32, i32) {
    %c0_i32 = arith.constant 0 : i32
    return %arg0, %arg1 : i32, i32
  }
}

module attributes {stable_mosaic.version = 11 : i64} {
  func.func @_conv3x3_kernel(%arg0: i32, %arg1: i32, %arg2: i32, %arg3: memref<2x1x3x512xbf16, #tpu.memory_space<vmem>>, %arg4: memref<1x3x512x256xbf16, #tpu.memory_space<vmem>>, %arg5: memref<1x256xf32, #tpu.memory_space<vmem>>, %arg6: memref<1x256xf32, #tpu.memory_space<vmem>>, %arg7: memref<2x1x1x256xbf16, #tpu.memory_space<vmem>>, %arg8: memref<2x1x1x256xbf16, #tpu.memory_space<vmem>>, %arg9: memref<2x256xf32, #tpu.memory_space<vmem>>) attributes {dimension_semantics = [#tpu.dimension_semantics<parallel>, #tpu.dimension_semantics<parallel>, #tpu.dimension_semantics<arbitrary>], iteration_bounds = array<i64: 1, 2, 3>, scalar_prefetch = 0 : i64, scratch_operands = 1 : i64, tpu.core_type = #tpu.core_type<tc>, window_params = [{transform_indices = @transform_0, window_bounds = array<i64: 2, 1, 3, 512>}, {transform_indices = @transform_1, window_bounds = array<i64: 1, 3, 512, 256>}, {transform_indices = @transform_2, window_bounds = array<i64: 1, 256>}, {transform_indices = @transform_3, window_bounds = array<i64: 1, 256>}, {transform_indices = @transform_4, window_bounds = array<i64: 2, 1, 1, 256>}, {transform_indices = @transform_5, window_bounds = array<i64: 2, 1, 1, 256>}]} {
    %c0_i32 = arith.constant 0 : i32
    %0 = arith.cmpi eq, %arg2, %c0_i32 : i32
    %1 = arith.extui %0 : i1 to i32
    %c0_i32_0 = arith.constant 0 : i32
    %2 = arith.cmpi ne, %1, %c0_i32_0 : i32
    scf.if %2 {
      %cst_29 = arith.constant 0.000000e+00 : f32
      %29 = vector.broadcast %cst_29 : f32 to vector<2x256xf32>
      %c0_30 = arith.constant 0 : index
      %c0_31 = arith.constant 0 : index
      %30 = vector.load %arg9[%c0_30, %c0_31] : memref<2x256xf32, #tpu.memory_space<vmem>>, vector<2x256xf32>
      tpu.vector_store %arg9[%c0_30, %c0_31], %29 {strides = array<i32>} : memref<2x256xf32, #tpu.memory_space<vmem>>, vector<2x256xf32>,
    } else {
    }
    %c0 = arith.constant 0 : index
    %c0_1 = arith.constant 0 : index
    %c0_2 = arith.constant 0 : index
    %c0_3 = arith.constant 0 : index
    %3 = vector.load %arg3[%c0, %c0_1, %c0_2, %c0_3] : memref<2x1x3x512xbf16, #tpu.memory_space<vmem>>, vector<2x1x1x512xbf16>
    %4 = vector.shape_cast %3 : vector<2x1x1x512xbf16> to vector<2x1x512xbf16>
    %5 = vector.shape_cast %4 : vector<2x1x512xbf16> to vector<2x512xbf16>
    %c0_4 = arith.constant 0 : index
    %c0_5 = arith.constant 0 : index
    %c0_6 = arith.constant 0 : index
    %c0_7 = arith.constant 0 : index
    %6 = vector.load %arg4[%c0_4, %c0_5, %c0_6, %c0_7] : memref<1x3x512x256xbf16, #tpu.memory_space<vmem>>, vector<1x1x512x256xbf16>
    %7 = vector.shape_cast %6 : vector<1x1x512x256xbf16> to vector<512x256xbf16>
    %cst = arith.constant dense<0.000000e+00> : vector<2x256xf32>
    %8 = tpu.matmul %5, %7, %cst {dimension_numbers = #tpu.dot_dimension_numbers<[1], [0], [0], [1], [0, 0, 1, 1], [], []>} : vector<2x512xbf16>, vector<512x256xbf16>, vector<2x256xf32> -> vector<2x256xf32>
    %c0_8 = arith.constant 0 : index
    %c0_9 = arith.constant 0 : index
    %c1 = arith.constant 1 : index
    %c0_10 = arith.constant 0 : index
    %9 = vector.load %arg3[%c0_8, %c0_9, %c1, %c0_10] : memref<2x1x3x512xbf16, #tpu.memory_space<vmem>>, vector<2x1x1x512xbf16>
    %10 = vector.shape_cast %9 : vector<2x1x1x512xbf16> to vector<2x1x512xbf16>
    %11 = vector.shape_cast %10 : vector<2x1x512xbf16> to vector<2x512xbf16>
    %c0_11 = arith.constant 0 : index
    %c1_12 = arith.constant 1 : index
    %c0_13 = arith.constant 0 : index
    %c0_14 = arith.constant 0 : index
    %12 = vector.load %arg4[%c0_11, %c1_12, %c0_13, %c0_14] : memref<1x3x512x256xbf16, #tpu.memory_space<vmem>>, vector<1x1x512x256xbf16>
    %13 = vector.shape_cast %12 : vector<1x1x512x256xbf16> to vector<512x256xbf16>
    %cst_15 = arith.constant dense<0.000000e+00> : vector<2x256xf32>
    %14 = tpu.matmul %11, %13, %cst_15 {dimension_numbers = #tpu.dot_dimension_numbers<[1], [0], [0], [1], [0, 0, 1, 1], [], []>} : vector<2x512xbf16>, vector<512x256xbf16>, vector<2x256xf32> -> vector<2x256xf32>
    %15 = arith.addf %8, %14 : vector<2x256xf32>
    %c0_16 = arith.constant 0 : index
    %c0_17 = arith.constant 0 : index
    %c2 = arith.constant 2 : index
    %c0_18 = arith.constant 0 : index
    %16 = vector.load %arg3[%c0_16, %c0_17, %c2, %c0_18] : memref<2x1x3x512xbf16, #tpu.memory_space<vmem>>, vector<2x1x1x512xbf16>
    %17 = vector.shape_cast %16 : vector<2x1x1x512xbf16> to vector<2x1x512xbf16>
    %18 = vector.shape_cast %17 : vector<2x1x512xbf16> to vector<2x512xbf16>
    %c0_19 = arith.constant 0 : index
    %c2_20 = arith.constant 2 : index
    %c0_21 = arith.constant 0 : index
    %c0_22 = arith.constant 0 : index
    %19 = vector.load %arg4[%c0_19, %c2_20, %c0_21, %c0_22] : memref<1x3x512x256xbf16, #tpu.memory_space<vmem>>, vector<1x1x512x256xbf16>
    %20 = vector.shape_cast %19 : vector<1x1x512x256xbf16> to vector<512x256xbf16>
    %cst_23 = arith.constant dense<0.000000e+00> : vector<2x256xf32>
    %21 = tpu.matmul %18, %20, %cst_23 {dimension_numbers = #tpu.dot_dimension_numbers<[1], [0], [0], [1], [0, 0, 1, 1], [], []>} : vector<2x512xbf16>, vector<512x256xbf16>, vector<2x256xf32> -> vector<2x256xf32>
    %22 = arith.addf %15, %21 : vector<2x256xf32>
    %c0_24 = arith.constant 0 : index
    %c0_25 = arith.constant 0 : index
    %23 = vector.load %arg9[%c0_24, %c0_25] : memref<2x256xf32, #tpu.memory_space<vmem>>, vector<2x256xf32>
    %24 = arith.addf %23, %22 : vector<2x256xf32>
    %c0_26 = arith.constant 0 : index
    %c0_27 = arith.constant 0 : index
    %25 = vector.load %arg9[%c0_26, %c0_27] : memref<2x256xf32, #tpu.memory_space<vmem>>, vector<2x256xf32>
    tpu.vector_store %arg9[%c0_26, %c0_27], %24 {strides = array<i32>} : memref<2x256xf32, #tpu.memory_space<vmem>>, vector<2x256xf32>,
    %c2_i32 = arith.constant 2 : i32
    %26 = arith.cmpi eq, %arg2, %c2_i32 : i32
    %27 = arith.extui %26 : i1 to i32
    %c0_i32_28 = arith.constant 0 : i32
    %28 = arith.cmpi ne, %27, %c0_i32_28 : i32
    scf.if %28 {
      %c0_29 = arith.constant 0 : index
      %c0_30 = arith.constant 0 : index
      %29 = vector.load %arg9[%c0_29, %c0_30] : memref<2x256xf32, #tpu.memory_space<vmem>>, vector<2x256xf32>
      %c0_31 = arith.constant 0 : index
      %c0_32 = arith.constant 0 : index
      %30 = vector.load %arg5[%c0_31, %c0_32] : memref<1x256xf32, #tpu.memory_space<vmem>>, vector<1x256xf32>
      %31 = vector.broadcast %30 : vector<1x256xf32> to vector<2x256xf32>
      %32 = arith.mulf %29, %31 : vector<2x256xf32>
      %c0_33 = arith.constant 0 : index
      %c0_34 = arith.constant 0 : index
      %33 = vector.load %arg6[%c0_33, %c0_34] : memref<1x256xf32, #tpu.memory_space<vmem>>, vector<1x256xf32>
      %34 = vector.broadcast %33 : vector<1x256xf32> to vector<2x256xf32>
      %35 = arith.addf %32, %34 : vector<2x256xf32>
      %c0_35 = arith.constant 0 : index
      %c0_36 = arith.constant 0 : index
      %c0_37 = arith.constant 0 : index
      %c0_38 = arith.constant 0 : index
      %36 = vector.load %arg7[%c0_35, %c0_36, %c0_37, %c0_38] : memref<2x1x1x256xbf16, #tpu.memory_space<vmem>>, vector<2x1x1x256xbf16>
      %37 = vector.shape_cast %36 : vector<2x1x1x256xbf16> to vector<2x256xbf16>
      %38 = arith.extf %37 : vector<2x256xbf16> to vector<2x256xf32>
      %39 = arith.addf %35, %38 : vector<2x256xf32>
      %cst_39 = arith.constant 0.000000e+00 : f32
      %40 = vector.broadcast %cst_39 : f32 to vector<2x256xf32>
      %41 = arith.maximumf %39, %40 : vector<2x256xf32>
      %42 = vector.shape_cast %41 : vector<2x256xf32> to vector<2x1x1x256xf32>
      %43 = arith.truncf %42 : vector<2x1x1x256xf32> to vector<2x1x1x256xbf16>
      %c0_40 = arith.constant 0 : index
      %c0_41 = arith.constant 0 : index
      %c0_42 = arith.constant 0 : index
      %c0_43 = arith.constant 0 : index
      %44 = vector.load %arg8[%c0_40, %c0_41, %c0_42, %c0_43] : memref<2x1x1x256xbf16, #tpu.memory_space<vmem>>, vector<2x1x1x256xbf16>
      tpu.vector_store %arg8[%c0_40, %c0_41, %c0_42, %c0_43], %43 {strides = array<i32>} : memref<2x1x1x256xbf16, #tpu.memory_space<vmem>>, vector<2x1x1x256xbf16>,
    } else {
    }
    return
  }
  func.func @transform_0(%arg0: i32, %arg1: i32, %arg2: i32) -> (i32, i32, i32, i32) {
    %0 = arith.addi %arg0, %arg2 : i32
    %c0_i32 = arith.constant 0 : i32
    %c0_i32_0 = arith.constant 0 : i32
    %c0_i32_1 = arith.constant 0 : i32
    %c0_i32_2 = arith.constant 0 : i32
    return %c0_i32, %0, %c0_i32_0, %c0_i32_1 : i32, i32, i32, i32
  }
  func.func @transform_1(%arg0: i32, %arg1: i32, %arg2: i32) -> (i32, i32, i32, i32) {
    %c0_i32 = arith.constant 0 : i32
    %c0_i32_0 = arith.constant 0 : i32
    %c0_i32_1 = arith.constant 0 : i32
    return %arg2, %c0_i32, %c0_i32_0, %arg1 : i32, i32, i32, i32
  }
  func.func @transform_2(%arg0: i32, %arg1: i32, %arg2: i32) -> (i32, i32) {
    %c0_i32 = arith.constant 0 : i32
    %c0_i32_0 = arith.constant 0 : i32
    return %c0_i32, %arg1 : i32, i32
  }
  func.func @transform_3(%arg0: i32, %arg1: i32, %arg2: i32) -> (i32, i32) {
    %c0_i32 = arith.constant 0 : i32
    %c0_i32_0 = arith.constant 0 : i32
    return %c0_i32, %arg1 : i32, i32
  }
  func.func @transform_4(%arg0: i32, %arg1: i32, %arg2: i32) -> (i32, i32, i32, i32) {
    %c0_i32 = arith.constant 0 : i32
    %c0_i32_0 = arith.constant 0 : i32
    %c0_i32_1 = arith.constant 0 : i32
    return %c0_i32, %arg0, %c0_i32_0, %arg1 : i32, i32, i32, i32
  }
  func.func @transform_5(%arg0: i32, %arg1: i32, %arg2: i32) -> (i32, i32, i32, i32) {
    %c0_i32 = arith.constant 0 : i32
    %c0_i32_0 = arith.constant 0 : i32
    %c0_i32_1 = arith.constant 0 : i32
    return %c0_i32, %arg0, %c0_i32_0, %arg1 : i32, i32, i32, i32
  }
}

module attributes {stable_mosaic.version = 11 : i64} {
  func.func @_avgpool_kernel(%arg0: i32, %arg1: memref<2x1x128xbf16, #tpu.memory_space<vmem>>, %arg2: memref<2x128xf32, #tpu.memory_space<vmem>>) attributes {dimension_semantics = [#tpu.dimension_semantics<parallel>], iteration_bounds = array<i64: 4>, scalar_prefetch = 0 : i64, scratch_operands = 0 : i64, tpu.core_type = #tpu.core_type<tc>, window_params = [{transform_indices = @transform_0, window_bounds = array<i64: 2, 1, 128>}, {transform_indices = @transform_1, window_bounds = array<i64: 2, 128>}]} {
    %c0 = arith.constant 0 : index
    %c0_0 = arith.constant 0 : index
    %c0_1 = arith.constant 0 : index
    %0 = vector.load %arg1[%c0, %c0_0, %c0_1] : memref<2x1x128xbf16, #tpu.memory_space<vmem>>, vector<2x1x128xbf16>
    %1 = arith.extf %0 : vector<2x1x128xbf16> to vector<2x1x128xf32>
    %cst = arith.constant dense<0.000000e+00> : vector<2x128xf32>
    %2 = vector.multi_reduction <add>, %1, %cst [1] : vector<2x1x128xf32> to vector<2x128xf32>
    %cst_2 = arith.constant 1.000000e+00 : f32
    %3 = vector.broadcast %cst_2 : f32 to vector<2x128xf32>
    %4 = arith.divf %2, %3 : vector<2x128xf32>
    %c0_3 = arith.constant 0 : index
    %c0_4 = arith.constant 0 : index
    %5 = vector.load %arg2[%c0_3, %c0_4] : memref<2x128xf32, #tpu.memory_space<vmem>>, vector<2x128xf32>
    tpu.vector_store %arg2[%c0_3, %c0_4], %4 {strides = array<i32>} : memref<2x128xf32, #tpu.memory_space<vmem>>, vector<2x128xf32>,
    return
  }
  func.func @transform_0(%arg0: i32) -> (i32, i32, i32) {
    %c0_i32 = arith.constant 0 : i32
    %c0_i32_0 = arith.constant 0 : i32
    %c0_i32_1 = arith.constant 0 : i32
    return %c0_i32, %c0_i32_0, %arg0 : i32, i32, i32
  }
  func.func @transform_1(%arg0: i32) -> (i32, i32) {
    %c0_i32 = arith.constant 0 : i32
    %c0_i32_0 = arith.constant 0 : i32
    return %c0_i32, %arg0 : i32, i32
  }
}

module attributes {stable_mosaic.version = 11 : i64} {
  func.func @_matmul_kernel_single(%arg0: i32, %arg1: i32, %arg2: memref<2x512xf32, #tpu.memory_space<vmem>>, %arg3: memref<512x10xf32, #tpu.memory_space<vmem>>, %arg4: memref<1x10xf32, #tpu.memory_space<vmem>>, %arg5: memref<1x10xf32, #tpu.memory_space<vmem>>, %arg6: memref<2x10xf32, #tpu.memory_space<vmem>>) attributes {dimension_semantics = [#tpu.dimension_semantics<parallel>, #tpu.dimension_semantics<parallel>], iteration_bounds = array<i64: 1, 1>, scalar_prefetch = 0 : i64, scratch_operands = 0 : i64, tpu.core_type = #tpu.core_type<tc>, window_params = [{transform_indices = @transform_0, window_bounds = array<i64: 2, 512>}, {transform_indices = @transform_1, window_bounds = array<i64: 512, 10>}, {transform_indices = @transform_2, window_bounds = array<i64: 1, 10>}, {transform_indices = @transform_3, window_bounds = array<i64: 1, 10>}, {transform_indices = @transform_4, window_bounds = array<i64: 2, 10>}]} {
    %c0 = arith.constant 0 : index
    %c0_0 = arith.constant 0 : index
    %0 = vector.load %arg2[%c0, %c0_0] : memref<2x512xf32, #tpu.memory_space<vmem>>, vector<2x512xf32>
    %c0_1 = arith.constant 0 : index
    %c0_2 = arith.constant 0 : index
    %1 = vector.load %arg3[%c0_1, %c0_2] : memref<512x10xf32, #tpu.memory_space<vmem>>, vector<512x10xf32>
    %cst = arith.constant dense<0.000000e+00> : vector<2x10xf32>
    %2 = tpu.matmul %0, %1, %cst {dimension_numbers = #tpu.dot_dimension_numbers<[1], [0], [0], [1], [0, 0, 1, 1], [], []>} : vector<2x512xf32>, vector<512x10xf32>, vector<2x10xf32> -> vector<2x10xf32>
    %c0_3 = arith.constant 0 : index
    %c0_4 = arith.constant 0 : index
    %3 = vector.load %arg4[%c0_3, %c0_4] : memref<1x10xf32, #tpu.memory_space<vmem>>, vector<1x10xf32>
    %4 = vector.broadcast %3 : vector<1x10xf32> to vector<2x10xf32>
    %5 = arith.mulf %2, %4 : vector<2x10xf32>
    %c0_5 = arith.constant 0 : index
    %c0_6 = arith.constant 0 : index
    %6 = vector.load %arg5[%c0_5, %c0_6] : memref<1x10xf32, #tpu.memory_space<vmem>>, vector<1x10xf32>
    %7 = vector.broadcast %6 : vector<1x10xf32> to vector<2x10xf32>
    %8 = arith.addf %5, %7 : vector<2x10xf32>
    %c0_7 = arith.constant 0 : index
    %c0_8 = arith.constant 0 : index
    %9 = vector.load %arg6[%c0_7, %c0_8] : memref<2x10xf32, #tpu.memory_space<vmem>>, vector<2x10xf32>
    tpu.vector_store %arg6[%c0_7, %c0_8], %8 {strides = array<i32>} : memref<2x10xf32, #tpu.memory_space<vmem>>, vector<2x10xf32>,
    return
  }
  func.func @transform_0(%arg0: i32, %arg1: i32) -> (i32, i32) {
    %c0_i32 = arith.constant 0 : i32
    %c0_i32_0 = arith.constant 0 : i32
    return %arg0, %c0_i32 : i32, i32
  }
  func.func @transform_1(%arg0: i32, %arg1: i32) -> (i32, i32) {
    %c0_i32 = arith.constant 0 : i32
    %c0_i32_0 = arith.constant 0 : i32
    return %c0_i32, %arg1 : i32, i32
  }
  func.func @transform_2(%arg0: i32, %arg1: i32) -> (i32, i32) {
    %c0_i32 = arith.constant 0 : i32
    %c0_i32_0 = arith.constant 0 : i32
    return %c0_i32, %arg1 : i32, i32
  }
  func.func @transform_3(%arg0: i32, %arg1: i32) -> (i32, i32) {
    %c0_i32 = arith.constant 0 : i32
    %c0_i32_0 = arith.constant 0 : i32
    return %c0_i32, %arg1 : i32, i32
  }
  func.func @transform_4(%arg0: i32, %arg1: i32) -> (i32, i32) {
    %c0_i32 = arith.constant 0 : i32
    return %arg0, %arg1 : i32, i32
  }
}

</mosaic_0001>

<bundles_post_ra>
// kernel: resnet_forward.14
= control target key start
LH: loop header
LB: loop body
LE: loop exit
PB: predicated region body
PF: predicated region fallthrough
CT: control target
= control target key end

     0   :  { %s1531_s15 = smov 0   ;;  %s1533_s16 = smov 0   ;;  %s1790_s0 = inlined_call_operand.vmem [shape: bf16[512,256], index: 0, kind: input, shape index: {}]   ;;  %s1791_s1 = inlined_call_operand.vmem [shape: bf16[256,64], index: 1, kind: input, shape index: {}]   ;;  %s1792_s2 = inlined_call_operand.vmem [shape: f32[1,64], index: 2, kind: input, shape index: {}]   ;;  %s1793_s3 = inlined_call_operand.vmem [shape: f32[1,64], index: 3, kind: input, shape index: {}]   ;;  %s1794_s4 = inlined_call_operand.vmem [shape: bf16[512,64], index: 4, kind: output, shape index: {}]  }
   0x1   :  { %s1535_s17 = smov 0  }
   0x2 LB: > { %s26_s18 = sadd.s32 1, %s1500_s16  ;;  %p1143_p0 = scmp.ge.s32.totalorder %s1504_s17, 1  ;;  %s1504_s17 = sphi %s1535_s17, %s14_s17   ;;  %s1500_s16 = sphi %s1533_s16, %s1796_s16   ;;  %s1496_s15 = sphi %s1531_s15, %s1795_s15  }
   0x3   : > { %p28_p1 = scmp.ge.s32.totalorder %s26_s18, 2  ;;  %p203_p2 = scmp.lt.s32.totalorder %s1504_s17, 3 }
   0x5   : > { %s1798_s18 = smov (%p28_p1, %s26_s18), 0  ;;  %p204_p3 = pnand %p1143_p0, %p203_p2 }
   0x6   : > { %v1418_v0 = vld [vmem:[%s1791_s1 + $0x40] sm:$0xff] (!%p204_p3)   ;;  %s1144_s21 = sshll.u32 (!%p204_p3), %s1496_s15, 5  ;;  %v1420_v2 = vld [vmem:[%s1791_s1 + $0x48] sm:$0xff] (!%p204_p3)   ;;  %v1422_v4 = vld [vmem:[%s1791_s1 + $0x50] sm:$0xff] (!%p204_p3)   ;;  %vm989_vm0 = vcmask (!%p204_p3), 519168  }
   0x7   : > { %207 = sbr.rel (%p204_p3) target bundleno = 321 (0x141), region = 36  ;;  %v1419_v1 = vld [vmem:[%s1791_s1] sm:$0xff] (!%p204_p3)   ;;  %1266 = vmatprep.subr.bf16.mxu0 (!%p204_p3), %v1418_v0  ;;  %1378 = vmatprep.subr.bf16.mxu1 (!%p204_p3), %v1418_v0  ;;  %v1421_v3 = vld [vmem:[%s1791_s1 + $0x8] sm:$0xff] (!%p204_p3)   ;;  %p244_p4 = scmp.lt.s32.totalorder (!%p204_p3), %s1144_s21, 63  ;;  %v1423_v5 = vld [vmem:[%s1791_s1 + $0x10] sm:$0xff] (!%p204_p3)  }
   0x8   : > { %1267 = vmatpush3.bf16.msra.mxu0 (!%p204_p3), %v1419_v1  ;;  %1386 = vmatpush3.bf16.msra.mxu1 (!%p204_p3), %v1419_v1  ;;  %v1424_v6 = vld [vmem:[%s1791_s1 + $0x58] sm:$0xff] (!%p204_p3)   ;;  %v1426_v8 = vld [vmem:[%s1791_s1 + $0x60] sm:$0xff] (!%p204_p3)   ;;  %v1428_v10 = vld [vmem:[%s1791_s1 + $0x68] sm:$0xff] (!%p204_p3)  }
   0x9   : > { %1268 = vmatprep.subr.bf16.mxu0 (!%p204_p3), %v1420_v2  ;;  %1379 = vmatprep.subr.bf16.mxu1 (!%p204_p3), %v1420_v2  ;;  %v1425_v7 = vld [vmem:[%s1791_s1 + $0x18] sm:$0xff] (!%p204_p3)   ;;  %v1427_v9 = vld [vmem:[%s1791_s1 + $0x20] sm:$0xff] (!%p204_p3)   ;;  %v1429_v13 = vld [vmem:[%s1791_s1 + $0x28] sm:$0xff] (!%p204_p3)  }
   0xa   : > { %v1430_v14 = vld [vmem:[%s1791_s1 + $0x70] sm:$0xff] (!%p204_p3)   ;;  %v1432_v16 = vld [vmem:[%s1791_s1 + $0x78] sm:$0xff] (!%p204_p3)   ;;  %v1640_v51 = vld [vmem:[%s1792_s2] ss:$0 sm:$0xff] (!%p204_p3) }
   0xb   : > { %v1431_v15 = vld [vmem:[%s1791_s1 + $0x30] sm:$0xff] (!%p204_p3)   ;;  %v1433_v17 = vld [vmem:[%s1791_s1 + $0x38] sm:$0xff] (!%p204_p3)   ;;  %v1645_v57 = vld [vmem:[%s1793_s3] ss:$0 sm:$0xff] (!%p204_p3) }
   0xc   : > { %1269 = vmatpush3.bf16.msra.mxu0 (!%p204_p3), %v1421_v3  ;;  %1387 = vmatpush3.bf16.msra.mxu1 (!%p204_p3), %v1421_v3 }
   0xd   : > { %1270 = vmatprep.subr.bf16.mxu0 (!%p204_p3), %v1422_v4  ;;  %1380 = vmatprep.subr.bf16.mxu1 (!%p204_p3), %v1422_v4 }
   0xe   : > { %s1800_s21 = smov (!%p244_p4, %s1144_s21), 63 }
   0xf   : > { %s1233_s10 = sshll.u32 %s1800_s21, 3  ;;  %s1148_s12 = sshll.u32 %s1800_s21, 2 }
  0x10   : > { %1271 = vmatpush3.bf16.msra.mxu0 %v1423_v5  ;;  %1388 = vmatpush3.bf16.msra.mxu1 %v1423_v5  ;;  %s1582_s15 = scalar_lea.vmem %s1790_s0, %s1233_s10  ;;  %s1659_s21 = scalar_lea.vmem %s1794_s4, %s1148_s12 }
  0x11   : > { %1272 = vmatprep.subr.bf16.mxu0 %v1424_v6  ;;  %1381 = vmatprep.subr.bf16.mxu1 %v1424_v6  ;;  %v1436_v11 = vld [vmem:[%s1582_s15 + $0x4] ss:$8 sps:$4 sm:$0xff]   ;;  %v1434_v18 = vld [vmem:[%s1582_s15] ss:$8 sps:$4 sm:$0xff]   ;;  %v1440_v20 = vld [vmem:[%s1582_s15 + $0x14] ss:$8 sps:$4 sm:$0xff]  }
  0x12   : > { %v1439_v12 = vld [vmem:[%s1582_s15 + $0x84] ss:$8 sps:$4 sm:$0xff]   ;;  %622 = vmatprep.mubr.bf16.mxu0 %v1436_v11  ;;  %v1437_v19 = vld [vmem:[%s1582_s15 + $0x80] ss:$8 sps:$4 sm:$0xff]   ;;  %v1442_v21 = vld [vmem:[%s1582_s15 + $0x94] ss:$8 sps:$4 sm:$0xff]  }
  0x13   : > { %686 = vmatprep.mubr.bf16.mxu1 %v1439_v12  ;;  %v1444_v22 = vld [vmem:[%s1582_s15 + $0x10] ss:$8 sps:$4 sm:$0xff]   ;;  %v1446_v24 = vld [vmem:[%s1582_s15 + $0x24] ss:$8 sps:$4 sm:$0xff]   ;;  %v1450_v26 = vld [vmem:[%s1582_s15 + $0x20] ss:$8 sps:$4 sm:$0xff]  }
  0x14   : > { %1273 = vmatpush3.bf16.msra.mxu0 %v1425_v7  ;;  %1389 = vmatpush3.bf16.msra.mxu1 %v1425_v7  ;;  %v1445_v23 = vld [vmem:[%s1582_s15 + $0x90] ss:$8 sps:$4 sm:$0xff]   ;;  %v1448_v25 = vld [vmem:[%s1582_s15 + $0xa4] ss:$8 sps:$4 sm:$0xff]   ;;  %v1451_v27 = vld [vmem:[%s1582_s15 + $0xa0] ss:$8 sps:$4 sm:$0xff]  }
  0x15   : > { %1274 = vmatprep.subr.bf16.mxu0 %v1426_v8  ;;  %1382 = vmatprep.subr.bf16.mxu1 %v1426_v8  ;;  %v1452_v28 = vld [vmem:[%s1582_s15 + $0x34] ss:$8 sps:$4 sm:$0xff]   ;;  %v1456_v30 = vld [vmem:[%s1582_s15 + $0x30] ss:$8 sps:$4 sm:$0xff]   ;;  %v1458_v32 = vld [vmem:[%s1582_s15 + $0x44] ss:$8 sps:$4 sm:$0xff]  }
  0x16   : > { %v1454_v29 = vld [vmem:[%s1582_s15 + $0xb4] ss:$8 sps:$4 sm:$0xff]   ;;  %v1457_v31 = vld [vmem:[%s1582_s15 + $0xb0] ss:$8 sps:$4 sm:$0xff]   ;;  %v1460_v33 = vld [vmem:[%s1582_s15 + $0xc4] ss:$8 sps:$4 sm:$0xff]  }
  0x17   : > { %v1462_v34 = vld [vmem:[%s1582_s15 + $0x40] ss:$8 sps:$4 sm:$0xff]   ;;  %v1464_v36 = vld [vmem:[%s1582_s15 + $0x54] ss:$8 sps:$4 sm:$0xff]   ;;  %v1468_v38 = vld [vmem:[%s1582_s15 + $0x50] ss:$8 sps:$4 sm:$0xff]  }
  0x18   : > { %1275 = vmatpush3.bf16.msra.mxu0 %v1427_v9  ;;  %1390 = vmatpush3.bf16.msra.mxu1 %v1427_v9  ;;  %v1463_v35 = vld [vmem:[%s1582_s15 + $0xc0] ss:$8 sps:$4 sm:$0xff]   ;;  %v1466_v37 = vld [vmem:[%s1582_s15 + $0xd4] ss:$8 sps:$4 sm:$0xff]   ;;  %v1469_v39 = vld [vmem:[%s1582_s15 + $0xd0] ss:$8 sps:$4 sm:$0xff]  }
  0x19   : > { %1276 = vmatprep.subr.bf16.mxu0 %v1428_v10  ;;  %1383 = vmatprep.subr.bf16.mxu1 %v1428_v10  ;;  %v1470_v40 = vld [vmem:[%s1582_s15 + $0x64] ss:$8 sps:$4 sm:$0xff]   ;;  %v1474_v42 = vld [vmem:[%s1582_s15 + $0x60] ss:$8 sps:$4 sm:$0xff]   ;;  %v1476_v44 = vld [vmem:[%s1582_s15 + $0x74] ss:$8 sps:$4 sm:$0xff]  }
  0x1a   : > { %v1472_v41 = vld [vmem:[%s1582_s15 + $0xe4] ss:$8 sps:$4 sm:$0xff]   ;;  %v1475_v43 = vld [vmem:[%s1582_s15 + $0xe0] ss:$8 sps:$4 sm:$0xff]   ;;  %v1478_v45 = vld [vmem:[%s1582_s15 + $0xf4] ss:$8 sps:$4 sm:$0xff]  }
  0x1b   : > { %v1480_v46 = vld [vmem:[%s1582_s15 + $0x70] ss:$8 sps:$4 sm:$0xff]  }
  0x1c   : > { %1277 = vmatpush3.bf16.msra.mxu0 %v1429_v13  ;;  %1391 = vmatpush3.bf16.msra.mxu1 %v1429_v13  ;;  %v1481_v47 = vld [vmem:[%s1582_s15 + $0xf0] ss:$8 sps:$4 sm:$0xff]  }
  0x1d   : > { %1278 = vmatprep.subr.bf16.mxu0 %v1430_v14  ;;  %1384 = vmatprep.subr.bf16.mxu1 %v1430_v14 }
  0x20   : > { %1279 = vmatpush3.bf16.msra.mxu0 %v1431_v15  ;;  %1392 = vmatpush3.bf16.msra.mxu1 %v1431_v15 }
  0x21   : > { %1280 = vmatprep.subr.bf16.mxu0 %v1432_v16  ;;  %1385 = vmatprep.subr.bf16.mxu1 %v1432_v16 }
  0x24   : > { %1281 = vmatpush3.bf16.msra.mxu0 %v1433_v17  ;;  %1393 = vmatpush3.bf16.msra.mxu1 %v1433_v17 }
  0x27   : > { %623 = vmatmul.mubr.bf16.vlgmr.msra.gmra.mrb[0].mxu0 %v1434_v18  ;;  %687 = vmatmul.mubr.bf16.vlgmr.msra.gmra.mrb[0].mxu1 %v1437_v19 }
  0x28   : > { %630 = vmatprep.mubr.bf16.mxu0 %v1440_v20  ;;  %694 = vmatprep.mubr.bf16.mxu1 %v1442_v21 }
  0x2f   : > { %631 = vmatmul.mubr.bf16.gmra.mrb[4].mxu0 %v1444_v22  ;;  %695 = vmatmul.mubr.bf16.gmra.mrb[4].mxu1 %v1445_v23 }
  0x30   : > { %638 = vmatprep.mubr.bf16.mxu0 %v1446_v24  ;;  %702 = vmatprep.mubr.bf16.mxu1 %v1448_v25 }
  0x37   : > { %639 = vmatmul.mubr.bf16.gmra.mrb[8].mxu0 %v1450_v26  ;;  %703 = vmatmul.mubr.bf16.gmra.mrb[8].mxu1 %v1451_v27 }
  0x38   : > { %646 = vmatprep.mubr.bf16.mxu0 %v1452_v28  ;;  %710 = vmatprep.mubr.bf16.mxu1 %v1454_v29 }
  0x3f   : > { %647 = vmatmul.mubr.bf16.gmra.mrb[12].mxu0 %v1456_v30  ;;  %711 = vmatmul.mubr.bf16.gmra.mrb[12].mxu1 %v1457_v31 }
  0x40   : > { %654 = vmatprep.mubr.bf16.mxu0 %v1458_v32  ;;  %718 = vmatprep.mubr.bf16.mxu1 %v1460_v33 }
  0x47   : > { %655 = vmatmul.mubr.bf16.gmra.mrb[16].mxu0 %v1462_v34  ;;  %719 = vmatmul.mubr.bf16.gmra.mrb[16].mxu1 %v1463_v35 }
  0x48   : > { %662 = vmatprep.mubr.bf16.mxu0 %v1464_v36  ;;  %726 = vmatprep.mubr.bf16.mxu1 %v1466_v37 }
  0x4f   : > { %663 = vmatmul.mubr.bf16.gmra.mrb[20].mxu0 %v1468_v38  ;;  %727 = vmatmul.mubr.bf16.gmra.mrb[20].mxu1 %v1469_v39 }
  0x50   : > { %670 = vmatprep.mubr.bf16.mxu0 %v1470_v40  ;;  %734 = vmatprep.mubr.bf16.mxu1 %v1472_v41 }
  0x57   : > { %671 = vmatmul.mubr.bf16.gmra.mrb[24].mxu0 %v1474_v42  ;;  %735 = vmatmul.mubr.bf16.gmra.mrb[24].mxu1 %v1475_v43 }
  0x58   : > { %678 = vmatprep.mubr.bf16.mxu0 %v1476_v44  ;;  %742 = vmatprep.mubr.bf16.mxu1 %v1478_v45 }
  0x5f   : > { %679 = vmatmul.mubr.bf16.gmra.mrb[28].mxu0 %v1480_v46  ;;  %743 = vmatmul.mubr.bf16.gmra.mrb[28].mxu1 %v1481_v47 }
  0xfa   : > { %v1282_v48 = vpop.f32.mrb[0].mxu0  ;;  %v1330_v49 = vpop.f32.mrb[0].mxu1 }
  0xfb   : > { %v1283_v50 = vpop.f32.mrb[1].mxu0  ;;  %v1331_v52 = vpop.f32.mrb[1].mxu1 }
  0xfc   : > { %v1284_v53 = vadd.f32 %v1283_v50, %v1282_v48  ;;  %v1332_v54 = vadd.f32 %v1331_v52, %v1330_v49  ;;  %v1285_v55 = vpop.f32.mrb[2].mxu0  ;;  %v1333_v56 = vpop.f32.mrb[2].mxu1 }
  0xfd   : > { %v1286_v58 = vpop.f32.mrb[3].mxu0  ;;  %v1334_v59 = vpop.f32.mrb[3].mxu1 }
  0xfe   : > { %v758_v60 = vmul.f32 %v1284_v53, %v1640_v51  ;;  %v774_v61 = vmul.f32 %v1332_v54, %v1640_v51  ;;  %v1287_v62 = vadd.f32 %v1286_v58, %v1285_v55  ;;  %v1335_v63 = vadd.f32 %v1334_v59, %v1333_v56 }
 0x100   : > { %v797_v0 = vadd.f32 %v1645_v57, %v758_v60  ;;  %v813_v1 = vadd.f32 %v1645_v57, %v774_v61  ;;  %v759_v2 = vmul.f32 %v1287_v62, %v1640_v51  ;;  %v775_v3 = vmul.f32 %v1335_v63, %v1640_v51 }
 0x102   : > { %v829_v4 = vmax.f32 %v797_v0, 0.0  ;;  %v845_v5 = vmax.f32 %v813_v1, 0.0  ;;  %v798_v6 = vadd.f32 %v1645_v57, %v759_v2  ;;  %v814_v7 = vadd.f32 %v1645_v57, %v775_v3  ;;  %v1288_v8 = vpop.f32.mrb[4].mxu0  ;;  %v1336_v9 = vpop.f32.mrb[4].mxu1 }
 0x103   : > { %v1289_v10 = vpop.f32.mrb[5].mxu0  ;;  %v1337_v11 = vpop.f32.mrb[5].mxu1 }
 0x104   : > { %v1234_v12 = vpack.c.bf16 %v829_v4, %v829_v4  ;;  %v1250_v13 = vpack.c.bf16 %v845_v5, %v845_v5  ;;  %v830_v14 = vmax.f32 %v798_v6, 0.0  ;;  %v846_v15 = vmax.f32 %v814_v7, 0.0  ;;  %v1291_v16 = vpop.f32.mrb[6].mxu0  ;;  %v1339_v17 = vpop.f32.mrb[6].mxu1 }
 0x105   : > { %v1290_v18 = vadd.f32 %v1289_v10, %v1288_v8  ;;  %v1338_v19 = vadd.f32 %v1337_v11, %v1336_v9  ;;  %v1292_v20 = vpop.f32.mrb[7].mxu0  ;;  %v1340_v21 = vpop.f32.mrb[7].mxu1 }
 0x106   : > { %990 = vst.msk [vmem:[%s1659_s21] sm:$0xf] %vm989_vm0, %v1234_v12  ;;  %1006 = vst.msk [vmem:[%s1659_s21 + $0x40] sm:$0xf] %vm989_vm0, %v1250_v13  ;;  %v1235_v22 = vpack.c.bf16 %v830_v14, %v830_v14  ;;  %v1251_v23 = vpack.c.bf16 %v846_v15, %v846_v15  ;;  %v1293_v24 = vadd.f32 %v1292_v20, %v1291_v16 }
 0x107   : > { %v1341_v25 = vadd.f32 %v1340_v21, %v1339_v17  ;;  %v760_v26 = vmul.f32 %v1290_v18, %v1640_v51  ;;  %v776_v27 = vmul.f32 %v1338_v19, %v1640_v51 }
 0x108   : > { %991 = vst.msk [vmem:[%s1659_s21 + $0x4] sm:$0xf] %vm989_vm0, %v1235_v22  ;;  %1007 = vst.msk [vmem:[%s1659_s21 + $0x44] sm:$0xf] %vm989_vm0, %v1251_v23  ;;  %v761_v28 = vmul.f32 %v1293_v24, %v1640_v51 }
 0x109   : > { %v777_v29 = vmul.f32 %v1341_v25, %v1640_v51  ;;  %v799_v30 = vadd.f32 %v1645_v57, %v760_v26  ;;  %v815_v31 = vadd.f32 %v1645_v57, %v776_v27 }
 0x10a   : > { %v800_v32 = vadd.f32 %v1645_v57, %v761_v28  ;;  %v1294_v34 = vpop.f32.mrb[8].mxu0  ;;  %v1342_v35 = vpop.f32.mrb[8].mxu1 }
 0x10b   : > { %v816_v33 = vadd.f32 %v1645_v57, %v777_v29  ;;  %v831_v36 = vmax.f32 %v799_v30, 0.0  ;;  %v847_v37 = vmax.f32 %v815_v31, 0.0  ;;  %v1295_v38 = vpop.f32.mrb[9].mxu0  ;;  %v1343_v39 = vpop.f32.mrb[9].mxu1 }
 0x10c   : > { %v832_v40 = vmax.f32 %v800_v32, 0.0  ;;  %v1296_v42 = vadd.f32 %v1295_v38, %v1294_v34  ;;  %v1344_v43 = vadd.f32 %v1343_v39, %v1342_v35  ;;  %v1297_v44 = vpop.f32.mrb[10].mxu0  ;;  %v1345_v45 = vpop.f32.mrb[10].mxu1 }
 0x10d   : > { %v848_v41 = vmax.f32 %v816_v33, 0.0  ;;  %v1236_v46 = vpack.c.bf16 %v831_v36, %v831_v36  ;;  %v1252_v47 = vpack.c.bf16 %v847_v37, %v847_v37  ;;  %v1298_v48 = vpop.f32.mrb[11].mxu0  ;;  %v1346_v49 = vpop.f32.mrb[11].mxu1 }
 0x10e   : > { %v1237_v50 = vpack.c.bf16 %v832_v40, %v832_v40  ;;  %v762_v53 = vmul.f32 %v1296_v42, %v1640_v51  ;;  %v778_v54 = vmul.f32 %v1344_v43, %v1640_v51  ;;  %v1299_v55 = vadd.f32 %v1298_v48, %v1297_v44 }
 0x10f   : > { %v1253_v52 = vpack.c.bf16 %v848_v41, %v848_v41  ;;  %992 = vst.msk [vmem:[%s1659_s21 + $0x8] sm:$0xf] %vm989_vm0, %v1236_v46  ;;  %1008 = vst.msk [vmem:[%s1659_s21 + $0x48] sm:$0xf] %vm989_vm0, %v1252_v47  ;;  %v1347_v56 = vadd.f32 %v1346_v49, %v1345_v45 }
 0x110   : > { %993 = vst.msk [vmem:[%s1659_s21 + $0xc] sm:$0xf] %vm989_vm0, %v1237_v50  ;;  %v801_v58 = vadd.f32 %v1645_v57, %v762_v53  ;;  %v817_v59 = vadd.f32 %v1645_v57, %v778_v54  ;;  %v763_v60 = vmul.f32 %v1299_v55, %v1640_v51 }
 0x111   : > { %1009 = vst.msk [vmem:[%s1659_s21 + $0x4c] sm:$0xf] %vm989_vm0, %v1253_v52  ;;  %v779_v61 = vmul.f32 %v1347_v56, %v1640_v51 }
 0x112   : > { %v833_v62 = vmax.f32 %v801_v58, 0.0  ;;  %v849_v63 = vmax.f32 %v817_v59, 0.0  ;;  %v1300_v0 = vpop.f32.mrb[12].mxu0  ;;  %v1348_v1 = vpop.f32.mrb[12].mxu1  ;;  %v802_v2 = vadd.f32 %v1645_v57, %v763_v60 }
 0x113   : > { %v818_v3 = vadd.f32 %v1645_v57, %v779_v61  ;;  %v1301_v4 = vpop.f32.mrb[13].mxu0  ;;  %v1349_v5 = vpop.f32.mrb[13].mxu1 }
 0x114   : > { %v1238_v6 = vpack.c.bf16 %v833_v62, %v833_v62  ;;  %v1254_v7 = vpack.c.bf16 %v849_v63, %v849_v63  ;;  %v1302_v8 = vadd.f32 %v1301_v4, %v1300_v0  ;;  %v1350_v9 = vadd.f32 %v1349_v5, %v1348_v1  ;;  %v1303_v10 = vpop.f32.mrb[14].mxu0  ;;  %v1351_v11 = vpop.f32.mrb[14].mxu1 }
 0x115   : > { %v834_v12 = vmax.f32 %v802_v2, 0.0  ;;  %v850_v13 = vmax.f32 %v818_v3, 0.0  ;;  %v1304_v14 = vpop.f32.mrb[15].mxu0  ;;  %v1352_v15 = vpop.f32.mrb[15].mxu1 }
 0x116   : > { %994 = vst.msk [vmem:[%s1659_s21 + $0x10] sm:$0xf] %vm989_vm0, %v1238_v6  ;;  %1010 = vst.msk [vmem:[%s1659_s21 + $0x50] sm:$0xf] %vm989_vm0, %v1254_v7  ;;  %v764_v16 = vmul.f32 %v1302_v8, %v1640_v51  ;;  %v780_v17 = vmul.f32 %v1350_v9, %v1640_v51  ;;  %v1305_v18 = vadd.f32 %v1304_v14, %v1303_v10 }
 0x117   : > { %v1353_v19 = vadd.f32 %v1352_v15, %v1351_v11  ;;  %v1239_v20 = vpack.c.bf16 %v834_v12, %v834_v12  ;;  %v1255_v21 = vpack.c.bf16 %v850_v13, %v850_v13 }
 0x118   : > { %v803_v22 = vadd.f32 %v1645_v57, %v764_v16  ;;  %v819_v23 = vadd.f32 %v1645_v57, %v780_v17  ;;  %v765_v24 = vmul.f32 %v1305_v18, %v1640_v51 }
 0x119   : > { %v781_v25 = vmul.f32 %v1353_v19, %v1640_v51  ;;  %995 = vst.msk [vmem:[%s1659_s21 + $0x14] sm:$0xf] %vm989_vm0, %v1239_v20  ;;  %1011 = vst.msk [vmem:[%s1659_s21 + $0x54] sm:$0xf] %vm989_vm0, %v1255_v21 }
 0x11a   : > { %v835_v26 = vmax.f32 %v803_v22, 0.0  ;;  %v851_v27 = vmax.f32 %v819_v23, 0.0  ;;  %v804_v28 = vadd.f32 %v1645_v57, %v765_v24  ;;  %v1306_v30 = vpop.f32.mrb[16].mxu0  ;;  %v1354_v31 = vpop.f32.mrb[16].mxu1 }
 0x11b   : > { %v820_v29 = vadd.f32 %v1645_v57, %v781_v25  ;;  %v1307_v32 = vpop.f32.mrb[17].mxu0  ;;  %v1355_v33 = vpop.f32.mrb[17].mxu1 }
 0x11c   : > { %v1240_v34 = vpack.c.bf16 %v835_v26, %v835_v26  ;;  %v1256_v35 = vpack.c.bf16 %v851_v27, %v851_v27  ;;  %v836_v36 = vmax.f32 %v804_v28, 0.0  ;;  %v1309_v38 = vpop.f32.mrb[18].mxu0  ;;  %v1357_v39 = vpop.f32.mrb[18].mxu1  ;;  %v1308_v40 = vadd.f32 %v1307_v32, %v1306_v30 }
 0x11d   : > { %v852_v37 = vmax.f32 %v820_v29, 0.0  ;;  %v1356_v41 = vadd.f32 %v1355_v33, %v1354_v31  ;;  %v1310_v42 = vpop.f32.mrb[19].mxu0  ;;  %v1358_v43 = vpop.f32.mrb[19].mxu1 }
 0x11e   : > { %996 = vst.msk [vmem:[%s1659_s21 + $0x18] sm:$0xf] %vm989_vm0, %v1240_v34  ;;  %1012 = vst.msk [vmem:[%s1659_s21 + $0x58] sm:$0xf] %vm989_vm0, %v1256_v35  ;;  %v1241_v44 = vpack.c.bf16 %v836_v36, %v836_v36  ;;  %v1311_v46 = vadd.f32 %v1310_v42, %v1309_v38  ;;  %v1359_v47 = vadd.f32 %v1358_v43, %v1357_v39 }
 0x11f   : > { %v1257_v45 = vpack.c.bf16 %v852_v37, %v852_v37  ;;  %v766_v48 = vmul.f32 %v1308_v40, %v1640_v51  ;;  %v782_v49 = vmul.f32 %v1356_v41, %v1640_v51 }
 0x120   : > { %997 = vst.msk [vmem:[%s1659_s21 + $0x1c] sm:$0xf] %vm989_vm0, %v1241_v44  ;;  %v767_v50 = vmul.f32 %v1311_v46, %v1640_v51  ;;  %v783_v52 = vmul.f32 %v1359_v47, %v1640_v51 }
 0x121   : > { %1013 = vst.msk [vmem:[%s1659_s21 + $0x5c] sm:$0xf] %vm989_vm0, %v1257_v45  ;;  %v805_v53 = vadd.f32 %v1645_v57, %v766_v48  ;;  %v821_v54 = vadd.f32 %v1645_v57, %v782_v49 }
 0x122   : > { %v806_v55 = vadd.f32 %v1645_v57, %v767_v50  ;;  %v822_v56 = vadd.f32 %v1645_v57, %v783_v52  ;;  %v1312_v58 = vpop.f32.mrb[20].mxu0  ;;  %v1360_v59 = vpop.f32.mrb[20].mxu1 }
 0x123   : > { %v837_v60 = vmax.f32 %v805_v53, 0.0  ;;  %v853_v61 = vmax.f32 %v821_v54, 0.0  ;;  %v1313_v62 = vpop.f32.mrb[21].mxu0  ;;  %v1361_v63 = vpop.f32.mrb[21].mxu1 }
 0x124   : > { %v838_v0 = vmax.f32 %v806_v55, 0.0  ;;  %v854_v1 = vmax.f32 %v822_v56, 0.0  ;;  %v1314_v2 = vadd.f32 %v1313_v62, %v1312_v58  ;;  %v1362_v3 = vadd.f32 %v1361_v63, %v1360_v59  ;;  %v1315_v4 = vpop.f32.mrb[22].mxu0  ;;  %v1363_v5 = vpop.f32.mrb[22].mxu1 }
 0x125   : > { %v1242_v6 = vpack.c.bf16 %v837_v60, %v837_v60  ;;  %v1258_v7 = vpack.c.bf16 %v853_v61, %v853_v61  ;;  %v1316_v8 = vpop.f32.mrb[23].mxu0  ;;  %v1364_v9 = vpop.f32.mrb[23].mxu1 }
 0x126   : > { %v1243_v10 = vpack.c.bf16 %v838_v0, %v838_v0  ;;  %v1259_v11 = vpack.c.bf16 %v854_v1, %v854_v1  ;;  %v768_v12 = vmul.f32 %v1314_v2, %v1640_v51  ;;  %v784_v13 = vmul.f32 %v1362_v3, %v1640_v51 }
 0x127   : > { %998 = vst.msk [vmem:[%s1659_s21 + $0x20] sm:$0xf] %vm989_vm0, %v1242_v6  ;;  %1014 = vst.msk [vmem:[%s1659_s21 + $0x60] sm:$0xf] %vm989_vm0, %v1258_v7  ;;  %v1317_v14 = vadd.f32 %v1316_v8, %v1315_v4  ;;  %v1365_v15 = vadd.f32 %v1364_v9, %v1363_v5 }
 0x128   : > { %999 = vst.msk [vmem:[%s1659_s21 + $0x24] sm:$0xf] %vm989_vm0, %v1243_v10  ;;  %1015 = vst.msk [vmem:[%s1659_s21 + $0x64] sm:$0xf] %vm989_vm0, %v1259_v11  ;;  %v807_v16 = vadd.f32 %v1645_v57, %v768_v12  ;;  %v823_v17 = vadd.f32 %v1645_v57, %v784_v13 }
 0x129   : > { %v769_v18 = vmul.f32 %v1317_v14, %v1640_v51  ;;  %v785_v19 = vmul.f32 %v1365_v15, %v1640_v51 }
 0x12a   : > { %v839_v20 = vmax.f32 %v807_v16, 0.0  ;;  %v855_v21 = vmax.f32 %v823_v17, 0.0  ;;  %v1318_v22 = vpop.f32.mrb[24].mxu0  ;;  %v1366_v23 = vpop.f32.mrb[24].mxu1 }
 0x12b   : > { %v808_v24 = vadd.f32 %v1645_v57, %v769_v18  ;;  %v824_v25 = vadd.f32 %v1645_v57, %v785_v19  ;;  %v1319_v26 = vpop.f32.mrb[25].mxu0  ;;  %v1367_v27 = vpop.f32.mrb[25].mxu1 }
 0x12c   : > { %v1244_v28 = vpack.c.bf16 %v839_v20, %v839_v20  ;;  %v1260_v29 = vpack.c.bf16 %v855_v21, %v855_v21  ;;  %v1320_v30 = vadd.f32 %v1319_v26, %v1318_v22  ;;  %v1368_v31 = vadd.f32 %v1367_v27, %v1366_v23  ;;  %v1321_v32 = vpop.f32.mrb[26].mxu0  ;;  %v1369_v33 = vpop.f32.mrb[26].mxu1 }
 0x12d   : > { %v840_v34 = vmax.f32 %v808_v24, 0.0  ;;  %v856_v35 = vmax.f32 %v824_v25, 0.0  ;;  %v1322_v36 = vpop.f32.mrb[27].mxu0  ;;  %v1370_v37 = vpop.f32.mrb[27].mxu1 }
 0x12e   : > { %1000 = vst.msk [vmem:[%s1659_s21 + $0x28] sm:$0xf] %vm989_vm0, %v1244_v28  ;;  %1016 = vst.msk [vmem:[%s1659_s21 + $0x68] sm:$0xf] %vm989_vm0, %v1260_v29  ;;  %v770_v38 = vmul.f32 %v1320_v30, %v1640_v51  ;;  %v786_v39 = vmul.f32 %v1368_v31, %v1640_v51  ;;  %v1323_v40 = vadd.f32 %v1322_v36, %v1321_v32 }
 0x12f   : > { %v1371_v41 = vadd.f32 %v1370_v37, %v1369_v33  ;;  %v1245_v42 = vpack.c.bf16 %v840_v34, %v840_v34  ;;  %v1261_v43 = vpack.c.bf16 %v856_v35, %v856_v35 }
 0x130   : > { %v809_v44 = vadd.f32 %v1645_v57, %v770_v38  ;;  %v825_v45 = vadd.f32 %v1645_v57, %v786_v39  ;;  %v771_v46 = vmul.f32 %v1323_v40, %v1640_v51 }
 0x131   : > { %v787_v47 = vmul.f32 %v1371_v41, %v1640_v51  ;;  %1001 = vst.msk [vmem:[%s1659_s21 + $0x2c] sm:$0xf] %vm989_vm0, %v1245_v42  ;;  %1017 = vst.msk [vmem:[%s1659_s21 + $0x6c] sm:$0xf] %vm989_vm0, %v1261_v43 }
 0x132   : > { %v841_v48 = vmax.f32 %v809_v44, 0.0  ;;  %v857_v49 = vmax.f32 %v825_v45, 0.0  ;;  %v810_v50 = vadd.f32 %v1645_v57, %v771_v46  ;;  %v1324_v53 = vpop.f32.mrb[28].mxu0  ;;  %v1372_v54 = vpop.f32.mrb[28].mxu1 }
 0x133   : > { %v826_v52 = vadd.f32 %v1645_v57, %v787_v47  ;;  %v1325_v55 = vpop.f32.mrb[29].mxu0  ;;  %v1373_v56 = vpop.f32.mrb[29].mxu1 }
 0x134   : > { %v1246_v58 = vpack.c.bf16 %v841_v48, %v841_v48  ;;  %v1262_v59 = vpack.c.bf16 %v857_v49, %v857_v49  ;;  %v842_v60 = vmax.f32 %v810_v50, 0.0  ;;  %v1327_v62 = vpop.f32.mrb[30].mxu0  ;;  %v1375_v63 = vpop.f32.mrb[30].mxu1  ;;  %v1326_v0 = vadd.f32 %v1325_v55, %v1324_v53 }
 0x135   : > { %v858_v61 = vmax.f32 %v826_v52, 0.0  ;;  %v1374_v1 = vadd.f32 %v1373_v56, %v1372_v54  ;;  %v1328_v2 = vpop.f32.mrb[31].mxu0  ;;  %v1376_v3 = vpop.f32.mrb[31].mxu1 }
 0x136   : > { %1002 = vst.msk [vmem:[%s1659_s21 + $0x30] sm:$0xf] %vm989_vm0, %v1246_v58  ;;  %1018 = vst.msk [vmem:[%s1659_s21 + $0x70] sm:$0xf] %vm989_vm0, %v1262_v59  ;;  %v1247_v4 = vpack.c.bf16 %v842_v60, %v842_v60  ;;  %v1329_v6 = vadd.f32 %v1328_v2, %v1327_v62  ;;  %v1377_v7 = vadd.f32 %v1376_v3, %v1375_v63 }
 0x137   : > { %v1263_v5 = vpack.c.bf16 %v858_v61, %v858_v61  ;;  %v772_v8 = vmul.f32 %v1326_v0, %v1640_v51  ;;  %v788_v9 = vmul.f32 %v1374_v1, %v1640_v51 }
 0x138   : > { %1003 = vst.msk [vmem:[%s1659_s21 + $0x34] sm:$0xf] %vm989_vm0, %v1247_v4  ;;  %v773_v10 = vmul.f32 %v1329_v6, %v1640_v51  ;;  %v789_v11 = vmul.f32 %v1377_v7, %v1640_v51 }
 0x139   : > { %1019 = vst.msk [vmem:[%s1659_s21 + $0x74] sm:$0xf] %vm989_vm0, %v1263_v5  ;;  %v811_v12 = vadd.f32 %v1645_v57, %v772_v8  ;;  %v827_v13 = vadd.f32 %v1645_v57, %v788_v9 }
 0x13a   : > { %v812_v14 = vadd.f32 %v1645_v57, %v773_v10  ;;  %v828_v15 = vadd.f32 %v1645_v57, %v789_v11 }
 0x13b   : > { %v843_v16 = vmax.f32 %v811_v12, 0.0  ;;  %v859_v17 = vmax.f32 %v827_v13, 0.0 }
 0x13c   : > { %v844_v18 = vmax.f32 %v812_v14, 0.0  ;;  %v860_v19 = vmax.f32 %v828_v15, 0.0 }
 0x13d   : > { %v1248_v20 = vpack.c.bf16 %v843_v16, %v843_v16  ;;  %v1264_v21 = vpack.c.bf16 %v859_v17, %v859_v17 }
 0x13e   : > { %v1249_v22 = vpack.c.bf16 %v844_v18, %v844_v18  ;;  %v1265_v23 = vpack.c.bf16 %v860_v19, %v860_v19 }
 0x13f   : > { %1004 = vst.msk [vmem:[%s1659_s21 + $0x38] sm:$0xf] %vm989_vm0, %v1248_v20  ;;  %1020 = vst.msk [vmem:[%s1659_s21 + $0x78] sm:$0xf] %vm989_vm0, %v1264_v21 }
 0x140   : > { %1005 = vst.msk [vmem:[%s1659_s21 + $0x3c] sm:$0xf] %vm989_vm0, %v1249_v22  ;;  %1021 = vst.msk [vmem:[%s1659_s21 + $0x7c] sm:$0xf] %vm989_vm0, %v1265_v23 }
 0x141 PF: > { %s14_s17 = sadd.s32 1, %s1504_s17   ;;  %s1795_s15 = smov %s1500_s16 }
 0x142   : > { %p11_p5 = scmp.ge.s32.totalorder %s14_s17, 4   ;;  %s1796_s16 = smov %s1798_s18 }
 0x144   :  { %13 = sbr.rel (!%p11_p5) target bundleno = 2 (0x2), region = 75 }

// kernel: resnet_forward.15
= control target key start
LH: loop header
LB: loop body
LE: loop exit
PB: predicated region body
PF: predicated region fallthrough
CT: control target
= control target key end

     0   :  { %s1137_s15 = smov 0   ;;  %s1139_s16 = smov 0   ;;  %s1325_s0 = inlined_call_operand.vmem [shape: bf16[2,10,10,64], index: 0, kind: input, shape index: {}]   ;;  %s1326_s1 = inlined_call_operand.vmem [shape: bf16[3,3,64,64], index: 1, kind: input, shape index: {}]   ;;  %s1327_s2 = inlined_call_operand.vmem [shape: f32[1,64], index: 2, kind: input, shape index: {}]   ;;  %s1328_s3 = inlined_call_operand.vmem [shape: f32[1,64], index: 3, kind: input, shape index: {}]   ;;  %s1329_s4 = inlined_call_operand.vmem [shape: bf16[2,8,8,64], index: 4, kind: output, shape index: {}]  }
   0x1   :  { %s1141_s17 = smov 0   ;;  %s1143_s18 = smov 0  }
   0x2   :  { %s1145_s19 = smov 0   ;;  %s1147_s20 = smov 0  }
   0x3   :  { %s1149_s21 = smov 0   ;;  %s1151_s22 = smov 0  }
   0x4   :  { %s1153_s23 = smov 0  }
   0x5 LB: > { %s26_s24 = sadd.s32 1, %s1099_s21  ;;  %s33_s25 = sadd.s32 1, %s1103_s22  ;;  %s1107_s23 = sphi %s1153_s23, %s14_s23   ;;  %s1103_s22 = sphi %s1151_s22, %s1339_s22   ;;  %s1099_s21 = sphi %s1149_s21, %s1338_s21   ;;  %s1095_s20 = sphi %s1147_s20, %s1337_s20   ;;  %s1091_s19 = sphi %s1145_s19, %s1336_s19   ;;  %s1087_s18 = sphi %s1143_s18, %s1335_s18   ;;  %s1083_s17 = sphi %s1141_s17, %s1334_s17   ;;  %s1079_s16 = sphi %s1139_s16, %s1333_s16   ;;  %s1075_s15 = sphi %s1137_s15, %s1332_s15  }
   0x6   : > { %p27_p0 = scmp.ge.s32.totalorder %s26_s24, 3  ;;  %s839_s26 = sadd.s32 4294967295, %s1107_s23  }
   0x7   : > { %s37_s27 = sadd.s32 %s1099_s21, %s1103_s22  ;;  %p49_p1 = scmp.ne.s32.totalorder %s1087_s18, %s1083_s17 }
   0x8   : > { %s1341_s24 = smov (%p27_p0, %s26_s24), 0  ;;  %s1343_s25 = smov (!%p27_p0, %s33_s25), %s1103_s22 }
   0x9   : > { %p50_p2 = scmp.eq.s32.totalorder %s1107_s23, 0  ;;  %p35_p3 = scmp.ge.s32.totalorder %s1343_s25, 8 }
   0xa   : > { %s42_s28 = sadd.s32 1, %s1087_s18  ;;  %p160_p5 = scmp.ne.s32.totalorder %s1079_s16, %s1075_s15 }
   0xb   : > { %p1194_p4 = por %p50_p2, %p49_p1  ;;  %s1345_s25 = smov (%p35_p3, %s1343_s25), 0 }
   0xc   : > { %s150_s30 = sadd.s32 1, %s1079_s16  ;;  %p161_p6 = scmp.eq.s32.totalorder %s839_s26, 23 }
   0xd   : > { %s38_s5 = sadd.s32 %s1345_s25, %s1341_s24  ;;  %s145_s6 = ssub.s32 %s1103_s22, %s1345_s25 }
   0xe   : > { %s39_s7 = ssub.s32 %s37_s27, %s38_s5  ;;  %p148_p7 = scmp.eq.s32.totalorder %s145_s6, 0 }
   0xf   : > { %p40_p8 = scmp.eq.s32.totalorder %s39_s7, 0  ;;  %p1207_p9 = por %p161_p6, %p160_p5 }
  0x10   : > { %s1212_s9 = scalar_select %p148_p7, %s1079_s16, %s150_s30  }
  0x11   : > { %s1215_s10 = scalar_select %p40_p8, %s1087_s18, %s42_s28  }
  0x12   : > { %p844_p10 = scmp.ge.s32.totalorder %s1107_s23, 24 }
  0x14   : > { %195 = sbr.rel (%p844_p10) target bundleno = 34 (0x22), region = 24 }
  0x1b   : > { %198 = sbr.rel (!%p1194_p4) target bundleno = 34 (0x22), region = 28  ;;  %s200_s11 = sand.u32 (%p1194_p4), 1, %s1087_s18  }
  0x1c   : > { %s896_s12 = sshll.u32 (%p1194_p4), %s37_s27, 3  ;;  %s845_s13 = sshll.u32 (%p1194_p4), %s200_s11, 4 }
  0x1d   : > { %s206_s5 = scalar_lea.vmem (%p1194_p4), %s1325_s0, %s896_s12  ;;  %s202_s30 = scalar_lea.vmem (%p1194_p4), [#allocation3], %s845_s13 }
  0x1e   : > { %v222_v0 = vld [vmem:[%s206_s5] sm:$0xff] (%p1194_p4)   ;;  %v226_v1 = vld [vmem:[%s206_s5 + $0x50] sm:$0xff] (%p1194_p4)  }
  0x1f   : > { %223 = vst [vmem:[%s202_s30] sm:$0xff] (%p1194_p4), %v222_v0   ;;  %227 = vst [vmem:[%s202_s30 + $0x8] sm:$0xff] (%p1194_p4), %v226_v1  }
  0x22 PF: > { %p848_p11 = scmp.ge.s32.totalorder %s1107_s23, 1  ;;  %p270_p12 = scmp.lt.s32.totalorder %s1107_s23, 25 }
  0x24   : > { %p271_p13 = pnand %p848_p11, %p270_p12 }
  0x25   : > { %s277_s27 = sand.u32 (!%p271_p13), 1, %s1083_s17   ;;  %s312_s28 = sand.u32 (!%p271_p13), 1, %s1075_s15  }
  0x26   : > { %274 = sbr.rel (%p271_p13) target bundleno = 329 (0x149), region = 73  ;;  %s849_s29 = sshll.u32 (!%p271_p13), %s277_s27, 4 }
  0x27   : > { %s850_s6 = sshll.u32 (!%p271_p13), %s312_s28, 3  ;;  %p316_p0 = scmp.lt.s32.totalorder (!%p271_p13), %s1091_s19, 2 }
  0x28   : > { %s1235_s26 = scalar_lea.vmem (!%p271_p13), [#allocation3], %s849_s29  ;;  %s1237_s5 = scalar_lea.vmem (!%p271_p13), [#allocation4], %s850_s6 }
  0x29   : > { %p852_p1 = scmp.ne.s32.totalorder (!%p271_p13), %s1091_s19, 0 }
  0x2d   : > { %s317_s7 = scalar_select %p316_p0, %s1091_s19, 2 }
  0x2e   : > { %334 = sbr.rel (%p852_p1) target bundleno = 53 (0x35), region = 81  ;;  %vm335_vm0 = vcmask (!%p852_p1), 523264   ;;  %v1109_v2 = vmov (!%p852_p1), 0.0  }
  0x2f   : > { %s948_s11 = smul.u32 96, %s317_s7  ;;  %336 = vst.msk [vmem:[#allocation2] sm:$0xff] (!%p852_p1), %vm335_vm0, %v1109_v2  ;;  %337 = vst.msk [vmem:[#allocation2 + $0x8] sm:$0xff] (!%p852_p1), %vm335_vm0, %v1109_v2 }
  0x31   : > { %s1233_s14 = scalar_lea.vmem %s1326_s1, %s948_s11 }
  0x35 PF: > { %v1024_v3 = vld [vmem:[%s1233_s14 + $0x20] sm:$0xff]   ;;  %v1110_v4 = vmov 0.0   ;;  %v1026_v6 = vld [vmem:[%s1233_s14 + $0x28] sm:$0xff]   ;;  %vm1111_vm1 = vmmov 0   ;;  %v1028_v8 = vld [vmem:[%s1233_s14 + $0x30] sm:$0xff]   ;;  %vm417_vm5 = vcmask 523264  }
  0x36   : > { %912 = vmatprep.subr.bf16.mxu0 %v1110_v4  ;;  %924 = vmatprep.subr.bf16.mxu1 %v1110_v4  ;;  %v1025_v5 = vld [vmem:[%s1233_s14] sm:$0xff]   ;;  %v1027_v7 = vld [vmem:[%s1233_s14 + $0x8] sm:$0xff]   ;;  %v1029_v9 = vld [vmem:[%s1233_s14 + $0x10] sm:$0xff]   ;;  %vm350_vm2 = vsmask.f32 3328  ;;  %vm541_vm6 = vcmask 1042432  }
  0x37   : > { %913 = vmatpush3.bf16.msra.mxu0 %v1024_v3  ;;  %920 = vmatprep.mubr.msk.bf16.mxu0 %vm1111_vm1, %v1110_v4  ;;  %v338_v10 = vld [vmem:[%s1235_s26] sm:$0xf]  ;;  %v339_v11 = vld [vmem:[%s1235_s26 + $0x8] sm:$0xf]  ;;  %v348_v12 = vld [vmem:[%s1235_s26 + $0x4] sm:$0x1] }
  0x38   : > { %925 = vmatpush3.bf16.msra.mxu1 %v1025_v5  ;;  %914 = vmatprep.subr.bf16.mxu0 %v1110_v4  ;;  %v1030_v13 = vld [vmem:[%s1233_s14 + $0x38] sm:$0xff]   ;;  %v354_v16 = vshrl.u32 %v338_v10, 16  ;;  %v357_v17 = vshll.u32 %v338_v10, 16  ;;  %v363_v18 = vshll.u32 %v348_v12, 16  ;;  %v368_v19 = vshrl.u32 %v339_v11, 16  ;;  %v1033_v35 = vld [vmem:[%s1233_s14 + $0x40] sm:$0xff]  }
  0x39   : > { %926 = vmatprep.subr.bf16.mxu1 %v1110_v4  ;;  %932 = vmatprep.mubr.msk.bf16.mxu1 %vm1111_vm1, %v1110_v4  ;;  %v1031_v14 = vld [vmem:[%s1233_s14 + $0x18] sm:$0xff]   ;;  %v371_v20 = vshll.u32 %v339_v11, 16  ;;  %vm351_vm3 = vsmask.f32 7440  ;;  %v867_v28 = vcombine.low %v338_v10, %v339_v11  ;;  %v1034_v37 = vld [vmem:[%s1233_s14 + $0x48] sm:$0xff]   ;;  %vm542_vm7 = vcmask 1046532  }
  0x3a   : > { %v349_v15 = vld [vmem:[%s1235_s26 + $0xc] sm:$0x1]  ;;  %v356_v22 = vrot.slane %v354_v16, 4  ;;  %v359_v23 = vrot.slane %v357_v17, 5  ;;  %v370_v24 = vrot.slane %v368_v19, 4  ;;  %v365_v27 = vrot.slane %v363_v18, 5  ;;  %vm352_vm4 = vmor %vm350_vm2, %vm351_vm3 }
  0x3b   : > { %915 = vmatpush3.bf16.msra.mxu0 %v1026_v6  ;;  %v377_v21 = vshll.u32 %v349_v15, 16  ;;  %v373_v25 = vrot.slane %v371_v20, 5  ;;  %v535_v38 = vld [vmem:[%s1235_s26] sm:$0xe]  ;;  %v536_v39 = vld [vmem:[%s1235_s26 + $0x8] sm:$0xe]  ;;  %vm543_vm8 = vmor %vm541_vm6, %vm542_vm7 }
  0x3c   : > { %927 = vmatpush3.bf16.msra.mxu1 %v1027_v7  ;;  %916 = vmatprep.subr.bf16.mxu0 %v1110_v4  ;;  %v360_v26 = vor.u32 %v359_v23, %v356_v22  ;;  %v546_v40 = vrot.slane %v348_v12, 5  ;;  %v550_v41 = vrot.slane %v349_v15, 5  ;;  %v1035_v42 = vld [vmem:[%s1233_s14 + $0x50] sm:$0xff]   ;;  %v873_v43 = vrot.slane %v535_v38, 9  ;;  %v1036_v45 = vld [vmem:[%s1233_s14 + $0x58] sm:$0xff]   ;;  %v634_v60 = vld [vmem:[#allocation2] sm:$0xff] }
  0x3d   : > { %928 = vmatprep.subr.bf16.mxu1 %v1110_v4  ;;  %v374_v29 = vor.u32 %v373_v25, %v370_v24  ;;  %v379_v30 = vrot.slane %v377_v21, 5  ;;  %v874_v44 = vrot.slane %v536_v39, 9  ;;  %v635_v0 = vld [vmem:[#allocation2 + $0x8] sm:$0xff]  ;;  %p889_p2 = scmp.ne.s32.totalorder %s1091_s19, 2 }
  0x3e   : > { %v361_v31 = vrot.slane %v360_v26, 4  ;;  %v547_v46 = vsel %vm543_vm8, %v873_v43, %v546_v40  ;;  %v890_v6 = vld [vmem:[%s1327_s2] ss:$0 sm:$0xff] (!%p889_p2)  ;;  %vm668_vm9 = vcmask (!%p889_p2), 519168  }
  0x3f   : > { %917 = vmatpush3.bf16.msra.mxu0 %v1028_v8  ;;  %v375_v32 = vrot.slane %v374_v29, 4  ;;  %v551_v47 = vsel %vm543_vm8, %v874_v44, %v550_v41  ;;  %v891_v7 = vld [vmem:[%s1328_s3] ss:$0 sm:$0xff] (!%p889_p2) }
  0x40   : > { %929 = vmatpush3.bf16.msra.mxu1 %v1029_v9  ;;  %918 = vmatprep.subr.bf16.mxu0 %v1110_v4  ;;  %v366_v33 = vsel %vm352_vm4, %v361_v31, %v365_v27  ;;  %v883_v48 = vcombine.low %v547_v46, %v551_v47 }
  0x41   : > { %930 = vmatprep.subr.bf16.mxu1 %v1110_v4  ;;  %v380_v34 = vsel %vm352_vm4, %v375_v32, %v379_v30 }
  0x42   : > { %v861_v36 = vcombine.low %v366_v33, %v380_v34 }
  0x43   : > { %919 = vmatpush3.bf16.msra.mxu0 %v1030_v13 }
  0x44   : > { %931 = vmatpush3.bf16.msra.mxu1 %v1031_v14  ;;  %936 = vmatprep.subr.bf16.mxu0 %v1110_v4 }
  0x46   : > { %921 = vmatmul.mubr.msk.bf16.vlgmr.msra.gmra.mrb[0].mxu0 %vm417_vm5, %v861_v36 }
  0x47   : > { %933 = vmatmul.mubr.msk.bf16.vlgmr.msra.gmra.mrb[0].mxu1 %vm417_vm5, %v867_v28  ;;  %937 = vmatpush3.bf16.msra.mxu0 %v1033_v35 }
  0x48   : > { %944 = vmatprep.mubr.msk.bf16.mxu0 %vm1111_vm1, %v1110_v4  ;;  %938 = vmatprep.subr.bf16.mxu0 %v1110_v4 }
  0x4b   : > { %939 = vmatpush3.bf16.msra.mxu0 %v1034_v37 }
  0x4c   : > { %940 = vmatprep.subr.bf16.mxu0 %v1110_v4 }
  0x4f   : > { %941 = vmatpush3.bf16.msra.mxu0 %v1035_v42 }
  0x50   : > { %942 = vmatprep.subr.bf16.mxu0 %v1110_v4 }
  0x53   : > { %943 = vmatpush3.bf16.msra.mxu0 %v1036_v45 }
  0x56   : > { %945 = vmatmul.mubr.msk.bf16.vlgmr.msra.gmra.mrb[4].mxu0 %vm417_vm5, %v883_v48 }
 0x119   : > { %v455_v53 = vpop.f32.mrb[0].mxu0 }
 0x11a   : > { %v528_v49 = vpop.f32.mrb[0].mxu1  ;;  %v922_v55 = vpop.f32.mrb[1].mxu0 }
 0x11b   : > { %v934_v50 = vpop.f32.mrb[1].mxu1  ;;  %v529_v54 = vadd.f32 %v528_v49, %v455_v53  ;;  %v458_v56 = vpop.f32.mrb[2].mxu0 }
 0x11c   : > { %v531_v51 = vpop.f32.mrb[2].mxu1  ;;  %v923_v58 = vpop.f32.mrb[3].mxu0 }
 0x11d   : > { %v935_v52 = vpop.f32.mrb[3].mxu1  ;;  %v532_v57 = vadd.f32 %v531_v51, %v458_v56 }
 0x129   : > { %v625_v59 = vpop.f32.mrb[4].mxu0 }
 0x12a   : > { %v632_v61 = vadd.f32 %v625_v59, %v529_v54  ;;  %v946_v62 = vpop.f32.mrb[5].mxu0  ;;  %643 = sbr.rel (%p889_p2) target bundleno = 321 (0x141), region = 85 }
 0x12b   : > { %v628_v63 = vpop.f32.mrb[6].mxu0 }
 0x12c   : > { %v636_v1 = vadd.f32 %v634_v60, %v632_v61  ;;  %v633_v2 = vadd.f32 %v628_v63, %v532_v57  ;;  %v947_v3 = vpop.f32.mrb[7].mxu0 }
 0x12e   : > { %638 = vst.msk [vmem:[#allocation2] sm:$0xff] %vm417_vm5, %v636_v1  ;;  %v637_v4 = vadd.f32 %v635_v0, %v633_v2 }
 0x130   : > { %639 = vst.msk [vmem:[#allocation2 + $0x8] sm:$0xff] %vm417_vm5, %v637_v4 }
 0x135   : > { %v644_v5 = vld [vmem:[#allocation2] sm:$0xff] }
 0x136   : > { %v653_v8 = vmul.f32 %v890_v6, %v644_v5 }
 0x137   : > { %v645_v9 = vld [vmem:[#allocation2 + $0x8] sm:$0xff] }
 0x138   : > { %v654_v10 = vmul.f32 %v890_v6, %v645_v9  ;;  %v662_v11 = vadd.f32 %v891_v7, %v653_v8 }
 0x13a   : > { %v663_v12 = vadd.f32 %v891_v7, %v654_v10  ;;  %v664_v13 = vmax.f32 %v662_v11, 0.0 }
 0x13c   : > { %v665_v14 = vmax.f32 %v663_v12, 0.0  ;;  %v666_v15 = vpack.c.bf16 %v664_v13, %v664_v13 }
 0x13e   : > { %v667_v16 = vpack.c.bf16 %v665_v14, %v665_v14  ;;  %669 = vst.msk [vmem:[%s1237_s5] sm:$0xf] %vm668_vm9, %v666_v15 }
 0x140   : > { %670 = vst.msk [vmem:[%s1237_s5 + $0x4] sm:$0xf] %vm668_vm9, %v667_v16 }
 0x141 PF: > { %677 = sbr.rel (!%p1207_p9) target bundleno = 329 (0x149), region = 89  ;;  %s893_s19 = sshll.u32 (%p1207_p9), %s1095_s20, 2 }
 0x142   : > { %s680_s6 = scalar_lea.vmem (%p1207_p9), %s1329_s4, %s893_s19 }
 0x145   : > { %v696_v17 = vld [vmem:[%s1237_s5] sm:$0xf] (%p1207_p9) }
 0x146   : > { %697 = vst [vmem:[%s680_s6] sm:$0xf] (%p1207_p9), %v696_v17 }
 0x147   : > { %v698_v18 = vld [vmem:[%s1237_s5 + $0x4] sm:$0xf] (%p1207_p9) }
 0x148   : > { %699 = vst [vmem:[%s680_s6 + $0x20] sm:$0xf] %v698_v18 }
 0x149 PF: > { %s14_s23 = sadd.s32 1, %s1107_s23   ;;  %s1332_s15 = smov %s1079_s16 }
 0x14a   : > { %p11_p3 = scmp.ge.s32.totalorder %s14_s23, 26   ;;  %s1333_s16 = smov %s1212_s9 }
 0x14b   : > { %s1334_s17 = smov %s1087_s18  ;;  %s1335_s18 = smov %s1215_s10 }
 0x14c   : > { %s1336_s19 = smov %s1099_s21  ;;  %s1337_s20 = smov %s1103_s22 }
 0x14d   : > { %s1338_s21 = smov %s1341_s24  ;;  %s1339_s22 = smov %s1345_s25 }
 0x14e   :  { %13 = sbr.rel (!%p11_p3) target bundleno = 5 (0x5), region = 172 }

// kernel: resnet_forward.16
= control target key start
LH: loop header
LB: loop body
LE: loop exit
PB: predicated region body
PF: predicated region fallthrough
CT: control target
= control target key end

     0   :  { %s1269_s18 = smov 0   ;;  %s1271_s19 = smov 0   ;;  %s1474_s0 = inlined_call_operand.vmem [shape: bf16[2,10,10,64], index: 0, kind: input, shape index: {}]   ;;  %s1475_s1 = inlined_call_operand.vmem [shape: bf16[3,3,64,64], index: 1, kind: input, shape index: {}]   ;;  %s1476_s2 = inlined_call_operand.vmem [shape: f32[1,64], index: 2, kind: input, shape index: {}]   ;;  %s1477_s3 = inlined_call_operand.vmem [shape: f32[1,64], index: 3, kind: input, shape index: {}]   ;;  %s1478_s4 = inlined_call_operand.vmem [shape: bf16[2,8,8,64], index: 4, kind: input, shape index: {}]   ;;  %s1479_s5 = inlined_call_operand.vmem [shape: bf16[2,8,8,64], index: 5, kind: output, shape index: {}]  }
   0x1   :  { %s1273_s20 = smov 0   ;;  %s1275_s21 = smov 0  }
   0x2   :  { %s1277_s22 = smov 0   ;;  %s1279_s23 = smov 0  }
   0x3   :  { %s1281_s24 = smov 0   ;;  %s1283_s25 = smov 0  }
   0x4   :  { %s1285_s26 = smov 0  }
   0x5 LB: > { %s959_s27 = sadd.s32 4294967295, %s1234_s26   ;;  %s27_s28 = sadd.s32 1, %s1226_s24  ;;  %s1234_s26 = sphi %s1285_s26, %s15_s26   ;;  %s1230_s25 = sphi %s1283_s25, %s1496_s25   ;;  %s1226_s24 = sphi %s1281_s24, %s1495_s24   ;;  %s1222_s23 = sphi %s1279_s23, %s1494_s23   ;;  %s1218_s22 = sphi %s1277_s22, %s1493_s22   ;;  %s1214_s21 = sphi %s1275_s21, %s1492_s21   ;;  %s1210_s20 = sphi %s1273_s20, %s1491_s20   ;;  %s1206_s19 = sphi %s1271_s19, %s1490_s19   ;;  %s1202_s18 = sphi %s1269_s18, %s1489_s18  }
   0x6   : > { %p28_p0 = scmp.ge.s32.totalorder %s27_s28, 3  ;;  %s34_s29 = sadd.s32 1, %s1230_s25 }
   0x7   : > { %s38_s30 = sadd.s32 %s1226_s24, %s1230_s25  ;;  %s43_s6 = sadd.s32 1, %s1214_s21 }
   0x8   : > { %s1498_s28 = smov (%p28_p0, %s27_s28), 0  ;;  %s1500_s29 = smov (!%p28_p0, %s34_s29), %s1230_s25 }
   0x9   : > { %1482 = sst [smem:[#allocation6_spill]] %s1498_s28  ;;  %p50_p1 = scmp.ne.s32.totalorder %s1214_s21, %s1210_s20 }
   0xa   : > { %p51_p2 = scmp.eq.s32.totalorder %s1234_s26, 0  ;;  %p36_p3 = scmp.ge.s32.totalorder %s1500_s29, 8 }
   0xb   : > { %s151_s7 = sadd.s32 1, %s1206_s19  ;;  %p158_p5 = scmp.ne.s32.totalorder %s1206_s19, %s1202_s18 }
   0xc   : > { %p1327_p4 = por %p51_p2, %p50_p1  ;;  %s1502_s29 = smov (%p36_p3, %s1500_s29), 0 }
   0xd   : > { %1484 = sst [smem:[#allocation7_spill]] %s1502_s29  ;;  %p1335_p6 = por %p158_p5, %p51_p2 }
   0xe   : > { %p190_p7 = scmp.eq.s32.totalorder %s959_s27, 23  ;;  %s39_s10 = sadd.s32 %s1502_s29, %s1498_s28 }
   0xf   : > { %s146_s11 = ssub.s32 %s1230_s25, %s1502_s29  ;;  %s40_s12 = ssub.s32 %s38_s30, %s39_s10 }
  0x10   : > { %p149_p8 = scmp.eq.s32.totalorder %s146_s11, 0  ;;  %p41_p9 = scmp.eq.s32.totalorder %s40_s12, 0 }
  0x11   : > { %p1343_p10 = por %p190_p7, %p158_p5  ;;  %p964_p11 = scmp.ge.s32.totalorder %s1234_s26, 24 }
  0x12   : > { %s1348_s14 = scalar_select %p149_p8, %s1206_s19, %s151_s7  }
  0x13   : > { %s1351_s15 = scalar_select %p41_p9, %s1214_s21, %s43_s6  }
  0x14   : > { %224 = sbr.rel (%p964_p11) target bundleno = 41 (0x29), region = 24 }
  0x1b   : > { %227 = sbr.rel (!%p1327_p4) target bundleno = 34 (0x22), region = 28  ;;  %s229_s16 = sand.u32 (%p1327_p4), 1, %s1214_s21  }
  0x1c   : > { %s1019_s17 = sshll.u32 (%p1327_p4), %s38_s30, 3  ;;  %s965_s27 = sshll.u32 (%p1327_p4), %s229_s16, 4 }
  0x1d   : > { %s235_s12 = scalar_lea.vmem (%p1327_p4), %s1474_s0, %s1019_s17  ;;  %s231_s7 = scalar_lea.vmem (%p1327_p4), [#allocation3], %s965_s27 }
  0x1e   : > { %v251_v0 = vld [vmem:[%s235_s12] sm:$0xff] (%p1327_p4)   ;;  %v255_v1 = vld [vmem:[%s235_s12 + $0x50] sm:$0xff] (%p1327_p4)  }
  0x1f   : > { %252 = vst [vmem:[%s231_s7] sm:$0xff] (%p1327_p4), %v251_v0   ;;  %256 = vst [vmem:[%s231_s7 + $0x8] sm:$0xff] (%p1327_p4), %v255_v1  }
  0x22 PF: > { %300 = sbr.rel (!%p1335_p6) target bundleno = 41 (0x29), region = 73  ;;  %s302_s6 = sand.u32 (%p1335_p6), 1, %s1206_s19  }
  0x23   : > { %s969_s8 = sshll.u32 (%p1335_p6), %s1230_s25, 2  ;;  %s968_s29 = sshll.u32 (%p1335_p6), %s302_s6, 3 }
  0x24   : > { %s307_s28 = scalar_lea.vmem (%p1335_p6), %s1478_s4, %s969_s8  ;;  %s304_s17 = scalar_lea.vmem (%p1335_p6), [#allocation4], %s968_s29 }
  0x25   : > { %v323_v2 = vld [vmem:[%s307_s28] sm:$0xf] (%p1335_p6) }
  0x26   : > { %v325_v3 = vld [vmem:[%s307_s28 + $0x20] sm:$0xf] (%p1335_p6)  ;;  %324 = vst [vmem:[%s304_s17] sm:$0xf] (%p1335_p6), %v323_v2 }
  0x27   : > { %326 = vst [vmem:[%s304_s17 + $0x4] sm:$0xf] (%p1335_p6), %v325_v3 }
  0x29 PF: > { %p970_p12 = scmp.ge.s32.totalorder %s1234_s26, 1  ;;  %p352_p13 = scmp.lt.s32.totalorder %s1234_s26, 25 }
  0x2b   : > { %p353_p0 = pnand %p970_p12, %p352_p13 }
  0x2c   : > { %s359_s9 = sand.u32 (!%p353_p0), 1, %s1210_s20   ;;  %s366_s27 = sand.u32 (!%p353_p0), 1, %s1202_s18  }
  0x2d   : > { %356 = sbr.rel (%p353_p0) target bundleno = 338 (0x152), region = 114  ;;  %s971_s10 = sshll.u32 (!%p353_p0), %s359_s9, 4 }
  0x2e   : > { %s1371_s11 = sshll.u32 (!%p353_p0), %s366_s27, 3  ;;  %p411_p1 = scmp.lt.s32.totalorder (!%p353_p0), %s1218_s22, 2 }
  0x2f   : > { %s1380_s8 = scalar_lea.vmem (!%p353_p0), [#allocation3], %s971_s10  ;;  %s368_s30 = scalar_lea.vmem (!%p353_p0), [#allocation4], %s1371_s11 }
  0x30   : > { %s1384_s16 = scalar_lea.vmem (!%p353_p0), [#allocation5], %s1371_s11  ;;  %p975_p2 = scmp.ne.s32.totalorder (!%p353_p0), %s1218_s22, 0 }
  0x34   : > { %s412_s28 = scalar_select %p411_p1, %s1218_s22, 2 }
  0x35   : > { %429 = sbr.rel (%p975_p2) target bundleno = 60 (0x3c), region = 126  ;;  %vm430_vm0 = vcmask (!%p975_p2), 523264   ;;  %v1236_v4 = vmov (!%p975_p2), 0.0  }
  0x36   : > { %s1075_s29 = smul.u32 96, %s412_s28  ;;  %431 = vst.msk [vmem:[#allocation2] sm:$0xff] (!%p975_p2), %vm430_vm0, %v1236_v4  ;;  %432 = vst.msk [vmem:[#allocation2 + $0x8] sm:$0xff] (!%p975_p2), %vm430_vm0, %v1236_v4 }
  0x38   : > { %s1378_s6 = scalar_lea.vmem %s1475_s1, %s1075_s29 }
  0x3c PF: > { %v1151_v5 = vld [vmem:[%s1378_s6 + $0x20] sm:$0xff]   ;;  %v1237_v6 = vmov 0.0   ;;  %v1153_v8 = vld [vmem:[%s1378_s6 + $0x28] sm:$0xff]   ;;  %vm1238_vm1 = vmmov 0   ;;  %v1155_v10 = vld [vmem:[%s1378_s6 + $0x30] sm:$0xff]   ;;  %vm512_vm5 = vcmask 523264  }
  0x3d   : > { %1039 = vmatprep.subr.bf16.mxu0 %v1237_v6  ;;  %1051 = vmatprep.subr.bf16.mxu1 %v1237_v6  ;;  %v1152_v7 = vld [vmem:[%s1378_s6] sm:$0xff]   ;;  %v1154_v9 = vld [vmem:[%s1378_s6 + $0x8] sm:$0xff]   ;;  %v1156_v11 = vld [vmem:[%s1378_s6 + $0x10] sm:$0xff]   ;;  %vm445_vm2 = vsmask.f32 3328  ;;  %vm636_vm6 = vcmask 1042432  }
  0x3e   : > { %1040 = vmatpush3.bf16.msra.mxu0 %v1151_v5  ;;  %1047 = vmatprep.mubr.msk.bf16.mxu0 %vm1238_vm1, %v1237_v6  ;;  %v433_v12 = vld [vmem:[%s1380_s8] sm:$0xf]  ;;  %v434_v13 = vld [vmem:[%s1380_s8 + $0x8] sm:$0xf]  ;;  %v443_v14 = vld [vmem:[%s1380_s8 + $0x4] sm:$0x1] }
  0x3f   : > { %1052 = vmatpush3.bf16.msra.mxu1 %v1152_v7  ;;  %1041 = vmatprep.subr.bf16.mxu0 %v1237_v6  ;;  %v1157_v15 = vld [vmem:[%s1378_s6 + $0x38] sm:$0xff]   ;;  %v449_v18 = vshrl.u32 %v433_v12, 16  ;;  %v452_v19 = vshll.u32 %v433_v12, 16  ;;  %v458_v20 = vshll.u32 %v443_v14, 16  ;;  %v463_v21 = vshrl.u32 %v434_v13, 16  ;;  %v1160_v37 = vld [vmem:[%s1378_s6 + $0x40] sm:$0xff]  }
  0x40   : > { %1053 = vmatprep.subr.bf16.mxu1 %v1237_v6  ;;  %1059 = vmatprep.mubr.msk.bf16.mxu1 %vm1238_vm1, %v1237_v6  ;;  %v1158_v16 = vld [vmem:[%s1378_s6 + $0x18] sm:$0xff]   ;;  %v466_v22 = vshll.u32 %v434_v13, 16  ;;  %vm446_vm3 = vsmask.f32 7440  ;;  %v990_v30 = vcombine.low %v433_v12, %v434_v13  ;;  %v1161_v39 = vld [vmem:[%s1378_s6 + $0x48] sm:$0xff]   ;;  %vm637_vm7 = vcmask 1046532  }
  0x41   : > { %v444_v17 = vld [vmem:[%s1380_s8 + $0xc] sm:$0x1]  ;;  %v451_v24 = vrot.slane %v449_v18, 4  ;;  %v454_v25 = vrot.slane %v452_v19, 5  ;;  %v465_v26 = vrot.slane %v463_v21, 4  ;;  %v460_v29 = vrot.slane %v458_v20, 5  ;;  %vm447_vm4 = vmor %vm445_vm2, %vm446_vm3 }
  0x42   : > { %1042 = vmatpush3.bf16.msra.mxu0 %v1153_v8  ;;  %v472_v23 = vshll.u32 %v444_v17, 16  ;;  %v468_v27 = vrot.slane %v466_v22, 5  ;;  %v630_v40 = vld [vmem:[%s1380_s8] sm:$0xe]  ;;  %v631_v41 = vld [vmem:[%s1380_s8 + $0x8] sm:$0xe]  ;;  %vm638_vm8 = vmor %vm636_vm6, %vm637_vm7 }
  0x43   : > { %1054 = vmatpush3.bf16.msra.mxu1 %v1154_v9  ;;  %1043 = vmatprep.subr.bf16.mxu0 %v1237_v6  ;;  %v455_v28 = vor.u32 %v454_v25, %v451_v24  ;;  %v641_v42 = vrot.slane %v443_v14, 5  ;;  %v645_v43 = vrot.slane %v444_v17, 5  ;;  %v1162_v44 = vld [vmem:[%s1378_s6 + $0x50] sm:$0xff]   ;;  %v996_v45 = vrot.slane %v630_v40, 9  ;;  %v1163_v47 = vld [vmem:[%s1378_s6 + $0x58] sm:$0xff]   ;;  %v729_v62 = vld [vmem:[#allocation2] sm:$0xff] }
  0x44   : > { %1055 = vmatprep.subr.bf16.mxu1 %v1237_v6  ;;  %v469_v31 = vor.u32 %v468_v27, %v465_v26  ;;  %v474_v32 = vrot.slane %v472_v23, 5  ;;  %v997_v46 = vrot.slane %v631_v41, 9  ;;  %v730_v2 = vld [vmem:[#allocation2 + $0x8] sm:$0xff]  ;;  %p1012_p3 = scmp.ne.s32.totalorder %s1218_s22, 2 }
  0x45   : > { %v456_v33 = vrot.slane %v455_v28, 4  ;;  %v642_v48 = vsel %vm638_vm8, %v996_v45, %v641_v42  ;;  %v1013_v8 = vld [vmem:[%s1476_s2] ss:$0 sm:$0xff] (!%p1012_p3)  ;;  %vm769_vm9 = vcmask (!%p1012_p3), 519168  }
  0x46   : > { %1044 = vmatpush3.bf16.msra.mxu0 %v1155_v10  ;;  %v470_v34 = vrot.slane %v469_v31, 4  ;;  %v646_v49 = vsel %vm638_vm8, %v997_v46, %v645_v43  ;;  %v1014_v9 = vld [vmem:[%s1477_s3] ss:$0 sm:$0xff] (!%p1012_p3) }
  0x47   : > { %1056 = vmatpush3.bf16.msra.mxu1 %v1156_v11  ;;  %1045 = vmatprep.subr.bf16.mxu0 %v1237_v6  ;;  %v461_v35 = vsel %vm447_vm4, %v456_v33, %v460_v29  ;;  %v1006_v50 = vcombine.low %v642_v48, %v646_v49  ;;  %v1021_v11 = vld [vmem:[%s368_s30] sm:$0xff] (!%p1012_p3)  }
  0x48   : > { %1057 = vmatprep.subr.bf16.mxu1 %v1237_v6  ;;  %v475_v36 = vsel %vm447_vm4, %v470_v34, %v474_v32  ;;  %v1022_v13 = vunpack.c.l.bf16 (!%p1012_p3), %v1021_v11 }
  0x49   : > { %v984_v38 = vcombine.low %v461_v35, %v475_v36 }
  0x4a   : > { %1046 = vmatpush3.bf16.msra.mxu0 %v1157_v15  ;;  %v1023_v15 = vunpack.c.h.bf16 (!%p1012_p3), %v1021_v11 }
  0x4b   : > { %1058 = vmatpush3.bf16.msra.mxu1 %v1158_v16  ;;  %1063 = vmatprep.subr.bf16.mxu0 %v1237_v6 }
  0x4d   : > { %1048 = vmatmul.mubr.msk.bf16.vlgmr.msra.gmra.mrb[0].mxu0 %vm512_vm5, %v984_v38 }
  0x4e   : > { %1060 = vmatmul.mubr.msk.bf16.vlgmr.msra.gmra.mrb[0].mxu1 %vm512_vm5, %v990_v30  ;;  %1064 = vmatpush3.bf16.msra.mxu0 %v1160_v37 }
  0x4f   : > { %1071 = vmatprep.mubr.msk.bf16.mxu0 %vm1238_vm1, %v1237_v6  ;;  %1065 = vmatprep.subr.bf16.mxu0 %v1237_v6 }
  0x52   : > { %1066 = vmatpush3.bf16.msra.mxu0 %v1161_v39 }
  0x53   : > { %1067 = vmatprep.subr.bf16.mxu0 %v1237_v6 }
  0x56   : > { %1068 = vmatpush3.bf16.msra.mxu0 %v1162_v44 }
  0x57   : > { %1069 = vmatprep.subr.bf16.mxu0 %v1237_v6 }
  0x5a   : > { %1070 = vmatpush3.bf16.msra.mxu0 %v1163_v47 }
  0x5d   : > { %1072 = vmatmul.mubr.msk.bf16.vlgmr.msra.gmra.mrb[4].mxu0 %vm512_vm5, %v1006_v50 }
 0x120   : > { %v550_v55 = vpop.f32.mrb[0].mxu0 }
 0x121   : > { %v623_v51 = vpop.f32.mrb[0].mxu1  ;;  %v1049_v57 = vpop.f32.mrb[1].mxu0 }
 0x122   : > { %v1061_v52 = vpop.f32.mrb[1].mxu1  ;;  %v624_v56 = vadd.f32 %v623_v51, %v550_v55  ;;  %v553_v58 = vpop.f32.mrb[2].mxu0 }
 0x123   : > { %v626_v53 = vpop.f32.mrb[2].mxu1  ;;  %v1050_v60 = vpop.f32.mrb[3].mxu0 }
 0x124   : > { %v1062_v54 = vpop.f32.mrb[3].mxu1  ;;  %v627_v59 = vadd.f32 %v626_v53, %v553_v58 }
 0x130   : > { %v720_v61 = vpop.f32.mrb[4].mxu0 }
 0x131   : > { %v727_v63 = vadd.f32 %v720_v61, %v624_v56  ;;  %v1073_v0 = vpop.f32.mrb[5].mxu0  ;;  %738 = sbr.rel (%p1012_p3) target bundleno = 330 (0x14a), region = 130 }
 0x132   : > { %v723_v1 = vpop.f32.mrb[6].mxu0 }
 0x133   : > { %v731_v3 = vadd.f32 %v729_v62, %v727_v63  ;;  %v728_v4 = vadd.f32 %v723_v1, %v627_v59  ;;  %v1074_v5 = vpop.f32.mrb[7].mxu0 }
 0x135   : > { %733 = vst.msk [vmem:[#allocation2] sm:$0xff] %vm512_vm5, %v731_v3  ;;  %v732_v6 = vadd.f32 %v730_v2, %v728_v4 }
 0x137   : > { %734 = vst.msk [vmem:[#allocation2 + $0x8] sm:$0xff] %vm512_vm5, %v732_v6 }
 0x13c   : > { %v739_v7 = vld [vmem:[#allocation2] sm:$0xff] }
 0x13d   : > { %v748_v10 = vmul.f32 %v1013_v8, %v739_v7 }
 0x13e   : > { %v740_v12 = vld [vmem:[#allocation2 + $0x8] sm:$0xff] }
 0x13f   : > { %v749_v14 = vmul.f32 %v1013_v8, %v740_v12  ;;  %v757_v16 = vadd.f32 %v1014_v9, %v748_v10 }
 0x141   : > { %v758_v17 = vadd.f32 %v1014_v9, %v749_v14  ;;  %v763_v18 = vadd.f32 %v1022_v13, %v757_v16 }
 0x143   : > { %v764_v19 = vadd.f32 %v1023_v15, %v758_v17  ;;  %v765_v20 = vmax.f32 %v763_v18, 0.0 }
 0x145   : > { %v766_v21 = vmax.f32 %v764_v19, 0.0  ;;  %v767_v22 = vpack.c.bf16 %v765_v20, %v765_v20 }
 0x147   : > { %v768_v23 = vpack.c.bf16 %v766_v21, %v766_v21  ;;  %770 = vst.msk [vmem:[%s1384_s16] sm:$0xf] %vm769_vm9, %v767_v22 }
 0x149   : > { %771 = vst.msk [vmem:[%s1384_s16 + $0x4] sm:$0xf] %vm769_vm9, %v768_v23 }
 0x14a PF: > { %778 = sbr.rel (!%p1343_p10) target bundleno = 338 (0x152), region = 134  ;;  %s1016_s22 = sshll.u32 (%p1343_p10), %s1222_s23, 2 }
 0x14b   : > { %s781_s11 = scalar_lea.vmem (%p1343_p10), %s1479_s5, %s1016_s22 }
 0x14e   : > { %v797_v24 = vld [vmem:[%s1384_s16] sm:$0xf] (%p1343_p10) }
 0x14f   : > { %798 = vst [vmem:[%s781_s11] sm:$0xf] (%p1343_p10), %v797_v24 }
 0x150   : > { %v799_v25 = vld [vmem:[%s1384_s16 + $0x4] sm:$0xf] (%p1343_p10) }
 0x151   : > { %800 = vst [vmem:[%s781_s11 + $0x20] sm:$0xf] %v799_v25 }
 0x152 PF: > { %s15_s26 = sadd.s32 1, %s1234_s26   ;;  %s1487_s13 = sld [smem:[#allocation6_spill]] }
 0x153   : > { %p12_p4 = scmp.ge.s32.totalorder %s15_s26, 26   ;;  %s1488_s28 = sld [smem:[#allocation7_spill]] }
 0x154   : > { %s1489_s18 = smov %s1206_s19  ;;  %s1490_s19 = smov %s1348_s14 }
 0x155   : > { %s1491_s20 = smov %s1214_s21  ;;  %s1492_s21 = smov %s1351_s15 }
 0x156   : > { %s1493_s22 = smov %s1226_s24  ;;  %s1494_s23 = smov %s1230_s25 }
 0x157   :  { %14 = sbr.rel (!%p12_p4) target bundleno = 5 (0x5), region = 225 }
 0x158   : > { %s1495_s24 = smov %s1487_s13 }
 0x159   : > { %s1496_s25 = smov %s1488_s28 }

// kernel: resnet_forward.18
= control target key start
LH: loop header
LB: loop body
LE: loop exit
PB: predicated region body
PF: predicated region fallthrough
CT: control target
= control target key end

     0   :  { %s1109_s15 = smov 0   ;;  %s1111_s16 = smov 0   ;;  %s1263_s0 = inlined_call_operand.vmem [shape: bf16[32,576], index: 0, kind: input, shape index: {}]   ;;  %s1264_s1 = inlined_call_operand.vmem [shape: bf16[576,128], index: 1, kind: input, shape index: {}]   ;;  %s1265_s2 = inlined_call_operand.vmem [shape: f32[1,128], index: 2, kind: input, shape index: {}]   ;;  %s1266_s3 = inlined_call_operand.vmem [shape: f32[1,128], index: 3, kind: input, shape index: {}]   ;;  %s1267_s4 = inlined_call_operand.vmem [shape: bf16[32,128], index: 4, kind: output, shape index: {}]  }
   0x1   :  { %s1113_s17 = smov 0  }
   0x2 LB: > { %s26_s18 = sadd.s32 1, %s1076_s16  ;;  %p867_p0 = scmp.ge.s32.totalorder %s1080_s17, 1  ;;  %s1080_s17 = sphi %s1113_s17, %s14_s17   ;;  %s1076_s16 = sphi %s1111_s16, %s1269_s16   ;;  %s1072_s15 = sphi %s1109_s15, %s1268_s15  }
   0x3   : > { %p28_p1 = scmp.ge.s32.totalorder %s26_s18, 2  ;;  %p203_p2 = scmp.lt.s32.totalorder %s1080_s17, 3 }
   0x5   : > { %s1271_s18 = smov (%p28_p1, %s26_s18), 0  ;;  %p204_p3 = pnand %p867_p0, %p203_p2 }
   0x6   : > { %v1015_v0 = vld [vmem:[%s1264_s1 + $0x40] sm:$0xff] (!%p204_p3)   ;;  %v1019_v4 = vld [vmem:[%s1264_s1 + $0x48] sm:$0xff] (!%p204_p3)   ;;  %v1023_v8 = vld [vmem:[%s1264_s1 + $0x50] sm:$0xff] (!%p204_p3)   ;;  %s868_s27 = sshll.u32 (!%p204_p3), %s1072_s15, 1  ;;  %v1082_v34 = vmov (!%p204_p3), 0.0   ;;  %vm1083_vm0 = vmmov (!%p204_p3), 0  }
   0x7   : > { %207 = sbr.rel (%p204_p3) target bundleno = 281 (0x119), region = 36  ;;  %v1016_v1 = vld [vmem:[%s1264_s1 + $0xc0] sm:$0xff] (!%p204_p3)   ;;  %927 = vmatprep.subr.bf16.mxu0 (!%p204_p3), %v1015_v0  ;;  %v1020_v5 = vld [vmem:[%s1264_s1 + $0xc8] sm:$0xff] (!%p204_p3)   ;;  %v1024_v9 = vld [vmem:[%s1264_s1 + $0xd0] sm:$0xff] (!%p204_p3)   ;;  %p244_p4 = scmp.lt.s32.totalorder (!%p204_p3), %s868_s27, 3  ;;  %vm589_vm1 = vcmask (!%p204_p3), 523264  }
   0x8   : > { %v1017_v2 = vld [vmem:[%s1264_s1] sm:$0xff] (!%p204_p3)   ;;  %949 = vmatprep.subr.bf16.mxu1 (!%p204_p3), %v1016_v1  ;;  %v1021_v6 = vld [vmem:[%s1264_s1 + $0x8] sm:$0xff] (!%p204_p3)   ;;  %v1025_v10 = vld [vmem:[%s1264_s1 + $0x10] sm:$0xff] (!%p204_p3)  }
   0x9   : > { %v1018_v3 = vld [vmem:[%s1264_s1 + $0x80] sm:$0xff] (!%p204_p3)   ;;  %928 = vmatpush3.bf16.msra.mxu0 (!%p204_p3), %v1017_v2  ;;  %v1022_v7 = vld [vmem:[%s1264_s1 + $0x88] sm:$0xff] (!%p204_p3)   ;;  %v1026_v11 = vld [vmem:[%s1264_s1 + $0x90] sm:$0xff] (!%p204_p3)  }
   0xa   : > { %950 = vmatpush3.bf16.msra.mxu1 (!%p204_p3), %v1018_v3  ;;  %929 = vmatprep.subr.bf16.mxu0 (!%p204_p3), %v1019_v4  ;;  %v1027_v12 = vld [vmem:[%s1264_s1 + $0x58] sm:$0xff] (!%p204_p3)   ;;  %v1031_v16 = vld [vmem:[%s1264_s1 + $0x60] sm:$0xff] (!%p204_p3)   ;;  %v1035_v20 = vld [vmem:[%s1264_s1 + $0x68] sm:$0xff] (!%p204_p3)  }
   0xb   : > { %951 = vmatprep.subr.bf16.mxu1 (!%p204_p3), %v1020_v5  ;;  %v1028_v13 = vld [vmem:[%s1264_s1 + $0xd8] sm:$0xff] (!%p204_p3)   ;;  %v1032_v17 = vld [vmem:[%s1264_s1 + $0xe0] sm:$0xff] (!%p204_p3)   ;;  %v1036_v21 = vld [vmem:[%s1264_s1 + $0xe8] sm:$0xff] (!%p204_p3)  }
   0xc   : > { %v1029_v14 = vld [vmem:[%s1264_s1 + $0x18] sm:$0xff] (!%p204_p3)   ;;  %v1033_v18 = vld [vmem:[%s1264_s1 + $0x20] sm:$0xff] (!%p204_p3)   ;;  %v1037_v22 = vld [vmem:[%s1264_s1 + $0x28] sm:$0xff] (!%p204_p3)  }
   0xd   : > { %930 = vmatpush3.bf16.msra.mxu0 (!%p204_p3), %v1021_v6  ;;  %v1030_v15 = vld [vmem:[%s1264_s1 + $0x98] sm:$0xff] (!%p204_p3)   ;;  %v1034_v19 = vld [vmem:[%s1264_s1 + $0xa0] sm:$0xff] (!%p204_p3)   ;;  %v1038_v23 = vld [vmem:[%s1264_s1 + $0xa8] sm:$0xff] (!%p204_p3)  }
   0xe   : > { %952 = vmatpush3.bf16.msra.mxu1 %v1022_v7  ;;  %931 = vmatprep.subr.bf16.mxu0 %v1023_v8  ;;  %s1273_s27 = smov (!%p244_p4, %s868_s27), 3  ;;  %v1039_v24 = vld [vmem:[%s1264_s1 + $0x70] sm:$0xff]   ;;  %v1043_v28 = vld [vmem:[%s1264_s1 + $0x78] sm:$0xff]   ;;  %v1053_v37 = vld [vmem:[%s1264_s1 + $0x100] sm:$0xff]  }
   0xf   : > { %953 = vmatprep.subr.bf16.mxu1 %v1024_v9  ;;  %v1040_v25 = vld [vmem:[%s1264_s1 + $0xf0] sm:$0xff]   ;;  %s988_s28 = smul.u32 20, %s1273_s27  ;;  %v1044_v29 = vld [vmem:[%s1264_s1 + $0xf8] sm:$0xff]   ;;  %v1054_v38 = vld [vmem:[%s1264_s1 + $0x108] sm:$0xff]   ;;  %s871_s8 = sshll.u32 %s1273_s27, 2 }
  0x10   : > { %v1041_v26 = vld [vmem:[%s1264_s1 + $0x30] sm:$0xff]   ;;  %v1045_v30 = vld [vmem:[%s1264_s1 + $0x38] sm:$0xff]   ;;  %v914_v57 = vld [vmem:[%s1265_s2] ss:$0 sm:$0xff]  ;;  %s267_s10 = scalar_lea.vmem %s1267_s4, %s871_s8 }
  0x11   : > { %932 = vmatpush3.bf16.msra.mxu0 %v1025_v10  ;;  %v1042_v27 = vld [vmem:[%s1264_s1 + $0xb0] sm:$0xff]   ;;  %s248_s12 = scalar_lea.vmem %s1263_s0, %s988_s28  ;;  %v1046_v31 = vld [vmem:[%s1264_s1 + $0xb8] sm:$0xff]   ;;  %v915_v60 = vld [vmem:[%s1266_s3] ss:$0 sm:$0xff] }
  0x12   : > { %954 = vmatpush3.bf16.msra.mxu1 %v1026_v11  ;;  %933 = vmatprep.subr.bf16.mxu0 %v1027_v12  ;;  %v1047_v32 = vld [vmem:[%s248_s12] ss:$20 sps:$4 sm:$0xff]   ;;  %v1049_v33 = vld [vmem:[%s248_s12 + $0x4] ss:$20 sps:$4 sm:$0xff]   ;;  %v1050_v35 = vld [vmem:[%s248_s12 + $0x8] ss:$20 sps:$4 sm:$0xff]  }
  0x13   : > { %955 = vmatprep.subr.bf16.mxu1 %v1028_v13  ;;  %v1052_v36 = vld [vmem:[%s248_s12 + $0xc] ss:$20 sps:$4 sm:$0xff]   ;;  %625 = vmatprep.mubr.bf16.mxu0 %v1049_v33  ;;  %v1055_v39 = vld [vmem:[%s1264_s1 + $0x110] sm:$0xff]   ;;  %v1056_v40 = vld [vmem:[%s1264_s1 + $0x118] sm:$0xff]  }
  0x14   : > { %666 = vmatprep.mubr.bf16.mxu1 %v1052_v36  ;;  %v1057_v41 = vld [vmem:[%s248_s12 + $0x10] ss:$20 sps:$4 sm:$0xff]  }
  0x15   : > { %934 = vmatpush3.bf16.msra.mxu0 %v1029_v14 }
  0x16   : > { %956 = vmatpush3.bf16.msra.mxu1 %v1030_v15  ;;  %935 = vmatprep.subr.bf16.mxu0 %v1031_v16 }
  0x17   : > { %957 = vmatprep.subr.bf16.mxu1 %v1032_v17 }
  0x19   : > { %936 = vmatpush3.bf16.msra.mxu0 %v1033_v18 }
  0x1a   : > { %958 = vmatpush3.bf16.msra.mxu1 %v1034_v19  ;;  %937 = vmatprep.subr.bf16.mxu0 %v1035_v20 }
  0x1b   : > { %959 = vmatprep.subr.bf16.mxu1 %v1036_v21 }
  0x1d   : > { %938 = vmatpush3.bf16.msra.mxu0 %v1037_v22 }
  0x1e   : > { %960 = vmatpush3.bf16.msra.mxu1 %v1038_v23  ;;  %939 = vmatprep.subr.bf16.mxu0 %v1039_v24 }
  0x1f   : > { %961 = vmatprep.subr.bf16.mxu1 %v1040_v25 }
  0x21   : > { %940 = vmatpush3.bf16.msra.mxu0 %v1041_v26 }
  0x22   : > { %962 = vmatpush3.bf16.msra.mxu1 %v1042_v27  ;;  %941 = vmatprep.subr.bf16.mxu0 %v1043_v28 }
  0x23   : > { %963 = vmatprep.subr.bf16.mxu1 %v1044_v29 }
  0x25   : > { %942 = vmatpush3.bf16.msra.mxu0 %v1045_v30 }
  0x26   : > { %964 = vmatpush3.bf16.msra.mxu1 %v1046_v31  ;;  %976 = vmatprep.subr.bf16.mxu0 %v1082_v34 }
  0x28   : > { %626 = vmatmul.mubr.bf16.vlgmr.msra.gmra.mrb[0].mxu0 %v1047_v32 }
  0x29   : > { %667 = vmatmul.mubr.bf16.vlgmr.msra.gmra.mrb[0].mxu1 %v1050_v35  ;;  %977 = vmatpush3.bf16.msra.mxu0 %v1053_v37 }
  0x2a   : > { %978 = vmatprep.subr.bf16.mxu0 %v1082_v34  ;;  %984 = vmatprep.mubr.msk.bf16.mxu0 %vm1083_vm0, %v1082_v34 }
  0x2d   : > { %979 = vmatpush3.bf16.msra.mxu0 %v1054_v38 }
  0x2e   : > { %980 = vmatprep.subr.bf16.mxu0 %v1082_v34 }
  0x31   : > { %981 = vmatpush3.bf16.msra.mxu0 %v1055_v39 }
  0x32   : > { %982 = vmatprep.subr.bf16.mxu0 %v1082_v34 }
  0x35   : > { %983 = vmatpush3.bf16.msra.mxu0 %v1056_v40 }
  0x38   : > { %985 = vmatmul.mubr.msk.bf16.vlgmr.msra.gmra.mrb[4].mxu0 %vm589_vm1, %v1057_v41 }
  0xfb   : > { %v943_v42 = vpop.f32.mrb[0].mxu0 }
  0xfc   : > { %v965_v43 = vpop.f32.mrb[0].mxu1  ;;  %v944_v44 = vpop.f32.mrb[1].mxu0 }
  0xfd   : > { %v945_v45 = vadd.f32 %v944_v44, %v943_v42  ;;  %v966_v46 = vpop.f32.mrb[1].mxu1  ;;  %v946_v47 = vpop.f32.mrb[2].mxu0 }
  0xfe   : > { %v967_v48 = vadd.f32 %v966_v46, %v965_v43  ;;  %v968_v49 = vpop.f32.mrb[2].mxu1  ;;  %v947_v50 = vpop.f32.mrb[3].mxu0 }
  0xff   : > { %v948_v51 = vadd.f32 %v947_v50, %v946_v47  ;;  %v969_v52 = vpop.f32.mrb[3].mxu1 }
 0x100   : > { %v970_v53 = vadd.f32 %v969_v52, %v968_v49  ;;  %v669_v54 = vadd.f32 %v967_v48, %v945_v45 }
 0x102   : > { %v672_v55 = vadd.f32 %v970_v53, %v948_v51 }
 0x10b   : > { %v709_v56 = vpop.f32.mrb[4].mxu0 }
 0x10c   : > { %v710_v58 = vadd.f32 %v709_v56, %v669_v54  ;;  %v986_v59 = vpop.f32.mrb[5].mxu0 }
 0x10d   : > { %v712_v61 = vpop.f32.mrb[6].mxu0 }
 0x10e   : > { %v723_v62 = vmul.f32 %v914_v57, %v710_v58  ;;  %v713_v63 = vadd.f32 %v712_v61, %v672_v55  ;;  %v987_v0 = vpop.f32.mrb[7].mxu0 }
 0x110   : > { %v732_v1 = vadd.f32 %v915_v60, %v723_v62  ;;  %v724_v2 = vmul.f32 %v914_v57, %v713_v63 }
 0x112   : > { %v733_v3 = vadd.f32 %v915_v60, %v724_v2  ;;  %v734_v4 = vmax.f32 %v732_v1, 0.0 }
 0x114   : > { %v735_v5 = vmax.f32 %v733_v3, 0.0 }
 0x116   : > { %v925_v6 = vpack.c.bf16 %v735_v5, %v734_v4 }
 0x118   : > { %926 = vst [vmem:[%s267_s10] sm:$0xff] %v925_v6  }
 0x119 PF: > { %s14_s17 = sadd.s32 1, %s1080_s17   ;;  %s1268_s15 = smov %s1076_s16 }
 0x11a   : > { %p11_p5 = scmp.ge.s32.totalorder %s14_s17, 4   ;;  %s1269_s16 = smov %s1271_s18 }
 0x11c   :  { %13 = sbr.rel (!%p11_p5) target bundleno = 2 (0x2), region = 75 }

// kernel: resnet_forward.19
= control target key start
LH: loop header
LB: loop body
LE: loop exit
PB: predicated region body
PF: predicated region fallthrough
CT: control target
= control target key end

     0   :  { %s1451_s18 = smov 0   ;;  %s1453_s19 = smov 0   ;;  %s1689_s0 = inlined_call_operand.vmem [shape: bf16[2,6,6,128], index: 0, kind: input, shape index: {}]   ;;  %s1690_s1 = inlined_call_operand.vmem [shape: bf16[3,3,128,128], index: 1, kind: input, shape index: {}]   ;;  %s1691_s2 = inlined_call_operand.vmem [shape: f32[1,128], index: 2, kind: input, shape index: {}]   ;;  %s1692_s3 = inlined_call_operand.vmem [shape: f32[1,128], index: 3, kind: input, shape index: {}]   ;;  %s1693_s4 = inlined_call_operand.vmem [shape: bf16[2,4,4,128], index: 4, kind: input, shape index: {}]   ;;  %s1694_s5 = inlined_call_operand.vmem [shape: bf16[2,4,4,128], index: 5, kind: output, shape index: {}]  }
   0x1   :  { %s1455_s20 = smov 0   ;;  %s1457_s21 = smov 0  }
   0x2   :  { %s1459_s22 = smov 0   ;;  %s1461_s23 = smov 0  }
   0x3   :  { %s1463_s24 = smov 0   ;;  %s1465_s25 = smov 0  }
   0x4   :  { %s1467_s26 = smov 0  }
   0x5 LB: > { %s1070_s27 = sadd.s32 4294967295, %s1415_s26   ;;  %s27_s28 = sadd.s32 1, %s1407_s24  ;;  %s1415_s26 = sphi %s1467_s26, %s15_s26   ;;  %s1411_s25 = sphi %s1465_s25, %s1715_s25   ;;  %s1407_s24 = sphi %s1463_s24, %s1714_s24   ;;  %s1403_s23 = sphi %s1461_s23, %s1713_s23   ;;  %s1399_s22 = sphi %s1459_s22, %s1712_s22   ;;  %s1395_s21 = sphi %s1457_s21, %s1711_s21   ;;  %s1391_s20 = sphi %s1455_s20, %s1710_s20   ;;  %s1387_s19 = sphi %s1453_s19, %s1709_s19   ;;  %s1383_s18 = sphi %s1451_s18, %s1708_s18  }
   0x6   : > { %p28_p0 = scmp.ge.s32.totalorder %s27_s28, 3  ;;  %s34_s29 = sadd.s32 1, %s1411_s25 }
   0x7   : > { %s38_s30 = sadd.s32 %s1407_s24, %s1411_s25  ;;  %s43_s6 = sadd.s32 1, %s1395_s21 }
   0x8   : > { %s1717_s28 = smov (%p28_p0, %s27_s28), 0  ;;  %s1719_s29 = smov (!%p28_p0, %s34_s29), %s1411_s25 }
   0x9   : > { %1697 = sst [smem:[#allocation6_spill]] %s1717_s28  ;;  %p50_p1 = scmp.ne.s32.totalorder %s1395_s21, %s1391_s20 }
   0xa   : > { %p51_p2 = scmp.eq.s32.totalorder %s1415_s26, 0  ;;  %p36_p3 = scmp.ge.s32.totalorder %s1719_s29, 4 }
   0xb   : > { %s151_s7 = sadd.s32 1, %s1387_s19  ;;  %p158_p5 = scmp.ne.s32.totalorder %s1387_s19, %s1383_s18 }
   0xc   : > { %p1509_p4 = por %p51_p2, %p50_p1  ;;  %s1721_s29 = smov (%p36_p3, %s1719_s29), 0 }
   0xd   : > { %1699 = sst [smem:[#allocation7_spill]] %s1721_s29  ;;  %p1517_p6 = por %p158_p5, %p51_p2 }
   0xe   : > { %p190_p7 = scmp.eq.s32.totalorder %s1070_s27, 11  ;;  %s39_s10 = sadd.s32 %s1721_s29, %s1717_s28 }
   0xf   : > { %s146_s11 = ssub.s32 %s1411_s25, %s1721_s29  ;;  %s40_s12 = ssub.s32 %s38_s30, %s39_s10 }
  0x10   : > { %p149_p8 = scmp.eq.s32.totalorder %s146_s11, 0  ;;  %p41_p9 = scmp.eq.s32.totalorder %s40_s12, 0 }
  0x11   : > { %p1525_p10 = por %p190_p7, %p158_p5  ;;  %p1075_p11 = scmp.ge.s32.totalorder %s1415_s26, 12 }
  0x12   : > { %s1530_s14 = scalar_select %p149_p8, %s1387_s19, %s151_s7  }
  0x13   : > { %s1533_s15 = scalar_select %p41_p9, %s1395_s21, %s43_s6  }
  0x14   : > { %224 = sbr.rel (%p1075_p11) target bundleno = 41 (0x29), region = 24 }
  0x1b   : > { %227 = sbr.rel (!%p1509_p4) target bundleno = 34 (0x22), region = 28  ;;  %s229_s16 = sand.u32 (%p1509_p4), 1, %s1395_s21  }
  0x1c   : > { %s1077_s17 = sshll.u32 (%p1509_p4), %s38_s30, 2  ;;  %s1076_s27 = sshll.u32 (%p1509_p4), %s229_s16, 3 }
  0x1d   : > { %s234_s12 = scalar_lea.vmem (%p1509_p4), %s1689_s0, %s1077_s17  ;;  %s231_s7 = scalar_lea.vmem (%p1509_p4), [#allocation3], %s1076_s27 }
  0x1e   : > { %v250_v0 = vld [vmem:[%s234_s12] sm:$0xf] (%p1509_p4)  ;;  %v252_v1 = vld [vmem:[%s234_s12 + $0x18] sm:$0xf] (%p1509_p4) }
  0x1f   : > { %251 = vst [vmem:[%s231_s7] sm:$0xf] (%p1509_p4), %v250_v0  ;;  %253 = vst [vmem:[%s231_s7 + $0x4] sm:$0xf] (%p1509_p4), %v252_v1 }
  0x22 PF: > { %291 = sbr.rel (!%p1517_p6) target bundleno = 41 (0x29), region = 73  ;;  %s293_s6 = sand.u32 (%p1517_p6), 1, %s1387_s19  }
  0x23   : > { %s1079_s8 = sshll.u32 (%p1517_p6), %s1411_s25, 1  ;;  %s1078_s29 = sshll.u32 (%p1517_p6), %s293_s6, 2 }
  0x24   : > { %s298_s28 = scalar_lea.vmem (%p1517_p6), %s1693_s4, %s1079_s8  ;;  %s295_s17 = scalar_lea.vmem (%p1517_p6), [#allocation4], %s1078_s29 }
  0x25   : > { %v314_v2 = vld [vmem:[%s298_s28] sm:$0x3] (%p1517_p6)  ;;  %v316_v3 = vld [vmem:[%s298_s28 + $0x8] sm:$0x3] (%p1517_p6) }
  0x26   : > { %315 = vst [vmem:[%s295_s17] sm:$0x3] (%p1517_p6), %v314_v2  ;;  %317 = vst [vmem:[%s295_s17 + $0x2] sm:$0x3] (%p1517_p6), %v316_v3 }
  0x29 PF: > { %p1080_p12 = scmp.ge.s32.totalorder %s1415_s26, 1  ;;  %p335_p13 = scmp.lt.s32.totalorder %s1415_s26, 13 }
  0x2b   : > { %p336_p0 = pnand %p1080_p12, %p335_p13 }
  0x2c   : > { %s342_s9 = sand.u32 (!%p336_p0), 1, %s1391_s20   ;;  %s349_s27 = sand.u32 (!%p336_p0), 1, %s1383_s18  }
  0x2d   : > { %339 = sbr.rel (%p336_p0) target bundleno = 370 (0x172), region = 107  ;;  %s1081_s10 = sshll.u32 (!%p336_p0), %s342_s9, 3 }
  0x2e   : > { %s1553_s11 = sshll.u32 (!%p336_p0), %s349_s27, 2  ;;  %p394_p1 = scmp.lt.s32.totalorder (!%p336_p0), %s1399_s22, 2 }
  0x2f   : > { %s1562_s8 = scalar_lea.vmem (!%p336_p0), [#allocation3], %s1081_s10  ;;  %s351_s30 = scalar_lea.vmem (!%p336_p0), [#allocation4], %s1553_s11 }
  0x30   : > { %s1566_s16 = scalar_lea.vmem (!%p336_p0), [#allocation5], %s1553_s11  ;;  %p1085_p2 = scmp.ne.s32.totalorder (!%p336_p0), %s1399_s22, 0 }
  0x34   : > { %s395_s28 = scalar_select %p394_p1, %s1399_s22, 2 }
  0x35   : > { %412 = sbr.rel (%p1085_p2) target bundleno = 60 (0x3c), region = 119  ;;  %v1417_v4 = vmov (!%p1085_p2), 0.0  }
  0x36   : > { %s1242_s29 = smul.u32 192, %s395_s28  ;;  %413 = vst [vmem:[#allocation2] sm:$0xff] (!%p1085_p2), %v1417_v4 }
  0x38   : > { %s1560_s6 = scalar_lea.vmem %s1690_s1, %s1242_s29 }
  0x3c PF: > { %v1319_v5 = vld [vmem:[%s1560_s6 + $0x40] sm:$0xff]   ;;  %v1418_v6 = vmov 0.0   ;;  %v1321_v8 = vld [vmem:[%s1560_s6 + $0x48] sm:$0xff]   ;;  %vm1419_vm0 = vmmov 0   ;;  %v1323_v10 = vld [vmem:[%s1560_s6 + $0x50] sm:$0xff]   ;;  %v508_v15 = vlaneseq  ;;  %vm720_vm8 = vcmask 1040384  }
  0x3d   : > { %1182 = vmatprep.subr.bf16.mxu0 %v1418_v6  ;;  %1202 = vmatprep.subr.bf16.mxu1 %v1418_v6  ;;  %v1320_v7 = vld [vmem:[%s1560_s6] sm:$0xff]   ;;  %v1322_v9 = vld [vmem:[%s1560_s6 + $0x8] sm:$0xff]   ;;  %v1324_v11 = vld [vmem:[%s1560_s6 + $0x10] sm:$0xff]   ;;  %vm452_vm1 = vsmask.f32 1280  ;;  %vm721_vm9 = vcmask 1042434  }
  0x3e   : > { %1183 = vmatpush3.bf16.msra.mxu0 %v1319_v5  ;;  %1198 = vmatprep.mubr.msk.bf16.mxu0 %vm1419_vm0, %v1418_v6  ;;  %v1325_v12 = vld [vmem:[%s1560_s6 + $0x58] sm:$0xff]   ;;  %v1327_v14 = vld [vmem:[%s1560_s6 + $0x60] sm:$0xff]   ;;  %v1086_v17 = vld.sshfl [vmem:[%s1562_s8] sm:$0x13 pattern:$0x76325410] }
  0x3f   : > { %1203 = vmatpush3.bf16.msra.mxu1 %v1320_v7  ;;  %1184 = vmatprep.subr.bf16.mxu0 %v1418_v6  ;;  %v1326_v13 = vld [vmem:[%s1560_s6 + $0x18] sm:$0xff]   ;;  %v1328_v16 = vld [vmem:[%s1560_s6 + $0x20] sm:$0xff]   ;;  %v1087_v18 = vld.sshfl [vmem:[%s1562_s8 + $0x4] sm:$0x13 pattern:$0x76325410]  ;;  %v443_v19 = vcombine.high %v1086_v17, %v1086_v17 }
  0x40   : > { %1204 = vmatprep.subr.bf16.mxu1 %v1418_v6  ;;  %1218 = vmatprep.mubr.msk.bf16.mxu1 %vm1419_vm0, %v1418_v6  ;;  %vm453_vm2 = vsmask.f32 3336  ;;  %v1329_v20 = vld [vmem:[%s1560_s6 + $0x68] sm:$0xff]   ;;  %v451_v22 = vcombine.high %v1087_v18, %v1087_v18  ;;  %vm455_vm4 = vsmask.f32 5392  ;;  %v460_v24 = vshrl.u32 %v1086_v17, 16  ;;  %vm722_vm10 = vmor %vm720_vm8, %vm721_vm9 }
  0x41   : > { %v1330_v21 = vld [vmem:[%s1560_s6 + $0x28] sm:$0xff]   ;;  %vm1597_vm3 = vmor %vm452_vm1, %vm453_vm2  ;;  %v509_v25 = vshrl.u32 %v508_v15, 7  ;;  %v463_v26 = vshll.u32 %v1086_v17, 16  ;;  %v469_v27 = vshll.u32 %v443_v19, 16  ;;  %v474_v28 = vshrl.u32 %v1087_v18, 16  ;;  %v1331_v30 = vld [vmem:[%s1560_s6 + $0x70] sm:$0xff]  }
  0x42   : > { %1185 = vmatpush3.bf16.msra.mxu0 %v1321_v8  ;;  %v477_v29 = vshll.u32 %v1087_v18, 16  ;;  %v462_v31 = vrot.slane %v460_v24, 6  ;;  %v483_v32 = vshll.u32 %v451_v22, 16  ;;  %v1332_v33 = vld [vmem:[%s1560_s6 + $0x30] sm:$0xff]   ;;  %vm1607_vm5 = vmor %vm1597_vm3, %vm455_vm4  ;;  %vm457_vm6 = vsmask.f32 7448 }
  0x43   : > { %1205 = vmatpush3.bf16.msra.mxu1 %v1322_v9  ;;  %1186 = vmatprep.subr.bf16.mxu0 %v1418_v6  ;;  %v465_v35 = vrot.slane %v463_v26, 7  ;;  %v476_v36 = vrot.slane %v474_v28, 6  ;;  %v471_v38 = vrot.slane %v469_v27, 7  ;;  %v1420_v40 = vmov 1983009808   ;;  %v1333_v44 = vld [vmem:[%s1560_s6 + $0x78] sm:$0xff]   ;;  %vm458_vm7 = vmor %vm1607_vm5, %vm457_vm6 }
  0x44   : > { %1206 = vmatprep.subr.bf16.mxu1 %v1418_v6  ;;  %v479_v37 = vrot.slane %v477_v29, 7  ;;  %v485_v39 = vrot.slane %v483_v32, 7  ;;  %v506_v41 = vunpack.c.l.s4 %v1420_v40  ;;  %v1344_v48 = vld.sshfl [vmem:[%s1562_s8] sm:$0xf pattern:$0x76325410] }
  0x45   : > { %v466_v42 = vor.u32 %v465_v35, %v462_v31  ;;  %v1334_v50 = vld [vmem:[%s1560_s6 + $0x38] sm:$0xff]   ;;  %v1336_v55 = vld [vmem:[%s1560_s6 + $0x80] sm:$0xff]   ;;  %v1337_v56 = vld [vmem:[%s1560_s6 + $0x88] sm:$0xff]   ;;  %vm723_vm11 = vcmask 1044484   ;;  %vm725_vm13 = vcmask 1046534   ;;  %p1148_p3 = scmp.ne.s32.totalorder %s1399_s22, 2 }
  0x46   : > { %1187 = vmatpush3.bf16.msra.mxu0 %v1323_v10  ;;  %v480_v43 = vor.u32 %v479_v37, %v476_v36  ;;  %v507_v45 = vunpack.c.0.s8 %v506_v41  ;;  %v1338_v57 = vld [vmem:[%s1560_s6 + $0x90] sm:$0xff]   ;;  %v1339_v58 = vld [vmem:[%s1560_s6 + $0x98] sm:$0xff]   ;;  %v1340_v61 = vld [vmem:[%s1560_s6 + $0xa0] sm:$0xff]  }
  0x47   : > { %1207 = vmatpush3.bf16.msra.mxu1 %v1324_v11  ;;  %1188 = vmatprep.subr.bf16.mxu0 %v1418_v6  ;;  %v467_v46 = vrot.slane %v466_v42, 2  ;;  %v1120_v59 = vld.sshfl [vmem:[%s1562_s8] sm:$0x12 pattern:$0x76325410]  ;;  %vm724_vm12 = vmor %vm722_vm10, %vm723_vm11  ;;  %v1343_v10 = vld [vmem:[%s1560_s6 + $0xb8] sm:$0xff]  }
  0x48   : > { %1208 = vmatprep.subr.bf16.mxu1 %v1418_v6  ;;  %v481_v47 = vrot.slane %v480_v43, 2  ;;  %v510_v49 = vsub.s32 %v507_v45, %v509_v25  ;;  %v1121_v60 = vld.sshfl [vmem:[%s1562_s8 + $0x4] sm:$0x12 pattern:$0x76325410]  ;;  %v711_v62 = vcombine.high %v1120_v59, %v1120_v59  ;;  %v1122_v1 = vrot.slane %v1120_v59, 9  ;;  %vm726_vm14 = vmor %vm724_vm12, %vm725_vm13 }
  0x49   : > { %v472_v51 = vsel %vm458_vm7, %v467_v46, %v471_v38  ;;  %v719_v63 = vcombine.high %v1121_v60, %v1121_v60  ;;  %v1341_v0 = vld [vmem:[%s1560_s6 + $0xa8] sm:$0xff]   ;;  %v1123_v3 = vrot.slane %v1121_v60, 9  ;;  %v1342_v5 = vld [vmem:[%s1560_s6 + $0xb0] sm:$0xff]   ;;  %v850_v22 = vld [vmem:[#allocation2] sm:$0xff] }
  0x4a   : > { %1189 = vmatpush3.bf16.msra.mxu0 %v1325_v12  ;;  %v486_v52 = vsel %vm458_vm7, %v481_v47, %v485_v39  ;;  %v729_v2 = vrot.slane %v711_v62, 7  ;;  %v1149_v28 = vld [vmem:[%s1691_s2] ss:$0 sm:$0xff] (!%p1148_p3)  ;;  %v874_v31 = vld [vmem:[%s351_s30] sm:$0x3] (!%p1148_p3) }
  0x4b   : > { %1209 = vmatpush3.bf16.msra.mxu1 %v1326_v13  ;;  %1190 = vmatprep.subr.bf16.mxu0 %v1418_v6  ;;  %v504_v53 = vcombine.low %v472_v51, %v486_v52  ;;  %v733_v4 = vrot.slane %v719_v63, 7  ;;  %v1150_v29 = vld [vmem:[%s1692_s3] ss:$0 sm:$0xff] (!%p1148_p3)  ;;  %v875_v32 = vld [vmem:[%s351_s30 + $0x2] sm:$0x3] (!%p1148_p3) }
  0x4c   : > { %1210 = vmatprep.subr.bf16.mxu1 %v1418_v6  ;;  %v730_v7 = vsel %vm726_vm14, %v1122_v1, %v729_v2  ;;  %v877_v34 = vunpack.c.l.bf16 (!%p1148_p3), %v875_v32 }
  0x4d   : > { %v511_v54 = vrot.slane %v504_v53, %v510_v49  ;;  %v734_v8 = vsel %vm726_vm14, %v1123_v3, %v733_v4 }
  0x4e   : > { %1191 = vmatpush3.bf16.msra.mxu0 %v1327_v14  ;;  %v752_v9 = vcombine.low %v730_v7, %v734_v8 }
  0x4f   : > { %1211 = vmatpush3.bf16.msra.mxu1 %v1328_v16  ;;  %1192 = vmatprep.subr.bf16.mxu0 %v1418_v6 }
  0x50   : > { %1212 = vmatprep.subr.bf16.mxu1 %v1418_v6  ;;  %v759_v11 = vrot.slane %v752_v9, %v510_v49 }
  0x52   : > { %1193 = vmatpush3.bf16.msra.mxu0 %v1329_v20 }
  0x53   : > { %1213 = vmatpush3.bf16.msra.mxu1 %v1330_v21  ;;  %1194 = vmatprep.subr.bf16.mxu0 %v1418_v6 }
  0x54   : > { %1214 = vmatprep.subr.bf16.mxu1 %v1418_v6 }
  0x56   : > { %1195 = vmatpush3.bf16.msra.mxu0 %v1331_v30 }
  0x57   : > { %1215 = vmatpush3.bf16.msra.mxu1 %v1332_v33  ;;  %1196 = vmatprep.subr.bf16.mxu0 %v1418_v6  ;;  %v876_v33 = vunpack.c.l.bf16 (!%p1148_p3), %v874_v31 }
  0x58   : > { %1216 = vmatprep.subr.bf16.mxu1 %v1418_v6 }
  0x59   : > { %v880_v36 = vcombine.low (!%p1148_p3), %v876_v33, %v877_v34 }
  0x5a   : > { %1197 = vmatpush3.bf16.msra.mxu0 %v1333_v44 }
  0x5b   : > { %1217 = vmatpush3.bf16.msra.mxu1 %v1334_v50  ;;  %1222 = vmatprep.subr.bf16.mxu0 %v1418_v6 }
  0x5d   : > { %1199 = vmatmul.mubr.bf16.vlgmr.msra.gmra.mrb[0].mxu0 %v511_v54 }
  0x5e   : > { %1219 = vmatmul.mubr.bf16.vlgmr.msra.gmra.mrb[0].mxu1 %v1344_v48  ;;  %1223 = vmatpush3.bf16.msra.mxu0 %v1336_v55 }
  0x5f   : > { %1224 = vmatprep.subr.bf16.mxu0 %v1418_v6  ;;  %1238 = vmatprep.mubr.msk.bf16.mxu0 %vm1419_vm0, %v1418_v6 }
  0x62   : > { %1225 = vmatpush3.bf16.msra.mxu0 %v1337_v56 }
  0x63   : > { %1226 = vmatprep.subr.bf16.mxu0 %v1418_v6 }
  0x66   : > { %1227 = vmatpush3.bf16.msra.mxu0 %v1338_v57 }
  0x67   : > { %1228 = vmatprep.subr.bf16.mxu0 %v1418_v6 }
  0x6a   : > { %1229 = vmatpush3.bf16.msra.mxu0 %v1339_v58 }
  0x6b   : > { %1230 = vmatprep.subr.bf16.mxu0 %v1418_v6 }
  0x6e   : > { %1231 = vmatpush3.bf16.msra.mxu0 %v1340_v61 }
  0x6f   : > { %1232 = vmatprep.subr.bf16.mxu0 %v1418_v6 }
  0x72   : > { %1233 = vmatpush3.bf16.msra.mxu0 %v1341_v0 }
  0x73   : > { %1234 = vmatprep.subr.bf16.mxu0 %v1418_v6 }
  0x76   : > { %1235 = vmatpush3.bf16.msra.mxu0 %v1342_v5 }
  0x77   : > { %1236 = vmatprep.subr.bf16.mxu0 %v1418_v6 }
  0x7a   : > { %1237 = vmatpush3.bf16.msra.mxu0 %v1343_v10 }
  0x7d   : > { %1239 = vmatmul.mubr.bf16.vlgmr.msra.gmra.mrb[4].mxu0 %v759_v11 }
 0x130   : > { %v595_v12 = vpop.f32.mrb[0].mxu0 }
 0x131   : > { %v1200_v13 = vpop.f32.mrb[1].mxu0  ;;  %v694_v14 = vpop.f32.mrb[0].mxu1 }
 0x132   : > { %v695_v15 = vadd.f32 %v694_v14, %v595_v12  ;;  %v598_v16 = vpop.f32.mrb[2].mxu0  ;;  %v1220_v17 = vpop.f32.mrb[1].mxu1 }
 0x133   : > { %v1201_v18 = vpop.f32.mrb[3].mxu0  ;;  %v697_v19 = vpop.f32.mrb[2].mxu1 }
 0x134   : > { %v1221_v20 = vpop.f32.mrb[3].mxu1 }
 0x14f   : > { %856 = sbr.rel (%p1148_p3) target bundleno = 362 (0x16a), region = 123 }
 0x150   : > { %v843_v21 = vpop.f32.mrb[4].mxu0 }
 0x151   : > { %v849_v23 = vadd.f32 %v843_v21, %v695_v15  ;;  %v1240_v24 = vpop.f32.mrb[5].mxu0 }
 0x152   : > { %v846_v25 = vpop.f32.mrb[6].mxu0 }
 0x153   : > { %v851_v26 = vadd.f32 %v850_v22, %v849_v23  ;;  %v1241_v27 = vpop.f32.mrb[7].mxu0 }
 0x155   : > { %852 = vst [vmem:[#allocation2] sm:$0xff] %v851_v26 }
 0x15c   : > { %v857_v6 = vld [vmem:[#allocation2] sm:$0xff] }
 0x15d   : > { %v865_v30 = vmul.f32 %v1149_v28, %v857_v6 }
 0x15f   : > { %v873_v35 = vadd.f32 %v1150_v29, %v865_v30 }
 0x161   : > { %v882_v37 = vadd.f32 %v880_v36, %v873_v35 }
 0x163   : > { %v883_v38 = vmax.f32 %v882_v37, 0.0 }
 0x165   : > { %v887_v39 = vpack.c.bf16 %v883_v38, %v883_v38  ;;  %v885_v40 = vcombine.high %v883_v38, %v883_v38 }
 0x167   : > { %889 = vst [vmem:[%s1566_s16] sm:$0x3] %v887_v39  ;;  %v888_v41 = vpack.c.bf16 %v885_v40, %v885_v40 }
 0x169   : > { %890 = vst [vmem:[%s1566_s16 + $0x2] sm:$0x3] %v888_v41 }
 0x16a PF: > { %897 = sbr.rel (!%p1525_p10) target bundleno = 370 (0x172), region = 127  ;;  %s1152_s22 = sshll.u32 (%p1525_p10), %s1403_s23, 1 }
 0x16b   : > { %s900_s11 = scalar_lea.vmem (%p1525_p10), %s1694_s5, %s1152_s22 }
 0x16e   : > { %v916_v42 = vld [vmem:[%s1566_s16] sm:$0x3] (%p1525_p10) }
 0x16f   : > { %917 = vst [vmem:[%s900_s11] sm:$0x3] (%p1525_p10), %v916_v42 }
 0x170   : > { %v918_v43 = vld [vmem:[%s1566_s16 + $0x2] sm:$0x3] (%p1525_p10) }
 0x171   : > { %919 = vst [vmem:[%s900_s11 + $0x8] sm:$0x3] %v918_v43 }
 0x172 PF: > { %s15_s26 = sadd.s32 1, %s1415_s26   ;;  %s1706_s13 = sld [smem:[#allocation6_spill]] }
 0x173   : > { %p12_p4 = scmp.ge.s32.totalorder %s15_s26, 14   ;;  %s1707_s28 = sld [smem:[#allocation7_spill]] }
 0x174   : > { %s1708_s18 = smov %s1387_s19  ;;  %s1709_s19 = smov %s1530_s14 }
 0x175   : > { %s1710_s20 = smov %s1395_s21  ;;  %s1711_s21 = smov %s1533_s15 }
 0x176   : > { %s1712_s22 = smov %s1407_s24  ;;  %s1713_s23 = smov %s1411_s25 }
 0x177   :  { %14 = sbr.rel (!%p12_p4) target bundleno = 5 (0x5), region = 211 }
 0x178   : > { %s1714_s24 = smov %s1706_s13 }
 0x179   : > { %s1715_s25 = smov %s1707_s28 }

// kernel: resnet_forward.17
= control target key start
LH: loop header
LB: loop body
LE: loop exit
PB: predicated region body
PF: predicated region fallthrough
CT: control target
= control target key end

     0   :  { %s623_s15 = smov 0   ;;  %s625_s16 = smov 0   ;;  %s674_s0 = inlined_call_operand.vmem [shape: bf16[32,64], index: 0, kind: input, shape index: {}]   ;;  %s675_s1 = inlined_call_operand.vmem [shape: bf16[64,128], index: 1, kind: input, shape index: {}]   ;;  %s676_s2 = inlined_call_operand.vmem [shape: f32[1,128], index: 2, kind: input, shape index: {}]   ;;  %s677_s3 = inlined_call_operand.vmem [shape: f32[1,128], index: 3, kind: input, shape index: {}]   ;;  %s678_s4 = inlined_call_operand.vmem [shape: bf16[32,128], index: 4, kind: output, shape index: {}]  }
   0x1   :  { %s627_s17 = smov 0  }
   0x2 LB: > { %s26_s18 = sadd.s32 1, %s590_s16  ;;  %p500_p0 = scmp.ge.s32.totalorder %s594_s17, 1  ;;  %s594_s17 = sphi %s627_s17, %s14_s17   ;;  %s590_s16 = sphi %s625_s16, %s680_s16   ;;  %s586_s15 = sphi %s623_s15, %s679_s15  }
   0x3   : > { %p28_p1 = scmp.ge.s32.totalorder %s26_s18, 2  ;;  %p202_p2 = scmp.lt.s32.totalorder %s594_s17, 3 }
   0x5   : > { %s682_s18 = smov (%p28_p1, %s26_s18), 0  ;;  %p203_p3 = pnand %p500_p0, %p202_p2 }
   0x6   : > { %v567_v0 = vld [vmem:[%s675_s1] sm:$0xff] (!%p203_p3)   ;;  %v596_v1 = vmov (!%p203_p3), 0.0   ;;  %v568_v2 = vld [vmem:[%s675_s1 + $0x8] sm:$0xff] (!%p203_p3)   ;;  %vm597_vm0 = vmmov (!%p203_p3), 0   ;;  %s501_s23 = sshll.u32 (!%p203_p3), %s586_s15, 1  ;;  %v569_v3 = vld [vmem:[%s675_s1 + $0x10] sm:$0xff] (!%p203_p3)  }
   0x7   : > { %206 = sbr.rel (%p203_p3) target bundleno = 244 (0xf4), region = 36  ;;  %529 = vmatprep.subr.bf16.mxu0 (!%p203_p3), %v596_v1  ;;  %537 = vmatprep.mubr.msk.bf16.mxu0 (!%p203_p3), %vm597_vm0, %v596_v1  ;;  %p242_p4 = scmp.lt.s32.totalorder (!%p203_p3), %s501_s23, 3  ;;  %v570_v4 = vld [vmem:[%s675_s1 + $0x18] sm:$0xff] (!%p203_p3)   ;;  %vm306_vm1 = vcmask (!%p203_p3), 523264   ;;  %v511_v6 = vld [vmem:[%s676_s2] ss:$0 sm:$0xff] (!%p203_p3) }
   0x8   : > { %530 = vmatpush3.bf16.msra.mxu0 (!%p203_p3), %v567_v0  ;;  %v512_v10 = vld [vmem:[%s677_s3] ss:$0 sm:$0xff] (!%p203_p3) }
   0x9   : > { %531 = vmatprep.subr.bf16.mxu0 (!%p203_p3), %v596_v1 }
   0xc   : > { %532 = vmatpush3.bf16.msra.mxu0 (!%p203_p3), %v568_v2 }
   0xd   : > { %533 = vmatprep.subr.bf16.mxu0 (!%p203_p3), %v596_v1 }
   0xe   : > { %s684_s23 = smov (!%p242_p4, %s501_s23), 3 }
   0xf   : > { %s502_s26 = sshll.u32 %s684_s23, 2 }
  0x10   : > { %s245_s29 = scalar_lea.vmem %s674_s0, %s502_s26  ;;  %534 = vmatpush3.bf16.msra.mxu0 %v569_v3  ;;  %s264_s12 = scalar_lea.vmem %s678_s4, %s502_s26 }
  0x11   : > { %535 = vmatprep.subr.bf16.mxu0 %v596_v1  ;;  %v571_v5 = vld [vmem:[%s245_s29] sm:$0xff]  }
  0x14   : > { %536 = vmatpush3.bf16.msra.mxu0 %v570_v4 }
  0x17   : > { %538 = vmatmul.mubr.msk.bf16.vlgmr.msra.gmra.mrb[0].mxu0 %vm306_vm1, %v571_v5 }
  0xea   : > { %v344_v7 = vpop.f32.mrb[0].mxu0 }
  0xeb   : > { %v358_v8 = vmul.f32 %v511_v6, %v344_v7  ;;  %v539_v9 = vpop.f32.mrb[1].mxu0 }
  0xec   : > { %v347_v11 = vpop.f32.mrb[2].mxu0 }
  0xed   : > { %v359_v12 = vmul.f32 %v511_v6, %v347_v11  ;;  %v540_v13 = vpop.f32.mrb[3].mxu0  ;;  %v367_v14 = vadd.f32 %v512_v10, %v358_v8 }
  0xef   : > { %v368_v15 = vadd.f32 %v512_v10, %v359_v12 }
  0xf1   : > { %v522_v16 = vpack.c.bf16 %v368_v15, %v367_v14 }
  0xf3   : > { %523 = vst [vmem:[%s264_s12] sm:$0xff] %v522_v16  }
  0xf4 PF: > { %s14_s17 = sadd.s32 1, %s594_s17   ;;  %s679_s15 = smov %s590_s16 }
  0xf5   : > { %p11_p5 = scmp.ge.s32.totalorder %s14_s17, 4   ;;  %s680_s16 = smov %s682_s18 }
  0xf7   :  { %13 = sbr.rel (!%p11_p5) target bundleno = 2 (0x2), region = 75 }

// kernel: resnet_forward.20
= control target key start
LH: loop header
LB: loop body
LE: loop exit
PB: predicated region body
PF: predicated region fallthrough
CT: control target
= control target key end

     0   :  { %v240_v1 = vmov 0   ;;  %v158_v18 = vlaneseq  ;;  %s326_s1 = inlined_call_operand.vmem [shape: bf16[128,256], index: 1, kind: input, shape index: {}]   ;;  %s327_s0 = inlined_call_operand.vmem [shape: bf16[8,128], index: 0, kind: input, shape index: {}]   ;;  %s328_s2 = inlined_call_operand.vmem [shape: f32[1,256], index: 2, kind: input, shape index: {}]   ;;  %s329_s3 = inlined_call_operand.vmem [shape: f32[1,256], index: 3, kind: input, shape index: {}]   ;;  %s330_s4 = inlined_call_operand.vmem [shape: bf16[8,256], index: 4, kind: output, shape index: {}]  }
   0x1   :  { %v216_v0 = vld [vmem:[%s326_s1 + $0x4] ss:$8 sps:$4 sm:$0xff]   ;;  %147 = vmatprep.mubr.bf16.mxu0 %v240_v1  ;;  %v218_v2 = vld [vmem:[%s326_s1] ss:$8 sps:$4 sm:$0xff]   ;;  %v219_v3 = vld [vmem:[%s326_s1 + $0x14] ss:$8 sps:$4 sm:$0xff]  }
   0x2   :  { %115 = vmatprep.subr.bf16.mxu0 %v216_v0  ;;  %v221_v4 = vld [vmem:[%s326_s1 + $0x10] ss:$8 sps:$4 sm:$0xff]   ;;  %v222_v5 = vld [vmem:[%s326_s1 + $0x24] ss:$8 sps:$4 sm:$0xff]   ;;  %v224_v6 = vld [vmem:[%s326_s1 + $0x20] ss:$8 sps:$4 sm:$0xff]  }
   0x3   :  { %116 = vmatpush1.bf16.msra.mxu0 %v218_v2  ;;  %v225_v7 = vld [vmem:[%s326_s1 + $0x34] ss:$8 sps:$4 sm:$0xff]   ;;  %v227_v8 = vld [vmem:[%s326_s1 + $0x30] ss:$8 sps:$4 sm:$0xff]   ;;  %v228_v9 = vld [vmem:[%s326_s1 + $0x44] ss:$8 sps:$4 sm:$0xff]  }
   0x4   :  { %117 = vmatprep.subr.bf16.mxu0 %v219_v3  ;;  %v230_v10 = vld [vmem:[%s326_s1 + $0x40] ss:$8 sps:$4 sm:$0xff]   ;;  %v231_v11 = vld [vmem:[%s326_s1 + $0x54] ss:$8 sps:$4 sm:$0xff]   ;;  %v233_v12 = vld [vmem:[%s326_s1 + $0x50] ss:$8 sps:$4 sm:$0xff]  }
   0x5   :  { %v234_v13 = vld [vmem:[%s326_s1 + $0x64] ss:$8 sps:$4 sm:$0xff]   ;;  %v236_v14 = vld [vmem:[%s326_s1 + $0x60] ss:$8 sps:$4 sm:$0xff]   ;;  %v237_v15 = vld [vmem:[%s326_s1 + $0x74] ss:$8 sps:$4 sm:$0xff]  }
   0x6   :  { %v239_v16 = vld [vmem:[%s326_s1 + $0x70] ss:$8 sps:$4 sm:$0xff]   ;;  %v18_v17 = vld [vmem:[%s327_s0] sm:$0xf]  ;;  %v159_v19 = vshrl.u32 %v158_v18, 7 }
   0x7   :  { %118 = vmatpush1.bf16.msra.mxu0 %v221_v4  ;;  %v156_v21 = vld [vmem:[%s328_s2] sm:$0x3] }
   0x8   :  { %119 = vmatprep.subr.bf16.mxu0 %v222_v5  ;;  %v160_v20 = vsub.s32 0, %v159_v19  ;;  %v164_v22 = vsub.s32 1, %v159_v19  ;;  %v170_v23 = vld [vmem:[%s329_s3] sm:$0x3] }
   0xa   :  { %v161_v24 = vrot.slane %v156_v21, %v160_v20  ;;  %v165_v25 = vrot.slane %v156_v21, %v164_v22  ;;  %v175_v26 = vrot.slane %v170_v23, %v160_v20  ;;  %v179_v28 = vrot.slane %v170_v23, %v164_v22 }
   0xb   :  { %120 = vmatpush1.bf16.msra.mxu0 %v224_v6 }
   0xc   :  { %121 = vmatprep.subr.bf16.mxu0 %v225_v7 }
   0xf   :  { %122 = vmatpush1.bf16.msra.mxu0 %v227_v8 }
  0x10   :  { %123 = vmatprep.subr.bf16.mxu0 %v228_v9 }
  0x13   :  { %124 = vmatpush1.bf16.msra.mxu0 %v230_v10 }
  0x14   :  { %125 = vmatprep.subr.bf16.mxu0 %v231_v11 }
  0x17   :  { %126 = vmatpush1.bf16.msra.mxu0 %v233_v12 }
  0x18   :  { %127 = vmatprep.subr.bf16.mxu0 %v234_v13 }
  0x1b   :  { %128 = vmatpush1.bf16.msra.mxu0 %v236_v14 }
  0x1c   :  { %129 = vmatprep.subr.bf16.mxu0 %v237_v15 }
  0x1f   :  { %130 = vmatpush1.bf16.msra.mxu0 %v239_v16 }
  0x22   :  { %148 = vmatmul.mubr.bf16.vlgmr.msra.gmra.mrb[0].mxu0 %v18_v17 }
  0xf5   :  { %v149_v27 = vpop.f32.mrb[0].mxu0 }
  0xf6   :  { %v168_v29 = vmul.f32 %v161_v24, %v149_v27  ;;  %v151_v30 = vpop.f32.mrb[1].mxu0 }
  0xf7   :  { %v169_v31 = vmul.f32 %v165_v25, %v151_v30  ;;  %v153_v32 = vpop.f32.mrb[2].mxu0 }
  0xf8   :  { %v182_v33 = vadd.f32 %v175_v26, %v168_v29  ;;  %v154_v34 = vpop.f32.mrb[3].mxu0 }
  0xf9   :  { %v183_v35 = vadd.f32 %v179_v28, %v169_v31 }
  0xfb   :  { %v214_v36 = vpack.c.bf16 %v183_v35, %v182_v33 }
  0xfd   :  { %192 = vst [vmem:[%s330_s4] sm:$0xff] %v214_v36 }

// kernel: resnet_forward.21
= control target key start
LH: loop header
LB: loop body
LE: loop exit
PB: predicated region body
PF: predicated region fallthrough
CT: control target
= control target key end

     0   :  { %s2056_s1 = inlined_call_operand.vmem [shape: bf16[1152,256], index: 1, kind: input, shape index: {}]   ;;  %s2057_s0 = inlined_call_operand.vmem [shape: bf16[8,1152], index: 0, kind: input, shape index: {}]   ;;  %s2058_s2 = inlined_call_operand.vmem [shape: f32[1,256], index: 2, kind: input, shape index: {}]   ;;  %s2059_s3 = inlined_call_operand.vmem [shape: f32[1,256], index: 3, kind: input, shape index: {}]   ;;  %s2060_s4 = inlined_call_operand.vmem [shape: bf16[8,256], index: 4, kind: output, shape index: {}]  }
   0x1   :  { %v1337_v0 = vld [vmem:[%s2056_s1 + $0x4] ss:$8 sps:$4 sm:$0xff]   ;;  %v1341_v2 = vld [vmem:[%s2056_s1] ss:$8 sps:$4 sm:$0xff]   ;;  %v1343_v4 = vld [vmem:[%s2056_s1 + $0x14] ss:$8 sps:$4 sm:$0xff]  }
   0x2   :  { %v1339_v1 = vld [vmem:[%s2056_s1 + $0x204] ss:$8 sps:$4 sm:$0xff]   ;;  %919 = vmatprep.subr.bf16.mxu1 %v1337_v0  ;;  %v1342_v3 = vld [vmem:[%s2056_s1 + $0x200] ss:$8 sps:$4 sm:$0xff]   ;;  %v1345_v5 = vld [vmem:[%s2056_s1 + $0x214] ss:$8 sps:$4 sm:$0xff]  }
   0x3   :  { %1001 = vmatprep.subr.bf16.mxu0 %v1339_v1  ;;  %920 = vmatpush1.bf16.msra.mxu1 %v1341_v2  ;;  %v1347_v6 = vld [vmem:[%s2056_s1 + $0x10] ss:$8 sps:$4 sm:$0xff]   ;;  %v1349_v8 = vld [vmem:[%s2056_s1 + $0x24] ss:$8 sps:$4 sm:$0xff]   ;;  %v1353_v10 = vld [vmem:[%s2056_s1 + $0x20] ss:$8 sps:$4 sm:$0xff]  }
   0x4   :  { %1002 = vmatpush1.bf16.msra.mxu0 %v1342_v3  ;;  %921 = vmatprep.subr.bf16.mxu1 %v1343_v4  ;;  %v1348_v7 = vld [vmem:[%s2056_s1 + $0x210] ss:$8 sps:$4 sm:$0xff]   ;;  %v1351_v9 = vld [vmem:[%s2056_s1 + $0x224] ss:$8 sps:$4 sm:$0xff]   ;;  %v1354_v11 = vld [vmem:[%s2056_s1 + $0x220] ss:$8 sps:$4 sm:$0xff]  }
   0x5   :  { %1003 = vmatprep.subr.bf16.mxu0 %v1345_v5  ;;  %v1355_v12 = vld [vmem:[%s2056_s1 + $0x34] ss:$8 sps:$4 sm:$0xff]   ;;  %v1359_v14 = vld [vmem:[%s2056_s1 + $0x30] ss:$8 sps:$4 sm:$0xff]   ;;  %v1361_v16 = vld [vmem:[%s2056_s1 + $0x44] ss:$8 sps:$4 sm:$0xff]  }
   0x6   :  { %v1357_v13 = vld [vmem:[%s2056_s1 + $0x234] ss:$8 sps:$4 sm:$0xff]   ;;  %v1360_v15 = vld [vmem:[%s2056_s1 + $0x230] ss:$8 sps:$4 sm:$0xff]   ;;  %v1363_v17 = vld [vmem:[%s2056_s1 + $0x244] ss:$8 sps:$4 sm:$0xff]  }
   0x7   :  { %922 = vmatpush1.bf16.msra.mxu1 %v1347_v6  ;;  %v1365_v18 = vld [vmem:[%s2056_s1 + $0x40] ss:$8 sps:$4 sm:$0xff]   ;;  %v1367_v20 = vld [vmem:[%s2056_s1 + $0x54] ss:$8 sps:$4 sm:$0xff]   ;;  %v1371_v22 = vld [vmem:[%s2056_s1 + $0x50] ss:$8 sps:$4 sm:$0xff]  }
   0x8   :  { %1004 = vmatpush1.bf16.msra.mxu0 %v1348_v7  ;;  %923 = vmatprep.subr.bf16.mxu1 %v1349_v8  ;;  %v1366_v19 = vld [vmem:[%s2056_s1 + $0x240] ss:$8 sps:$4 sm:$0xff]   ;;  %v1369_v21 = vld [vmem:[%s2056_s1 + $0x254] ss:$8 sps:$4 sm:$0xff]   ;;  %v1372_v23 = vld [vmem:[%s2056_s1 + $0x250] ss:$8 sps:$4 sm:$0xff]  }
   0x9   :  { %1005 = vmatprep.subr.bf16.mxu0 %v1351_v9  ;;  %v1373_v24 = vld [vmem:[%s2056_s1 + $0x64] ss:$8 sps:$4 sm:$0xff]   ;;  %v1377_v26 = vld [vmem:[%s2056_s1 + $0x60] ss:$8 sps:$4 sm:$0xff]   ;;  %v1379_v28 = vld [vmem:[%s2056_s1 + $0x74] ss:$8 sps:$4 sm:$0xff]  }
   0xa   :  { %v1375_v25 = vld [vmem:[%s2056_s1 + $0x264] ss:$8 sps:$4 sm:$0xff]   ;;  %v1378_v27 = vld [vmem:[%s2056_s1 + $0x260] ss:$8 sps:$4 sm:$0xff]   ;;  %v1381_v29 = vld [vmem:[%s2056_s1 + $0x274] ss:$8 sps:$4 sm:$0xff]  }
   0xb   :  { %924 = vmatpush1.bf16.msra.mxu1 %v1353_v10  ;;  %v1383_v30 = vld [vmem:[%s2056_s1 + $0x70] ss:$8 sps:$4 sm:$0xff]   ;;  %v1385_v32 = vld [vmem:[%s2056_s1 + $0x84] ss:$8 sps:$4 sm:$0xff]   ;;  %v1389_v34 = vld [vmem:[%s2056_s1 + $0x80] ss:$8 sps:$4 sm:$0xff]  }
   0xc   :  { %1006 = vmatpush1.bf16.msra.mxu0 %v1354_v11  ;;  %925 = vmatprep.subr.bf16.mxu1 %v1355_v12  ;;  %v1384_v31 = vld [vmem:[%s2056_s1 + $0x270] ss:$8 sps:$4 sm:$0xff]   ;;  %v1387_v33 = vld [vmem:[%s2056_s1 + $0x284] ss:$8 sps:$4 sm:$0xff]   ;;  %v1390_v35 = vld [vmem:[%s2056_s1 + $0x280] ss:$8 sps:$4 sm:$0xff]  }
   0xd   :  { %1007 = vmatprep.subr.bf16.mxu0 %v1357_v13  ;;  %v1391_v36 = vld [vmem:[%s2056_s1 + $0x94] ss:$8 sps:$4 sm:$0xff]   ;;  %v1395_v38 = vld [vmem:[%s2056_s1 + $0x90] ss:$8 sps:$4 sm:$0xff]   ;;  %v1397_v40 = vld [vmem:[%s2056_s1 + $0xa4] ss:$8 sps:$4 sm:$0xff]  }
   0xe   :  { %v1393_v37 = vld [vmem:[%s2056_s1 + $0x294] ss:$8 sps:$4 sm:$0xff]   ;;  %v1396_v39 = vld [vmem:[%s2056_s1 + $0x290] ss:$8 sps:$4 sm:$0xff]   ;;  %v1399_v41 = vld [vmem:[%s2056_s1 + $0x2a4] ss:$8 sps:$4 sm:$0xff]  }
   0xf   :  { %926 = vmatpush1.bf16.msra.mxu1 %v1359_v14  ;;  %v1401_v42 = vld [vmem:[%s2056_s1 + $0xa0] ss:$8 sps:$4 sm:$0xff]   ;;  %v1403_v44 = vld [vmem:[%s2056_s1 + $0xb4] ss:$8 sps:$4 sm:$0xff]   ;;  %v1407_v47 = vld [vmem:[%s2056_s1 + $0xb0] ss:$8 sps:$4 sm:$0xff]  }
  0x10   :  { %1008 = vmatpush1.bf16.msra.mxu0 %v1360_v15  ;;  %927 = vmatprep.subr.bf16.mxu1 %v1361_v16  ;;  %v1402_v43 = vld [vmem:[%s2056_s1 + $0x2a0] ss:$8 sps:$4 sm:$0xff]   ;;  %v1405_v45 = vld [vmem:[%s2056_s1 + $0x2b4] ss:$8 sps:$4 sm:$0xff]   ;;  %v1408_v49 = vld [vmem:[%s2056_s1 + $0x2b0] ss:$8 sps:$4 sm:$0xff]  }
  0x11   :  { %1009 = vmatprep.subr.bf16.mxu0 %v1363_v17  ;;  %v18_v46 = vld [vmem:[%s2057_s0] sm:$0xff]  ;;  %v20_v50 = vld [vmem:[%s2057_s0 + $0x10] sm:$0xff] }
  0x12   :  { %v1168_v48 = vcombine.high %v18_v46, %v18_v46  ;;  %v1409_v51 = vld [vmem:[%s2056_s1 + $0xc4] ss:$8 sps:$4 sm:$0xff]   ;;  %v1172_v53 = vcombine.high %v20_v50, %v20_v50  ;;  %v1413_v54 = vld [vmem:[%s2056_s1 + $0xc0] ss:$8 sps:$4 sm:$0xff]   ;;  %v1415_v56 = vld [vmem:[%s2056_s1 + $0xd4] ss:$8 sps:$4 sm:$0xff]   ;;  %v1167_v6 = vcombine.low %v18_v46, %v18_v46  ;;  %v1171_v7 = vcombine.low %v20_v50, %v20_v50 }
  0x13   :  { %928 = vmatpush1.bf16.msra.mxu1 %v1365_v18  ;;  %v1411_v52 = vld [vmem:[%s2056_s1 + $0x2c4] ss:$8 sps:$4 sm:$0xff]   ;;  %v1414_v55 = vld [vmem:[%s2056_s1 + $0x2c0] ss:$8 sps:$4 sm:$0xff]   ;;  %v1417_v57 = vld [vmem:[%s2056_s1 + $0x2d4] ss:$8 sps:$4 sm:$0xff]  }
  0x14   :  { %1010 = vmatpush1.bf16.msra.mxu0 %v1366_v19  ;;  %929 = vmatprep.subr.bf16.mxu1 %v1367_v20  ;;  %v1419_v58 = vld [vmem:[%s2056_s1 + $0xd0] ss:$8 sps:$4 sm:$0xff]   ;;  %v1421_v60 = vld [vmem:[%s2056_s1 + $0xe4] ss:$8 sps:$4 sm:$0xff]   ;;  %v1425_v62 = vld [vmem:[%s2056_s1 + $0xe0] ss:$8 sps:$4 sm:$0xff]  }
  0x15   :  { %1011 = vmatprep.subr.bf16.mxu0 %v1369_v21  ;;  %951 = vmatprep.mubr.bf16.mxu1 %v1168_v48  ;;  %v1420_v59 = vld [vmem:[%s2056_s1 + $0x2d0] ss:$8 sps:$4 sm:$0xff]   ;;  %v1423_v61 = vld [vmem:[%s2056_s1 + $0x2e4] ss:$8 sps:$4 sm:$0xff]   ;;  %v1426_v63 = vld [vmem:[%s2056_s1 + $0x2e0] ss:$8 sps:$4 sm:$0xff]  }
  0x16   :  { %1033 = vmatprep.mubr.bf16.mxu0 %v1172_v53  ;;  %v1427_v0 = vld [vmem:[%s2056_s1 + $0xf4] ss:$8 sps:$4 sm:$0xff]   ;;  %v1431_v2 = vld [vmem:[%s2056_s1 + $0xf0] ss:$8 sps:$4 sm:$0xff]   ;;  %v1437_v4 = vld [vmem:[%s2056_s1 + $0x104] ss:$8 sps:$4 sm:$0xff]  }
  0x17   :  { %930 = vmatpush1.bf16.msra.mxu1 %v1371_v22  ;;  %v1429_v1 = vld [vmem:[%s2056_s1 + $0x2f4] ss:$8 sps:$4 sm:$0xff]   ;;  %v1432_v3 = vld [vmem:[%s2056_s1 + $0x2f0] ss:$8 sps:$4 sm:$0xff]   ;;  %v1442_v5 = vld [vmem:[%s2056_s1 + $0x304] ss:$8 sps:$4 sm:$0xff]  }
  0x18   :  { %1012 = vmatpush1.bf16.msra.mxu0 %v1372_v23  ;;  %931 = vmatprep.subr.bf16.mxu1 %v1373_v24  ;;  %v1435_v8 = vld [vmem:[%s2056_s1 + $0x100] ss:$8 sps:$4 sm:$0xff]   ;;  %v1445_v10 = vld [vmem:[%s2056_s1 + $0x114] ss:$8 sps:$4 sm:$0xff]   ;;  %v1443_v12 = vld [vmem:[%s2056_s1 + $0x110] ss:$8 sps:$4 sm:$0xff]  }
  0x19   :  { %1013 = vmatprep.subr.bf16.mxu0 %v1375_v25  ;;  %v1440_v9 = vld [vmem:[%s2056_s1 + $0x300] ss:$8 sps:$4 sm:$0xff]   ;;  %v1448_v11 = vld [vmem:[%s2056_s1 + $0x314] ss:$8 sps:$4 sm:$0xff]   ;;  %v1446_v13 = vld [vmem:[%s2056_s1 + $0x310] ss:$8 sps:$4 sm:$0xff]  }
  0x1a   :  { %v1451_v14 = vld [vmem:[%s2056_s1 + $0x124] ss:$8 sps:$4 sm:$0xff]   ;;  %v1449_v16 = vld [vmem:[%s2056_s1 + $0x120] ss:$8 sps:$4 sm:$0xff]   ;;  %v1457_v18 = vld [vmem:[%s2056_s1 + $0x134] ss:$8 sps:$4 sm:$0xff]  }
  0x1b   :  { %932 = vmatpush1.bf16.msra.mxu1 %v1377_v26  ;;  %v1454_v15 = vld [vmem:[%s2056_s1 + $0x324] ss:$8 sps:$4 sm:$0xff]   ;;  %v1452_v17 = vld [vmem:[%s2056_s1 + $0x320] ss:$8 sps:$4 sm:$0xff]   ;;  %v1460_v19 = vld [vmem:[%s2056_s1 + $0x334] ss:$8 sps:$4 sm:$0xff]  }
  0x1c   :  { %1014 = vmatpush1.bf16.msra.mxu0 %v1378_v27  ;;  %933 = vmatprep.subr.bf16.mxu1 %v1379_v28  ;;  %v1455_v20 = vld [vmem:[%s2056_s1 + $0x130] ss:$8 sps:$4 sm:$0xff]   ;;  %v1463_v22 = vld [vmem:[%s2056_s1 + $0x144] ss:$8 sps:$4 sm:$0xff]   ;;  %v1461_v24 = vld [vmem:[%s2056_s1 + $0x140] ss:$8 sps:$4 sm:$0xff]  }
  0x1d   :  { %1015 = vmatprep.subr.bf16.mxu0 %v1381_v29  ;;  %v1458_v21 = vld [vmem:[%s2056_s1 + $0x330] ss:$8 sps:$4 sm:$0xff]   ;;  %v1466_v23 = vld [vmem:[%s2056_s1 + $0x344] ss:$8 sps:$4 sm:$0xff]   ;;  %v1464_v25 = vld [vmem:[%s2056_s1 + $0x340] ss:$8 sps:$4 sm:$0xff]  }
  0x1e   :  { %v1469_v26 = vld [vmem:[%s2056_s1 + $0x154] ss:$8 sps:$4 sm:$0xff]   ;;  %v1467_v28 = vld [vmem:[%s2056_s1 + $0x150] ss:$8 sps:$4 sm:$0xff]   ;;  %v1499_v50 = vld [vmem:[%s2056_s1 + $0x1a4] ss:$8 sps:$4 sm:$0xff]  }
  0x1f   :  { %934 = vmatpush1.bf16.msra.mxu1 %v1383_v30  ;;  %v1472_v27 = vld [vmem:[%s2056_s1 + $0x354] ss:$8 sps:$4 sm:$0xff]   ;;  %v1470_v29 = vld [vmem:[%s2056_s1 + $0x350] ss:$8 sps:$4 sm:$0xff]   ;;  %v1475_v30 = vld [vmem:[%s2056_s1 + $0x164] ss:$8 sps:$4 sm:$0xff]  }
  0x20   :  { %1016 = vmatpush1.bf16.msra.mxu0 %v1384_v31  ;;  %935 = vmatprep.subr.bf16.mxu1 %v1385_v32  ;;  %v1478_v31 = vld [vmem:[%s2056_s1 + $0x364] ss:$8 sps:$4 sm:$0xff]   ;;  %v1493_v46 = vld [vmem:[%s2056_s1 + $0x194] ss:$8 sps:$4 sm:$0xff]   ;;  %v1491_v48 = vld [vmem:[%s2056_s1 + $0x190] ss:$8 sps:$4 sm:$0xff]  }
  0x21   :  { %1017 = vmatprep.subr.bf16.mxu0 %v1387_v33  ;;  %v1867_v32 = vld [vmem:[%s2057_s0 + $0x8] sm:$0xff]  ;;  %v1872_v33 = vld [vmem:[%s2057_s0 + $0x18] sm:$0xff] }
  0x22   :  { %v1500_v53 = vld [vmem:[%s2056_s1 + $0x3a0] ss:$8 sps:$4 sm:$0xff]  }
  0x23   :  { %936 = vmatpush1.bf16.msra.mxu1 %v1389_v34  ;;  %v1473_v34 = vld [vmem:[%s2056_s1 + $0x160] ss:$8 sps:$4 sm:$0xff]  }
  0x24   :  { %1018 = vmatpush1.bf16.msra.mxu0 %v1390_v35  ;;  %937 = vmatprep.subr.bf16.mxu1 %v1391_v36  ;;  %v1476_v35 = vld [vmem:[%s2056_s1 + $0x360] ss:$8 sps:$4 sm:$0xff]   ;;  %v1170_v36 = vcombine.high %v1867_v32, %v1867_v32 }
  0x25   :  { %1019 = vmatprep.subr.bf16.mxu0 %v1393_v37  ;;  %v1174_v37 = vcombine.high %v1872_v33, %v1872_v33 }
  0x27   :  { %938 = vmatpush1.bf16.msra.mxu1 %v1395_v38  ;;  %v1481_v38 = vld [vmem:[%s2056_s1 + $0x174] ss:$8 sps:$4 sm:$0xff]  }
  0x28   :  { %1020 = vmatpush1.bf16.msra.mxu0 %v1396_v39  ;;  %939 = vmatprep.subr.bf16.mxu1 %v1397_v40  ;;  %v1484_v39 = vld [vmem:[%s2056_s1 + $0x374] ss:$8 sps:$4 sm:$0xff]   ;;  %v1479_v40 = vld [vmem:[%s2056_s1 + $0x170] ss:$8 sps:$4 sm:$0xff]  }
  0x29   :  { %1021 = vmatprep.subr.bf16.mxu0 %v1399_v41  ;;  %v1482_v41 = vld [vmem:[%s2056_s1 + $0x370] ss:$8 sps:$4 sm:$0xff]  }
  0x2b   :  { %940 = vmatpush1.bf16.msra.mxu1 %v1401_v42  ;;  %v1487_v42 = vld [vmem:[%s2056_s1 + $0x184] ss:$8 sps:$4 sm:$0xff]  }
  0x2c   :  { %1022 = vmatpush1.bf16.msra.mxu0 %v1402_v43  ;;  %941 = vmatprep.subr.bf16.mxu1 %v1403_v44  ;;  %v1490_v43 = vld [vmem:[%s2056_s1 + $0x384] ss:$8 sps:$4 sm:$0xff]   ;;  %v1485_v44 = vld [vmem:[%s2056_s1 + $0x180] ss:$8 sps:$4 sm:$0xff]  }
  0x2d   :  { %1023 = vmatprep.subr.bf16.mxu0 %v1405_v45  ;;  %v1488_v45 = vld [vmem:[%s2056_s1 + $0x380] ss:$8 sps:$4 sm:$0xff]  }
  0x2f   :  { %942 = vmatpush1.bf16.msra.mxu1 %v1407_v47  ;;  %v1496_v47 = vld [vmem:[%s2056_s1 + $0x394] ss:$8 sps:$4 sm:$0xff]  }
  0x30   :  { %1024 = vmatpush1.bf16.msra.mxu0 %v1408_v49  ;;  %943 = vmatprep.subr.bf16.mxu1 %v1409_v51  ;;  %v1494_v49 = vld [vmem:[%s2056_s1 + $0x390] ss:$8 sps:$4 sm:$0xff]   ;;  %v1502_v51 = vld [vmem:[%s2056_s1 + $0x3a4] ss:$8 sps:$4 sm:$0xff]  }
  0x31   :  { %1025 = vmatprep.subr.bf16.mxu0 %v1411_v52  ;;  %v1497_v52 = vld [vmem:[%s2056_s1 + $0x1a0] ss:$8 sps:$4 sm:$0xff]  }
  0x33   :  { %944 = vmatpush1.bf16.msra.mxu1 %v1413_v54  ;;  %v1505_v54 = vld [vmem:[%s2056_s1 + $0x1b4] ss:$8 sps:$4 sm:$0xff]  }
  0x34   :  { %1026 = vmatpush1.bf16.msra.mxu0 %v1414_v55  ;;  %945 = vmatprep.subr.bf16.mxu1 %v1415_v56  ;;  %v1508_v55 = vld [vmem:[%s2056_s1 + $0x3b4] ss:$8 sps:$4 sm:$0xff]   ;;  %v1503_v56 = vld [vmem:[%s2056_s1 + $0x1b0] ss:$8 sps:$4 sm:$0xff]  }
  0x35   :  { %1027 = vmatprep.subr.bf16.mxu0 %v1417_v57  ;;  %v1506_v57 = vld [vmem:[%s2056_s1 + $0x3b0] ss:$8 sps:$4 sm:$0xff]  }
  0x37   :  { %946 = vmatpush1.bf16.msra.mxu1 %v1419_v58  ;;  %v1511_v58 = vld [vmem:[%s2056_s1 + $0x1c4] ss:$8 sps:$4 sm:$0xff]  }
  0x38   :  { %1028 = vmatpush1.bf16.msra.mxu0 %v1420_v59  ;;  %947 = vmatprep.subr.bf16.mxu1 %v1421_v60  ;;  %v1514_v59 = vld [vmem:[%s2056_s1 + $0x3c4] ss:$8 sps:$4 sm:$0xff]   ;;  %v1509_v60 = vld [vmem:[%s2056_s1 + $0x1c0] ss:$8 sps:$4 sm:$0xff]  }
  0x39   :  { %1029 = vmatprep.subr.bf16.mxu0 %v1423_v61  ;;  %v1512_v61 = vld [vmem:[%s2056_s1 + $0x3c0] ss:$8 sps:$4 sm:$0xff]  }
  0x3b   :  { %948 = vmatpush1.bf16.msra.mxu1 %v1425_v62  ;;  %v1517_v62 = vld [vmem:[%s2056_s1 + $0x1d4] ss:$8 sps:$4 sm:$0xff]  }
  0x3c   :  { %1030 = vmatpush1.bf16.msra.mxu0 %v1426_v63  ;;  %949 = vmatprep.subr.bf16.mxu1 %v1427_v0  ;;  %v1520_v63 = vld [vmem:[%s2056_s1 + $0x3d4] ss:$8 sps:$4 sm:$0xff]   ;;  %v1515_v0 = vld [vmem:[%s2056_s1 + $0x1d0] ss:$8 sps:$4 sm:$0xff]  }
  0x3d   :  { %1031 = vmatprep.subr.bf16.mxu0 %v1429_v1  ;;  %v1518_v1 = vld [vmem:[%s2056_s1 + $0x3d0] ss:$8 sps:$4 sm:$0xff]  }
  0x3f   :  { %950 = vmatpush1.bf16.msra.mxu1 %v1431_v2  ;;  %v1523_v2 = vld [vmem:[%s2056_s1 + $0x1e4] ss:$8 sps:$4 sm:$0xff]  }
  0x40   :  { %1032 = vmatpush1.bf16.msra.mxu0 %v1432_v3  ;;  %960 = vmatprep.subr.bf16.mxu1 %v1437_v4  ;;  %v1526_v3 = vld [vmem:[%s2056_s1 + $0x3e4] ss:$8 sps:$4 sm:$0xff]   ;;  %v1521_v4 = vld [vmem:[%s2056_s1 + $0x1e0] ss:$8 sps:$4 sm:$0xff]  }
  0x41   :  { %1042 = vmatprep.subr.bf16.mxu0 %v1442_v5  ;;  %v1524_v5 = vld [vmem:[%s2056_s1 + $0x3e0] ss:$8 sps:$4 sm:$0xff]  }
  0x42   :  { %952 = vmatmul.mubr.bf16.vlgmr.msra.gmra.mrb[0].mxu1 %v1167_v6  ;;  %v1529_v6 = vld [vmem:[%s2056_s1 + $0x1f4] ss:$8 sps:$4 sm:$0xff]  }
  0x43   :  { %1034 = vmatmul.mubr.bf16.vlgmr.msra.gmra.mrb[0].mxu0 %v1171_v7  ;;  %961 = vmatpush1.bf16.msra.mxu1 %v1435_v8  ;;  %v1532_v7 = vld [vmem:[%s2056_s1 + $0x3f4] ss:$8 sps:$4 sm:$0xff]   ;;  %v1527_v8 = vld [vmem:[%s2056_s1 + $0x1f0] ss:$8 sps:$4 sm:$0xff]  }
  0x44   :  { %1043 = vmatpush1.bf16.msra.mxu0 %v1440_v9  ;;  %962 = vmatprep.subr.bf16.mxu1 %v1445_v10  ;;  %v1530_v9 = vld [vmem:[%s2056_s1 + $0x3f0] ss:$8 sps:$4 sm:$0xff]   ;;  %v1539_v10 = vld [vmem:[%s2056_s1 + $0x404] ss:$8 sps:$4 sm:$0xff]  }
  0x45   :  { %1044 = vmatprep.subr.bf16.mxu0 %v1448_v11  ;;  %992 = vmatprep.mubr.bf16.mxu1 %v1170_v36  ;;  %v1169_v11 = vcombine.low %v1867_v32, %v1867_v32 }
  0x46   :  { %1074 = vmatprep.mubr.bf16.mxu0 %v1174_v37  ;;  %v1124_v37 = vld [vmem:[%s2058_s2] sm:$0x3] }
  0x47   :  { %963 = vmatpush1.bf16.msra.mxu1 %v1443_v12  ;;  %v1173_v12 = vcombine.low %v1872_v33, %v1872_v33 }
  0x48   :  { %1045 = vmatpush1.bf16.msra.mxu0 %v1446_v13  ;;  %964 = vmatprep.subr.bf16.mxu1 %v1451_v14  ;;  %v1537_v13 = vld [vmem:[%s2056_s1 + $0x400] ss:$8 sps:$4 sm:$0xff]   ;;  %v1542_v14 = vld [vmem:[%s2056_s1 + $0x414] ss:$8 sps:$4 sm:$0xff]  }
  0x49   :  { %1046 = vmatprep.subr.bf16.mxu0 %v1454_v15  ;;  %v1540_v15 = vld [vmem:[%s2056_s1 + $0x410] ss:$8 sps:$4 sm:$0xff]  }
  0x4b   :  { %965 = vmatpush1.bf16.msra.mxu1 %v1449_v16  ;;  %v1562_v16 = vmov 0  }
  0x4c   :  { %1047 = vmatpush1.bf16.msra.mxu0 %v1452_v17  ;;  %966 = vmatprep.subr.bf16.mxu1 %v1457_v18  ;;  %v1545_v17 = vld [vmem:[%s2056_s1 + $0x424] ss:$8 sps:$4 sm:$0xff]   ;;  %v1543_v18 = vld [vmem:[%s2056_s1 + $0x420] ss:$8 sps:$4 sm:$0xff]  }
  0x4d   :  { %1048 = vmatprep.subr.bf16.mxu0 %v1460_v19  ;;  %v1548_v19 = vld [vmem:[%s2056_s1 + $0x434] ss:$8 sps:$4 sm:$0xff]  }
  0x4f   :  { %967 = vmatpush1.bf16.msra.mxu1 %v1455_v20  ;;  %v1546_v20 = vld [vmem:[%s2056_s1 + $0x430] ss:$8 sps:$4 sm:$0xff]  }
  0x50   :  { %1049 = vmatpush1.bf16.msra.mxu0 %v1458_v21  ;;  %968 = vmatprep.subr.bf16.mxu1 %v1463_v22  ;;  %v1551_v21 = vld [vmem:[%s2056_s1 + $0x444] ss:$8 sps:$4 sm:$0xff]   ;;  %v1549_v22 = vld [vmem:[%s2056_s1 + $0x440] ss:$8 sps:$4 sm:$0xff]  }
  0x51   :  { %1050 = vmatprep.subr.bf16.mxu0 %v1466_v23  ;;  %v1554_v23 = vld [vmem:[%s2056_s1 + $0x454] ss:$8 sps:$4 sm:$0xff]  }
  0x53   :  { %969 = vmatpush1.bf16.msra.mxu1 %v1461_v24  ;;  %v1552_v24 = vld [vmem:[%s2056_s1 + $0x450] ss:$8 sps:$4 sm:$0xff]  }
  0x54   :  { %1051 = vmatpush1.bf16.msra.mxu0 %v1464_v25  ;;  %970 = vmatprep.subr.bf16.mxu1 %v1469_v26  ;;  %v1557_v25 = vld [vmem:[%s2056_s1 + $0x464] ss:$8 sps:$4 sm:$0xff]   ;;  %v1555_v26 = vld [vmem:[%s2056_s1 + $0x460] ss:$8 sps:$4 sm:$0xff]  }
  0x55   :  { %1052 = vmatprep.subr.bf16.mxu0 %v1472_v27  ;;  %v1560_v27 = vld [vmem:[%s2056_s1 + $0x474] ss:$8 sps:$4 sm:$0xff]  }
  0x57   :  { %971 = vmatpush1.bf16.msra.mxu1 %v1467_v28  ;;  %v1558_v28 = vld [vmem:[%s2056_s1 + $0x470] ss:$8 sps:$4 sm:$0xff]  }
  0x58   :  { %1053 = vmatpush1.bf16.msra.mxu0 %v1470_v29  ;;  %972 = vmatprep.subr.bf16.mxu1 %v1475_v30  ;;  %v1561_v29 = vld [vmem:[%s2057_s0 + $0x20] ss:$0 sps:$4 sm:$0xff]  }
  0x59   :  { %1054 = vmatprep.subr.bf16.mxu0 %v1478_v31 }
  0x5b   :  { %973 = vmatpush1.bf16.msra.mxu1 %v1473_v34  ;;  %v1126_v34 = vlaneseq }
  0x5c   :  { %1055 = vmatpush1.bf16.msra.mxu0 %v1476_v35  ;;  %974 = vmatprep.subr.bf16.mxu1 %v1481_v38 }
  0x5d   :  { %1056 = vmatprep.subr.bf16.mxu0 %v1484_v39  ;;  %v1127_v35 = vshrl.u32 %v1126_v34, 7  ;;  %v1138_v39 = vld [vmem:[%s2059_s3] sm:$0x3] }
  0x5f   :  { %975 = vmatpush1.bf16.msra.mxu1 %v1479_v40  ;;  %v1128_v36 = vsub.s32 0, %v1127_v35  ;;  %v1132_v38 = vsub.s32 1, %v1127_v35 }
  0x60   :  { %1057 = vmatpush1.bf16.msra.mxu0 %v1482_v41  ;;  %976 = vmatprep.subr.bf16.mxu1 %v1487_v42 }
  0x61   :  { %1058 = vmatprep.subr.bf16.mxu0 %v1490_v43  ;;  %v1129_v40 = vrot.slane %v1124_v37, %v1128_v36  ;;  %v1133_v42 = vrot.slane %v1124_v37, %v1132_v38 }
  0x63   :  { %977 = vmatpush1.bf16.msra.mxu1 %v1485_v44  ;;  %v1143_v44 = vrot.slane %v1138_v39, %v1128_v36 }
  0x64   :  { %1059 = vmatpush1.bf16.msra.mxu0 %v1488_v45  ;;  %978 = vmatprep.subr.bf16.mxu1 %v1493_v46 }
  0x65   :  { %1060 = vmatprep.subr.bf16.mxu0 %v1496_v47  ;;  %v1147_v47 = vrot.slane %v1138_v39, %v1132_v38 }
  0x67   :  { %979 = vmatpush1.bf16.msra.mxu1 %v1491_v48 }
  0x68   :  { %1061 = vmatpush1.bf16.msra.mxu0 %v1494_v49  ;;  %980 = vmatprep.subr.bf16.mxu1 %v1499_v50 }
  0x69   :  { %1062 = vmatprep.subr.bf16.mxu0 %v1502_v51 }
  0x6b   :  { %981 = vmatpush1.bf16.msra.mxu1 %v1497_v52 }
  0x6c   :  { %1063 = vmatpush1.bf16.msra.mxu0 %v1500_v53  ;;  %982 = vmatprep.subr.bf16.mxu1 %v1505_v54 }
  0x6d   :  { %1064 = vmatprep.subr.bf16.mxu0 %v1508_v55 }
  0x6f   :  { %983 = vmatpush1.bf16.msra.mxu1 %v1503_v56 }
  0x70   :  { %1065 = vmatpush1.bf16.msra.mxu0 %v1506_v57  ;;  %984 = vmatprep.subr.bf16.mxu1 %v1511_v58 }
  0x71   :  { %1066 = vmatprep.subr.bf16.mxu0 %v1514_v59 }
  0x73   :  { %985 = vmatpush1.bf16.msra.mxu1 %v1509_v60 }
  0x74   :  { %1067 = vmatpush1.bf16.msra.mxu0 %v1512_v61  ;;  %986 = vmatprep.subr.bf16.mxu1 %v1517_v62 }
  0x75   :  { %1068 = vmatprep.subr.bf16.mxu0 %v1520_v63 }
  0x77   :  { %987 = vmatpush1.bf16.msra.mxu1 %v1515_v0 }
  0x78   :  { %1069 = vmatpush1.bf16.msra.mxu0 %v1518_v1  ;;  %988 = vmatprep.subr.bf16.mxu1 %v1523_v2 }
  0x79   :  { %1070 = vmatprep.subr.bf16.mxu0 %v1526_v3 }
  0x7b   :  { %989 = vmatpush1.bf16.msra.mxu1 %v1521_v4 }
  0x7c   :  { %1071 = vmatpush1.bf16.msra.mxu0 %v1524_v5  ;;  %990 = vmatprep.subr.bf16.mxu1 %v1529_v6 }
  0x7d   :  { %1072 = vmatprep.subr.bf16.mxu0 %v1532_v7 }
  0x7f   :  { %991 = vmatpush1.bf16.msra.mxu1 %v1527_v8 }
  0x80   :  { %1073 = vmatpush1.bf16.msra.mxu0 %v1530_v9 }
  0x81   :  { %1083 = vmatprep.subr.bf16.mxu0 %v1539_v10 }
  0x82   :  { %993 = vmatmul.mubr.bf16.vlgmr.msra.gmra.mrb[0].mxu1 %v1169_v11 }
  0x83   :  { %1075 = vmatmul.mubr.bf16.vlgmr.msra.gmra.mrb[0].mxu0 %v1173_v12 }
  0x84   :  { %1084 = vmatpush1.bf16.msra.mxu0 %v1537_v13  ;;  %1115 = vmatprep.mubr.bf16.mxu0 %v1562_v16 }
  0x85   :  { %1085 = vmatprep.subr.bf16.mxu0 %v1542_v14 }
  0x88   :  { %1086 = vmatpush1.bf16.msra.mxu0 %v1540_v15 }
  0x89   :  { %1087 = vmatprep.subr.bf16.mxu0 %v1545_v17 }
  0x8c   :  { %1088 = vmatpush1.bf16.msra.mxu0 %v1543_v18 }
  0x8d   :  { %1089 = vmatprep.subr.bf16.mxu0 %v1548_v19 }
  0x90   :  { %1090 = vmatpush1.bf16.msra.mxu0 %v1546_v20 }
  0x91   :  { %1091 = vmatprep.subr.bf16.mxu0 %v1551_v21 }
  0x94   :  { %1092 = vmatpush1.bf16.msra.mxu0 %v1549_v22 }
  0x95   :  { %1093 = vmatprep.subr.bf16.mxu0 %v1554_v23 }
  0x98   :  { %1094 = vmatpush1.bf16.msra.mxu0 %v1552_v24 }
  0x99   :  { %1095 = vmatprep.subr.bf16.mxu0 %v1557_v25 }
  0x9c   :  { %1096 = vmatpush1.bf16.msra.mxu0 %v1555_v26 }
  0x9d   :  { %1097 = vmatprep.subr.bf16.mxu0 %v1560_v27 }
  0xa0   :  { %1098 = vmatpush1.bf16.msra.mxu0 %v1558_v28 }
  0xa3   :  { %1116 = vmatmul.mubr.bf16.vlgmr.msra.gmra.mrb[0].mxu0 %v1561_v29 }
 0x155   :  { %v994_v30 = vpop.f32.mrb[0].mxu1 }
 0x156   :  { %v996_v31 = vpop.f32.mrb[1].mxu1 }
 0x157   :  { %v998_v32 = vpop.f32.mrb[2].mxu1 }
 0x158   :  { %v999_v33 = vpop.f32.mrb[3].mxu1 }
 0x176   :  { %v1117_v41 = vpop.f32.mrb[0].mxu0 }
 0x177   :  { %v1322_v43 = vadd.f32 %v1117_v41, %v994_v30  ;;  %v1119_v45 = vpop.f32.mrb[1].mxu0 }
 0x178   :  { %v1323_v46 = vadd.f32 %v1119_v45, %v996_v31  ;;  %v1121_v48 = vpop.f32.mrb[2].mxu0 }
 0x179   :  { %v1136_v49 = vmul.f32 %v1322_v43, %v1129_v40  ;;  %v1122_v50 = vpop.f32.mrb[3].mxu0 }
 0x17a   :  { %v1137_v51 = vmul.f32 %v1323_v46, %v1133_v42 }
 0x17b   :  { %v1150_v52 = vadd.f32 %v1143_v44, %v1136_v49 }
 0x17c   :  { %v1151_v53 = vadd.f32 %v1147_v47, %v1137_v51 }
 0x17d   :  { %v1152_v54 = vmax.f32 %v1150_v52, 0.0 }
 0x17e   :  { %v1153_v55 = vmax.f32 %v1151_v53, 0.0 }
 0x180   :  { %v1321_v56 = vpack.c.bf16 %v1153_v55, %v1152_v54 }
 0x182   :  { %1162 = vst [vmem:[%s2060_s4] sm:$0xff] %v1321_v56 }

// kernel: resnet_forward.22
= control target key start
LH: loop header
LB: loop body
LE: loop exit
PB: predicated region body
PF: predicated region fallthrough
CT: control target
= control target key end

     0   :  { %s2136_s18 = smov 0   ;;  %s2138_s19 = smov 0   ;;  %s2445_s0 = inlined_call_operand.vmem [shape: bf16[2,4,4,256], index: 0, kind: input, shape index: {}]   ;;  %s2446_s1 = inlined_call_operand.vmem [shape: bf16[3,3,256,256], index: 1, kind: input, shape index: {}]   ;;  %s2447_s2 = inlined_call_operand.vmem [shape: f32[1,256], index: 2, kind: input, shape index: {}]   ;;  %s2448_s3 = inlined_call_operand.vmem [shape: f32[1,256], index: 3, kind: input, shape index: {}]   ;;  %s2449_s4 = inlined_call_operand.vmem [shape: bf16[2,2,2,256], index: 4, kind: input, shape index: {}]   ;;  %s2450_s5 = inlined_call_operand.vmem [shape: bf16[2,2,2,256], index: 5, kind: output, shape index: {}]  }
   0x1   :  { %s2140_s20 = smov 0   ;;  %s2142_s21 = smov 0  }
   0x2   :  { %s2144_s22 = smov 0   ;;  %s2146_s23 = smov 0  }
   0x3   :  { %s2148_s24 = smov 0   ;;  %s2150_s25 = smov 0  }
   0x4   :  { %s2152_s26 = smov 0  }
   0x5 LB: > { %s1609_s27 = sadd.s32 4294967295, %s2101_s26   ;;  %s27_s28 = sadd.s32 1, %s2093_s24  ;;  %s2101_s26 = sphi %s2152_s26, %s15_s26   ;;  %s2097_s25 = sphi %s2150_s25, %s2469_s25   ;;  %s2093_s24 = sphi %s2148_s24, %s2468_s24   ;;  %s2089_s23 = sphi %s2146_s23, %s2467_s23   ;;  %s2085_s22 = sphi %s2144_s22, %s2466_s22   ;;  %s2081_s21 = sphi %s2142_s21, %s2465_s21   ;;  %s2077_s20 = sphi %s2140_s20, %s2464_s20   ;;  %s2073_s19 = sphi %s2138_s19, %s2463_s19   ;;  %s2069_s18 = sphi %s2136_s18, %s2462_s18  }
   0x6   : > { %p28_p0 = scmp.ge.s32.totalorder %s27_s28, 3  ;;  %s34_s29 = sadd.s32 1, %s2097_s25 }
   0x7   : > { %s38_s30 = sadd.s32 %s2093_s24, %s2097_s25  ;;  %s43_s6 = sadd.s32 1, %s2081_s21 }
   0x8   : > { %s2471_s28 = smov (%p28_p0, %s27_s28), 0  ;;  %s2473_s29 = smov (!%p28_p0, %s34_s29), %s2097_s25 }
   0x9   : > { %2453 = sst [smem:[#allocation6_spill]] %s2471_s28  ;;  %p50_p1 = scmp.ne.s32.totalorder %s2081_s21, %s2077_s20 }
   0xa   : > { %p51_p2 = scmp.eq.s32.totalorder %s2101_s26, 0  ;;  %p36_p3 = scmp.ge.s32.totalorder %s2473_s29, 2 }
   0xb   : > { %s151_s7 = sadd.s32 1, %s2073_s19  ;;  %p158_p5 = scmp.ne.s32.totalorder %s2073_s19, %s2069_s18 }
   0xc   : > { %p2194_p4 = por %p51_p2, %p50_p1  ;;  %s2475_s29 = smov (%p36_p3, %s2473_s29), 0 }
   0xd   : > { %2455 = sst [smem:[#allocation7_spill]] %s2475_s29  ;;  %p2202_p6 = por %p158_p5, %p51_p2 }
   0xe   : > { %p190_p7 = scmp.eq.s32.totalorder %s1609_s27, 5  ;;  %s39_s10 = sadd.s32 %s2475_s29, %s2471_s28 }
   0xf   : > { %s146_s11 = ssub.s32 %s2097_s25, %s2475_s29  ;;  %s40_s12 = ssub.s32 %s38_s30, %s39_s10 }
  0x10   : > { %p149_p8 = scmp.eq.s32.totalorder %s146_s11, 0  ;;  %p41_p9 = scmp.eq.s32.totalorder %s40_s12, 0 }
  0x11   : > { %p2210_p10 = por %p190_p7, %p158_p5  ;;  %p1614_p11 = scmp.ge.s32.totalorder %s2101_s26, 6 }
  0x12   : > { %s2215_s14 = scalar_select %p149_p8, %s2073_s19, %s151_s7  }
  0x13   : > { %s2218_s15 = scalar_select %p41_p9, %s2081_s21, %s43_s6  }
  0x14   : > { %228 = sbr.rel (%p1614_p11) target bundleno = 41 (0x29), region = 24 }
  0x1b   : > { %231 = sbr.rel (!%p2194_p4) target bundleno = 34 (0x22), region = 28  ;;  %s233_s16 = sand.u32 (%p2194_p4), 1, %s2081_s21  }
  0x1c   : > { %s1804_s17 = sshll.u32 (%p2194_p4), %s38_s30, 2  ;;  %s1615_s27 = sshll.u32 (%p2194_p4), %s233_s16, 3 }
  0x1d   : > { %s239_s12 = scalar_lea.vmem (%p2194_p4), %s2445_s0, %s1804_s17  ;;  %s235_s7 = scalar_lea.vmem (%p2194_p4), [#allocation3], %s1615_s27 }
  0x1e   : > { %v255_v0 = vld [vmem:[%s239_s12] sm:$0xf] (%p2194_p4)  ;;  %v257_v1 = vld [vmem:[%s239_s12 + $0x10] sm:$0xf] (%p2194_p4) }
  0x1f   : > { %256 = vst [vmem:[%s235_s7] sm:$0xf] (%p2194_p4), %v255_v0  ;;  %258 = vst [vmem:[%s235_s7 + $0x4] sm:$0xf] (%p2194_p4), %v257_v1 }
  0x22 PF: > { %298 = sbr.rel (!%p2202_p6) target bundleno = 41 (0x29), region = 73  ;;  %s300_s6 = sand.u32 (%p2202_p6), 1, %s2073_s19  }
  0x23   : > { %s1619_s8 = sshll.u32 (%p2202_p6), %s2097_s25, 1  ;;  %s1618_s29 = sshll.u32 (%p2202_p6), %s300_s6, 2 }
  0x24   : > { %s306_s28 = scalar_lea.vmem (%p2202_p6), %s2449_s4, %s1619_s8  ;;  %s302_s17 = scalar_lea.vmem (%p2202_p6), [#allocation4], %s1618_s29 }
  0x25   : > { %v322_v2 = vld [vmem:[%s306_s28] sm:$0x3] (%p2202_p6)  ;;  %v324_v3 = vld [vmem:[%s306_s28 + $0x4] sm:$0x3] (%p2202_p6) }
  0x26   : > { %323 = vst [vmem:[%s302_s17] sm:$0x3] (%p2202_p6), %v322_v2  ;;  %325 = vst [vmem:[%s302_s17 + $0x2] sm:$0x3] (%p2202_p6), %v324_v3 }
  0x29 PF: > { %p1620_p12 = scmp.ge.s32.totalorder %s2101_s26, 1  ;;  %p343_p13 = scmp.lt.s32.totalorder %s2101_s26, 7 }
  0x2b   : > { %p344_p0 = pnand %p1620_p12, %p343_p13 }
  0x2c   : > { %s350_s9 = sand.u32 (!%p344_p0), 1, %s2077_s20   ;;  %s357_s27 = sand.u32 (!%p344_p0), 1, %s2069_s18  }
  0x2d   : > { %347 = sbr.rel (%p344_p0) target bundleno = 445 (0x1bd), region = 107  ;;  %s1621_s10 = sshll.u32 (!%p344_p0), %s350_s9, 3 }
  0x2e   : > { %s2238_s11 = sshll.u32 (!%p344_p0), %s357_s27, 2  ;;  %p406_p1 = scmp.lt.s32.totalorder (!%p344_p0), %s2085_s22, 2 }
  0x2f   : > { %s2247_s8 = scalar_lea.vmem (!%p344_p0), [#allocation3], %s1621_s10  ;;  %s359_s30 = scalar_lea.vmem (!%p344_p0), [#allocation4], %s2238_s11 }
  0x30   : > { %s2251_s16 = scalar_lea.vmem (!%p344_p0), [#allocation5], %s2238_s11  ;;  %p1625_p2 = scmp.ne.s32.totalorder (!%p344_p0), %s2085_s22, 0 }
  0x34   : > { %s407_s28 = scalar_select %p406_p1, %s2085_s22, 2 }
  0x35   : > { %430 = sbr.rel (%p1625_p2) target bundleno = 60 (0x3c), region = 119  ;;  %v2103_v4 = vmov (!%p1625_p2), 0.0  }
  0x36   : > { %s1811_s29 = smul.u32 768, %s407_s28  ;;  %431 = vst [vmem:[#allocation2] sm:$0xff] (!%p1625_p2), %v2103_v4 }
  0x38   : > { %s2245_s6 = scalar_lea.vmem %s2446_s1, %s1811_s29 }
  0x3c PF: > { %v1887_v5 = vld [vmem:[%s2245_s6 + $0x4] ss:$8 sps:$4 sm:$0xff]   ;;  %v1889_v6 = vld [vmem:[%s2245_s6] ss:$8 sps:$4 sm:$0xff]   ;;  %v1890_v7 = vld [vmem:[%s2245_s6 + $0x14] ss:$8 sps:$4 sm:$0xff]   ;;  %v572_v17 = vlaneseq }
  0x3d   : > { %979 = vmatprep.subr.bf16.mxu0 %v1887_v5  ;;  %v1892_v8 = vld [vmem:[%s2245_s6 + $0x10] ss:$8 sps:$4 sm:$0xff]   ;;  %v1893_v9 = vld [vmem:[%s2245_s6 + $0x24] ss:$8 sps:$4 sm:$0xff]   ;;  %v1895_v10 = vld [vmem:[%s2245_s6 + $0x20] ss:$8 sps:$4 sm:$0xff]  }
  0x3e   : > { %980 = vmatpush1.bf16.msra.mxu0 %v1889_v6  ;;  %v1896_v11 = vld [vmem:[%s2245_s6 + $0x34] ss:$8 sps:$4 sm:$0xff]   ;;  %v1898_v12 = vld [vmem:[%s2245_s6 + $0x30] ss:$8 sps:$4 sm:$0xff]   ;;  %v1899_v13 = vld [vmem:[%s2245_s6 + $0x44] ss:$8 sps:$4 sm:$0xff]  }
  0x3f   : > { %981 = vmatprep.subr.bf16.mxu0 %v1890_v7  ;;  %v1901_v14 = vld [vmem:[%s2245_s6 + $0x40] ss:$8 sps:$4 sm:$0xff]   ;;  %v2104_v15 = vmov 1966171168   ;;  %v1902_v18 = vld [vmem:[%s2245_s6 + $0x54] ss:$8 sps:$4 sm:$0xff]  }
  0x40   : > { %v570_v16 = vunpack.c.l.s4 %v2104_v15  ;;  %v1904_v19 = vld [vmem:[%s2245_s6 + $0x50] ss:$8 sps:$4 sm:$0xff]   ;;  %v2266_v21 = vshrl.u32 %v572_v17, 7  ;;  %v1905_v22 = vld [vmem:[%s2245_s6 + $0x64] ss:$8 sps:$4 sm:$0xff]   ;;  %p1795_p3 = scmp.ne.s32.totalorder %s2085_s22, 2 }
  0x41   : > { %v1934_v23 = vld [vmem:[%s2245_s6 + $0x104] ss:$8 sps:$4 sm:$0xff]   ;;  %v1907_v24 = vld [vmem:[%s2245_s6 + $0x60] ss:$8 sps:$4 sm:$0xff]   ;;  %v1908_v28 = vld [vmem:[%s2245_s6 + $0x74] ss:$8 sps:$4 sm:$0xff]  }
  0x42   : > { %982 = vmatpush1.bf16.msra.mxu0 %v1892_v8  ;;  %v571_v20 = vunpack.c.0.s8 %v570_v16  ;;  %v1937_v25 = vld [vmem:[%s2245_s6 + $0x100] ss:$8 sps:$4 sm:$0xff]   ;;  %753 = vmatprep.subr.bf16.mxu1 %v1934_v23  ;;  %v1627_v29 = vld.sshfl [vmem:[%s2247_s8 + $0x4] sm:$0x3 pattern:$0x75316420] }
  0x43   : > { %983 = vmatprep.subr.bf16.mxu0 %v1893_v9  ;;  %v1626_v26 = vld.sshfl [vmem:[%s2247_s8] sm:$0x3 pattern:$0x75316420]  ;;  %754 = vmatpush1.bf16.msra.mxu1 %v1937_v25  ;;  %v1941_v31 = vld [vmem:[%s2245_s6 + $0x114] ss:$8 sps:$4 sm:$0xff]  }
  0x44   : > { %v2274_v27 = vsub.s32 %v571_v20, %v2266_v21  ;;  %v794_v30 = vcombine.low %v1626_v26, %v1627_v29  ;;  %v1943_v32 = vld [vmem:[%s2245_s6 + $0x110] ss:$8 sps:$4 sm:$0xff]   ;;  %v1911_v34 = vld [vmem:[%s2245_s6 + $0x84] ss:$8 sps:$4 sm:$0xff]   ;;  %755 = vmatprep.subr.bf16.mxu1 %v1941_v31  ;;  %v1949_v37 = vld [vmem:[%s2245_s6 + $0x120] ss:$8 sps:$4 sm:$0xff]  }
  0x45   : > { %v1910_v33 = vld [vmem:[%s2245_s6 + $0x70] ss:$8 sps:$4 sm:$0xff]   ;;  %v1947_v36 = vld [vmem:[%s2245_s6 + $0x124] ss:$8 sps:$4 sm:$0xff]   ;;  %v1913_v39 = vld [vmem:[%s2245_s6 + $0x80] ss:$8 sps:$4 sm:$0xff]  }
  0x46   : > { %984 = vmatpush1.bf16.msra.mxu0 %v1895_v10  ;;  %v2283_v35 = vrot.slane %v794_v30, %v2274_v27  ;;  %v1953_v41 = vld [vmem:[%s2245_s6 + $0x134] ss:$8 sps:$4 sm:$0xff]   ;;  %v1955_v43 = vld [vmem:[%s2245_s6 + $0x130] ss:$8 sps:$4 sm:$0xff]   ;;  %v1959_v44 = vld [vmem:[%s2245_s6 + $0x144] ss:$8 sps:$4 sm:$0xff]  }
  0x47   : > { %985 = vmatprep.subr.bf16.mxu0 %v1896_v11  ;;  %756 = vmatpush1.bf16.msra.mxu1 %v1943_v32  ;;  %v1914_v42 = vld [vmem:[%s2245_s6 + $0x94] ss:$8 sps:$4 sm:$0xff]   ;;  %v1916_v45 = vld [vmem:[%s2245_s6 + $0x90] ss:$8 sps:$4 sm:$0xff]   ;;  %v1917_v46 = vld [vmem:[%s2245_s6 + $0xa4] ss:$8 sps:$4 sm:$0xff]  }
  0x48   : > { %v802_v38 = vcombine.high %v2283_v35, %v2283_v35  ;;  %757 = vmatprep.subr.bf16.mxu1 %v1947_v36  ;;  %v1961_v47 = vld [vmem:[%s2245_s6 + $0x140] ss:$8 sps:$4 sm:$0xff]   ;;  %v1965_v48 = vld [vmem:[%s2245_s6 + $0x154] ss:$8 sps:$4 sm:$0xff]   ;;  %v1967_v51 = vld [vmem:[%s2245_s6 + $0x150] ss:$8 sps:$4 sm:$0xff]   ;;  %v809_v11 = vrot.slane %v2283_v35, %v2274_v27 }
  0x49   : > { %v1919_v49 = vld [vmem:[%s2245_s6 + $0xa0] ss:$8 sps:$4 sm:$0xff]   ;;  %v1920_v50 = vld [vmem:[%s2245_s6 + $0xb4] ss:$8 sps:$4 sm:$0xff]   ;;  %v1971_v52 = vld [vmem:[%s2245_s6 + $0x164] ss:$8 sps:$4 sm:$0xff]  }
  0x4a   : > { %986 = vmatpush1.bf16.msra.mxu0 %v1898_v12  ;;  %v816_v40 = vrot.slane %v802_v38, %v2274_v27  ;;  %v1922_v53 = vld [vmem:[%s2245_s6 + $0xb0] ss:$8 sps:$4 sm:$0xff]   ;;  %v1923_v54 = vld [vmem:[%s2245_s6 + $0xc4] ss:$8 sps:$4 sm:$0xff]   ;;  %v1973_v55 = vld [vmem:[%s2245_s6 + $0x160] ss:$8 sps:$4 sm:$0xff]  }
  0x4b   : > { %987 = vmatprep.subr.bf16.mxu0 %v1899_v13  ;;  %758 = vmatpush1.bf16.msra.mxu1 %v1949_v37  ;;  %v1977_v56 = vld [vmem:[%s2245_s6 + $0x174] ss:$8 sps:$4 sm:$0xff]   ;;  %v1925_v57 = vld [vmem:[%s2245_s6 + $0xc0] ss:$8 sps:$4 sm:$0xff]   ;;  %v1979_v59 = vld [vmem:[%s2245_s6 + $0x170] ss:$8 sps:$4 sm:$0xff]  }
  0x4c   : > { %1011 = vmatprep.mubr.bf16.mxu0 %v816_v40  ;;  %759 = vmatprep.subr.bf16.mxu1 %v1953_v41  ;;  %v1926_v58 = vld [vmem:[%s2245_s6 + $0xd4] ss:$8 sps:$4 sm:$0xff]   ;;  %v1983_v60 = vld [vmem:[%s2245_s6 + $0x184] ss:$8 sps:$4 sm:$0xff]   ;;  %v1928_v61 = vld [vmem:[%s2245_s6 + $0xd0] ss:$8 sps:$4 sm:$0xff]  }
  0x4d   : > { %v1929_v62 = vld [vmem:[%s2245_s6 + $0xe4] ss:$8 sps:$4 sm:$0xff]   ;;  %v1985_v63 = vld [vmem:[%s2245_s6 + $0x180] ss:$8 sps:$4 sm:$0xff]   ;;  %v1989_v0 = vld [vmem:[%s2245_s6 + $0x194] ss:$8 sps:$4 sm:$0xff]  }
  0x4e   : > { %988 = vmatpush1.bf16.msra.mxu0 %v1901_v14  ;;  %vm502_vm0 = vsmask.f32 256  ;;  %v1931_v1 = vld [vmem:[%s2245_s6 + $0xe0] ss:$8 sps:$4 sm:$0xff]   ;;  %vm503_vm1 = vsmask.f32 1284 }
  0x4f   : > { %989 = vmatprep.subr.bf16.mxu0 %v1902_v18  ;;  %760 = vmatpush1.bf16.msra.mxu1 %v1955_v43  ;;  %v1932_v2 = vld [vmem:[%s2245_s6 + $0xf4] ss:$8 sps:$4 sm:$0xff]   ;;  %v1991_v3 = vld [vmem:[%s2245_s6 + $0x190] ss:$8 sps:$4 sm:$0xff]   ;;  %v1995_v4 = vld [vmem:[%s2245_s6 + $0x1a4] ss:$8 sps:$4 sm:$0xff]  }
  0x50   : > { %761 = vmatprep.subr.bf16.mxu1 %v1959_v44  ;;  %vm505_vm2 = vsmask.f32 2312  ;;  %vm507_vm3 = vsmask.f32 3340  ;;  %v1936_v5 = vld [vmem:[%s2245_s6 + $0xf0] ss:$8 sps:$4 sm:$0xff]   ;;  %vm2320_vm4 = vmor %vm502_vm0, %vm503_vm1 }
  0x51   : > { %vm509_vm5 = vsmask.f32 4368  ;;  %v1940_v7 = vld [vmem:[%s2245_s6 + $0x204] ss:$8 sps:$4 sm:$0xff]   ;;  %v1997_v8 = vld [vmem:[%s2245_s6 + $0x1a0] ss:$8 sps:$4 sm:$0xff]   ;;  %vm506_vm8 = vmor %vm2320_vm4, %vm505_vm2 }
  0x52   : > { %990 = vmatpush1.bf16.msra.mxu0 %v1904_v19  ;;  %v1938_v9 = vld [vmem:[%s2245_s6 + $0x200] ss:$8 sps:$4 sm:$0xff]   ;;  %v2001_v10 = vld [vmem:[%s2245_s6 + $0x1b4] ss:$8 sps:$4 sm:$0xff]   ;;  %vm511_vm6 = vsmask.f32 5396  ;;  %vm508_vm10 = vmor %vm506_vm8, %vm507_vm3 }
  0x53   : > { %991 = vmatprep.subr.bf16.mxu0 %v1905_v22  ;;  %762 = vmatpush1.bf16.msra.mxu1 %v1961_v47  ;;  %v1946_v12 = vld [vmem:[%s2245_s6 + $0x214] ss:$8 sps:$4 sm:$0xff]   ;;  %vm513_vm7 = vsmask.f32 6424  ;;  %v2003_v13 = vld [vmem:[%s2245_s6 + $0x1b0] ss:$8 sps:$4 sm:$0xff]   ;;  %vm510_vm11 = vmor %vm508_vm10, %vm509_vm5 }
  0x54   : > { %763 = vmatprep.subr.bf16.mxu1 %v1965_v48  ;;  %v2007_v14 = vld [vmem:[%s2245_s6 + $0x1c4] ss:$8 sps:$4 sm:$0xff]   ;;  %vm515_vm9 = vsmask.f32 7452  ;;  %v1944_v16 = vld [vmem:[%s2245_s6 + $0x210] ss:$8 sps:$4 sm:$0xff]   ;;  %vm512_vm12 = vmor %vm510_vm11, %vm511_vm6 }
  0x55   : > { %v1628_v15 = vld.sshfl [vmem:[%s2247_s8] sm:$0x33 pattern:$0x75316420]  ;;  %v1952_v20 = vld [vmem:[%s2245_s6 + $0x224] ss:$8 sps:$4 sm:$0xff]   ;;  %vm514_vm13 = vmor %vm512_vm12, %vm513_vm7 }
  0x56   : > { %992 = vmatpush1.bf16.msra.mxu0 %v1907_v24  ;;  %v1629_v17 = vld.sshfl [vmem:[%s2247_s8 + $0x4] sm:$0x33 pattern:$0x75316420]  ;;  %v493_v18 = vcombine.high %v1628_v15, %v1628_v15  ;;  %v518_v19 = vshrl.u32 %v1628_v15, 16  ;;  %vm516_vm14 = vmor %vm514_vm13, %vm515_vm9 }
  0x57   : > { %993 = vmatprep.subr.bf16.mxu0 %v1908_v28  ;;  %764 = vmatpush1.bf16.msra.mxu1 %v1967_v51  ;;  %v2009_v22 = vld [vmem:[%s2245_s6 + $0x1c0] ss:$8 sps:$4 sm:$0xff]   ;;  %v501_v23 = vcombine.high %v1629_v17, %v1629_v17  ;;  %v527_v24 = vshrl.u32 %v1629_v17, 16  ;;  %v2013_v30 = vld [vmem:[%s2245_s6 + $0x1d4] ss:$8 sps:$4 sm:$0xff]  }
  0x58   : > { %765 = vmatprep.subr.bf16.mxu1 %v1971_v52  ;;  %v523_v25 = vshll.u32 %v493_v18, 16  ;;  %v1728_v26 = vld.sshfl [vmem:[%s2247_s8] sm:$0x30 pattern:$0x75316420] }
  0x59   : > { %v532_v28 = vshll.u32 %v501_v23, 16  ;;  %v1729_v29 = vld.sshfl [vmem:[%s2247_s8 + $0x4] sm:$0x30 pattern:$0x75316420] }
  0x5a   : > { %994 = vmatpush1.bf16.msra.mxu0 %v1910_v33  ;;  %v525_v31 = vsel %vm516_vm14, %v518_v19, %v523_v25  ;;  %v1762_v32 = vcombine.high %v1728_v26, %v1729_v29  ;;  %v1958_v37 = vld [vmem:[%s2245_s6 + $0x234] ss:$8 sps:$4 sm:$0xff]   ;;  %v2015_v38 = vld [vmem:[%s2245_s6 + $0x1d0] ss:$8 sps:$4 sm:$0xff]   ;;  %v2024_v6 = vld [vmem:[%s2245_s6 + $0x2e4] ss:$8 sps:$4 sm:$0xff]  }
  0x5b   : > { %995 = vmatprep.subr.bf16.mxu0 %v1911_v34  ;;  %766 = vmatpush1.bf16.msra.mxu1 %v1973_v55  ;;  %v534_v33 = vsel %vm516_vm14, %v527_v24, %v532_v28  ;;  %v1950_v34 = vld [vmem:[%s2245_s6 + $0x220] ss:$8 sps:$4 sm:$0xff]   ;;  %v2025_v47 = vld [vmem:[%s2245_s6 + $0x1f4] ss:$8 sps:$4 sm:$0xff]   ;;  %v2027_v51 = vld [vmem:[%s2245_s6 + $0x1f0] ss:$8 sps:$4 sm:$0xff]  }
  0x5c   : > { %767 = vmatprep.subr.bf16.mxu1 %v1977_v56  ;;  %v568_v35 = vcombine.low %v525_v31, %v534_v33  ;;  %v2351_v36 = vrot.slane %v1762_v32, %v2274_v27  ;;  %v1968_v52 = vld [vmem:[%s2245_s6 + $0x250] ss:$8 sps:$4 sm:$0xff]   ;;  %v1974_v55 = vld [vmem:[%s2245_s6 + $0x260] ss:$8 sps:$4 sm:$0xff]   ;;  %v1982_v56 = vld [vmem:[%s2245_s6 + $0x274] ss:$8 sps:$4 sm:$0xff]  }
  0x5d   : > { %v1313_v25 = vld [vmem:[%s2447_s2] sm:$0x3] (!%p1795_p3)  ;;  %v1317_v26 = vsub.s32 (!%p1795_p3), 0, %v2266_v21  ;;  %v1321_v28 = vsub.s32 (!%p1795_p3), 1, %v2266_v21  ;;  %v1340_v31 = vld [vmem:[%s359_s30 + $0x2] sm:$0x3] (!%p1795_p3) }
  0x5e   : > { %996 = vmatpush1.bf16.msra.mxu0 %v1913_v39  ;;  %v2019_v39 = vld [vmem:[%s2245_s6 + $0x1e4] ss:$8 sps:$4 sm:$0xff]   ;;  %v575_v40 = vrot.slane %v568_v35, %v2274_v27  ;;  %v1081_v41 = vcombine.high %v2351_v36, %v2351_v36  ;;  %v1326_v29 = vld [vmem:[%s2448_s3] sm:$0x3] (!%p1795_p3) }
  0x5f   : > { %997 = vmatprep.subr.bf16.mxu0 %v1914_v42  ;;  %768 = vmatpush1.bf16.msra.mxu1 %v1979_v59  ;;  %v1956_v42 = vld [vmem:[%s2245_s6 + $0x230] ss:$8 sps:$4 sm:$0xff]   ;;  %v1986_v59 = vld [vmem:[%s2245_s6 + $0x280] ss:$8 sps:$4 sm:$0xff]   ;;  %v1318_v32 = vrot.slane (!%p1795_p3), %v1313_v25, %v1317_v26  ;;  %v1322_v33 = vrot.slane (!%p1795_p3), %v1313_v25, %v1321_v28  ;;  %v1335_v35 = vrot.slane (!%p1795_p3), %v1326_v29, %v1321_v28 }
  0x60   : > { %769 = vmatprep.subr.bf16.mxu1 %v1983_v60  ;;  %v576_v43 = vcombine.high %v575_v40, %v575_v40  ;;  %v1095_v44 = vrot.slane %v1081_v41, %v2274_v27  ;;  %v1994_v60 = vld [vmem:[%s2245_s6 + $0x294] ss:$8 sps:$4 sm:$0xff]   ;;  %v2105_v41 = vmov (!%p1795_p3), 1983009808  }
  0x62   : > { %998 = vmatpush1.bf16.msra.mxu0 %v1916_v45  ;;  %v1964_v45 = vld [vmem:[%s2245_s6 + $0x244] ss:$8 sps:$4 sm:$0xff]   ;;  %v590_v48 = vrot.slane %v576_v43, %v2274_v27 }
  0x63   : > { %999 = vmatprep.subr.bf16.mxu0 %v1917_v46  ;;  %770 = vmatpush1.bf16.msra.mxu1 %v1985_v63  ;;  %v2021_v46 = vld [vmem:[%s2245_s6 + $0x1e0] ss:$8 sps:$4 sm:$0xff]  }
  0x64   : > { %771 = vmatprep.subr.bf16.mxu1 %v1989_v0  ;;  %785 = vmatprep.mubr.bf16.mxu1 %v590_v48  ;;  %v1998_v63 = vld [vmem:[%s2245_s6 + $0x2a0] ss:$8 sps:$4 sm:$0xff]   ;;  %v2006_v0 = vld [vmem:[%s2245_s6 + $0x2b4] ss:$8 sps:$4 sm:$0xff]  }
  0x66   : > { %1000 = vmatpush1.bf16.msra.mxu0 %v1919_v49  ;;  %v1962_v49 = vld [vmem:[%s2245_s6 + $0x240] ss:$8 sps:$4 sm:$0xff]  }
  0x67   : > { %1001 = vmatprep.subr.bf16.mxu0 %v1920_v50  ;;  %772 = vmatpush1.bf16.msra.mxu1 %v1991_v3  ;;  %v1970_v50 = vld [vmem:[%s2245_s6 + $0x254] ss:$8 sps:$4 sm:$0xff]   ;;  %v2010_v3 = vld [vmem:[%s2245_s6 + $0x2c0] ss:$8 sps:$4 sm:$0xff]  }
  0x68   : > { %773 = vmatprep.subr.bf16.mxu1 %v1995_v4  ;;  %v2018_v4 = vld [vmem:[%s2245_s6 + $0x2d4] ss:$8 sps:$4 sm:$0xff]  }
  0x6a   : > { %1002 = vmatpush1.bf16.msra.mxu0 %v1922_v53  ;;  %v583_v53 = vrot.slane %v575_v40, %v2274_v27 }
  0x6b   : > { %1003 = vmatprep.subr.bf16.mxu0 %v1923_v54  ;;  %774 = vmatpush1.bf16.msra.mxu1 %v1997_v8  ;;  %v1976_v54 = vld [vmem:[%s2245_s6 + $0x264] ss:$8 sps:$4 sm:$0xff]   ;;  %v2030_v8 = vld [vmem:[%s2245_s6 + $0x2f4] ss:$8 sps:$4 sm:$0xff]  }
  0x6c   : > { %775 = vmatprep.subr.bf16.mxu1 %v2001_v10  ;;  %v1088_v10 = vrot.slane %v2351_v36, %v2274_v27 }
  0x6e   : > { %1004 = vmatpush1.bf16.msra.mxu0 %v1925_v57  ;;  %v1980_v57 = vld [vmem:[%s2245_s6 + $0x270] ss:$8 sps:$4 sm:$0xff]  }
  0x6f   : > { %1005 = vmatprep.subr.bf16.mxu0 %v1926_v58  ;;  %776 = vmatpush1.bf16.msra.mxu1 %v2003_v13  ;;  %v1988_v58 = vld [vmem:[%s2245_s6 + $0x284] ss:$8 sps:$4 sm:$0xff]  }
  0x70   : > { %777 = vmatprep.subr.bf16.mxu1 %v2007_v14 }
  0x72   : > { %1006 = vmatpush1.bf16.msra.mxu0 %v1928_v61  ;;  %v1992_v61 = vld [vmem:[%s2245_s6 + $0x290] ss:$8 sps:$4 sm:$0xff]  }
  0x73   : > { %1007 = vmatprep.subr.bf16.mxu0 %v1929_v62  ;;  %778 = vmatpush1.bf16.msra.mxu1 %v2009_v22  ;;  %v2000_v62 = vld [vmem:[%s2245_s6 + $0x2a4] ss:$8 sps:$4 sm:$0xff]  }
  0x74   : > { %779 = vmatprep.subr.bf16.mxu1 %v2013_v30  ;;  %v1339_v30 = vld [vmem:[%s359_s30] sm:$0x3] (!%p1795_p3) }
  0x76   : > { %1008 = vmatpush1.bf16.msra.mxu0 %v1931_v1  ;;  %v2004_v1 = vld [vmem:[%s2245_s6 + $0x2b0] ss:$8 sps:$4 sm:$0xff]  }
  0x77   : > { %1009 = vmatprep.subr.bf16.mxu0 %v1932_v2  ;;  %780 = vmatpush1.bf16.msra.mxu1 %v2015_v38  ;;  %v2012_v2 = vld [vmem:[%s2245_s6 + $0x2c4] ss:$8 sps:$4 sm:$0xff]   ;;  %v1342_v38 = vunpack.c.l.bf16 (!%p1795_p3), %v1340_v31 }
  0x78   : > { %781 = vmatprep.subr.bf16.mxu1 %v2019_v39  ;;  %v1323_v39 = vcombine.low (!%p1795_p3), %v1318_v32, %v1322_v33 }
  0x7a   : > { %1010 = vmatpush1.bf16.msra.mxu0 %v1936_v5  ;;  %v2016_v5 = vld [vmem:[%s2245_s6 + $0x2d0] ss:$8 sps:$4 sm:$0xff]  }
  0x7b   : > { %1258 = vmatprep.subr.bf16.mxu0 %v1940_v7  ;;  %782 = vmatpush1.bf16.msra.mxu1 %v2021_v46  ;;  %v2022_v7 = vld [vmem:[%s2245_s6 + $0x2e0] ss:$8 sps:$4 sm:$0xff]  }
  0x7c   : > { %783 = vmatprep.subr.bf16.mxu1 %v2025_v47 }
  0x7d   : > { %1012 = vmatmul.mubr.bf16.vlgmr.msra.gmra.mrb[0].mxu0 %v809_v11 }
  0x7e   : > { %1259 = vmatpush1.bf16.msra.mxu0 %v1938_v9  ;;  %1290 = vmatprep.mubr.bf16.mxu0 %v1095_v44  ;;  %v2028_v9 = vld [vmem:[%s2245_s6 + $0x2f0] ss:$8 sps:$4 sm:$0xff]  }
  0x7f   : > { %1260 = vmatprep.subr.bf16.mxu0 %v1946_v12  ;;  %784 = vmatpush1.bf16.msra.mxu1 %v2027_v51 }
  0x82   : > { %1261 = vmatpush1.bf16.msra.mxu0 %v1944_v16  ;;  %786 = vmatmul.mubr.bf16.vlgmr.msra.gmra.mrb[0].mxu1 %v583_v53 }
  0x83   : > { %1262 = vmatprep.subr.bf16.mxu0 %v1952_v20  ;;  %v1301_v20 = vld [vmem:[#allocation2] sm:$0xff] }
  0x86   : > { %1263 = vmatpush1.bf16.msra.mxu0 %v1950_v34  ;;  %v1331_v34 = vrot.slane (!%p1795_p3), %v1326_v29, %v1317_v26 }
  0x87   : > { %1264 = vmatprep.subr.bf16.mxu0 %v1958_v37  ;;  %v1341_v37 = vunpack.c.l.bf16 (!%p1795_p3), %v1339_v30 }
  0x88   : > { %v1336_v40 = vcombine.low (!%p1795_p3), %v1331_v34, %v1335_v35 }
  0x89   : > { %v1345_v44 = vcombine.low (!%p1795_p3), %v1341_v37, %v1342_v38 }
  0x8a   : > { %1265 = vmatpush1.bf16.msra.mxu0 %v1956_v42  ;;  %v1347_v42 = vunpack.c.l.s4 (!%p1795_p3), %v2105_v41 }
  0x8b   : > { %1266 = vmatprep.subr.bf16.mxu0 %v1964_v45 }
  0x8c   : > { %v1348_v45 = vunpack.c.0.s8 (!%p1795_p3), %v1347_v42 }
  0x8e   : > { %1267 = vmatpush1.bf16.msra.mxu0 %v1962_v49  ;;  %v1351_v47 = vsub.s32 (!%p1795_p3), %v1348_v45, %v2266_v21 }
  0x8f   : > { %1268 = vmatprep.subr.bf16.mxu0 %v1970_v50 }
  0x90   : > { %v1352_v48 = vrot.slane (!%p1795_p3), %v1345_v44, %v1351_v47 }
  0x92   : > { %1269 = vmatpush1.bf16.msra.mxu0 %v1968_v52 }
  0x93   : > { %1270 = vmatprep.subr.bf16.mxu0 %v1976_v54 }
  0x96   : > { %1271 = vmatpush1.bf16.msra.mxu0 %v1974_v55 }
  0x97   : > { %1272 = vmatprep.subr.bf16.mxu0 %v1982_v56 }
  0x9a   : > { %1273 = vmatpush1.bf16.msra.mxu0 %v1980_v57 }
  0x9b   : > { %1274 = vmatprep.subr.bf16.mxu0 %v1988_v58 }
  0x9e   : > { %1275 = vmatpush1.bf16.msra.mxu0 %v1986_v59 }
  0x9f   : > { %1276 = vmatprep.subr.bf16.mxu0 %v1994_v60 }
  0xa2   : > { %1277 = vmatpush1.bf16.msra.mxu0 %v1992_v61 }
  0xa3   : > { %1278 = vmatprep.subr.bf16.mxu0 %v2000_v62 }
  0xa6   : > { %1279 = vmatpush1.bf16.msra.mxu0 %v1998_v63 }
  0xa7   : > { %1280 = vmatprep.subr.bf16.mxu0 %v2006_v0 }
  0xaa   : > { %1281 = vmatpush1.bf16.msra.mxu0 %v2004_v1 }
  0xab   : > { %1282 = vmatprep.subr.bf16.mxu0 %v2012_v2 }
  0xae   : > { %1283 = vmatpush1.bf16.msra.mxu0 %v2010_v3 }
  0xaf   : > { %1284 = vmatprep.subr.bf16.mxu0 %v2018_v4 }
  0xb2   : > { %1285 = vmatpush1.bf16.msra.mxu0 %v2016_v5 }
  0xb3   : > { %1286 = vmatprep.subr.bf16.mxu0 %v2024_v6 }
  0xb6   : > { %1287 = vmatpush1.bf16.msra.mxu0 %v2022_v7 }
  0xb7   : > { %1288 = vmatprep.subr.bf16.mxu0 %v2030_v8 }
  0xba   : > { %1289 = vmatpush1.bf16.msra.mxu0 %v2028_v9 }
  0xbd   : > { %1291 = vmatmul.mubr.bf16.vlgmr.msra.gmra.mrb[0].mxu0 %v1088_v10 }
 0x155   : > { %v787_v11 = vpop.f32.mrb[0].mxu1 }
 0x156   : > { %v789_v12 = vpop.f32.mrb[1].mxu1 }
 0x157   : > { %v791_v13 = vpop.f32.mrb[2].mxu1 }
 0x158   : > { %v792_v14 = vpop.f32.mrb[3].mxu1 }
 0x190   : > { %v1292_v15 = vpop.f32.mrb[0].mxu0 }
 0x191   : > { %v1805_v16 = vadd.f32 %v1292_v15, %v787_v11  ;;  %v1294_v17 = vpop.f32.mrb[1].mxu0 }
 0x192   : > { %v1806_v18 = vadd.f32 %v1294_v17, %v789_v12  ;;  %v1296_v19 = vpop.f32.mrb[2].mxu0  ;;  %1311 = sbr.rel (%p1795_p3) target bundleno = 437 (0x1b5), region = 123 }
 0x193   : > { %v1297_v22 = vpop.f32.mrb[3].mxu0 }
 0x194   : > { %v1304_v23 = vcombine.low %v1805_v16, %v1806_v18 }
 0x196   : > { %v1306_v24 = vadd.f32 %v1304_v23, %v1301_v20 }
 0x198   : > { %1307 = vst [vmem:[#allocation2] sm:$0xff] %v1306_v24 }
 0x19f   : > { %v1312_v36 = vld [vmem:[#allocation2] sm:$0xff] }
 0x1a0   : > { %v1325_v43 = vmul.f32 %v1323_v39, %v1312_v36 }
 0x1a2   : > { %v1338_v46 = vadd.f32 %v1336_v40, %v1325_v43 }
 0x1a4   : > { %v1354_v49 = vadd.f32 %v1352_v48, %v1338_v46 }
 0x1a6   : > { %v1355_v50 = vmax.f32 %v1354_v49, 0.0 }
 0x1a8   : > { %v1363_v51 = vrot.slane %v1355_v50, %v1351_v47 }
 0x1aa   : > { %v1371_v52 = vrot.slane %v1363_v51, %v1351_v47  ;;  %v1364_v53 = vcombine.high %v1363_v51, %v1363_v51 }
 0x1ac   : > { %v1372_v54 = vcombine.high %v1371_v52, %v1371_v52  ;;  %v1379_v55 = vrot.slane %v1364_v53, %v1351_v47 }
 0x1ae   : > { %v1796_v56 = vpack.c.bf16 %v1372_v54, %v1371_v52  ;;  %v1380_v57 = vcombine.high %v1379_v55, %v1379_v55 }
 0x1b0   : > { %v1400_v58 = vrot.slane %v1796_v56, %v2274_v27  ;;  %v1797_v59 = vpack.c.bf16 %v1380_v57, %v1379_v55 }
 0x1b2   : > { %1798 = vst.sshfl [vmem:[%s2251_s16] sm:$0x5 pattern:$0x73625140] %v1400_v58  ;;  %v1415_v60 = vrot.slane %v1797_v59, %v2274_v27 }
 0x1b4   : > { %1799 = vst.sshfl [vmem:[%s2251_s16 + $0x2] sm:$0x5 pattern:$0x73625140] %v1415_v60 }
 0x1b5 PF: > { %1433 = sbr.rel (!%p2210_p10) target bundleno = 445 (0x1bd), region = 127  ;;  %s1801_s22 = sshll.u32 (%p2210_p10), %s2089_s23, 1 }
 0x1b6   : > { %s1437_s11 = scalar_lea.vmem (%p2210_p10), %s2450_s5, %s1801_s22 }
 0x1b9   : > { %v1453_v21 = vld [vmem:[%s2251_s16] sm:$0x3] (%p2210_p10) }
 0x1ba   : > { %1454 = vst [vmem:[%s1437_s11] sm:$0x3] (%p2210_p10), %v1453_v21 }
 0x1bb   : > { %v1455_v61 = vld [vmem:[%s2251_s16 + $0x2] sm:$0x3] (%p2210_p10) }
 0x1bc   : > { %1456 = vst [vmem:[%s1437_s11 + $0x4] sm:$0x3] %v1455_v61 }
 0x1bd PF: > { %s15_s26 = sadd.s32 1, %s2101_s26   ;;  %s2460_s13 = sld [smem:[#allocation6_spill]] }
 0x1be   : > { %p12_p4 = scmp.ge.s32.totalorder %s15_s26, 8   ;;  %s2461_s28 = sld [smem:[#allocation7_spill]] }
 0x1bf   : > { %s2462_s18 = smov %s2073_s19  ;;  %s2463_s19 = smov %s2215_s14 }
 0x1c0   : > { %s2464_s20 = smov %s2081_s21  ;;  %s2465_s21 = smov %s2218_s15 }
 0x1c1   : > { %s2466_s22 = smov %s2093_s24  ;;  %s2467_s23 = smov %s2097_s25 }
 0x1c2   :  { %14 = sbr.rel (!%p12_p4) target bundleno = 5 (0x5), region = 211 }
 0x1c3   : > { %s2468_s24 = smov %s2460_s13 }
 0x1c4   : > { %s2469_s25 = smov %s2461_s28 }

// kernel: resnet_forward.23
= control target key start
LH: loop header
LB: loop body
LE: loop exit
PB: predicated region body
PF: predicated region fallthrough
CT: control target
= control target key end

     0   :  { %v764_v38 = vmov 1966171168   ;;  %v94_v40 = vlaneseq  ;;  %s1007_s1 = inlined_call_operand.vmem [shape: bf16[256,512], index: 1, kind: input, shape index: {}]   ;;  %s1008_s0 = inlined_call_operand.vmem [shape: bf16[2,256], index: 0, kind: input, shape index: {}]   ;;  %s1009_s2 = inlined_call_operand.vmem [shape: f32[1,512], index: 2, kind: input, shape index: {}]   ;;  %s1010_s3 = inlined_call_operand.vmem [shape: f32[1,512], index: 3, kind: input, shape index: {}]   ;;  %s1011_s4 = inlined_call_operand.vmem [shape: bf16[2,512], index: 4, kind: output, shape index: {}]  }
   0x1   :  { %v668_v0 = vld [vmem:[%s1007_s1 + $0x4] ss:$16 sps:$4 sm:$0xff]   ;;  %v670_v1 = vld [vmem:[%s1007_s1 + $0xc] ss:$16 sps:$4 sm:$0xff]   ;;  %v672_v2 = vld [vmem:[%s1007_s1] ss:$16 sps:$4 sm:$0xff]   ;;  %v92_v39 = vunpack.c.l.s4 %v764_v38 }
   0x2   :  { %427 = vmatprep.subr.bf16.mxu0 %v668_v0  ;;  %v673_v3 = vld [vmem:[%s1007_s1 + $0x8] ss:$16 sps:$4 sm:$0xff]   ;;  %468 = vmatprep.subr.bf16.mxu1 %v670_v1  ;;  %v674_v4 = vld [vmem:[%s1007_s1 + $0x24] ss:$16 sps:$4 sm:$0xff]   ;;  %v676_v5 = vld [vmem:[%s1007_s1 + $0x2c] ss:$16 sps:$4 sm:$0xff]  }
   0x3   :  { %428 = vmatpush1.bf16.msra.mxu0 %v672_v2  ;;  %469 = vmatpush1.bf16.msra.mxu1 %v673_v3  ;;  %v678_v6 = vld [vmem:[%s1007_s1 + $0x20] ss:$16 sps:$4 sm:$0xff]   ;;  %v679_v7 = vld [vmem:[%s1007_s1 + $0x28] ss:$16 sps:$4 sm:$0xff]   ;;  %v680_v8 = vld [vmem:[%s1007_s1 + $0x44] ss:$16 sps:$4 sm:$0xff]   ;;  %v93_v45 = vunpack.c.0.s8 %v92_v39 }
   0x4   :  { %429 = vmatprep.subr.bf16.mxu0 %v674_v4  ;;  %470 = vmatprep.subr.bf16.mxu1 %v676_v5  ;;  %v682_v9 = vld [vmem:[%s1007_s1 + $0x4c] ss:$16 sps:$4 sm:$0xff]   ;;  %v684_v10 = vld [vmem:[%s1007_s1 + $0x40] ss:$16 sps:$4 sm:$0xff]   ;;  %v685_v11 = vld [vmem:[%s1007_s1 + $0x48] ss:$16 sps:$4 sm:$0xff]  }
   0x5   :  { %v686_v12 = vld [vmem:[%s1007_s1 + $0x64] ss:$16 sps:$4 sm:$0xff]   ;;  %v688_v13 = vld [vmem:[%s1007_s1 + $0x6c] ss:$16 sps:$4 sm:$0xff]   ;;  %v690_v14 = vld [vmem:[%s1007_s1 + $0x60] ss:$16 sps:$4 sm:$0xff]  }
   0x6   :  { %v691_v15 = vld [vmem:[%s1007_s1 + $0x68] ss:$16 sps:$4 sm:$0xff]   ;;  %v692_v16 = vld [vmem:[%s1007_s1 + $0x84] ss:$16 sps:$4 sm:$0xff]   ;;  %v694_v17 = vld [vmem:[%s1007_s1 + $0x8c] ss:$16 sps:$4 sm:$0xff]  }
   0x7   :  { %430 = vmatpush1.bf16.msra.mxu0 %v678_v6  ;;  %471 = vmatpush1.bf16.msra.mxu1 %v679_v7  ;;  %v696_v18 = vld [vmem:[%s1007_s1 + $0x80] ss:$16 sps:$4 sm:$0xff]   ;;  %v697_v19 = vld [vmem:[%s1007_s1 + $0x88] ss:$16 sps:$4 sm:$0xff]   ;;  %v698_v20 = vld [vmem:[%s1007_s1 + $0xa4] ss:$16 sps:$4 sm:$0xff]  }
   0x8   :  { %431 = vmatprep.subr.bf16.mxu0 %v680_v8  ;;  %472 = vmatprep.subr.bf16.mxu1 %v682_v9  ;;  %v700_v21 = vld [vmem:[%s1007_s1 + $0xac] ss:$16 sps:$4 sm:$0xff]   ;;  %v702_v22 = vld [vmem:[%s1007_s1 + $0xa0] ss:$16 sps:$4 sm:$0xff]   ;;  %v703_v23 = vld [vmem:[%s1007_s1 + $0xa8] ss:$16 sps:$4 sm:$0xff]  }
   0x9   :  { %v704_v24 = vld [vmem:[%s1007_s1 + $0xc4] ss:$16 sps:$4 sm:$0xff]   ;;  %v706_v25 = vld [vmem:[%s1007_s1 + $0xcc] ss:$16 sps:$4 sm:$0xff]   ;;  %v708_v26 = vld [vmem:[%s1007_s1 + $0xc0] ss:$16 sps:$4 sm:$0xff]  }
   0xa   :  { %v709_v27 = vld [vmem:[%s1007_s1 + $0xc8] ss:$16 sps:$4 sm:$0xff]   ;;  %v710_v28 = vld [vmem:[%s1007_s1 + $0xe4] ss:$16 sps:$4 sm:$0xff]   ;;  %v712_v29 = vld [vmem:[%s1007_s1 + $0xec] ss:$16 sps:$4 sm:$0xff]  }
   0xb   :  { %432 = vmatpush1.bf16.msra.mxu0 %v684_v10  ;;  %473 = vmatpush1.bf16.msra.mxu1 %v685_v11  ;;  %v714_v30 = vld [vmem:[%s1007_s1 + $0xe0] ss:$16 sps:$4 sm:$0xff]   ;;  %v715_v31 = vld [vmem:[%s1007_s1 + $0xe8] ss:$16 sps:$4 sm:$0xff]   ;;  %v716_v32 = vld [vmem:[%s1007_s1 + $0x104] ss:$16 sps:$4 sm:$0xff]  }
   0xc   :  { %433 = vmatprep.subr.bf16.mxu0 %v686_v12  ;;  %474 = vmatprep.subr.bf16.mxu1 %v688_v13  ;;  %v718_v33 = vld [vmem:[%s1007_s1 + $0x10c] ss:$16 sps:$4 sm:$0xff]   ;;  %v720_v34 = vld [vmem:[%s1007_s1 + $0x100] ss:$16 sps:$4 sm:$0xff]   ;;  %v721_v35 = vld [vmem:[%s1007_s1 + $0x108] ss:$16 sps:$4 sm:$0xff]  }
   0xd   :  { %v722_v36 = vld [vmem:[%s1007_s1 + $0x124] ss:$16 sps:$4 sm:$0xff]   ;;  %v724_v37 = vld [vmem:[%s1007_s1 + $0x12c] ss:$16 sps:$4 sm:$0xff]   ;;  %v726_v41 = vld [vmem:[%s1007_s1 + $0x120] ss:$16 sps:$4 sm:$0xff]  }
   0xe   :  { %v727_v42 = vld [vmem:[%s1007_s1 + $0x128] ss:$16 sps:$4 sm:$0xff]   ;;  %v728_v43 = vld [vmem:[%s1007_s1 + $0x144] ss:$16 sps:$4 sm:$0xff]   ;;  %v730_v44 = vld [vmem:[%s1007_s1 + $0x14c] ss:$16 sps:$4 sm:$0xff]  }
   0xf   :  { %434 = vmatpush1.bf16.msra.mxu0 %v690_v14  ;;  %475 = vmatpush1.bf16.msra.mxu1 %v691_v15  ;;  %v916_v46 = vshrl.u32 %v94_v40, 7  ;;  %v732_v47 = vld [vmem:[%s1007_s1 + $0x140] ss:$16 sps:$4 sm:$0xff]   ;;  %v733_v48 = vld [vmem:[%s1007_s1 + $0x148] ss:$16 sps:$4 sm:$0xff]  }
  0x10   :  { %435 = vmatprep.subr.bf16.mxu0 %v692_v16  ;;  %476 = vmatprep.subr.bf16.mxu1 %v694_v17  ;;  %v734_v49 = vld [vmem:[%s1007_s1 + $0x164] ss:$16 sps:$4 sm:$0xff]   ;;  %v736_v50 = vld [vmem:[%s1007_s1 + $0x16c] ss:$16 sps:$4 sm:$0xff]   ;;  %v738_v53 = vld [vmem:[%s1007_s1 + $0x160] ss:$16 sps:$4 sm:$0xff]  }
  0x11   :  { %v931_v51 = vsub.s32 %v93_v45, %v916_v46  ;;  %v599_v52 = vld.sshfl [vmem:[%s1008_s0] sm:$0x11 pattern:$0x75316420]  ;;  %v739_v54 = vld [vmem:[%s1007_s1 + $0x168] ss:$16 sps:$4 sm:$0xff]  }
  0x12   :  { %v90_v55 = vcombine.high %v599_v52, %v599_v52  ;;  %v740_v56 = vld [vmem:[%s1007_s1 + $0x184] ss:$16 sps:$4 sm:$0xff]   ;;  %v742_v57 = vld [vmem:[%s1007_s1 + $0x18c] ss:$16 sps:$4 sm:$0xff]   ;;  %v744_v59 = vld [vmem:[%s1007_s1 + $0x180] ss:$16 sps:$4 sm:$0xff]  }
  0x13   :  { %436 = vmatpush1.bf16.msra.mxu0 %v696_v18  ;;  %477 = vmatpush1.bf16.msra.mxu1 %v697_v19  ;;  %v745_v60 = vld [vmem:[%s1007_s1 + $0x188] ss:$16 sps:$4 sm:$0xff]   ;;  %v746_v61 = vld [vmem:[%s1007_s1 + $0x1a4] ss:$16 sps:$4 sm:$0xff]   ;;  %v748_v62 = vld [vmem:[%s1007_s1 + $0x1ac] ss:$16 sps:$4 sm:$0xff]   ;;  %v97_v9 = vrot.slane %v599_v52, %v931_v51 }
  0x14   :  { %437 = vmatprep.subr.bf16.mxu0 %v698_v20  ;;  %478 = vmatprep.subr.bf16.mxu1 %v700_v21  ;;  %v104_v58 = vrot.slane %v90_v55, %v931_v51  ;;  %v750_v63 = vld [vmem:[%s1007_s1 + $0x1a0] ss:$16 sps:$4 sm:$0xff]   ;;  %v751_v0 = vld [vmem:[%s1007_s1 + $0x1a8] ss:$16 sps:$4 sm:$0xff]   ;;  %v752_v1 = vld [vmem:[%s1007_s1 + $0x1c4] ss:$16 sps:$4 sm:$0xff]  }
  0x15   :  { %v754_v2 = vld [vmem:[%s1007_s1 + $0x1cc] ss:$16 sps:$4 sm:$0xff]   ;;  %v756_v3 = vld [vmem:[%s1007_s1 + $0x1c0] ss:$16 sps:$4 sm:$0xff]   ;;  %v757_v4 = vld [vmem:[%s1007_s1 + $0x1c8] ss:$16 sps:$4 sm:$0xff]  }
  0x16   :  { %459 = vmatprep.mubr.bf16.mxu0 %v104_v58  ;;  %500 = vmatprep.mubr.bf16.mxu1 %v104_v58  ;;  %v758_v5 = vld [vmem:[%s1007_s1 + $0x1e4] ss:$16 sps:$4 sm:$0xff]   ;;  %v760_v6 = vld [vmem:[%s1007_s1 + $0x1ec] ss:$16 sps:$4 sm:$0xff]   ;;  %v762_v7 = vld [vmem:[%s1007_s1 + $0x1e0] ss:$16 sps:$4 sm:$0xff]  }
  0x17   :  { %438 = vmatpush1.bf16.msra.mxu0 %v702_v22  ;;  %479 = vmatpush1.bf16.msra.mxu1 %v703_v23  ;;  %v763_v8 = vld [vmem:[%s1007_s1 + $0x1e8] ss:$16 sps:$4 sm:$0xff]   ;;  %v513_v10 = vsub.s32 0, %v916_v46  ;;  %v521_v11 = vsub.s32 2, %v916_v46  ;;  %v509_v12 = vld [vmem:[%s1009_s2] sm:$0xf] }
  0x18   :  { %439 = vmatprep.subr.bf16.mxu0 %v704_v24  ;;  %480 = vmatprep.subr.bf16.mxu1 %v706_v25  ;;  %v517_v13 = vsub.s32 1, %v916_v46  ;;  %v525_v14 = vsub.s32 3, %v916_v46  ;;  %v535_v15 = vld [vmem:[%s1010_s3] sm:$0xf] }
  0x19   :  { %v514_v16 = vrot.slane %v509_v12, %v513_v10  ;;  %v522_v17 = vrot.slane %v509_v12, %v521_v11  ;;  %v540_v20 = vrot.slane %v535_v15, %v513_v10  ;;  %v548_v21 = vrot.slane %v535_v15, %v521_v11 }
  0x1a   :  { %v518_v18 = vrot.slane %v509_v12, %v517_v13  ;;  %v526_v19 = vrot.slane %v509_v12, %v525_v14  ;;  %v544_v24 = vrot.slane %v535_v15, %v517_v13  ;;  %v552_v25 = vrot.slane %v535_v15, %v525_v14 }
  0x1b   :  { %440 = vmatpush1.bf16.msra.mxu0 %v708_v26  ;;  %481 = vmatpush1.bf16.msra.mxu1 %v709_v27 }
  0x1c   :  { %441 = vmatprep.subr.bf16.mxu0 %v710_v28  ;;  %482 = vmatprep.subr.bf16.mxu1 %v712_v29 }
  0x1f   :  { %442 = vmatpush1.bf16.msra.mxu0 %v714_v30  ;;  %483 = vmatpush1.bf16.msra.mxu1 %v715_v31 }
  0x20   :  { %443 = vmatprep.subr.bf16.mxu0 %v716_v32  ;;  %484 = vmatprep.subr.bf16.mxu1 %v718_v33 }
  0x23   :  { %444 = vmatpush1.bf16.msra.mxu0 %v720_v34  ;;  %485 = vmatpush1.bf16.msra.mxu1 %v721_v35 }
  0x24   :  { %445 = vmatprep.subr.bf16.mxu0 %v722_v36  ;;  %486 = vmatprep.subr.bf16.mxu1 %v724_v37 }
  0x27   :  { %446 = vmatpush1.bf16.msra.mxu0 %v726_v41  ;;  %487 = vmatpush1.bf16.msra.mxu1 %v727_v42 }
  0x28   :  { %447 = vmatprep.subr.bf16.mxu0 %v728_v43  ;;  %488 = vmatprep.subr.bf16.mxu1 %v730_v44 }
  0x2b   :  { %448 = vmatpush1.bf16.msra.mxu0 %v732_v47  ;;  %489 = vmatpush1.bf16.msra.mxu1 %v733_v48 }
  0x2c   :  { %449 = vmatprep.subr.bf16.mxu0 %v734_v49  ;;  %490 = vmatprep.subr.bf16.mxu1 %v736_v50 }
  0x2f   :  { %450 = vmatpush1.bf16.msra.mxu0 %v738_v53  ;;  %491 = vmatpush1.bf16.msra.mxu1 %v739_v54 }
  0x30   :  { %451 = vmatprep.subr.bf16.mxu0 %v740_v56  ;;  %492 = vmatprep.subr.bf16.mxu1 %v742_v57 }
  0x33   :  { %452 = vmatpush1.bf16.msra.mxu0 %v744_v59  ;;  %493 = vmatpush1.bf16.msra.mxu1 %v745_v60 }
  0x34   :  { %453 = vmatprep.subr.bf16.mxu0 %v746_v61  ;;  %494 = vmatprep.subr.bf16.mxu1 %v748_v62 }
  0x37   :  { %454 = vmatpush1.bf16.msra.mxu0 %v750_v63  ;;  %495 = vmatpush1.bf16.msra.mxu1 %v751_v0 }
  0x38   :  { %455 = vmatprep.subr.bf16.mxu0 %v752_v1  ;;  %496 = vmatprep.subr.bf16.mxu1 %v754_v2 }
  0x3b   :  { %456 = vmatpush1.bf16.msra.mxu0 %v756_v3  ;;  %497 = vmatpush1.bf16.msra.mxu1 %v757_v4 }
  0x3c   :  { %457 = vmatprep.subr.bf16.mxu0 %v758_v5  ;;  %498 = vmatprep.subr.bf16.mxu1 %v760_v6 }
  0x3f   :  { %458 = vmatpush1.bf16.msra.mxu0 %v762_v7  ;;  %499 = vmatpush1.bf16.msra.mxu1 %v763_v8 }
  0x42   :  { %460 = vmatmul.mubr.bf16.vlgmr.msra.gmra.mrb[0].mxu0 %v97_v9  ;;  %501 = vmatmul.mubr.bf16.vlgmr.msra.gmra.mrb[0].mxu1 %v97_v9 }
 0x115   :  { %v461_v22 = vpop.f32.mrb[0].mxu0  ;;  %v502_v23 = vpop.f32.mrb[0].mxu1 }
 0x116   :  { %v531_v26 = vmul.f32 %v514_v16, %v461_v22  ;;  %v533_v27 = vmul.f32 %v522_v17, %v502_v23  ;;  %v463_v28 = vpop.f32.mrb[1].mxu0  ;;  %v504_v29 = vpop.f32.mrb[1].mxu1 }
 0x117   :  { %v532_v30 = vmul.f32 %v518_v18, %v463_v28  ;;  %v534_v31 = vmul.f32 %v526_v19, %v504_v29  ;;  %v465_v32 = vpop.f32.mrb[2].mxu0  ;;  %v506_v33 = vpop.f32.mrb[2].mxu1 }
 0x118   :  { %v557_v34 = vadd.f32 %v540_v20, %v531_v26  ;;  %v559_v35 = vadd.f32 %v548_v21, %v533_v27  ;;  %v466_v36 = vpop.f32.mrb[3].mxu0  ;;  %v507_v37 = vpop.f32.mrb[3].mxu1 }
 0x119   :  { %v558_v38 = vadd.f32 %v544_v24, %v532_v30  ;;  %v560_v39 = vadd.f32 %v552_v25, %v534_v31 }
 0x11b   :  { %v664_v40 = vpack.c.bf16 %v558_v38, %v557_v34  ;;  %v665_v41 = vpack.c.bf16 %v560_v39, %v559_v35 }
 0x11d   :  { %v577_v42 = vrot.slane %v664_v40, %v931_v51  ;;  %v584_v43 = vrot.slane %v665_v41, %v931_v51 }
 0x11f   :  { %v585_v44 = vcombine.low %v577_v42, %v584_v43 }
 0x121   :  { %666 = vst.sshfl [vmem:[%s1011_s4] sm:$0x55 pattern:$0x73625140] %v585_v44 }

// kernel: resnet_forward.25
= control target key start
LH: loop header
LB: loop body
LE: loop exit
PB: predicated region body
PF: predicated region fallthrough
CT: control target
= control target key end

     0   :  { %s3972_s18 = smov 0   ;;  %s3974_s19 = smov 0   ;;  %s4867_s0 = inlined_call_operand.vmem [shape: bf16[2,3,3,512], index: 0, kind: input, shape index: {}]   ;;  %s4868_s1 = inlined_call_operand.vmem [shape: bf16[3,3,512,512], index: 1, kind: input, shape index: {}]   ;;  %s4869_s2 = inlined_call_operand.vmem [shape: f32[1,512], index: 2, kind: input, shape index: {}]   ;;  %s4870_s3 = inlined_call_operand.vmem [shape: f32[1,512], index: 3, kind: input, shape index: {}]   ;;  %s4871_s4 = inlined_call_operand.vmem [shape: bf16[2,1,1,512], index: 4, kind: input, shape index: {}]   ;;  %s4872_s5 = inlined_call_operand.vmem [shape: bf16[2,1,1,512], index: 5, kind: output, shape index: {}]  }
   0x1   :  { %s3976_s20 = smov 0   ;;  %s3978_s21 = smov 0  }
   0x2   :  { %s3980_s22 = smov 0   ;;  %s3982_s23 = smov 0  }
   0x3   :  { %s3984_s24 = smov 0   ;;  %s3986_s25 = smov 0  }
   0x4   :  { %s3988_s26 = smov 0   ;;  %s3990_s27 = smov 0  }
   0x5   :  { %s3992_s28 = smov 0  }
   0x6 LB: > { %4876 = sst [smem:[#allocation7_spill]] %s3917_s23  ;;  %s3101_s29 = sadd.s32 4294967295, %s3937_s28   ;;  %s3937_s28 = sphi %s3992_s28, %s15_s28   ;;  %s3933_s27 = sphi %s3990_s27, %s4902_s27   ;;  %s3929_s26 = sphi %s3988_s26, %s4901_s26   ;;  %s3925_s25 = sphi %s3986_s25, %s4900_s25   ;;  %s3921_s24 = sphi %s3984_s24, %s4899_s24   ;;  %s3917_s23 = sphi %s3982_s23, %s4898_s23   ;;  %s3913_s22 = sphi %s3980_s22, %s4890_s22   ;;  %s3909_s21 = sphi %s3978_s21, %s4897_s21   ;;  %s3905_s20 = sphi %s3976_s20, %s4896_s20   ;;  %s3901_s19 = sphi %s3974_s19, %s4895_s19   ;;  %s3897_s18 = sphi %s3972_s18, %s4894_s18  }
   0x7   : > { %s27_s30 = sadd.s32 1, %s3929_s26  ;;  %s30_s6 = sadd.s32 1, %s3933_s27 }
   0x8   : > { %p28_p0 = scmp.ge.s32.totalorder %s27_s30, 3  ;;  %s43_s7 = sadd.s32 1, %s3917_s23 }
   0x9   : > { %p50_p1 = scmp.ne.s32.totalorder %s3917_s23, %s3913_s22  ;;  %p51_p2 = scmp.eq.s32.totalorder %s3937_s28, 0 }
   0xa   : > { %s4904_s30 = smov (%p28_p0, %s27_s30), 0  ;;  %s4906_s6 = smov (!%p28_p0, %s30_s6), %s3933_s27 }
   0xb   : > { %4877 = sst [smem:[#allocation8_spill]] %s4904_s30  ;;  %s40_s8 = ssub.s32 %s3929_s26, %s4904_s30 }
   0xc   : > { %p32_p3 = scmp.ge.s32.totalorder %s4906_s6, 2  ;;  %p41_p4 = scmp.eq.s32.totalorder %s40_s8, 0 }
   0xd   : > { %p4041_p5 = por %p51_p2, %p50_p1  ;;  %s71_s10 = sadd.s32 1, %s3909_s21 }
   0xe   : > { %s4908_s6 = smov (%p32_p3, %s4906_s6), 0  ;;  %p78_p6 = scmp.ne.s32.totalorder %s3909_s21, %s3905_s20 }
   0xf   : > { %4879 = sst [smem:[#allocation9_spill]] %s4908_s6  ;;  %s67_s12 = ssub.s32 %s3933_s27, %s4908_s6 }
  0x10   : > { %s4049_s11 = scalar_select %p41_p4, %s3917_s23, %s43_s7  }
  0x11   : > { %s68_s13 = sor.u32 %s67_s12, %s40_s8  ;;  %p149_p7 = scmp.eq.s32.totalorder %s67_s12, 0 }
  0x12   : > { %4880 = sst [smem:[#allocation10_spill]] %s4049_s11  ;;  %p69_p8 = scmp.eq.s32.totalorder %s68_s13, 0 }
  0x13   : > { %p4057_p9 = por %p78_p6, %p51_p2  ;;  %s151_s15 = sadd.s32 1, %s3901_s19 }
  0x14   : > { %p158_p10 = scmp.ne.s32.totalorder %s3901_s19, %s3897_s18  ;;  %p190_p12 = scmp.eq.s32.totalorder %s3101_s29, 5 }
  0x15   : > { %s4065_s16 = scalar_select %p69_p8, %s3909_s21, %s71_s10  }
  0x16   : > { %s4068_s17 = scalar_select %p149_p7, %s3901_s19, %s151_s15  }
  0x17   : > { %4882 = sst [smem:[#allocation11_spill]] %s4065_s16  ;;  %p4072_p11 = por %p158_p10, %p51_p2 }
  0x18   : > { %4883 = sst [smem:[#allocation12_spill]] %s4068_s17  ;;  %p4076_p13 = por %p190_p12, %p158_p10 }
  0x19   : > { %p3104_p0 = scmp.ge.s32.totalorder %s3937_s28, 6 }
  0x1b   : > { %212 = sbr.rel (%p3104_p0) target bundleno = 152 (0x98), region = 16 }
  0x22   : > { %215 = sbr.rel (!%p4041_p5) target bundleno = 41 (0x29), region = 20  ;;  %s217_s10 = sand.u32 (%p4041_p5), 1, %s3917_s23  }
  0x23   : > { %s3446_s12 = sshll.u32 (%p4041_p5), %s3929_s26, 3  ;;  %s3105_s13 = sshll.u32 (%p4041_p5), %s217_s10, 4 }
  0x24   : > { %s223_s30 = scalar_lea.vmem (%p4041_p5), %s4867_s0, %s3446_s12  ;;  %s219_s29 = scalar_lea.vmem (%p4041_p5), [#allocation3], %s3105_s13 }
  0x25   : > { %v253_v0 = vld [vmem:[%s223_s30] sm:$0xff] (%p4041_p5)  ;;  %v255_v1 = vld [vmem:[%s223_s30 + $0x18] sm:$0xff] (%p4041_p5) }
  0x26   : > { %254 = vst [vmem:[%s219_s29] sm:$0xff] (%p4041_p5), %v253_v0  ;;  %256 = vst [vmem:[%s219_s29 + $0x8] sm:$0xff] (%p4041_p5), %v255_v1 }
  0x29 PF: > { %262 = sbr.rel (!%p4057_p9) target bundleno = 145 (0x91), region = 58  ;;  %s264_s9 = sand.u32 (%p4057_p9), 1, %s3909_s21  }
  0x2a   : > { %s3465_s11 = smul.u32 (%p4057_p9), 1536, %s264_s9  ;;  %s3108_s23 = sshll.u32 (%p4057_p9), %s3933_s27, 1 }
  0x2b   : > { %s3466_s10 = smul.u32 (%p4057_p9), 768, %s3929_s26 }
  0x2c   : > { %s4101_s14 = scalar_lea.vmem (%p4057_p9), [#allocation4], %s3465_s11 }
  0x2d   : > { %s269_s16 = sadd.s32 (%p4057_p9), %s3466_s10, %s3108_s23 }
  0x2e   : > { %s3109_s17 = sshll.u32 (%p4057_p9), %s269_s16, 2 }
  0x2f   : > { %s4096_s30 = scalar_lea.vmem (%p4057_p9), %s4868_s1, %s3109_s17 }
  0x30   : > { %v681_v2 = vld [vmem:[%s4096_s30] sm:$0xff]  ;;  %v683_v3 = vld [vmem:[%s4096_s30 + $0x10] sm:$0xff] }
  0x31   : > { %v685_v4 = vld [vmem:[%s4096_s30 + $0x20] sm:$0xff]  ;;  %682 = vst [vmem:[%s4101_s14] sm:$0xff] %v681_v2  ;;  %684 = vst [vmem:[%s4101_s14 + $0x8] sm:$0xff] %v683_v3  ;;  %v687_v5 = vld [vmem:[%s4096_s30 + $0x30] sm:$0xff] }
  0x32   : > { %686 = vst [vmem:[%s4101_s14 + $0x10] sm:$0xff] %v685_v4  ;;  %v689_v6 = vld [vmem:[%s4096_s30 + $0x40] sm:$0xff]  ;;  %v691_v7 = vld [vmem:[%s4096_s30 + $0x50] sm:$0xff]  ;;  %688 = vst [vmem:[%s4101_s14 + $0x18] sm:$0xff] %v687_v5 }
  0x33   : > { %690 = vst [vmem:[%s4101_s14 + $0x20] sm:$0xff] %v689_v6  ;;  %692 = vst [vmem:[%s4101_s14 + $0x28] sm:$0xff] %v691_v7  ;;  %v693_v8 = vld [vmem:[%s4096_s30 + $0x60] sm:$0xff]  ;;  %v695_v9 = vld [vmem:[%s4096_s30 + $0x70] sm:$0xff] }
  0x34   : > { %v697_v10 = vld [vmem:[%s4096_s30 + $0x80] sm:$0xff]  ;;  %694 = vst [vmem:[%s4101_s14 + $0x30] sm:$0xff] %v693_v8  ;;  %696 = vst [vmem:[%s4101_s14 + $0x38] sm:$0xff] %v695_v9  ;;  %v699_v11 = vld [vmem:[%s4096_s30 + $0x90] sm:$0xff] }
  0x35   : > { %698 = vst [vmem:[%s4101_s14 + $0x40] sm:$0xff] %v697_v10  ;;  %v701_v12 = vld [vmem:[%s4096_s30 + $0xa0] sm:$0xff]  ;;  %v703_v13 = vld [vmem:[%s4096_s30 + $0xb0] sm:$0xff]  ;;  %700 = vst [vmem:[%s4101_s14 + $0x48] sm:$0xff] %v699_v11 }
  0x36   : > { %702 = vst [vmem:[%s4101_s14 + $0x50] sm:$0xff] %v701_v12  ;;  %704 = vst [vmem:[%s4101_s14 + $0x58] sm:$0xff] %v703_v13  ;;  %v705_v14 = vld [vmem:[%s4096_s30 + $0xc0] sm:$0xff]  ;;  %v707_v15 = vld [vmem:[%s4096_s30 + $0xd0] sm:$0xff] }
  0x37   : > { %v709_v16 = vld [vmem:[%s4096_s30 + $0xe0] sm:$0xff]  ;;  %706 = vst [vmem:[%s4101_s14 + $0x60] sm:$0xff] %v705_v14  ;;  %708 = vst [vmem:[%s4101_s14 + $0x68] sm:$0xff] %v707_v15  ;;  %v711_v17 = vld [vmem:[%s4096_s30 + $0xf0] sm:$0xff] }
  0x38   : > { %710 = vst [vmem:[%s4101_s14 + $0x70] sm:$0xff] %v709_v16  ;;  %v713_v18 = vld [vmem:[%s4096_s30 + $0x100] sm:$0xff]  ;;  %v715_v19 = vld [vmem:[%s4096_s30 + $0x110] sm:$0xff]  ;;  %712 = vst [vmem:[%s4101_s14 + $0x78] sm:$0xff] %v711_v17 }
  0x39   : > { %714 = vst [vmem:[%s4101_s14 + $0x80] sm:$0xff] %v713_v18  ;;  %716 = vst [vmem:[%s4101_s14 + $0x88] sm:$0xff] %v715_v19  ;;  %v717_v20 = vld [vmem:[%s4096_s30 + $0x120] sm:$0xff]  ;;  %v719_v21 = vld [vmem:[%s4096_s30 + $0x130] sm:$0xff] }
  0x3a   : > { %v721_v22 = vld [vmem:[%s4096_s30 + $0x140] sm:$0xff]  ;;  %718 = vst [vmem:[%s4101_s14 + $0x90] sm:$0xff] %v717_v20  ;;  %720 = vst [vmem:[%s4101_s14 + $0x98] sm:$0xff] %v719_v21  ;;  %v723_v23 = vld [vmem:[%s4096_s30 + $0x150] sm:$0xff] }
  0x3b   : > { %722 = vst [vmem:[%s4101_s14 + $0xa0] sm:$0xff] %v721_v22  ;;  %v725_v24 = vld [vmem:[%s4096_s30 + $0x160] sm:$0xff]  ;;  %v727_v25 = vld [vmem:[%s4096_s30 + $0x170] sm:$0xff]  ;;  %724 = vst [vmem:[%s4101_s14 + $0xa8] sm:$0xff] %v723_v23 }
  0x3c   : > { %726 = vst [vmem:[%s4101_s14 + $0xb0] sm:$0xff] %v725_v24  ;;  %728 = vst [vmem:[%s4101_s14 + $0xb8] sm:$0xff] %v727_v25  ;;  %v729_v26 = vld [vmem:[%s4096_s30 + $0x180] sm:$0xff]  ;;  %v731_v27 = vld [vmem:[%s4096_s30 + $0x190] sm:$0xff] }
  0x3d   : > { %v733_v28 = vld [vmem:[%s4096_s30 + $0x1a0] sm:$0xff]  ;;  %730 = vst [vmem:[%s4101_s14 + $0xc0] sm:$0xff] %v729_v26  ;;  %732 = vst [vmem:[%s4101_s14 + $0xc8] sm:$0xff] %v731_v27  ;;  %v735_v29 = vld [vmem:[%s4096_s30 + $0x1b0] sm:$0xff] }
  0x3e   : > { %734 = vst [vmem:[%s4101_s14 + $0xd0] sm:$0xff] %v733_v28  ;;  %v737_v30 = vld [vmem:[%s4096_s30 + $0x1c0] sm:$0xff]  ;;  %v739_v31 = vld [vmem:[%s4096_s30 + $0x1d0] sm:$0xff]  ;;  %736 = vst [vmem:[%s4101_s14 + $0xd8] sm:$0xff] %v735_v29 }
  0x3f   : > { %738 = vst [vmem:[%s4101_s14 + $0xe0] sm:$0xff] %v737_v30  ;;  %740 = vst [vmem:[%s4101_s14 + $0xe8] sm:$0xff] %v739_v31  ;;  %v741_v32 = vld [vmem:[%s4096_s30 + $0x1e0] sm:$0xff]  ;;  %v743_v33 = vld [vmem:[%s4096_s30 + $0x1f0] sm:$0xff] }
  0x40   : > { %v745_v34 = vld [vmem:[%s4096_s30 + $0x200] sm:$0xff]  ;;  %742 = vst [vmem:[%s4101_s14 + $0xf0] sm:$0xff] %v741_v32  ;;  %744 = vst [vmem:[%s4101_s14 + $0xf8] sm:$0xff] %v743_v33  ;;  %v747_v35 = vld [vmem:[%s4096_s30 + $0x210] sm:$0xff] }
  0x41   : > { %746 = vst [vmem:[%s4101_s14 + $0x100] sm:$0xff] %v745_v34  ;;  %v749_v36 = vld [vmem:[%s4096_s30 + $0x220] sm:$0xff]  ;;  %v751_v37 = vld [vmem:[%s4096_s30 + $0x230] sm:$0xff]  ;;  %748 = vst [vmem:[%s4101_s14 + $0x108] sm:$0xff] %v747_v35 }
  0x42   : > { %750 = vst [vmem:[%s4101_s14 + $0x110] sm:$0xff] %v749_v36  ;;  %752 = vst [vmem:[%s4101_s14 + $0x118] sm:$0xff] %v751_v37  ;;  %v753_v38 = vld [vmem:[%s4096_s30 + $0x240] sm:$0xff]  ;;  %v755_v39 = vld [vmem:[%s4096_s30 + $0x250] sm:$0xff] }
  0x43   : > { %v757_v40 = vld [vmem:[%s4096_s30 + $0x260] sm:$0xff]  ;;  %754 = vst [vmem:[%s4101_s14 + $0x120] sm:$0xff] %v753_v38  ;;  %756 = vst [vmem:[%s4101_s14 + $0x128] sm:$0xff] %v755_v39  ;;  %v759_v41 = vld [vmem:[%s4096_s30 + $0x270] sm:$0xff] }
  0x44   : > { %758 = vst [vmem:[%s4101_s14 + $0x130] sm:$0xff] %v757_v40  ;;  %v761_v42 = vld [vmem:[%s4096_s30 + $0x280] sm:$0xff]  ;;  %v763_v43 = vld [vmem:[%s4096_s30 + $0x290] sm:$0xff]  ;;  %760 = vst [vmem:[%s4101_s14 + $0x138] sm:$0xff] %v759_v41 }
  0x45   : > { %762 = vst [vmem:[%s4101_s14 + $0x140] sm:$0xff] %v761_v42  ;;  %764 = vst [vmem:[%s4101_s14 + $0x148] sm:$0xff] %v763_v43  ;;  %v765_v44 = vld [vmem:[%s4096_s30 + $0x2a0] sm:$0xff]  ;;  %v767_v45 = vld [vmem:[%s4096_s30 + $0x2b0] sm:$0xff] }
  0x46   : > { %v769_v46 = vld [vmem:[%s4096_s30 + $0x2c0] sm:$0xff]  ;;  %766 = vst [vmem:[%s4101_s14 + $0x150] sm:$0xff] %v765_v44  ;;  %768 = vst [vmem:[%s4101_s14 + $0x158] sm:$0xff] %v767_v45  ;;  %v771_v47 = vld [vmem:[%s4096_s30 + $0x2d0] sm:$0xff] }
  0x47   : > { %770 = vst [vmem:[%s4101_s14 + $0x160] sm:$0xff] %v769_v46  ;;  %v773_v48 = vld [vmem:[%s4096_s30 + $0x2e0] sm:$0xff]  ;;  %v775_v49 = vld [vmem:[%s4096_s30 + $0x2f0] sm:$0xff]  ;;  %772 = vst [vmem:[%s4101_s14 + $0x168] sm:$0xff] %v771_v47 }
  0x48   : > { %774 = vst [vmem:[%s4101_s14 + $0x170] sm:$0xff] %v773_v48  ;;  %776 = vst [vmem:[%s4101_s14 + $0x178] sm:$0xff] %v775_v49  ;;  %v777_v50 = vld [vmem:[%s4096_s30 + $0x300] sm:$0xff]  ;;  %v779_v51 = vld [vmem:[%s4096_s30 + $0x310] sm:$0xff] }
  0x49   : > { %v781_v52 = vld [vmem:[%s4096_s30 + $0x320] sm:$0xff]  ;;  %778 = vst [vmem:[%s4101_s14 + $0x180] sm:$0xff] %v777_v50  ;;  %780 = vst [vmem:[%s4101_s14 + $0x188] sm:$0xff] %v779_v51  ;;  %v783_v53 = vld [vmem:[%s4096_s30 + $0x330] sm:$0xff] }
  0x4a   : > { %782 = vst [vmem:[%s4101_s14 + $0x190] sm:$0xff] %v781_v52  ;;  %v785_v54 = vld [vmem:[%s4096_s30 + $0x340] sm:$0xff]  ;;  %v787_v55 = vld [vmem:[%s4096_s30 + $0x350] sm:$0xff]  ;;  %784 = vst [vmem:[%s4101_s14 + $0x198] sm:$0xff] %v783_v53 }
  0x4b   : > { %786 = vst [vmem:[%s4101_s14 + $0x1a0] sm:$0xff] %v785_v54  ;;  %788 = vst [vmem:[%s4101_s14 + $0x1a8] sm:$0xff] %v787_v55  ;;  %v789_v56 = vld [vmem:[%s4096_s30 + $0x360] sm:$0xff]  ;;  %v791_v57 = vld [vmem:[%s4096_s30 + $0x370] sm:$0xff] }
  0x4c   : > { %v793_v58 = vld [vmem:[%s4096_s30 + $0x380] sm:$0xff]  ;;  %790 = vst [vmem:[%s4101_s14 + $0x1b0] sm:$0xff] %v789_v56  ;;  %792 = vst [vmem:[%s4101_s14 + $0x1b8] sm:$0xff] %v791_v57  ;;  %v795_v59 = vld [vmem:[%s4096_s30 + $0x390] sm:$0xff] }
  0x4d   : > { %794 = vst [vmem:[%s4101_s14 + $0x1c0] sm:$0xff] %v793_v58  ;;  %v797_v60 = vld [vmem:[%s4096_s30 + $0x3a0] sm:$0xff]  ;;  %v799_v61 = vld [vmem:[%s4096_s30 + $0x3b0] sm:$0xff]  ;;  %796 = vst [vmem:[%s4101_s14 + $0x1c8] sm:$0xff] %v795_v59 }
  0x4e   : > { %798 = vst [vmem:[%s4101_s14 + $0x1d0] sm:$0xff] %v797_v60  ;;  %800 = vst [vmem:[%s4101_s14 + $0x1d8] sm:$0xff] %v799_v61  ;;  %v801_v62 = vld [vmem:[%s4096_s30 + $0x3c0] sm:$0xff]  ;;  %v803_v63 = vld [vmem:[%s4096_s30 + $0x3d0] sm:$0xff] }
  0x4f   : > { %v805_v0 = vld [vmem:[%s4096_s30 + $0x3e0] sm:$0xff]  ;;  %802 = vst [vmem:[%s4101_s14 + $0x1e0] sm:$0xff] %v801_v62  ;;  %804 = vst [vmem:[%s4101_s14 + $0x1e8] sm:$0xff] %v803_v63  ;;  %v807_v1 = vld [vmem:[%s4096_s30 + $0x3f0] sm:$0xff] }
  0x50   : > { %806 = vst [vmem:[%s4101_s14 + $0x1f0] sm:$0xff] %v805_v0  ;;  %v809_v2 = vld [vmem:[%s4096_s30 + $0x400] sm:$0xff]  ;;  %v811_v3 = vld [vmem:[%s4096_s30 + $0x410] sm:$0xff]  ;;  %808 = vst [vmem:[%s4101_s14 + $0x1f8] sm:$0xff] %v807_v1 }
  0x51   : > { %810 = vst [vmem:[%s4101_s14 + $0x200] sm:$0xff] %v809_v2  ;;  %812 = vst [vmem:[%s4101_s14 + $0x208] sm:$0xff] %v811_v3  ;;  %v813_v4 = vld [vmem:[%s4096_s30 + $0x420] sm:$0xff]  ;;  %v815_v5 = vld [vmem:[%s4096_s30 + $0x430] sm:$0xff] }
  0x52   : > { %v817_v6 = vld [vmem:[%s4096_s30 + $0x440] sm:$0xff]  ;;  %814 = vst [vmem:[%s4101_s14 + $0x210] sm:$0xff] %v813_v4  ;;  %816 = vst [vmem:[%s4101_s14 + $0x218] sm:$0xff] %v815_v5  ;;  %v819_v7 = vld [vmem:[%s4096_s30 + $0x450] sm:$0xff] }
  0x53   : > { %818 = vst [vmem:[%s4101_s14 + $0x220] sm:$0xff] %v817_v6  ;;  %v821_v8 = vld [vmem:[%s4096_s30 + $0x460] sm:$0xff]  ;;  %v823_v9 = vld [vmem:[%s4096_s30 + $0x470] sm:$0xff]  ;;  %820 = vst [vmem:[%s4101_s14 + $0x228] sm:$0xff] %v819_v7 }
  0x54   : > { %822 = vst [vmem:[%s4101_s14 + $0x230] sm:$0xff] %v821_v8  ;;  %824 = vst [vmem:[%s4101_s14 + $0x238] sm:$0xff] %v823_v9  ;;  %v825_v10 = vld [vmem:[%s4096_s30 + $0x480] sm:$0xff]  ;;  %v827_v11 = vld [vmem:[%s4096_s30 + $0x490] sm:$0xff] }
  0x55   : > { %v829_v12 = vld [vmem:[%s4096_s30 + $0x4a0] sm:$0xff]  ;;  %826 = vst [vmem:[%s4101_s14 + $0x240] sm:$0xff] %v825_v10  ;;  %828 = vst [vmem:[%s4101_s14 + $0x248] sm:$0xff] %v827_v11  ;;  %v831_v13 = vld [vmem:[%s4096_s30 + $0x4b0] sm:$0xff] }
  0x56   : > { %830 = vst [vmem:[%s4101_s14 + $0x250] sm:$0xff] %v829_v12  ;;  %v833_v14 = vld [vmem:[%s4096_s30 + $0x4c0] sm:$0xff]  ;;  %v835_v15 = vld [vmem:[%s4096_s30 + $0x4d0] sm:$0xff]  ;;  %832 = vst [vmem:[%s4101_s14 + $0x258] sm:$0xff] %v831_v13 }
  0x57   : > { %834 = vst [vmem:[%s4101_s14 + $0x260] sm:$0xff] %v833_v14  ;;  %836 = vst [vmem:[%s4101_s14 + $0x268] sm:$0xff] %v835_v15  ;;  %v837_v16 = vld [vmem:[%s4096_s30 + $0x4e0] sm:$0xff]  ;;  %v839_v17 = vld [vmem:[%s4096_s30 + $0x4f0] sm:$0xff] }
  0x58   : > { %v841_v18 = vld [vmem:[%s4096_s30 + $0x500] sm:$0xff]  ;;  %838 = vst [vmem:[%s4101_s14 + $0x270] sm:$0xff] %v837_v16  ;;  %840 = vst [vmem:[%s4101_s14 + $0x278] sm:$0xff] %v839_v17  ;;  %v843_v19 = vld [vmem:[%s4096_s30 + $0x510] sm:$0xff] }
  0x59   : > { %842 = vst [vmem:[%s4101_s14 + $0x280] sm:$0xff] %v841_v18  ;;  %v845_v20 = vld [vmem:[%s4096_s30 + $0x520] sm:$0xff]  ;;  %v847_v21 = vld [vmem:[%s4096_s30 + $0x530] sm:$0xff]  ;;  %844 = vst [vmem:[%s4101_s14 + $0x288] sm:$0xff] %v843_v19 }
  0x5a   : > { %846 = vst [vmem:[%s4101_s14 + $0x290] sm:$0xff] %v845_v20  ;;  %848 = vst [vmem:[%s4101_s14 + $0x298] sm:$0xff] %v847_v21  ;;  %v849_v22 = vld [vmem:[%s4096_s30 + $0x540] sm:$0xff]  ;;  %v851_v23 = vld [vmem:[%s4096_s30 + $0x550] sm:$0xff] }
  0x5b   : > { %v853_v24 = vld [vmem:[%s4096_s30 + $0x560] sm:$0xff]  ;;  %850 = vst [vmem:[%s4101_s14 + $0x2a0] sm:$0xff] %v849_v22  ;;  %852 = vst [vmem:[%s4101_s14 + $0x2a8] sm:$0xff] %v851_v23  ;;  %v855_v25 = vld [vmem:[%s4096_s30 + $0x570] sm:$0xff] }
  0x5c   : > { %854 = vst [vmem:[%s4101_s14 + $0x2b0] sm:$0xff] %v853_v24  ;;  %v857_v26 = vld [vmem:[%s4096_s30 + $0x580] sm:$0xff]  ;;  %v859_v27 = vld [vmem:[%s4096_s30 + $0x590] sm:$0xff]  ;;  %856 = vst [vmem:[%s4101_s14 + $0x2b8] sm:$0xff] %v855_v25 }
  0x5d   : > { %858 = vst [vmem:[%s4101_s14 + $0x2c0] sm:$0xff] %v857_v26  ;;  %860 = vst [vmem:[%s4101_s14 + $0x2c8] sm:$0xff] %v859_v27  ;;  %v861_v28 = vld [vmem:[%s4096_s30 + $0x5a0] sm:$0xff]  ;;  %v863_v29 = vld [vmem:[%s4096_s30 + $0x5b0] sm:$0xff] }
  0x5e   : > { %v865_v30 = vld [vmem:[%s4096_s30 + $0x5c0] sm:$0xff]  ;;  %862 = vst [vmem:[%s4101_s14 + $0x2d0] sm:$0xff] %v861_v28  ;;  %864 = vst [vmem:[%s4101_s14 + $0x2d8] sm:$0xff] %v863_v29  ;;  %v867_v31 = vld [vmem:[%s4096_s30 + $0x5d0] sm:$0xff] }
  0x5f   : > { %866 = vst [vmem:[%s4101_s14 + $0x2e0] sm:$0xff] %v865_v30  ;;  %v869_v32 = vld [vmem:[%s4096_s30 + $0x5e0] sm:$0xff]  ;;  %v871_v33 = vld [vmem:[%s4096_s30 + $0x5f0] sm:$0xff]  ;;  %868 = vst [vmem:[%s4101_s14 + $0x2e8] sm:$0xff] %v867_v31 }
  0x60   : > { %870 = vst [vmem:[%s4101_s14 + $0x2f0] sm:$0xff] %v869_v32  ;;  %872 = vst [vmem:[%s4101_s14 + $0x2f8] sm:$0xff] %v871_v33  ;;  %v873_v34 = vld [vmem:[%s4096_s30 + $0x600] sm:$0xff]  ;;  %v875_v35 = vld [vmem:[%s4096_s30 + $0x610] sm:$0xff] }
  0x61   : > { %v877_v36 = vld [vmem:[%s4096_s30 + $0x620] sm:$0xff]  ;;  %874 = vst [vmem:[%s4101_s14 + $0x300] sm:$0xff] %v873_v34  ;;  %876 = vst [vmem:[%s4101_s14 + $0x308] sm:$0xff] %v875_v35  ;;  %v879_v37 = vld [vmem:[%s4096_s30 + $0x630] sm:$0xff] }
  0x62   : > { %878 = vst [vmem:[%s4101_s14 + $0x310] sm:$0xff] %v877_v36  ;;  %v881_v38 = vld [vmem:[%s4096_s30 + $0x640] sm:$0xff]  ;;  %v883_v39 = vld [vmem:[%s4096_s30 + $0x650] sm:$0xff]  ;;  %880 = vst [vmem:[%s4101_s14 + $0x318] sm:$0xff] %v879_v37 }
  0x63   : > { %882 = vst [vmem:[%s4101_s14 + $0x320] sm:$0xff] %v881_v38  ;;  %884 = vst [vmem:[%s4101_s14 + $0x328] sm:$0xff] %v883_v39  ;;  %v885_v40 = vld [vmem:[%s4096_s30 + $0x660] sm:$0xff]  ;;  %v887_v41 = vld [vmem:[%s4096_s30 + $0x670] sm:$0xff] }
  0x64   : > { %v889_v42 = vld [vmem:[%s4096_s30 + $0x680] sm:$0xff]  ;;  %886 = vst [vmem:[%s4101_s14 + $0x330] sm:$0xff] %v885_v40  ;;  %888 = vst [vmem:[%s4101_s14 + $0x338] sm:$0xff] %v887_v41  ;;  %v891_v43 = vld [vmem:[%s4096_s30 + $0x690] sm:$0xff] }
  0x65   : > { %890 = vst [vmem:[%s4101_s14 + $0x340] sm:$0xff] %v889_v42  ;;  %v893_v44 = vld [vmem:[%s4096_s30 + $0x6a0] sm:$0xff]  ;;  %v895_v45 = vld [vmem:[%s4096_s30 + $0x6b0] sm:$0xff]  ;;  %892 = vst [vmem:[%s4101_s14 + $0x348] sm:$0xff] %v891_v43 }
  0x66   : > { %894 = vst [vmem:[%s4101_s14 + $0x350] sm:$0xff] %v893_v44  ;;  %896 = vst [vmem:[%s4101_s14 + $0x358] sm:$0xff] %v895_v45  ;;  %v897_v46 = vld [vmem:[%s4096_s30 + $0x6c0] sm:$0xff]  ;;  %v899_v47 = vld [vmem:[%s4096_s30 + $0x6d0] sm:$0xff] }
  0x67   : > { %v901_v48 = vld [vmem:[%s4096_s30 + $0x6e0] sm:$0xff]  ;;  %898 = vst [vmem:[%s4101_s14 + $0x360] sm:$0xff] %v897_v46  ;;  %900 = vst [vmem:[%s4101_s14 + $0x368] sm:$0xff] %v899_v47  ;;  %v903_v49 = vld [vmem:[%s4096_s30 + $0x6f0] sm:$0xff] }
  0x68   : > { %902 = vst [vmem:[%s4101_s14 + $0x370] sm:$0xff] %v901_v48  ;;  %v905_v50 = vld [vmem:[%s4096_s30 + $0x700] sm:$0xff]  ;;  %v907_v51 = vld [vmem:[%s4096_s30 + $0x710] sm:$0xff]  ;;  %904 = vst [vmem:[%s4101_s14 + $0x378] sm:$0xff] %v903_v49 }
  0x69   : > { %906 = vst [vmem:[%s4101_s14 + $0x380] sm:$0xff] %v905_v50  ;;  %908 = vst [vmem:[%s4101_s14 + $0x388] sm:$0xff] %v907_v51  ;;  %v909_v52 = vld [vmem:[%s4096_s30 + $0x720] sm:$0xff]  ;;  %v911_v53 = vld [vmem:[%s4096_s30 + $0x730] sm:$0xff] }
  0x6a   : > { %v913_v54 = vld [vmem:[%s4096_s30 + $0x740] sm:$0xff]  ;;  %910 = vst [vmem:[%s4101_s14 + $0x390] sm:$0xff] %v909_v52  ;;  %912 = vst [vmem:[%s4101_s14 + $0x398] sm:$0xff] %v911_v53  ;;  %v915_v55 = vld [vmem:[%s4096_s30 + $0x750] sm:$0xff] }
  0x6b   : > { %914 = vst [vmem:[%s4101_s14 + $0x3a0] sm:$0xff] %v913_v54  ;;  %v917_v56 = vld [vmem:[%s4096_s30 + $0x760] sm:$0xff]  ;;  %v919_v57 = vld [vmem:[%s4096_s30 + $0x770] sm:$0xff]  ;;  %916 = vst [vmem:[%s4101_s14 + $0x3a8] sm:$0xff] %v915_v55 }
  0x6c   : > { %918 = vst [vmem:[%s4101_s14 + $0x3b0] sm:$0xff] %v917_v56  ;;  %920 = vst [vmem:[%s4101_s14 + $0x3b8] sm:$0xff] %v919_v57  ;;  %v921_v58 = vld [vmem:[%s4096_s30 + $0x780] sm:$0xff]  ;;  %v923_v59 = vld [vmem:[%s4096_s30 + $0x790] sm:$0xff] }
  0x6d   : > { %v925_v60 = vld [vmem:[%s4096_s30 + $0x7a0] sm:$0xff]  ;;  %922 = vst [vmem:[%s4101_s14 + $0x3c0] sm:$0xff] %v921_v58  ;;  %924 = vst [vmem:[%s4101_s14 + $0x3c8] sm:$0xff] %v923_v59  ;;  %v927_v61 = vld [vmem:[%s4096_s30 + $0x7b0] sm:$0xff] }
  0x6e   : > { %926 = vst [vmem:[%s4101_s14 + $0x3d0] sm:$0xff] %v925_v60  ;;  %v929_v62 = vld [vmem:[%s4096_s30 + $0x7c0] sm:$0xff]  ;;  %v931_v63 = vld [vmem:[%s4096_s30 + $0x7d0] sm:$0xff]  ;;  %928 = vst [vmem:[%s4101_s14 + $0x3d8] sm:$0xff] %v927_v61 }
  0x6f   : > { %930 = vst [vmem:[%s4101_s14 + $0x3e0] sm:$0xff] %v929_v62  ;;  %932 = vst [vmem:[%s4101_s14 + $0x3e8] sm:$0xff] %v931_v63  ;;  %v933_v0 = vld [vmem:[%s4096_s30 + $0x7e0] sm:$0xff]  ;;  %v935_v1 = vld [vmem:[%s4096_s30 + $0x7f0] sm:$0xff] }
  0x70   : > { %v937_v2 = vld [vmem:[%s4096_s30 + $0x800] sm:$0xff]  ;;  %934 = vst [vmem:[%s4101_s14 + $0x3f0] sm:$0xff] %v933_v0  ;;  %936 = vst [vmem:[%s4101_s14 + $0x3f8] sm:$0xff] %v935_v1  ;;  %v939_v3 = vld [vmem:[%s4096_s30 + $0x810] sm:$0xff] }
  0x71   : > { %938 = vst [vmem:[%s4101_s14 + $0x400] sm:$0xff] %v937_v2  ;;  %v941_v4 = vld [vmem:[%s4096_s30 + $0x820] sm:$0xff]  ;;  %v943_v5 = vld [vmem:[%s4096_s30 + $0x830] sm:$0xff]  ;;  %940 = vst [vmem:[%s4101_s14 + $0x408] sm:$0xff] %v939_v3 }
  0x72   : > { %942 = vst [vmem:[%s4101_s14 + $0x410] sm:$0xff] %v941_v4  ;;  %944 = vst [vmem:[%s4101_s14 + $0x418] sm:$0xff] %v943_v5  ;;  %v945_v6 = vld [vmem:[%s4096_s30 + $0x840] sm:$0xff]  ;;  %v947_v7 = vld [vmem:[%s4096_s30 + $0x850] sm:$0xff] }
  0x73   : > { %v949_v8 = vld [vmem:[%s4096_s30 + $0x860] sm:$0xff]  ;;  %946 = vst [vmem:[%s4101_s14 + $0x420] sm:$0xff] %v945_v6  ;;  %948 = vst [vmem:[%s4101_s14 + $0x428] sm:$0xff] %v947_v7  ;;  %v951_v9 = vld [vmem:[%s4096_s30 + $0x870] sm:$0xff] }
  0x74   : > { %950 = vst [vmem:[%s4101_s14 + $0x430] sm:$0xff] %v949_v8  ;;  %v953_v10 = vld [vmem:[%s4096_s30 + $0x880] sm:$0xff]  ;;  %v955_v11 = vld [vmem:[%s4096_s30 + $0x890] sm:$0xff]  ;;  %952 = vst [vmem:[%s4101_s14 + $0x438] sm:$0xff] %v951_v9 }
  0x75   : > { %954 = vst [vmem:[%s4101_s14 + $0x440] sm:$0xff] %v953_v10  ;;  %956 = vst [vmem:[%s4101_s14 + $0x448] sm:$0xff] %v955_v11  ;;  %v957_v12 = vld [vmem:[%s4096_s30 + $0x8a0] sm:$0xff]  ;;  %v959_v13 = vld [vmem:[%s4096_s30 + $0x8b0] sm:$0xff] }
  0x76   : > { %v961_v14 = vld [vmem:[%s4096_s30 + $0x8c0] sm:$0xff]  ;;  %958 = vst [vmem:[%s4101_s14 + $0x450] sm:$0xff] %v957_v12  ;;  %960 = vst [vmem:[%s4101_s14 + $0x458] sm:$0xff] %v959_v13  ;;  %v963_v15 = vld [vmem:[%s4096_s30 + $0x8d0] sm:$0xff] }
  0x77   : > { %962 = vst [vmem:[%s4101_s14 + $0x460] sm:$0xff] %v961_v14  ;;  %v965_v16 = vld [vmem:[%s4096_s30 + $0x8e0] sm:$0xff]  ;;  %v967_v17 = vld [vmem:[%s4096_s30 + $0x8f0] sm:$0xff]  ;;  %964 = vst [vmem:[%s4101_s14 + $0x468] sm:$0xff] %v963_v15 }
  0x78   : > { %966 = vst [vmem:[%s4101_s14 + $0x470] sm:$0xff] %v965_v16  ;;  %968 = vst [vmem:[%s4101_s14 + $0x478] sm:$0xff] %v967_v17  ;;  %v969_v18 = vld [vmem:[%s4096_s30 + $0x900] sm:$0xff]  ;;  %v971_v19 = vld [vmem:[%s4096_s30 + $0x910] sm:$0xff] }
  0x79   : > { %v973_v20 = vld [vmem:[%s4096_s30 + $0x920] sm:$0xff]  ;;  %970 = vst [vmem:[%s4101_s14 + $0x480] sm:$0xff] %v969_v18  ;;  %972 = vst [vmem:[%s4101_s14 + $0x488] sm:$0xff] %v971_v19  ;;  %v975_v21 = vld [vmem:[%s4096_s30 + $0x930] sm:$0xff] }
  0x7a   : > { %974 = vst [vmem:[%s4101_s14 + $0x490] sm:$0xff] %v973_v20  ;;  %v977_v22 = vld [vmem:[%s4096_s30 + $0x940] sm:$0xff]  ;;  %v979_v23 = vld [vmem:[%s4096_s30 + $0x950] sm:$0xff]  ;;  %976 = vst [vmem:[%s4101_s14 + $0x498] sm:$0xff] %v975_v21 }
  0x7b   : > { %978 = vst [vmem:[%s4101_s14 + $0x4a0] sm:$0xff] %v977_v22  ;;  %980 = vst [vmem:[%s4101_s14 + $0x4a8] sm:$0xff] %v979_v23  ;;  %v981_v24 = vld [vmem:[%s4096_s30 + $0x960] sm:$0xff]  ;;  %v983_v25 = vld [vmem:[%s4096_s30 + $0x970] sm:$0xff] }
  0x7c   : > { %v985_v26 = vld [vmem:[%s4096_s30 + $0x980] sm:$0xff]  ;;  %982 = vst [vmem:[%s4101_s14 + $0x4b0] sm:$0xff] %v981_v24  ;;  %984 = vst [vmem:[%s4101_s14 + $0x4b8] sm:$0xff] %v983_v25  ;;  %v987_v27 = vld [vmem:[%s4096_s30 + $0x990] sm:$0xff] }
  0x7d   : > { %986 = vst [vmem:[%s4101_s14 + $0x4c0] sm:$0xff] %v985_v26  ;;  %v989_v28 = vld [vmem:[%s4096_s30 + $0x9a0] sm:$0xff]  ;;  %v991_v29 = vld [vmem:[%s4096_s30 + $0x9b0] sm:$0xff]  ;;  %988 = vst [vmem:[%s4101_s14 + $0x4c8] sm:$0xff] %v987_v27 }
  0x7e   : > { %990 = vst [vmem:[%s4101_s14 + $0x4d0] sm:$0xff] %v989_v28  ;;  %992 = vst [vmem:[%s4101_s14 + $0x4d8] sm:$0xff] %v991_v29  ;;  %v993_v30 = vld [vmem:[%s4096_s30 + $0x9c0] sm:$0xff]  ;;  %v995_v31 = vld [vmem:[%s4096_s30 + $0x9d0] sm:$0xff] }
  0x7f   : > { %v997_v32 = vld [vmem:[%s4096_s30 + $0x9e0] sm:$0xff]  ;;  %994 = vst [vmem:[%s4101_s14 + $0x4e0] sm:$0xff] %v993_v30  ;;  %996 = vst [vmem:[%s4101_s14 + $0x4e8] sm:$0xff] %v995_v31  ;;  %v999_v33 = vld [vmem:[%s4096_s30 + $0x9f0] sm:$0xff] }
  0x80   : > { %998 = vst [vmem:[%s4101_s14 + $0x4f0] sm:$0xff] %v997_v32  ;;  %v1001_v34 = vld [vmem:[%s4096_s30 + $0xa00] sm:$0xff]  ;;  %v1003_v35 = vld [vmem:[%s4096_s30 + $0xa10] sm:$0xff]  ;;  %1000 = vst [vmem:[%s4101_s14 + $0x4f8] sm:$0xff] %v999_v33 }
  0x81   : > { %1002 = vst [vmem:[%s4101_s14 + $0x500] sm:$0xff] %v1001_v34  ;;  %1004 = vst [vmem:[%s4101_s14 + $0x508] sm:$0xff] %v1003_v35  ;;  %v1005_v36 = vld [vmem:[%s4096_s30 + $0xa20] sm:$0xff]  ;;  %v1007_v37 = vld [vmem:[%s4096_s30 + $0xa30] sm:$0xff] }
  0x82   : > { %v1009_v38 = vld [vmem:[%s4096_s30 + $0xa40] sm:$0xff]  ;;  %1006 = vst [vmem:[%s4101_s14 + $0x510] sm:$0xff] %v1005_v36  ;;  %1008 = vst [vmem:[%s4101_s14 + $0x518] sm:$0xff] %v1007_v37  ;;  %v1011_v39 = vld [vmem:[%s4096_s30 + $0xa50] sm:$0xff] }
  0x83   : > { %1010 = vst [vmem:[%s4101_s14 + $0x520] sm:$0xff] %v1009_v38  ;;  %v1013_v40 = vld [vmem:[%s4096_s30 + $0xa60] sm:$0xff]  ;;  %v1015_v41 = vld [vmem:[%s4096_s30 + $0xa70] sm:$0xff]  ;;  %1012 = vst [vmem:[%s4101_s14 + $0x528] sm:$0xff] %v1011_v39 }
  0x84   : > { %1014 = vst [vmem:[%s4101_s14 + $0x530] sm:$0xff] %v1013_v40  ;;  %1016 = vst [vmem:[%s4101_s14 + $0x538] sm:$0xff] %v1015_v41  ;;  %v1017_v42 = vld [vmem:[%s4096_s30 + $0xa80] sm:$0xff]  ;;  %v1019_v43 = vld [vmem:[%s4096_s30 + $0xa90] sm:$0xff] }
  0x85   : > { %v1021_v44 = vld [vmem:[%s4096_s30 + $0xaa0] sm:$0xff]  ;;  %1018 = vst [vmem:[%s4101_s14 + $0x540] sm:$0xff] %v1017_v42  ;;  %1020 = vst [vmem:[%s4101_s14 + $0x548] sm:$0xff] %v1019_v43  ;;  %v1023_v45 = vld [vmem:[%s4096_s30 + $0xab0] sm:$0xff] }
  0x86   : > { %1022 = vst [vmem:[%s4101_s14 + $0x550] sm:$0xff] %v1021_v44  ;;  %v1025_v46 = vld [vmem:[%s4096_s30 + $0xac0] sm:$0xff]  ;;  %v1027_v47 = vld [vmem:[%s4096_s30 + $0xad0] sm:$0xff]  ;;  %1024 = vst [vmem:[%s4101_s14 + $0x558] sm:$0xff] %v1023_v45 }
  0x87   : > { %1026 = vst [vmem:[%s4101_s14 + $0x560] sm:$0xff] %v1025_v46  ;;  %1028 = vst [vmem:[%s4101_s14 + $0x568] sm:$0xff] %v1027_v47  ;;  %v1029_v48 = vld [vmem:[%s4096_s30 + $0xae0] sm:$0xff]  ;;  %v1031_v49 = vld [vmem:[%s4096_s30 + $0xaf0] sm:$0xff] }
  0x88   : > { %v1033_v50 = vld [vmem:[%s4096_s30 + $0xb00] sm:$0xff]  ;;  %1030 = vst [vmem:[%s4101_s14 + $0x570] sm:$0xff] %v1029_v48  ;;  %1032 = vst [vmem:[%s4101_s14 + $0x578] sm:$0xff] %v1031_v49  ;;  %v1035_v51 = vld [vmem:[%s4096_s30 + $0xb10] sm:$0xff] }
  0x89   : > { %1034 = vst [vmem:[%s4101_s14 + $0x580] sm:$0xff] %v1033_v50  ;;  %v1037_v52 = vld [vmem:[%s4096_s30 + $0xb20] sm:$0xff]  ;;  %v1039_v53 = vld [vmem:[%s4096_s30 + $0xb30] sm:$0xff]  ;;  %1036 = vst [vmem:[%s4101_s14 + $0x588] sm:$0xff] %v1035_v51 }
  0x8a   : > { %1038 = vst [vmem:[%s4101_s14 + $0x590] sm:$0xff] %v1037_v52  ;;  %1040 = vst [vmem:[%s4101_s14 + $0x598] sm:$0xff] %v1039_v53  ;;  %v1041_v54 = vld [vmem:[%s4096_s30 + $0xb40] sm:$0xff]  ;;  %v1043_v55 = vld [vmem:[%s4096_s30 + $0xb50] sm:$0xff] }
  0x8b   : > { %v1045_v56 = vld [vmem:[%s4096_s30 + $0xb60] sm:$0xff]  ;;  %1042 = vst [vmem:[%s4101_s14 + $0x5a0] sm:$0xff] %v1041_v54  ;;  %1044 = vst [vmem:[%s4101_s14 + $0x5a8] sm:$0xff] %v1043_v55  ;;  %v1047_v57 = vld [vmem:[%s4096_s30 + $0xb70] sm:$0xff] }
  0x8c   : > { %1046 = vst [vmem:[%s4101_s14 + $0x5b0] sm:$0xff] %v1045_v56  ;;  %v1049_v58 = vld [vmem:[%s4096_s30 + $0xb80] sm:$0xff]  ;;  %v1051_v59 = vld [vmem:[%s4096_s30 + $0xb90] sm:$0xff]  ;;  %1048 = vst [vmem:[%s4101_s14 + $0x5b8] sm:$0xff] %v1047_v57 }
  0x8d   : > { %1050 = vst [vmem:[%s4101_s14 + $0x5c0] sm:$0xff] %v1049_v58  ;;  %1052 = vst [vmem:[%s4101_s14 + $0x5c8] sm:$0xff] %v1051_v59  ;;  %v1053_v60 = vld [vmem:[%s4096_s30 + $0xba0] sm:$0xff]  ;;  %v1055_v61 = vld [vmem:[%s4096_s30 + $0xbb0] sm:$0xff] }
  0x8e   : > { %v1057_v62 = vld [vmem:[%s4096_s30 + $0xbc0] sm:$0xff]  ;;  %1054 = vst [vmem:[%s4101_s14 + $0x5d0] sm:$0xff] %v1053_v60  ;;  %1056 = vst [vmem:[%s4101_s14 + $0x5d8] sm:$0xff] %v1055_v61  ;;  %v1059_v63 = vld [vmem:[%s4096_s30 + $0xbd0] sm:$0xff] }
  0x8f   : > { %1058 = vst [vmem:[%s4101_s14 + $0x5e0] sm:$0xff] %v1057_v62  ;;  %v1061_v0 = vld [vmem:[%s4096_s30 + $0xbe0] sm:$0xff]  ;;  %v1063_v1 = vld [vmem:[%s4096_s30 + $0xbf0] sm:$0xff]  ;;  %1060 = vst [vmem:[%s4101_s14 + $0x5e8] sm:$0xff] %v1059_v63 }
  0x90   : > { %1062 = vst [vmem:[%s4101_s14 + $0x5f0] sm:$0xff] %v1061_v0  ;;  %1064 = vst [vmem:[%s4101_s14 + $0x5f8] sm:$0xff] %v1063_v1 }
  0x91 PF: > { %1086 = sbr.rel (!%p4072_p11) target bundleno = 152 (0x98), region = 104  ;;  %s1088_s23 = sand.u32 (%p4072_p11), 1, %s3901_s19  }
  0x92   : > { %s3111_s11 = sshll.u32 (%p4072_p11), %s3933_s27, 1  ;;  %s3110_s16 = sshll.u32 (%p4072_p11), %s1088_s23, 2 }
  0x93   : > { %s1094_s15 = scalar_lea.vmem (%p4072_p11), %s4871_s4, %s3111_s11  ;;  %s1090_s29 = scalar_lea.vmem (%p4072_p11), [#allocation5], %s3110_s16 }
  0x94   : > { %v1110_v2 = vld [vmem:[%s1094_s15] sm:$0x3] (%p4072_p11)  ;;  %v1112_v3 = vld [vmem:[%s1094_s15 + $0x4] sm:$0x3] (%p4072_p11) }
  0x95   : > { %1111 = vst [vmem:[%s1090_s29] sm:$0x3] (%p4072_p11), %v1110_v2  ;;  %1113 = vst [vmem:[%s1090_s29 + $0x2] sm:$0x3] (%p4072_p11), %v1112_v3 }
  0x98 PF: > { %p3112_p1 = scmp.ge.s32.totalorder %s3937_s28, 1  ;;  %p1131_p2 = scmp.lt.s32.totalorder %s3937_s28, 7 }
  0x9a   : > { %p1132_p3 = pnand %p3112_p1, %p1131_p2 }
  0x9b   : > { %s1138_s7 = sand.u32 (!%p1132_p3), 1, %s3913_s22   ;;  %s1145_s9 = sand.u32 (!%p1132_p3), 1, %s3905_s20  }
  0x9c   : > { %1135 = sbr.rel (%p1132_p3) target bundleno = 624 (0x270), region = 138  ;;  %s3113_s10 = sshll.u32 (!%p1132_p3), %s1138_s7, 4 }
  0x9d   : > { %s3467_s6 = smul.u32 (!%p1132_p3), 1536, %s1145_s9  ;;  %s1152_s12 = sand.u32 (!%p1132_p3), 1, %s3897_s18  }
  0x9e   : > { %s4496_s30 = sshll.u32 (!%p1132_p3), %s1152_s12, 2  ;;  %s4499_s14 = sshll.u32 (!%p1132_p3), %s3925_s25, 1 }
  0x9f   : > { %p1197_p4 = scmp.lt.s32.totalorder (!%p1132_p3), %s4499_s14, 3  ;;  %s4513_s13 = scalar_lea.vmem (!%p1132_p3), [#allocation3], %s3113_s10 }
  0xa0   : > { %s4515_s15 = scalar_lea.vmem (!%p1132_p3), [#allocation4], %s3467_s6  ;;  %s1154_s25 = scalar_lea.vmem (!%p1132_p3), [#allocation5], %s4496_s30 }
  0xa1   : > { %s4519_s29 = scalar_lea.vmem (!%p1132_p3), [#allocation6], %s4496_s30  ;;  %p3118_p5 = scmp.ne.s32.totalorder (!%p1132_p3), %s3921_s24, 0 }
  0xa3   : > { %s4503_s23 = scalar_select %p1197_p4, %s4499_s14, 3 }
  0xa4   : > { %1211 = sbr.rel (%p3118_p5) target bundleno = 171 (0xab), region = 154  ;;  %v3939_v4 = vmov (!%p3118_p5), 0.0  }
  0xa5   : > { %s1199_s20 = scalar_lea.vmem %s4869_s2, %s4503_s23  ;;  %s1204_s18 = scalar_lea.vmem %s4870_s3, %s4503_s23  ;;  %1212 = vst [vmem:[#allocation2] sm:$0xf] (!%p3118_p5), %v3939_v4 }
  0xab PF: > { %v3559_v5 = vld [vmem:[%s4515_s15 + $0x204] ss:$8 sps:$4 sm:$0xff]   ;;  %v3563_v7 = vld [vmem:[%s4515_s15 + $0x200] ss:$8 sps:$4 sm:$0xff]   ;;  %v3565_v9 = vld [vmem:[%s4515_s15 + $0x214] ss:$8 sps:$4 sm:$0xff]   ;;  %v1350_v43 = vlaneseq }
  0xac   : > { %v3561_v6 = vld [vmem:[%s4515_s15 + $0x104] ss:$8 sps:$4 sm:$0xff]   ;;  %1725 = vmatprep.subr.bf16.mxu1 %v3559_v5  ;;  %v3564_v8 = vld [vmem:[%s4515_s15 + $0x100] ss:$8 sps:$4 sm:$0xff]   ;;  %v3567_v10 = vld [vmem:[%s4515_s15 + $0x114] ss:$8 sps:$4 sm:$0xff]  }
  0xad   : > { %2184 = vmatprep.subr.bf16.mxu0 %v3561_v6  ;;  %1726 = vmatpush1.bf16.msra.mxu1 %v3563_v7  ;;  %v3569_v11 = vld [vmem:[%s4515_s15 + $0x210] ss:$8 sps:$4 sm:$0xff]   ;;  %v3571_v13 = vld [vmem:[%s4515_s15 + $0x224] ss:$8 sps:$4 sm:$0xff]   ;;  %v3575_v15 = vld [vmem:[%s4515_s15 + $0x220] ss:$8 sps:$4 sm:$0xff]  }
  0xae   : > { %2185 = vmatpush1.bf16.msra.mxu0 %v3564_v8  ;;  %1727 = vmatprep.subr.bf16.mxu1 %v3565_v9  ;;  %v3570_v12 = vld [vmem:[%s4515_s15 + $0x110] ss:$8 sps:$4 sm:$0xff]   ;;  %v3573_v14 = vld [vmem:[%s4515_s15 + $0x124] ss:$8 sps:$4 sm:$0xff]   ;;  %v3576_v16 = vld [vmem:[%s4515_s15 + $0x120] ss:$8 sps:$4 sm:$0xff]  }
  0xaf   : > { %2186 = vmatprep.subr.bf16.mxu0 %v3567_v10  ;;  %v3577_v17 = vld [vmem:[%s4515_s15 + $0x234] ss:$8 sps:$4 sm:$0xff]   ;;  %v3581_v19 = vld [vmem:[%s4515_s15 + $0x230] ss:$8 sps:$4 sm:$0xff]   ;;  %v3583_v21 = vld [vmem:[%s4515_s15 + $0x244] ss:$8 sps:$4 sm:$0xff]  }
  0xb0   : > { %v3579_v18 = vld [vmem:[%s4515_s15 + $0x134] ss:$8 sps:$4 sm:$0xff]   ;;  %v3582_v20 = vld [vmem:[%s4515_s15 + $0x130] ss:$8 sps:$4 sm:$0xff]   ;;  %v3585_v22 = vld [vmem:[%s4515_s15 + $0x144] ss:$8 sps:$4 sm:$0xff]  }
  0xb1   : > { %1728 = vmatpush1.bf16.msra.mxu1 %v3569_v11  ;;  %v3587_v23 = vld [vmem:[%s4515_s15 + $0x240] ss:$8 sps:$4 sm:$0xff]   ;;  %v3589_v25 = vld [vmem:[%s4515_s15 + $0x254] ss:$8 sps:$4 sm:$0xff]   ;;  %v3593_v27 = vld [vmem:[%s4515_s15 + $0x250] ss:$8 sps:$4 sm:$0xff]  }
  0xb2   : > { %2187 = vmatpush1.bf16.msra.mxu0 %v3570_v12  ;;  %1729 = vmatprep.subr.bf16.mxu1 %v3571_v13  ;;  %v3588_v24 = vld [vmem:[%s4515_s15 + $0x140] ss:$8 sps:$4 sm:$0xff]   ;;  %v3591_v26 = vld [vmem:[%s4515_s15 + $0x154] ss:$8 sps:$4 sm:$0xff]   ;;  %v3594_v28 = vld [vmem:[%s4515_s15 + $0x150] ss:$8 sps:$4 sm:$0xff]  }
  0xb3   : > { %2188 = vmatprep.subr.bf16.mxu0 %v3573_v14  ;;  %v3595_v29 = vld [vmem:[%s4515_s15 + $0x264] ss:$8 sps:$4 sm:$0xff]   ;;  %v3599_v31 = vld [vmem:[%s4515_s15 + $0x260] ss:$8 sps:$4 sm:$0xff]   ;;  %v3601_v33 = vld [vmem:[%s4515_s15 + $0x274] ss:$8 sps:$4 sm:$0xff]  }
  0xb4   : > { %v3597_v30 = vld [vmem:[%s4515_s15 + $0x164] ss:$8 sps:$4 sm:$0xff]   ;;  %v3600_v32 = vld [vmem:[%s4515_s15 + $0x160] ss:$8 sps:$4 sm:$0xff]   ;;  %v3603_v34 = vld [vmem:[%s4515_s15 + $0x174] ss:$8 sps:$4 sm:$0xff]  }
  0xb5   : > { %1730 = vmatpush1.bf16.msra.mxu1 %v3575_v15  ;;  %v3605_v35 = vld [vmem:[%s4515_s15 + $0x270] ss:$8 sps:$4 sm:$0xff]   ;;  %v3607_v37 = vld [vmem:[%s4515_s15 + $0x284] ss:$8 sps:$4 sm:$0xff]   ;;  %v3611_v39 = vld [vmem:[%s4515_s15 + $0x280] ss:$8 sps:$4 sm:$0xff]  }
  0xb6   : > { %2189 = vmatpush1.bf16.msra.mxu0 %v3576_v16  ;;  %1731 = vmatprep.subr.bf16.mxu1 %v3577_v17  ;;  %v3606_v36 = vld [vmem:[%s4515_s15 + $0x170] ss:$8 sps:$4 sm:$0xff]   ;;  %v3609_v38 = vld [vmem:[%s4515_s15 + $0x184] ss:$8 sps:$4 sm:$0xff]   ;;  %v3612_v40 = vld [vmem:[%s4515_s15 + $0x180] ss:$8 sps:$4 sm:$0xff]  }
  0xb7   : > { %2190 = vmatprep.subr.bf16.mxu0 %v3579_v18  ;;  %v3940_v41 = vmov 1983009808   ;;  %v3613_v44 = vld [vmem:[%s4515_s15 + $0x294] ss:$8 sps:$4 sm:$0xff]   ;;  %v3617_v46 = vld [vmem:[%s4515_s15 + $0x290] ss:$8 sps:$4 sm:$0xff]  }
  0xb8   : > { %v1348_v42 = vunpack.c.l.s4 %v3940_v41  ;;  %v3615_v45 = vld [vmem:[%s4515_s15 + $0x194] ss:$8 sps:$4 sm:$0xff]   ;;  %v4561_v48 = vshrl.u32 %v1350_v43, 7  ;;  %v3618_v49 = vld [vmem:[%s4515_s15 + $0x190] ss:$8 sps:$4 sm:$0xff]   ;;  %vm1389_vm0 = vcmask 1041409  }
  0xb9   : > { %1732 = vmatpush1.bf16.msra.mxu1 %v3581_v19  ;;  %v3619_v50 = vld [vmem:[%s4515_s15 + $0x2a4] ss:$8 sps:$4 sm:$0xff]   ;;  %v3623_v52 = vld [vmem:[%s4515_s15 + $0x2a0] ss:$8 sps:$4 sm:$0xff]   ;;  %v3625_v55 = vld [vmem:[%s4515_s15 + $0x2b4] ss:$8 sps:$4 sm:$0xff]  }
  0xba   : > { %2191 = vmatpush1.bf16.msra.mxu0 %v3582_v20  ;;  %1733 = vmatprep.subr.bf16.mxu1 %v3583_v21  ;;  %v1349_v47 = vunpack.c.0.s8 %v1348_v42  ;;  %v3621_v51 = vld [vmem:[%s4515_s15 + $0x1a4] ss:$8 sps:$4 sm:$0xff]   ;;  %v3624_v53 = vld [vmem:[%s4515_s15 + $0x1a0] ss:$8 sps:$4 sm:$0xff]   ;;  %v3627_v56 = vld [vmem:[%s4515_s15 + $0x1b4] ss:$8 sps:$4 sm:$0xff]  }
  0xbb   : > { %2192 = vmatprep.subr.bf16.mxu0 %v3585_v22  ;;  %v1213_v57 = vld [vmem:[%s4513_s13] sm:$0x55]  ;;  %v1214_v58 = vld [vmem:[%s4513_s13 + $0x8] sm:$0x55]  ;;  %p3439_p6 = scmp.ne.s32.totalorder %s3921_s24, 2 }
  0xbc   : > { %v4569_v54 = vsub.s32 %v1349_v47, %v4561_v48  ;;  %v1346_v60 = vcombine.high %v1213_v57, %v1213_v57  ;;  %v3629_v61 = vld [vmem:[%s4515_s15 + $0x2b0] ss:$8 sps:$4 sm:$0xff]   ;;  %v1363_v63 = vcombine.high %v1214_v58, %v1214_v58  ;;  %v3631_v1 = vld [vmem:[%s4515_s15 + $0x2c4] ss:$8 sps:$4 sm:$0xff]   ;;  %v3635_v7 = vld [vmem:[%s4515_s15 + $0x2c0] ss:$8 sps:$4 sm:$0xff]  }
  0xbd   : > { %1734 = vmatpush1.bf16.msra.mxu1 %v3587_v23  ;;  %v3630_v62 = vld [vmem:[%s4515_s15 + $0x1b0] ss:$8 sps:$4 sm:$0xff]   ;;  %v3633_v2 = vld [vmem:[%s4515_s15 + $0x1c4] ss:$8 sps:$4 sm:$0xff]   ;;  %v3636_v11 = vld [vmem:[%s4515_s15 + $0x1c0] ss:$8 sps:$4 sm:$0xff]  }
  0xbe   : > { %2193 = vmatpush1.bf16.msra.mxu0 %v3588_v24  ;;  %1735 = vmatprep.subr.bf16.mxu1 %v3589_v25  ;;  %v4576_v59 = vrot.slane %v1213_v57, %v4569_v54  ;;  %v4581_v0 = vrot.slane %v1214_v58, %v4569_v54  ;;  %v1360_v4 = vrot.slane %v1346_v60, %v4569_v54  ;;  %v3637_v12 = vld [vmem:[%s4515_s15 + $0x2d4] ss:$8 sps:$4 sm:$0xff]   ;;  %v3641_v23 = vld [vmem:[%s4515_s15 + $0x2d0] ss:$8 sps:$4 sm:$0xff]   ;;  %v3662_v47 = vld [vmem:[%s4515_s15 + $0x404] ss:$8 sps:$4 sm:$0xff]  }
  0xbf   : > { %2194 = vmatprep.subr.bf16.mxu0 %v3591_v26  ;;  %v1377_v6 = vrot.slane %v1363_v63, %v4569_v54  ;;  %v3639_v15 = vld [vmem:[%s4515_s15 + $0x1d4] ss:$8 sps:$4 sm:$0xff]   ;;  %v3642_v24 = vld [vmem:[%s4515_s15 + $0x1d0] ss:$8 sps:$4 sm:$0xff]   ;;  %v3674_v63 = vld [vmem:[%s4515_s15 + $0x424] ss:$8 sps:$4 sm:$0xff]  }
  0xc0   : > { %v1361_v3 = vcombine.high %v4576_v59, %v4576_v59  ;;  %v1378_v5 = vcombine.high %v4581_v0, %v4581_v0  ;;  %v1362_v9 = vcombine.high %v1360_v4, %v1360_v4  ;;  %v1382_v10 = vunpack.c.l.b16 %v1360_v4  ;;  %v3653_v41 = vld [vmem:[%s4515_s15 + $0x2f0] ss:$8 sps:$4 sm:$0xff]   ;;  %v3665_v57 = vld [vmem:[%s4515_s15 + $0x314] ss:$8 sps:$4 sm:$0xff]  }
  0xc1   : > { %1736 = vmatpush1.bf16.msra.mxu1 %v3593_v27  ;;  %v1379_v14 = vcombine.high %v1377_v6, %v1377_v6  ;;  %v1386_v17 = vunpack.c.l.b16 %v1377_v6  ;;  %v1380_v27 = vunpack.c.l.b16 %v4576_v59  ;;  %v3654_v42 = vld [vmem:[%s4515_s15 + $0x1f0] ss:$8 sps:$4 sm:$0xff]   ;;  %v3668_v58 = vld [vmem:[%s4515_s15 + $0x414] ss:$8 sps:$4 sm:$0xff]   ;;  %v3683_v6 = vld [vmem:[%s4515_s15 + $0x344] ss:$8 sps:$4 sm:$0xff]  }
  0xc2   : > { %2195 = vmatpush1.bf16.msra.mxu0 %v3594_v28  ;;  %1737 = vmatprep.subr.bf16.mxu1 %v3595_v29  ;;  %v4592_v8 = vunpack.c.l.b16 %v1361_v3  ;;  %v1385_v13 = vunpack.c.l.b16 %v1378_v5  ;;  %v1393_v18 = vrot.slane %v1382_v10, 1  ;;  %v1383_v19 = vunpack.c.l.b16 %v1362_v9  ;;  %v3643_v28 = vld [vmem:[%s4515_s15 + $0x2e4] ss:$8 sps:$4 sm:$0xff]   ;;  %v3663_v60 = vld [vmem:[%s4515_s15 + $0x310] ss:$8 sps:$4 sm:$0xff]  }
  0xc3   : > { %2196 = vmatprep.subr.bf16.mxu0 %v3597_v30  ;;  %v1387_v20 = vunpack.c.l.b16 %v1379_v14  ;;  %v3645_v29 = vld [vmem:[%s4515_s15 + $0x1e4] ss:$8 sps:$4 sm:$0xff]   ;;  %v3680_v3 = vld [vmem:[%s4515_s15 + $0x434] ss:$8 sps:$4 sm:$0xff]   ;;  %v3675_v4 = vld [vmem:[%s4515_s15 + $0x330] ss:$8 sps:$4 sm:$0xff]  }
  0xc4   : > { %v1391_v16 = vrot.slane %v4592_v8, 1  ;;  %v4600_v22 = vsel %vm1389_vm0, %v1386_v17, %v1393_v18  ;;  %v3678_v5 = vld [vmem:[%s4515_s15 + $0x430] ss:$8 sps:$4 sm:$0xff]   ;;  %v3684_v9 = vld [vmem:[%s4515_s15 + $0x440] ss:$8 sps:$4 sm:$0xff]   ;;  %vm2831_vm1 = vcmask (!%p3439_p6), 1043459  }
  0xc5   : > { %1738 = vmatpush1.bf16.msra.mxu1 %v3599_v31  ;;  %v1813_v26 = vrot.slane %v1387_v20, 7  ;;  %v3647_v31 = vld [vmem:[%s4515_s15 + $0x2e0] ss:$8 sps:$4 sm:$0xff]   ;;  %v3695_v14 = vld [vmem:[%s4515_s15 + $0x364] ss:$8 sps:$4 sm:$0xff]   ;;  %vm2833_vm2 = vcmask (!%p3439_p6), 1045509  }
  0xc6   : > { %2197 = vmatpush1.bf16.msra.mxu0 %v3600_v32  ;;  %1739 = vmatprep.subr.bf16.mxu1 %v3601_v33  ;;  %v1392_v21 = vsel %vm1389_vm0, %v1385_v13, %v1391_v16  ;;  %v3648_v33 = vld [vmem:[%s4515_s15 + $0x1e0] ss:$8 sps:$4 sm:$0xff]   ;;  %vm2835_vm3 = vcmask (!%p3439_p6), 1047559   ;;  %vm2909_vm4 = vcmask (!%p3439_p6), 1040384   ;;  %vm2910_vm5 = vsmask.f32 (!%p3439_p6), 256 }
  0xc7   : > { %2198 = vmatprep.subr.bf16.mxu0 %v3603_v34  ;;  %v1398_v25 = vpack.c.b16 %v1392_v21, %v1392_v21  ;;  %v1814_v30 = vsel %vm1389_vm0, %v1813_v26, %v1383_v19  ;;  %v1384_v34 = vunpack.c.l.b16 %v4581_v0  ;;  %v3669_v0 = vld [vmem:[%s4515_s15 + $0x320] ss:$8 sps:$4 sm:$0xff]   ;;  %vm2913_vm6 = vsmask.f32 (!%p3439_p6), 1280  ;;  %vm4815_vm7 = vmand (!%p3439_p6), %vm2909_vm4, %vm2910_vm5 }
  0xc8   : > { %v1818_v32 = vpack.c.b16 %v1814_v30, %v1814_v30  ;;  %v3693_v16 = vld [vmem:[%s4515_s15 + $0x360] ss:$8 sps:$4 sm:$0xff]   ;;  %v3702_v30 = vld [vmem:[%s4515_s15 + $0x470] ss:$8 sps:$4 sm:$0xff]   ;;  %vm2914_vm8 = vmand (!%p3439_p6), %vm1389_vm0, %vm2913_vm6 }
  0xc9   : > { %1740 = vmatpush1.bf16.msra.mxu1 %v3605_v35  ;;  %1757 = vmatprep.mubr.bf16.mxu1 %v1398_v25  ;;  %v1388_v35 = vrot.slane %v1380_v27, 1  ;;  %v2225_v18 = vld [vmem:[%s4513_s13] sm:$0xaa]  ;;  %vm2915_vm9 = vmor (!%p3439_p6), %vm2914_vm8, %vm4815_vm7 }
  0xca   : > { %2199 = vmatpush1.bf16.msra.mxu0 %v3606_v36  ;;  %1741 = vmatprep.subr.bf16.mxu1 %v3607_v37  ;;  %v1811_v36 = vrot.slane %v1386_v17, 7  ;;  %v3649_v37 = vld [vmem:[%s4515_s15 + $0x2f4] ss:$8 sps:$4 sm:$0xff]   ;;  %v3696_v17 = vld [vmem:[%s4515_s15 + $0x460] ss:$8 sps:$4 sm:$0xff]   ;;  %v4657_v21 = vrot.slane %v2225_v18, %v4569_v54 }
  0xcb   : > { %2200 = vmatprep.subr.bf16.mxu0 %v3609_v38  ;;  %v3651_v38 = vld [vmem:[%s4515_s15 + $0x1f4] ss:$8 sps:$4 sm:$0xff]   ;;  %2216 = vmatprep.mubr.bf16.mxu0 %v1818_v32  ;;  %v1390_v43 = vsel %vm1389_vm0, %v1384_v34, %v1388_v35 }
  0xcc   : > { %v3704_v25 = vld [vmem:[%s4515_s15 + $0x474] ss:$8 sps:$4 sm:$0xff]  }
  0xcd   : > { %1742 = vmatpush1.bf16.msra.mxu1 %v3611_v39  ;;  %v1809_v39 = vrot.slane %v1385_v13, 7  ;;  %v3690_v13 = vld [vmem:[%s4515_s15 + $0x450] ss:$8 sps:$4 sm:$0xff]  }
  0xce   : > { %2201 = vmatpush1.bf16.msra.mxu0 %v3612_v40  ;;  %1743 = vmatprep.subr.bf16.mxu1 %v3613_v44  ;;  %v1395_v40 = vrot.slane %v1383_v19, 1  ;;  %v1807_v44 = vrot.slane %v1384_v34, 7  ;;  %v2226_v19 = vld [vmem:[%s4513_s13 + $0x8] sm:$0xaa] }
  0xcf   : > { %2202 = vmatprep.subr.bf16.mxu0 %v3615_v45  ;;  %v1812_v45 = vsel %vm1389_vm0, %v1811_v36, %v1382_v10  ;;  %v3689_v10 = vld [vmem:[%s4515_s15 + $0x354] ss:$8 sps:$4 sm:$0xff]   ;;  %v2311_v26 = vcombine.high %v2226_v19, %v2226_v19  ;;  %v3710_v36 = vld [vmem:[%s4515_s15 + $0x484] ss:$8 sps:$4 sm:$0xff]  }
  0xd1   : > { %1744 = vmatpush1.bf16.msra.mxu1 %v3617_v46  ;;  %v3658_v46 = vld [vmem:[%s4515_s15 + $0x304] ss:$8 sps:$4 sm:$0xff]   ;;  %v4673_v32 = vrot.slane %v2311_v26, %v4569_v54  ;;  %v3750_v26 = vld [vmem:[%s4515_s15 + $0x4f0] ss:$8 sps:$4 sm:$0xff]  }
  0xd2   : > { %2203 = vmatpush1.bf16.msra.mxu0 %v3618_v49  ;;  %1745 = vmatprep.subr.bf16.mxu1 %v3619_v50  ;;  %v1397_v49 = vpack.c.b16 %v1390_v43, %v1390_v43  ;;  %v1817_v50 = vpack.c.b16 %v1812_v45, %v1812_v45  ;;  %v3708_v43 = vld [vmem:[%s4515_s15 + $0x480] ss:$8 sps:$4 sm:$0xff]  }
  0xd3   : > { %2204 = vmatprep.subr.bf16.mxu0 %v3621_v51  ;;  %v1396_v51 = vsel %vm1389_vm0, %v1387_v20, %v1395_v40  ;;  %v3701_v20 = vld [vmem:[%s4515_s15 + $0x374] ss:$8 sps:$4 sm:$0xff]  }
  0xd4   : > { %v1400_v59 = vpack.c.b16 %v1396_v51, %v1396_v51  ;;  %v3711_v51 = vld [vmem:[%s4515_s15 + $0x390] ss:$8 sps:$4 sm:$0xff]  }
  0xd5   : > { %1746 = vmatpush1.bf16.msra.mxu1 %v3623_v52  ;;  %v4622_v52 = vsel %vm1389_vm0, %v1809_v39, %v4592_v8  ;;  %v3681_v8 = vld [vmem:[%s4515_s15 + $0x340] ss:$8 sps:$4 sm:$0xff]  }
  0xd6   : > { %2205 = vmatpush1.bf16.msra.mxu0 %v3624_v53  ;;  %1747 = vmatprep.subr.bf16.mxu1 %v3625_v55  ;;  %v3656_v53 = vld [vmem:[%s4515_s15 + $0x300] ss:$8 sps:$4 sm:$0xff]  }
  0xd7   : > { %2206 = vmatprep.subr.bf16.mxu0 %v3627_v56  ;;  %v3660_v55 = vld [vmem:[%s4515_s15 + $0x400] ss:$8 sps:$4 sm:$0xff]   ;;  %v4627_v56 = vsel %vm1389_vm0, %v1807_v44, %v1380_v27  ;;  %v2309_v27 = vcombine.high %v4657_v21, %v4657_v21 }
  0xd9   : > { %1748 = vmatpush1.bf16.msra.mxu1 %v3629_v61  ;;  %v3666_v61 = vld [vmem:[%s4515_s15 + $0x410] ss:$8 sps:$4 sm:$0xff]   ;;  %v2329_v34 = vunpack.c.l.b16 %v2309_v27 }
  0xda   : > { %2207 = vmatpush1.bf16.msra.mxu0 %v3630_v62  ;;  %1749 = vmatprep.subr.bf16.mxu1 %v3631_v1  ;;  %v3671_v62 = vld [vmem:[%s4515_s15 + $0x324] ss:$8 sps:$4 sm:$0xff]   ;;  %v3672_v1 = vld [vmem:[%s4515_s15 + $0x420] ss:$8 sps:$4 sm:$0xff]  }
  0xdb   : > { %2208 = vmatprep.subr.bf16.mxu0 %v3633_v2  ;;  %v3677_v2 = vld [vmem:[%s4515_s15 + $0x334] ss:$8 sps:$4 sm:$0xff]   ;;  %v2339_v39 = vrot.slane %v2329_v34, 2  ;;  %v3756_v34 = vld [vmem:[%s4515_s15 + $0x500] ss:$8 sps:$4 sm:$0xff]  }
  0xdd   : > { %1750 = vmatpush1.bf16.msra.mxu1 %v3635_v7  ;;  %v3686_v7 = vld [vmem:[%s4515_s15 + $0x444] ss:$8 sps:$4 sm:$0xff]  }
  0xde   : > { %2209 = vmatpush1.bf16.msra.mxu0 %v3636_v11  ;;  %1751 = vmatprep.subr.bf16.mxu1 %v3637_v12  ;;  %v3692_v11 = vld [vmem:[%s4515_s15 + $0x454] ss:$8 sps:$4 sm:$0xff]   ;;  %v3687_v12 = vld [vmem:[%s4515_s15 + $0x350] ss:$8 sps:$4 sm:$0xff]  }
  0xdf   : > { %2210 = vmatprep.subr.bf16.mxu0 %v3639_v15  ;;  %v3698_v15 = vld [vmem:[%s4515_s15 + $0x464] ss:$8 sps:$4 sm:$0xff]  }
  0xe1   : > { %1752 = vmatpush1.bf16.msra.mxu1 %v3641_v23  ;;  %v4660_v23 = vrot.slane %v2226_v19, %v4569_v54 }
  0xe2   : > { %2211 = vmatpush1.bf16.msra.mxu0 %v3642_v24  ;;  %1753 = vmatprep.subr.bf16.mxu1 %v3643_v28  ;;  %v2294_v24 = vcombine.high %v2225_v18, %v2225_v18 }
  0xe3   : > { %2212 = vmatprep.subr.bf16.mxu0 %v3645_v29  ;;  %v2326_v28 = vcombine.high %v4660_v23, %v4660_v23  ;;  %v3699_v29 = vld [vmem:[%s4515_s15 + $0x370] ss:$8 sps:$4 sm:$0xff]  }
  0xe5   : > { %1754 = vmatpush1.bf16.msra.mxu1 %v3647_v31  ;;  %v4670_v31 = vrot.slane %v2294_v24, %v4569_v54  ;;  %v2333_v35 = vunpack.c.l.b16 %v2326_v28  ;;  %v3755_v28 = vld [vmem:[%s4515_s15 + $0x4] ss:$8 sps:$4 sm:$0xff]  }
  0xe6   : > { %2213 = vmatpush1.bf16.msra.mxu0 %v3648_v33  ;;  %1755 = vmatprep.subr.bf16.mxu1 %v3649_v37  ;;  %v3707_v33 = vld [vmem:[%s4515_s15 + $0x384] ss:$8 sps:$4 sm:$0xff]  }
  0xe7   : > { %2214 = vmatprep.subr.bf16.mxu0 %v3651_v38  ;;  %v2330_v37 = vunpack.c.l.b16 %v4670_v31  ;;  %v2334_v38 = vunpack.c.l.b16 %v4673_v32  ;;  %v2340_v40 = vrot.slane %v2333_v35, 1  ;;  %v3761_v35 = vld [vmem:[%s4515_s15 + $0x14] ss:$8 sps:$4 sm:$0xff]  }
  0xe9   : > { %1756 = vmatpush1.bf16.msra.mxu1 %v3653_v41  ;;  %v3705_v41 = vld [vmem:[%s4515_s15 + $0x380] ss:$8 sps:$4 sm:$0xff]   ;;  %v2341_v44 = vsel %vm1389_vm0, %v2340_v40, %v2339_v39  ;;  %v2343_v45 = vrot.slane %v2334_v38, 1  ;;  %v3762_v39 = vld [vmem:[%s4515_s15 + $0x510] ss:$8 sps:$4 sm:$0xff]  }
  0xea   : > { %2215 = vmatpush1.bf16.msra.mxu0 %v3654_v42  ;;  %1766 = vmatprep.subr.bf16.mxu1 %v3658_v46  ;;  %v2342_v42 = vrot.slane %v2330_v37, 2  ;;  %v3713_v46 = vld [vmem:[%s4515_s15 + $0x394] ss:$8 sps:$4 sm:$0xff]   ;;  %v1816_v37 = vpack.c.b16 %v4622_v52, %v4622_v52  ;;  %v3767_v40 = vld [vmem:[%s4515_s15 + $0x24] ss:$8 sps:$4 sm:$0xff]  }
  0xeb   : > { %2676 = vmatprep.subr.bf16.mxu0 %v3662_v47  ;;  %v3716_v47 = vld [vmem:[%s4515_s15 + $0x494] ss:$8 sps:$4 sm:$0xff]   ;;  %v3765_v52 = vld [vmem:[%s4515_s15 + $0x20] ss:$8 sps:$4 sm:$0xff]  }
  0xec   : > { %1758 = vmatmul.mubr.bf16.vlgmr.msra.gmra.mrb[0].mxu1 %v1397_v49  ;;  %v2349_v49 = vpack.c.b16 %v2341_v44, %v2341_v44  ;;  %v3776_v44 = vld [vmem:[%s4515_s15 + $0x534] ss:$8 sps:$4 sm:$0xff]  }
  0xed   : > { %2217 = vmatmul.mubr.bf16.vlgmr.msra.gmra.mrb[0].mxu0 %v1817_v50  ;;  %1767 = vmatpush1.bf16.msra.mxu1 %v3656_v53  ;;  %v4685_v50 = vsel %vm1389_vm0, %v2343_v45, %v2342_v42  ;;  %v3714_v53 = vld [vmem:[%s4515_s15 + $0x490] ss:$8 sps:$4 sm:$0xff]   ;;  %v3768_v42 = vld [vmem:[%s4515_s15 + $0x520] ss:$8 sps:$4 sm:$0xff]  }
  0xee   : > { %2677 = vmatpush1.bf16.msra.mxu0 %v3660_v55  ;;  %1768 = vmatprep.subr.bf16.mxu1 %v3665_v57  ;;  %v3719_v55 = vld [vmem:[%s4515_s15 + $0x3a4] ss:$8 sps:$4 sm:$0xff]   ;;  %v3771_v45 = vld [vmem:[%s4515_s15 + $0x30] ss:$8 sps:$4 sm:$0xff]  }
  0xef   : > { %2678 = vmatprep.subr.bf16.mxu0 %v3668_v58  ;;  %1798 = vmatprep.mubr.bf16.mxu1 %v1400_v59  ;;  %v3722_v57 = vld [vmem:[%s4515_s15 + $0x4a4] ss:$8 sps:$4 sm:$0xff]   ;;  %v3717_v58 = vld [vmem:[%s4515_s15 + $0x3a0] ss:$8 sps:$4 sm:$0xff]  }
  0xf0   : > { %2708 = vmatprep.mubr.bf16.mxu0 %v2349_v49  ;;  %v3720_v59 = vld [vmem:[%s4515_s15 + $0x4a0] ss:$8 sps:$4 sm:$0xff]   ;;  %v3782_v49 = vld [vmem:[%s4515_s15 + $0x544] ss:$8 sps:$4 sm:$0xff]  }
  0xf1   : > { %1769 = vmatpush1.bf16.msra.mxu1 %v3663_v60  ;;  %v3725_v60 = vld [vmem:[%s4515_s15 + $0x3b4] ss:$8 sps:$4 sm:$0xff]  }
  0xf2   : > { %2679 = vmatpush1.bf16.msra.mxu0 %v3666_v61  ;;  %1770 = vmatprep.subr.bf16.mxu1 %v3671_v62  ;;  %v3728_v61 = vld [vmem:[%s4515_s15 + $0x4b4] ss:$8 sps:$4 sm:$0xff]   ;;  %v3723_v62 = vld [vmem:[%s4515_s15 + $0x3b0] ss:$8 sps:$4 sm:$0xff]  }
  0xf3   : > { %2680 = vmatprep.subr.bf16.mxu0 %v3674_v63  ;;  %v3726_v63 = vld [vmem:[%s4515_s15 + $0x4b0] ss:$8 sps:$4 sm:$0xff]  }
  0xf5   : > { %1771 = vmatpush1.bf16.msra.mxu1 %v3669_v0  ;;  %v3731_v0 = vld [vmem:[%s4515_s15 + $0x3c4] ss:$8 sps:$4 sm:$0xff]  }
  0xf6   : > { %2681 = vmatpush1.bf16.msra.mxu0 %v3672_v1  ;;  %1772 = vmatprep.subr.bf16.mxu1 %v3677_v2  ;;  %v3734_v1 = vld [vmem:[%s4515_s15 + $0x4c4] ss:$8 sps:$4 sm:$0xff]   ;;  %v3729_v2 = vld [vmem:[%s4515_s15 + $0x3c0] ss:$8 sps:$4 sm:$0xff]  }
  0xf7   : > { %2682 = vmatprep.subr.bf16.mxu0 %v3680_v3  ;;  %v3732_v3 = vld [vmem:[%s4515_s15 + $0x4c0] ss:$8 sps:$4 sm:$0xff]  }
  0xf9   : > { %1773 = vmatpush1.bf16.msra.mxu1 %v3675_v4  ;;  %v3737_v4 = vld [vmem:[%s4515_s15 + $0x3d4] ss:$8 sps:$4 sm:$0xff]  }
  0xfa   : > { %2683 = vmatpush1.bf16.msra.mxu0 %v3678_v5  ;;  %1774 = vmatprep.subr.bf16.mxu1 %v3683_v6  ;;  %v3740_v5 = vld [vmem:[%s4515_s15 + $0x4d4] ss:$8 sps:$4 sm:$0xff]   ;;  %v3735_v6 = vld [vmem:[%s4515_s15 + $0x3d0] ss:$8 sps:$4 sm:$0xff]  }
  0xfb   : > { %2684 = vmatprep.subr.bf16.mxu0 %v3686_v7  ;;  %v2310_v7 = vcombine.high %v4670_v31, %v4670_v31  ;;  %v1399_v31 = vpack.c.b16 %v4600_v22, %v4600_v22  ;;  %v3759_v22 = vld [vmem:[%s4515_s15 + $0x10] ss:$8 sps:$4 sm:$0xff]  }
  0xfd   : > { %1775 = vmatpush1.bf16.msra.mxu1 %v3681_v8  ;;  %v2327_v8 = vcombine.high %v4673_v32, %v4673_v32 }
  0xfe   : > { %2685 = vmatpush1.bf16.msra.mxu0 %v3684_v9  ;;  %1776 = vmatprep.subr.bf16.mxu1 %v3689_v10  ;;  %v3738_v9 = vld [vmem:[%s4515_s15 + $0x4d0] ss:$8 sps:$4 sm:$0xff]   ;;  %v2328_v10 = vunpack.c.l.b16 %v4657_v21  ;;  %v3752_v21 = vld [vmem:[%s4515_s15 + $0x4f4] ss:$8 sps:$4 sm:$0xff]  }
  0xff   : > { %2686 = vmatprep.subr.bf16.mxu0 %v3692_v11  ;;  %v2332_v11 = vunpack.c.l.b16 %v4660_v23  ;;  %v3747_v23 = vld [vmem:[%s4515_s15 + $0x3f0] ss:$8 sps:$4 sm:$0xff]  }
 0x100   : > { %v2336_v18 = vrot.slane %v2328_v10, 2  ;;  %v3807_v10 = vld [vmem:[%s4515_s15 + $0x90] ss:$8 sps:$4 sm:$0xff]  }
 0x101   : > { %1777 = vmatpush1.bf16.msra.mxu1 %v3687_v12  ;;  %v3743_v12 = vld [vmem:[%s4515_s15 + $0x3e4] ss:$8 sps:$4 sm:$0xff]   ;;  %v2337_v19 = vrot.slane %v2332_v11, 1  ;;  %v3810_v11 = vld [vmem:[%s4515_s15 + $0x590] ss:$8 sps:$4 sm:$0xff]  }
 0x102   : > { %2687 = vmatpush1.bf16.msra.mxu0 %v3690_v13  ;;  %1778 = vmatprep.subr.bf16.mxu1 %v3695_v14  ;;  %v3746_v13 = vld [vmem:[%s4515_s15 + $0x4e4] ss:$8 sps:$4 sm:$0xff]   ;;  %v3741_v14 = vld [vmem:[%s4515_s15 + $0x3e0] ss:$8 sps:$4 sm:$0xff]  }
 0x103   : > { %2688 = vmatprep.subr.bf16.mxu0 %v3698_v15  ;;  %v2331_v15 = vunpack.c.l.b16 %v2310_v7  ;;  %v2338_v27 = vsel %vm1389_vm0, %v2337_v19, %v2336_v18  ;;  %v3804_v7 = vld [vmem:[%s4515_s15 + $0x580] ss:$8 sps:$4 sm:$0xff]   ;;  %v3819_v18 = vld [vmem:[%s4515_s15 + $0xb0] ss:$8 sps:$4 sm:$0xff]  }
 0x104   : > { %v2348_v32 = vpack.c.b16 %v2338_v27, %v2338_v27  ;;  %v3822_v19 = vld [vmem:[%s4515_s15 + $0x5b0] ss:$8 sps:$4 sm:$0xff]  }
 0x105   : > { %1779 = vmatpush1.bf16.msra.mxu1 %v3693_v16  ;;  %v2335_v16 = vunpack.c.l.b16 %v2327_v8  ;;  %v2345_v24 = vrot.slane %v2331_v15, 2  ;;  %v3809_v8 = vld [vmem:[%s4515_s15 + $0x94] ss:$8 sps:$4 sm:$0xff]   ;;  %v3816_v15 = vld [vmem:[%s4515_s15 + $0x5a0] ss:$8 sps:$4 sm:$0xff]  }
 0x106   : > { %2689 = vmatpush1.bf16.msra.mxu0 %v3696_v17  ;;  %1780 = vmatprep.subr.bf16.mxu1 %v3701_v20  ;;  %v3744_v17 = vld [vmem:[%s4515_s15 + $0x4e0] ss:$8 sps:$4 sm:$0xff]   ;;  %v3749_v20 = vld [vmem:[%s4515_s15 + $0x3f4] ss:$8 sps:$4 sm:$0xff]   ;;  %v3831_v27 = vld [vmem:[%s4515_s15 + $0xd0] ss:$8 sps:$4 sm:$0xff]  }
 0x107   : > { %2690 = vmatprep.subr.bf16.mxu0 %v3704_v25  ;;  %v2346_v25 = vrot.slane %v2335_v16, 1  ;;  %v3821_v16 = vld [vmem:[%s4515_s15 + $0xb4] ss:$8 sps:$4 sm:$0xff]  }
 0x109   : > { %1781 = vmatpush1.bf16.msra.mxu1 %v3699_v29  ;;  %v3758_v29 = vld [vmem:[%s4515_s15 + $0x504] ss:$8 sps:$4 sm:$0xff]  }
 0x10a   : > { %2691 = vmatpush1.bf16.msra.mxu0 %v3702_v30  ;;  %1782 = vmatprep.subr.bf16.mxu1 %v3707_v33  ;;  %v3753_v30 = vld [vmem:[%s4515_s15] ss:$8 sps:$4 sm:$0xff]   ;;  %v2347_v33 = vsel %vm1389_vm0, %v2346_v25, %v2345_v24  ;;  %v3833_v25 = vld [vmem:[%s4515_s15 + $0xd4] ss:$8 sps:$4 sm:$0xff]  }
 0x10b   : > { %2692 = vmatprep.subr.bf16.mxu0 %v3710_v36  ;;  %v3764_v36 = vld [vmem:[%s4515_s15 + $0x514] ss:$8 sps:$4 sm:$0xff]   ;;  %v2351_v38 = vpack.c.b16 %v2347_v33, %v2347_v33  ;;  %v3828_v24 = vld [vmem:[%s4515_s15 + $0x5c0] ss:$8 sps:$4 sm:$0xff]  }
 0x10c   : > { %v3845_v33 = vld [vmem:[%s4515_s15 + $0xf4] ss:$8 sps:$4 sm:$0xff]  }
 0x10d   : > { %1783 = vmatpush1.bf16.msra.mxu1 %v3705_v41  ;;  %v3770_v41 = vld [vmem:[%s4515_s15 + $0x524] ss:$8 sps:$4 sm:$0xff]  }
 0x10e   : > { %2693 = vmatpush1.bf16.msra.mxu0 %v3708_v43  ;;  %1784 = vmatprep.subr.bf16.mxu1 %v3713_v46  ;;  %v3773_v43 = vld [vmem:[%s4515_s15 + $0x34] ss:$8 sps:$4 sm:$0xff]   ;;  %v3774_v46 = vld [vmem:[%s4515_s15 + $0x530] ss:$8 sps:$4 sm:$0xff]  }
 0x10f   : > { %2694 = vmatprep.subr.bf16.mxu0 %v3716_v47  ;;  %v3779_v47 = vld [vmem:[%s4515_s15 + $0x44] ss:$8 sps:$4 sm:$0xff]  }
 0x111   : > { %1785 = vmatpush1.bf16.msra.mxu1 %v3711_v51  ;;  %v3777_v51 = vld [vmem:[%s4515_s15 + $0x40] ss:$8 sps:$4 sm:$0xff]  }
 0x112   : > { %2695 = vmatpush1.bf16.msra.mxu0 %v3714_v53  ;;  %1786 = vmatprep.subr.bf16.mxu1 %v3719_v55  ;;  %v3780_v53 = vld [vmem:[%s4515_s15 + $0x540] ss:$8 sps:$4 sm:$0xff]   ;;  %v3785_v55 = vld [vmem:[%s4515_s15 + $0x54] ss:$8 sps:$4 sm:$0xff]  }
 0x113   : > { %2696 = vmatprep.subr.bf16.mxu0 %v3722_v57  ;;  %v3788_v57 = vld [vmem:[%s4515_s15 + $0x554] ss:$8 sps:$4 sm:$0xff]  }
 0x115   : > { %1787 = vmatpush1.bf16.msra.mxu1 %v3717_v58  ;;  %v3783_v58 = vld [vmem:[%s4515_s15 + $0x50] ss:$8 sps:$4 sm:$0xff]  }
 0x116   : > { %2697 = vmatpush1.bf16.msra.mxu0 %v3720_v59  ;;  %1788 = vmatprep.subr.bf16.mxu1 %v3725_v60  ;;  %v3786_v59 = vld [vmem:[%s4515_s15 + $0x550] ss:$8 sps:$4 sm:$0xff]   ;;  %v3791_v60 = vld [vmem:[%s4515_s15 + $0x64] ss:$8 sps:$4 sm:$0xff]  }
 0x117   : > { %2698 = vmatprep.subr.bf16.mxu0 %v3728_v61  ;;  %v3794_v61 = vld [vmem:[%s4515_s15 + $0x564] ss:$8 sps:$4 sm:$0xff]  }
 0x119   : > { %1789 = vmatpush1.bf16.msra.mxu1 %v3723_v62  ;;  %v3789_v62 = vld [vmem:[%s4515_s15 + $0x60] ss:$8 sps:$4 sm:$0xff]  }
 0x11a   : > { %2699 = vmatpush1.bf16.msra.mxu0 %v3726_v63  ;;  %1790 = vmatprep.subr.bf16.mxu1 %v3731_v0  ;;  %v3792_v63 = vld [vmem:[%s4515_s15 + $0x560] ss:$8 sps:$4 sm:$0xff]   ;;  %v3797_v0 = vld [vmem:[%s4515_s15 + $0x74] ss:$8 sps:$4 sm:$0xff]  }
 0x11b   : > { %2700 = vmatprep.subr.bf16.mxu0 %v3734_v1  ;;  %v3800_v1 = vld [vmem:[%s4515_s15 + $0x574] ss:$8 sps:$4 sm:$0xff]  }
 0x11d   : > { %1791 = vmatpush1.bf16.msra.mxu1 %v3729_v2  ;;  %v3795_v2 = vld [vmem:[%s4515_s15 + $0x70] ss:$8 sps:$4 sm:$0xff]  }
 0x11e   : > { %2701 = vmatpush1.bf16.msra.mxu0 %v3732_v3  ;;  %1792 = vmatprep.subr.bf16.mxu1 %v3737_v4  ;;  %v3798_v3 = vld [vmem:[%s4515_s15 + $0x570] ss:$8 sps:$4 sm:$0xff]   ;;  %v3803_v4 = vld [vmem:[%s4515_s15 + $0x84] ss:$8 sps:$4 sm:$0xff]  }
 0x11f   : > { %2702 = vmatprep.subr.bf16.mxu0 %v3740_v5  ;;  %v3806_v5 = vld [vmem:[%s4515_s15 + $0x584] ss:$8 sps:$4 sm:$0xff]  }
 0x121   : > { %1793 = vmatpush1.bf16.msra.mxu1 %v3735_v6  ;;  %v3801_v6 = vld [vmem:[%s4515_s15 + $0x80] ss:$8 sps:$4 sm:$0xff]  }
 0x122   : > { %2703 = vmatpush1.bf16.msra.mxu0 %v3738_v9  ;;  %1794 = vmatprep.subr.bf16.mxu1 %v3743_v12  ;;  %v3812_v9 = vld [vmem:[%s4515_s15 + $0x594] ss:$8 sps:$4 sm:$0xff]   ;;  %v3815_v12 = vld [vmem:[%s4515_s15 + $0xa4] ss:$8 sps:$4 sm:$0xff]  }
 0x123   : > { %2704 = vmatprep.subr.bf16.mxu0 %v3746_v13  ;;  %v3818_v13 = vld [vmem:[%s4515_s15 + $0x5a4] ss:$8 sps:$4 sm:$0xff]  }
 0x125   : > { %1795 = vmatpush1.bf16.msra.mxu1 %v3741_v14  ;;  %v3813_v14 = vld [vmem:[%s4515_s15 + $0xa0] ss:$8 sps:$4 sm:$0xff]  }
 0x126   : > { %2705 = vmatpush1.bf16.msra.mxu0 %v3744_v17  ;;  %1796 = vmatprep.subr.bf16.mxu1 %v3749_v20  ;;  %v3824_v17 = vld [vmem:[%s4515_s15 + $0x5b4] ss:$8 sps:$4 sm:$0xff]   ;;  %v3827_v20 = vld [vmem:[%s4515_s15 + $0xc4] ss:$8 sps:$4 sm:$0xff]  }
 0x127   : > { %2706 = vmatprep.subr.bf16.mxu0 %v3752_v21  ;;  %v3830_v21 = vld [vmem:[%s4515_s15 + $0x5c4] ss:$8 sps:$4 sm:$0xff]  }
 0x129   : > { %1797 = vmatpush1.bf16.msra.mxu1 %v3747_v23  ;;  %v3825_v23 = vld [vmem:[%s4515_s15 + $0xc0] ss:$8 sps:$4 sm:$0xff]  }
 0x12a   : > { %2707 = vmatpush1.bf16.msra.mxu0 %v3750_v26  ;;  %2143 = vmatprep.subr.bf16.mxu1 %v3755_v28  ;;  %v3836_v26 = vld [vmem:[%s4515_s15 + $0x5d4] ss:$8 sps:$4 sm:$0xff]   ;;  %v3834_v28 = vld [vmem:[%s4515_s15 + $0x5d0] ss:$8 sps:$4 sm:$0xff]  }
 0x12b   : > { %2717 = vmatprep.subr.bf16.mxu0 %v3758_v29  ;;  %v3839_v29 = vld [vmem:[%s4515_s15 + $0xe4] ss:$8 sps:$4 sm:$0xff]  }
 0x12c   : > { %1799 = vmatmul.mubr.bf16.vlgmr.msra.gmra.mrb[0].mxu1 %v1399_v31  ;;  %v3837_v31 = vld [vmem:[%s4515_s15 + $0xe0] ss:$8 sps:$4 sm:$0xff]  }
 0x12d   : > { %2709 = vmatmul.mubr.bf16.vlgmr.msra.gmra.mrb[0].mxu0 %v2348_v32  ;;  %2144 = vmatpush1.bf16.msra.mxu1 %v3753_v30  ;;  %v3842_v30 = vld [vmem:[%s4515_s15 + $0x5e4] ss:$8 sps:$4 sm:$0xff]   ;;  %v3840_v32 = vld [vmem:[%s4515_s15 + $0x5e0] ss:$8 sps:$4 sm:$0xff]  }
 0x12e   : > { %2718 = vmatpush1.bf16.msra.mxu0 %v3756_v34  ;;  %2145 = vmatprep.subr.bf16.mxu1 %v3761_v35  ;;  %v3848_v34 = vld [vmem:[%s4515_s15 + $0x5f4] ss:$8 sps:$4 sm:$0xff]   ;;  %v3843_v35 = vld [vmem:[%s4515_s15 + $0xf0] ss:$8 sps:$4 sm:$0xff]  }
 0x12f   : > { %2719 = vmatprep.subr.bf16.mxu0 %v3764_v36  ;;  %2175 = vmatprep.mubr.bf16.mxu1 %v1816_v37  ;;  %v3846_v36 = vld [vmem:[%s4515_s15 + $0x5f0] ss:$8 sps:$4 sm:$0xff]   ;;  %v1815_v37 = vpack.c.b16 %v4627_v56, %v4627_v56 }
 0x130   : > { %2749 = vmatprep.mubr.bf16.mxu0 %v2351_v38  ;;  %v2350_v38 = vpack.c.b16 %v4685_v50, %v4685_v50  ;;  %v2779_v50 = vld [vmem:[%s1199_s20] sm:$0x3] (!%p3439_p6) }
 0x131   : > { %2146 = vmatpush1.bf16.msra.mxu1 %v3759_v22 }
 0x132   : > { %2720 = vmatpush1.bf16.msra.mxu0 %v3762_v39  ;;  %2147 = vmatprep.subr.bf16.mxu1 %v3767_v40 }
 0x133   : > { %2721 = vmatprep.subr.bf16.mxu0 %v3770_v41 }
 0x135   : > { %2148 = vmatpush1.bf16.msra.mxu1 %v3765_v52 }
 0x136   : > { %2722 = vmatpush1.bf16.msra.mxu0 %v3768_v42  ;;  %2149 = vmatprep.subr.bf16.mxu1 %v3773_v43 }
 0x137   : > { %2723 = vmatprep.subr.bf16.mxu0 %v3776_v44 }
 0x139   : > { %2150 = vmatpush1.bf16.msra.mxu1 %v3771_v45 }
 0x13a   : > { %2724 = vmatpush1.bf16.msra.mxu0 %v3774_v46  ;;  %2151 = vmatprep.subr.bf16.mxu1 %v3779_v47 }
 0x13b   : > { %2725 = vmatprep.subr.bf16.mxu0 %v3782_v49  ;;  %v2760_v49 = vld [vmem:[#allocation2] sm:$0xf] }
 0x13d   : > { %2152 = vmatpush1.bf16.msra.mxu1 %v3777_v51 }
 0x13e   : > { %2726 = vmatpush1.bf16.msra.mxu0 %v3780_v53  ;;  %2153 = vmatprep.subr.bf16.mxu1 %v3785_v55  ;;  %v2783_v53 = vsub.s32 (!%p3439_p6), 0, %v4561_v48  ;;  %v2787_v55 = vsub.s32 (!%p3439_p6), 1, %v4561_v48 }
 0x13f   : > { %2727 = vmatprep.subr.bf16.mxu0 %v3788_v57  ;;  %v2799_v57 = vld [vmem:[%s1204_s18] sm:$0x3] (!%p3439_p6) }
 0x141   : > { %2154 = vmatpush1.bf16.msra.mxu1 %v3783_v58  ;;  %v2819_v58 = vld [vmem:[%s1154_s25] sm:$0x3] (!%p3439_p6) }
 0x142   : > { %2728 = vmatpush1.bf16.msra.mxu0 %v3786_v59  ;;  %2155 = vmatprep.subr.bf16.mxu1 %v3791_v60  ;;  %v2820_v59 = vld [vmem:[%s1154_s25 + $0x2] sm:$0x3] (!%p3439_p6)  ;;  %v2784_v60 = vrot.slane (!%p3439_p6), %v2779_v50, %v2783_v53 }
 0x143   : > { %2729 = vmatprep.subr.bf16.mxu0 %v3794_v61  ;;  %v2788_v61 = vrot.slane (!%p3439_p6), %v2779_v50, %v2787_v55 }
 0x145   : > { %2156 = vmatpush1.bf16.msra.mxu1 %v3789_v62  ;;  %v2804_v62 = vrot.slane (!%p3439_p6), %v2799_v57, %v2783_v53 }
 0x146   : > { %2730 = vmatpush1.bf16.msra.mxu0 %v3792_v63  ;;  %2157 = vmatprep.subr.bf16.mxu1 %v3797_v0  ;;  %v2808_v63 = vrot.slane (!%p3439_p6), %v2799_v57, %v2787_v55  ;;  %v2821_v0 = vunpack.c.l.bf16 (!%p3439_p6), %v2819_v58 }
 0x147   : > { %2731 = vmatprep.subr.bf16.mxu0 %v3800_v1  ;;  %v2822_v1 = vunpack.c.l.bf16 (!%p3439_p6), %v2820_v59 }
 0x149   : > { %2158 = vmatpush1.bf16.msra.mxu1 %v3795_v2  ;;  %v2789_v2 = vcombine.low (!%p3439_p6), %v2784_v60, %v2788_v61 }
 0x14a   : > { %2732 = vmatpush1.bf16.msra.mxu0 %v3798_v3  ;;  %2159 = vmatprep.subr.bf16.mxu1 %v3803_v4  ;;  %v2809_v3 = vcombine.low (!%p3439_p6), %v2804_v62, %v2808_v63 }
 0x14b   : > { %2733 = vmatprep.subr.bf16.mxu0 %v3806_v5  ;;  %v2829_v5 = vrot.slane (!%p3439_p6), %v2822_v1, 7 }
 0x14d   : > { %2160 = vmatpush1.bf16.msra.mxu1 %v3801_v6  ;;  %v3941_v6 = vmov (!%p3439_p6), 1966171168  }
 0x14e   : > { %2734 = vmatpush1.bf16.msra.mxu0 %v3804_v7  ;;  %2161 = vmatprep.subr.bf16.mxu1 %v3809_v8  ;;  %v2842_v7 = vunpack.c.l.s4 (!%p3439_p6), %v3941_v6  ;;  %v2796_v8 = vrot.slane (!%p3439_p6), %v2789_v2, %v4569_v54 }
 0x14f   : > { %2735 = vmatprep.subr.bf16.mxu0 %v3812_v9  ;;  %v2816_v9 = vrot.slane (!%p3439_p6), %v2809_v3, %v4569_v54 }
 0x151   : > { %2162 = vmatpush1.bf16.msra.mxu1 %v3807_v10  ;;  %v2830_v10 = vsel (!%p3439_p6), %vm1389_vm0, %v2829_v5, %v2821_v0 }
 0x152   : > { %2736 = vmatpush1.bf16.msra.mxu0 %v3810_v11  ;;  %2163 = vmatprep.subr.bf16.mxu1 %v3815_v12  ;;  %v2832_v12 = vsel (!%p3439_p6), %vm2831_vm1, %v2829_v5, %v2830_v10 }
 0x153   : > { %2737 = vmatprep.subr.bf16.mxu0 %v3818_v13  ;;  %v2843_v13 = vunpack.c.0.s8 (!%p3439_p6), %v2842_v7 }
 0x155   : > { %2164 = vmatpush1.bf16.msra.mxu1 %v3813_v14  ;;  %v2834_v14 = vsel (!%p3439_p6), %vm2833_vm2, %v2829_v5, %v2832_v12 }
 0x156   : > { %2738 = vmatpush1.bf16.msra.mxu0 %v3816_v15  ;;  %2165 = vmatprep.subr.bf16.mxu1 %v3821_v16  ;;  %v2836_v16 = vsel (!%p3439_p6), %vm2835_vm3, %v2829_v5, %v2834_v14 }
 0x157   : > { %2739 = vmatprep.subr.bf16.mxu0 %v3824_v17 }
 0x159   : > { %2166 = vmatpush1.bf16.msra.mxu1 %v3819_v18  ;;  %v2846_v18 = vsub.s32 (!%p3439_p6), %v2843_v13, %v4561_v48 }
 0x15a   : > { %2740 = vmatpush1.bf16.msra.mxu0 %v3822_v19  ;;  %2167 = vmatprep.subr.bf16.mxu1 %v3827_v20 }
 0x15b   : > { %2741 = vmatprep.subr.bf16.mxu0 %v3830_v21 }
 0x15d   : > { %2168 = vmatpush1.bf16.msra.mxu1 %v3825_v23 }
 0x15e   : > { %2742 = vmatpush1.bf16.msra.mxu0 %v3828_v24  ;;  %2169 = vmatprep.subr.bf16.mxu1 %v3833_v25 }
 0x15f   : > { %2743 = vmatprep.subr.bf16.mxu0 %v3836_v26 }
 0x161   : > { %2170 = vmatpush1.bf16.msra.mxu1 %v3831_v27 }
 0x162   : > { %2744 = vmatpush1.bf16.msra.mxu0 %v3834_v28  ;;  %2171 = vmatprep.subr.bf16.mxu1 %v3839_v29  ;;  %v2916_v29 = vld [vmem:[%s4519_s29] sm:$0x3] (!%p3439_p6) }
 0x163   : > { %2745 = vmatprep.subr.bf16.mxu0 %v3842_v30 }
 0x165   : > { %2172 = vmatpush1.bf16.msra.mxu1 %v3837_v31 }
 0x166   : > { %2746 = vmatpush1.bf16.msra.mxu0 %v3840_v32  ;;  %2173 = vmatprep.subr.bf16.mxu1 %v3845_v33  ;;  %v2919_v32 = vld [vmem:[%s4519_s29 + $0x2] sm:$0x3] (!%p3439_p6) }
 0x167   : > { %2747 = vmatprep.subr.bf16.mxu0 %v3848_v34 }
 0x169   : > { %2174 = vmatpush1.bf16.msra.mxu1 %v3843_v35 }
 0x16a   : > { %2748 = vmatpush1.bf16.msra.mxu0 %v3846_v36 }
 0x16c   : > { %2176 = vmatmul.mubr.bf16.vlgmr.msra.gmra.mrb[0].mxu1 %v1815_v37 }
 0x16d   : > { %2750 = vmatmul.mubr.bf16.vlgmr.msra.gmra.mrb[0].mxu0 %v2350_v38 }
 0x23f   : > { %v2177_v22 = vpop.f32.mrb[0].mxu1 }
 0x240   : > { %v2751_v39 = vpop.f32.mrb[0].mxu0  ;;  %v2179_v41 = vpop.f32.mrb[1].mxu1 }
 0x241   : > { %v3447_v40 = vadd.f32 %v2751_v39, %v2177_v22  ;;  %v2753_v52 = vpop.f32.mrb[1].mxu0  ;;  %v2181_v43 = vpop.f32.mrb[2].mxu1 }
 0x242   : > { %v3448_v42 = vadd.f32 %v2753_v52, %v2179_v41  ;;  %v2755_v44 = vpop.f32.mrb[2].mxu0  ;;  %v2182_v45 = vpop.f32.mrb[3].mxu1 }
 0x243   : > { %v2756_v46 = vpop.f32.mrb[3].mxu0 }
 0x244   : > { %v2763_v47 = vcombine.low %v3447_v40, %v3448_v42  ;;  %2777 = sbr.rel (%p3439_p6) target bundleno = 616 (0x268), region = 158 }
 0x246   : > { %v2770_v56 = vrot.slane %v2763_v47, %v4569_v54 }
 0x248   : > { %v2772_v51 = vadd.f32 %v2770_v56, %v2760_v49 }
 0x24a   : > { %2773 = vst [vmem:[#allocation2] sm:$0xf] %v2772_v51 }
 0x251   : > { %v2778_v4 = vld [vmem:[#allocation2] sm:$0xf] }
 0x252   : > { %v2798_v11 = vmul.f32 %v2796_v8, %v2778_v4 }
 0x254   : > { %v2818_v15 = vadd.f32 %v2816_v9, %v2798_v11 }
 0x256   : > { %v2838_v17 = vadd.f32 %v2836_v16, %v2818_v15 }
 0x258   : > { %v2839_v19 = vmax.f32 %v2838_v17, 0.0 }
 0x25a   : > { %v2847_v20 = vrot.slane %v2839_v19, %v2846_v18 }
 0x25c   : > { %v2852_v54 = vrot.slane %v2847_v20, %v2783_v53  ;;  %v2856_v21 = vrot.slane %v2847_v20, %v2787_v55  ;;  %v2848_v23 = vcombine.high %v2847_v20, %v2847_v20 }
 0x25e   : > { %v3440_v25 = vpack.c.bf16 %v2856_v21, %v2852_v54  ;;  %v2860_v48 = vrot.slane %v2848_v23, %v2783_v53  ;;  %v2864_v26 = vrot.slane %v2848_v23, %v2787_v55 }
 0x260   : > { %v2884_v27 = vrot.slane %v3440_v25, %v2846_v18  ;;  %v3441_v28 = vpack.c.bf16 %v2864_v26, %v2860_v48 }
 0x262   : > { %v2891_v30 = vrot.slane %v2884_v27, %v2846_v18  ;;  %v2899_v31 = vrot.slane %v3441_v28, %v2846_v18 }
 0x264   : > { %v2917_v33 = vsel %vm2915_vm9, %v2891_v30, %v2916_v29  ;;  %v2906_v34 = vrot.slane %v2899_v31, %v2846_v18 }
 0x265   : > { %2918 = vst [vmem:[%s4519_s29] sm:$0x3] %v2917_v33 }
 0x266   : > { %v2920_v35 = vsel %vm2915_vm9, %v2906_v34, %v2919_v32 }
 0x267   : > { %2921 = vst [vmem:[%s4519_s29 + $0x2] sm:$0x3] %v2920_v35 }
 0x268 PF: > { %2928 = sbr.rel (!%p4076_p13) target bundleno = 624 (0x270), region = 162  ;;  %s2932_s30 = scalar_lea.vmem (%p4076_p13), %s4872_s5, %s4499_s14 }
 0x26c   : > { %v2948_v36 = vld [vmem:[%s4519_s29] sm:$0x3] (%p4076_p13) }
 0x26d   : > { %2949 = vst [vmem:[%s2932_s30] sm:$0x3] (%p4076_p13), %v2948_v36 }
 0x26e   : > { %v2950_v37 = vld [vmem:[%s4519_s29 + $0x2] sm:$0x3] (%p4076_p13) }
 0x26f   : > { %2951 = vst [vmem:[%s2932_s30 + $0x4] sm:$0x3] %v2950_v37 }
 0x270 PF: > { %s15_s28 = sadd.s32 1, %s3937_s28   ;;  %s4888_s23 = sld [smem:[#allocation12_spill]] }
 0x271   : > { %p12_p7 = scmp.ge.s32.totalorder %s15_s28, 8   ;;  %s4889_s8 = sld [smem:[#allocation11_spill]] }
 0x272   : > { %s4890_s22 = sld [smem:[#allocation7_spill]]  ;;  %s4891_s11 = sld [smem:[#allocation10_spill]] }
 0x273   : > { %s4892_s16 = sld [smem:[#allocation8_spill]]  ;;  %s4893_s17 = sld [smem:[#allocation9_spill]] }
 0x274   : > { %s4894_s18 = smov %s3901_s19  ;;  %s4896_s20 = smov %s3909_s21 }
 0x275   : > { %s4899_s24 = smov %s3929_s26  ;;  %s4900_s25 = smov %s3933_s27 }
 0x276   : > { %s4895_s19 = smov %s4888_s23  ;;  %14 = sbr.rel (!%p12_p7) target bundleno = 6 (0x6), region = 251 }
 0x277   : > { %s4897_s21 = smov %s4889_s8 }
 0x278   : > { %s4898_s23 = smov %s4891_s11 }
 0x279   : > { %s4901_s26 = smov %s4892_s16  ;;  %s4902_s27 = smov %s4893_s17 }

// kernel: resnet_forward.24
= control target key start
LH: loop header
LB: loop body
LE: loop exit
PB: predicated region body
PF: predicated region fallthrough
CT: control target
= control target key end

     0   :  { %v5960_v36 = vmov 1966171168   ;;  %v603_v38 = vlaneseq  ;;  %s7829_s1 = inlined_call_operand.vmem [shape: bf16[2304,512], index: 1, kind: input, shape index: {}]   ;;  %s7830_s0 = inlined_call_operand.vmem [shape: bf16[2,2304], index: 0, kind: input, shape index: {}]   ;;  %s7831_s2 = inlined_call_operand.vmem [shape: f32[1,512], index: 2, kind: input, shape index: {}]   ;;  %s7832_s3 = inlined_call_operand.vmem [shape: f32[1,512], index: 3, kind: input, shape index: {}]   ;;  %s7833_s4 = inlined_call_operand.vmem [shape: bf16[2,512], index: 4, kind: output, shape index: {}]  }
   0x1   :  { %v5094_v0 = vld [vmem:[%s7829_s1 + $0x4] ss:$16 sps:$4 sm:$0xff]   ;;  %v5096_v1 = vld [vmem:[%s7829_s1 + $0xc] ss:$16 sps:$4 sm:$0xff]   ;;  %v5098_v2 = vld [vmem:[%s7829_s1] ss:$16 sps:$4 sm:$0xff]   ;;  %v601_v37 = vunpack.c.l.s4 %v5960_v36 }
   0x2   :  { %3617 = vmatprep.subr.bf16.mxu0 %v5094_v0  ;;  %v5099_v3 = vld [vmem:[%s7829_s1 + $0x8] ss:$16 sps:$4 sm:$0xff]   ;;  %3986 = vmatprep.subr.bf16.mxu1 %v5096_v1  ;;  %v5100_v4 = vld [vmem:[%s7829_s1 + $0x24] ss:$16 sps:$4 sm:$0xff]   ;;  %v5102_v5 = vld [vmem:[%s7829_s1 + $0x2c] ss:$16 sps:$4 sm:$0xff]  }
   0x3   :  { %3618 = vmatpush1.bf16.msra.mxu0 %v5098_v2  ;;  %3987 = vmatpush1.bf16.msra.mxu1 %v5099_v3  ;;  %v5104_v6 = vld [vmem:[%s7829_s1 + $0x20] ss:$16 sps:$4 sm:$0xff]   ;;  %v5105_v7 = vld [vmem:[%s7829_s1 + $0x28] ss:$16 sps:$4 sm:$0xff]   ;;  %v5106_v8 = vld [vmem:[%s7829_s1 + $0x44] ss:$16 sps:$4 sm:$0xff]   ;;  %v602_v42 = vunpack.c.0.s8 %v601_v37 }
   0x4   :  { %3619 = vmatprep.subr.bf16.mxu0 %v5100_v4  ;;  %3988 = vmatprep.subr.bf16.mxu1 %v5102_v5  ;;  %v5108_v9 = vld [vmem:[%s7829_s1 + $0x4c] ss:$16 sps:$4 sm:$0xff]   ;;  %v5110_v10 = vld [vmem:[%s7829_s1 + $0x40] ss:$16 sps:$4 sm:$0xff]   ;;  %v5111_v11 = vld [vmem:[%s7829_s1 + $0x48] ss:$16 sps:$4 sm:$0xff]  }
   0x5   :  { %v5112_v12 = vld [vmem:[%s7829_s1 + $0x64] ss:$16 sps:$4 sm:$0xff]   ;;  %v5114_v13 = vld [vmem:[%s7829_s1 + $0x6c] ss:$16 sps:$4 sm:$0xff]   ;;  %v5116_v14 = vld [vmem:[%s7829_s1 + $0x60] ss:$16 sps:$4 sm:$0xff]  }
   0x6   :  { %v5117_v15 = vld [vmem:[%s7829_s1 + $0x68] ss:$16 sps:$4 sm:$0xff]   ;;  %v5118_v16 = vld [vmem:[%s7829_s1 + $0x84] ss:$16 sps:$4 sm:$0xff]   ;;  %v5120_v17 = vld [vmem:[%s7829_s1 + $0x8c] ss:$16 sps:$4 sm:$0xff]  }
   0x7   :  { %3620 = vmatpush1.bf16.msra.mxu0 %v5104_v6  ;;  %3989 = vmatpush1.bf16.msra.mxu1 %v5105_v7  ;;  %v5122_v18 = vld [vmem:[%s7829_s1 + $0x80] ss:$16 sps:$4 sm:$0xff]   ;;  %v5123_v19 = vld [vmem:[%s7829_s1 + $0x88] ss:$16 sps:$4 sm:$0xff]   ;;  %v5124_v20 = vld [vmem:[%s7829_s1 + $0xa4] ss:$16 sps:$4 sm:$0xff]  }
   0x8   :  { %3621 = vmatprep.subr.bf16.mxu0 %v5106_v8  ;;  %3990 = vmatprep.subr.bf16.mxu1 %v5108_v9  ;;  %v5126_v21 = vld [vmem:[%s7829_s1 + $0xac] ss:$16 sps:$4 sm:$0xff]   ;;  %v5128_v22 = vld [vmem:[%s7829_s1 + $0xa0] ss:$16 sps:$4 sm:$0xff]   ;;  %v5129_v23 = vld [vmem:[%s7829_s1 + $0xa8] ss:$16 sps:$4 sm:$0xff]  }
   0x9   :  { %v5130_v24 = vld [vmem:[%s7829_s1 + $0xc4] ss:$16 sps:$4 sm:$0xff]   ;;  %v5132_v25 = vld [vmem:[%s7829_s1 + $0xcc] ss:$16 sps:$4 sm:$0xff]   ;;  %v5134_v26 = vld [vmem:[%s7829_s1 + $0xc0] ss:$16 sps:$4 sm:$0xff]  }
   0xa   :  { %v5135_v27 = vld [vmem:[%s7829_s1 + $0xc8] ss:$16 sps:$4 sm:$0xff]   ;;  %v5136_v28 = vld [vmem:[%s7829_s1 + $0xe4] ss:$16 sps:$4 sm:$0xff]   ;;  %v5138_v29 = vld [vmem:[%s7829_s1 + $0xec] ss:$16 sps:$4 sm:$0xff]  }
   0xb   :  { %3622 = vmatpush1.bf16.msra.mxu0 %v5110_v10  ;;  %3991 = vmatpush1.bf16.msra.mxu1 %v5111_v11  ;;  %v5140_v30 = vld [vmem:[%s7829_s1 + $0xe0] ss:$16 sps:$4 sm:$0xff]   ;;  %v5141_v31 = vld [vmem:[%s7829_s1 + $0xe8] ss:$16 sps:$4 sm:$0xff]   ;;  %v5142_v32 = vld [vmem:[%s7829_s1 + $0x104] ss:$16 sps:$4 sm:$0xff]  }
   0xc   :  { %3623 = vmatprep.subr.bf16.mxu0 %v5112_v12  ;;  %3992 = vmatprep.subr.bf16.mxu1 %v5114_v13  ;;  %v5144_v33 = vld [vmem:[%s7829_s1 + $0x10c] ss:$16 sps:$4 sm:$0xff]   ;;  %v5146_v34 = vld [vmem:[%s7829_s1 + $0x100] ss:$16 sps:$4 sm:$0xff]   ;;  %v5147_v35 = vld [vmem:[%s7829_s1 + $0x108] ss:$16 sps:$4 sm:$0xff]  }
   0xd   :  { %v5148_v39 = vld [vmem:[%s7829_s1 + $0x124] ss:$16 sps:$4 sm:$0xff]   ;;  %v5150_v40 = vld [vmem:[%s7829_s1 + $0x12c] ss:$16 sps:$4 sm:$0xff]   ;;  %v5152_v41 = vld [vmem:[%s7829_s1 + $0x120] ss:$16 sps:$4 sm:$0xff]  }
   0xe   :  { %v6103_v43 = vshrl.u32 %v603_v38, 7  ;;  %v5153_v44 = vld [vmem:[%s7829_s1 + $0x128] ss:$16 sps:$4 sm:$0xff]   ;;  %v5154_v45 = vld [vmem:[%s7829_s1 + $0x144] ss:$16 sps:$4 sm:$0xff]  }
   0xf   :  { %3624 = vmatpush1.bf16.msra.mxu0 %v5116_v14  ;;  %3993 = vmatpush1.bf16.msra.mxu1 %v5117_v15  ;;  %v5156_v46 = vld [vmem:[%s7829_s1 + $0x14c] ss:$16 sps:$4 sm:$0xff]   ;;  %v5158_v47 = vld [vmem:[%s7829_s1 + $0x140] ss:$16 sps:$4 sm:$0xff]   ;;  %v5159_v48 = vld [vmem:[%s7829_s1 + $0x148] ss:$16 sps:$4 sm:$0xff]  }
  0x10   :  { %3625 = vmatprep.subr.bf16.mxu0 %v5118_v16  ;;  %3994 = vmatprep.subr.bf16.mxu1 %v5120_v17  ;;  %v6121_v49 = vsub.s32 %v602_v42, %v6103_v43  ;;  %v5160_v50 = vld [vmem:[%s7829_s1 + $0x164] ss:$16 sps:$4 sm:$0xff]   ;;  %v5162_v51 = vld [vmem:[%s7829_s1 + $0x16c] ss:$16 sps:$4 sm:$0xff]   ;;  %v5164_v53 = vld [vmem:[%s7829_s1 + $0x160] ss:$16 sps:$4 sm:$0xff]  }
  0x11   :  { %v6132_v52 = vld [vmem:[%s7830_s0] sm:$0xff]  ;;  %v5165_v55 = vld [vmem:[%s7829_s1 + $0x168] ss:$16 sps:$4 sm:$0xff]   ;;  %v5168_v57 = vld [vmem:[%s7829_s1 + $0x18c] ss:$16 sps:$4 sm:$0xff]  }
  0x12   :  { %v606_v54 = vrot.slane %v6132_v52, %v6121_v49  ;;  %v5166_v56 = vld [vmem:[%s7829_s1 + $0x184] ss:$16 sps:$4 sm:$0xff]   ;;  %v5170_v59 = vld [vmem:[%s7829_s1 + $0x180] ss:$16 sps:$4 sm:$0xff]   ;;  %v5171_v61 = vld [vmem:[%s7829_s1 + $0x188] ss:$16 sps:$4 sm:$0xff]  }
  0x13   :  { %3626 = vmatpush1.bf16.msra.mxu0 %v5122_v18  ;;  %3995 = vmatpush1.bf16.msra.mxu1 %v5123_v19  ;;  %v5172_v62 = vld [vmem:[%s7829_s1 + $0x1a4] ss:$16 sps:$4 sm:$0xff]   ;;  %v5174_v63 = vld [vmem:[%s7829_s1 + $0x1ac] ss:$16 sps:$4 sm:$0xff]   ;;  %v5176_v0 = vld [vmem:[%s7829_s1 + $0x1a0] ss:$16 sps:$4 sm:$0xff]  }
  0x14   :  { %3627 = vmatprep.subr.bf16.mxu0 %v5124_v20  ;;  %3996 = vmatprep.subr.bf16.mxu1 %v5126_v21  ;;  %v614_v58 = vcombine.high %v606_v54, %v606_v54  ;;  %v5177_v1 = vld [vmem:[%s7829_s1 + $0x1a8] ss:$16 sps:$4 sm:$0xff]   ;;  %v5178_v2 = vld [vmem:[%s7829_s1 + $0x1c4] ss:$16 sps:$4 sm:$0xff]   ;;  %v5180_v3 = vld [vmem:[%s7829_s1 + $0x1cc] ss:$16 sps:$4 sm:$0xff]   ;;  %v6201_v13 = vrot.slane %v606_v54, %v6121_v49 }
  0x15   :  { %v5182_v4 = vld [vmem:[%s7829_s1 + $0x1c0] ss:$16 sps:$4 sm:$0xff]   ;;  %v5183_v5 = vld [vmem:[%s7829_s1 + $0x1c8] ss:$16 sps:$4 sm:$0xff]   ;;  %v5184_v6 = vld [vmem:[%s7829_s1 + $0x1e4] ss:$16 sps:$4 sm:$0xff]  }
  0x16   :  { %v636_v60 = vrot.slane %v614_v58, %v6121_v49  ;;  %v5186_v7 = vld [vmem:[%s7829_s1 + $0x1ec] ss:$16 sps:$4 sm:$0xff]   ;;  %v5188_v8 = vld [vmem:[%s7829_s1 + $0x1e0] ss:$16 sps:$4 sm:$0xff]   ;;  %v5189_v9 = vld [vmem:[%s7829_s1 + $0x1e8] ss:$16 sps:$4 sm:$0xff]  }
  0x17   :  { %3628 = vmatpush1.bf16.msra.mxu0 %v5128_v22  ;;  %3997 = vmatpush1.bf16.msra.mxu1 %v5129_v23  ;;  %v5192_v10 = vld [vmem:[%s7829_s1 + $0x204] ss:$16 sps:$4 sm:$0xff]   ;;  %v5195_v11 = vld [vmem:[%s7829_s1 + $0x20c] ss:$16 sps:$4 sm:$0xff]   ;;  %v5190_v12 = vld [vmem:[%s7829_s1 + $0x200] ss:$16 sps:$4 sm:$0xff]  }
  0x18   :  { %3629 = vmatprep.subr.bf16.mxu0 %v5130_v24  ;;  %3998 = vmatprep.subr.bf16.mxu1 %v5132_v25  ;;  %v5193_v14 = vld [vmem:[%s7829_s1 + $0x208] ss:$16 sps:$4 sm:$0xff]   ;;  %v5198_v15 = vld [vmem:[%s7829_s1 + $0x224] ss:$16 sps:$4 sm:$0xff]   ;;  %v5201_v16 = vld [vmem:[%s7829_s1 + $0x22c] ss:$16 sps:$4 sm:$0xff]   ;;  %v646_v17 = vcombine.high %v636_v60, %v636_v60 }
  0x19   :  { %3649 = vmatprep.mubr.bf16.mxu0 %v636_v60  ;;  %4018 = vmatprep.mubr.bf16.mxu1 %v636_v60  ;;  %v5196_v18 = vld [vmem:[%s7829_s1 + $0x220] ss:$16 sps:$4 sm:$0xff]   ;;  %v5199_v19 = vld [vmem:[%s7829_s1 + $0x228] ss:$16 sps:$4 sm:$0xff]   ;;  %v5204_v20 = vld [vmem:[%s7829_s1 + $0x244] ss:$16 sps:$4 sm:$0xff]  }
  0x1a   :  { %v5207_v21 = vld [vmem:[%s7829_s1 + $0x24c] ss:$16 sps:$4 sm:$0xff]   ;;  %v5202_v22 = vld [vmem:[%s7829_s1 + $0x240] ss:$16 sps:$4 sm:$0xff]   ;;  %v5205_v23 = vld [vmem:[%s7829_s1 + $0x248] ss:$16 sps:$4 sm:$0xff]  }
  0x1b   :  { %3630 = vmatpush1.bf16.msra.mxu0 %v5134_v26  ;;  %3999 = vmatpush1.bf16.msra.mxu1 %v5135_v27  ;;  %v5210_v24 = vld [vmem:[%s7829_s1 + $0x264] ss:$16 sps:$4 sm:$0xff]   ;;  %v5213_v25 = vld [vmem:[%s7829_s1 + $0x26c] ss:$16 sps:$4 sm:$0xff]   ;;  %v5208_v26 = vld [vmem:[%s7829_s1 + $0x260] ss:$16 sps:$4 sm:$0xff]  }
  0x1c   :  { %3631 = vmatprep.subr.bf16.mxu0 %v5136_v28  ;;  %4000 = vmatprep.subr.bf16.mxu1 %v5138_v29  ;;  %v5211_v27 = vld [vmem:[%s7829_s1 + $0x268] ss:$16 sps:$4 sm:$0xff]   ;;  %v5216_v28 = vld [vmem:[%s7829_s1 + $0x284] ss:$16 sps:$4 sm:$0xff]   ;;  %v5219_v29 = vld [vmem:[%s7829_s1 + $0x28c] ss:$16 sps:$4 sm:$0xff]  }
  0x1d   :  { %v5228_v36 = vld [vmem:[%s7829_s1 + $0x2c4] ss:$16 sps:$4 sm:$0xff]   ;;  %v5231_v37 = vld [vmem:[%s7829_s1 + $0x2cc] ss:$16 sps:$4 sm:$0xff]   ;;  %v5226_v38 = vld [vmem:[%s7829_s1 + $0x2c0] ss:$16 sps:$4 sm:$0xff]  }
  0x1e   :  { %v5232_v42 = vld [vmem:[%s7829_s1 + $0x2e0] ss:$16 sps:$4 sm:$0xff]   ;;  %v5247_v54 = vld [vmem:[%s7829_s1 + $0x328] ss:$16 sps:$4 sm:$0xff]   ;;  %v5261_v60 = vld [vmem:[%s7829_s1 + $0x36c] ss:$16 sps:$4 sm:$0xff]  }
  0x1f   :  { %3632 = vmatpush1.bf16.msra.mxu0 %v5140_v30  ;;  %4001 = vmatpush1.bf16.msra.mxu1 %v5141_v31  ;;  %v5214_v30 = vld [vmem:[%s7829_s1 + $0x280] ss:$16 sps:$4 sm:$0xff]   ;;  %v5217_v31 = vld [vmem:[%s7829_s1 + $0x288] ss:$16 sps:$4 sm:$0xff]  }
  0x20   :  { %3633 = vmatprep.subr.bf16.mxu0 %v5142_v32  ;;  %4002 = vmatprep.subr.bf16.mxu1 %v5144_v33  ;;  %v5222_v32 = vld [vmem:[%s7829_s1 + $0x2a4] ss:$16 sps:$4 sm:$0xff]   ;;  %v5225_v33 = vld [vmem:[%s7829_s1 + $0x2ac] ss:$16 sps:$4 sm:$0xff]   ;;  %v5253_v58 = vld [vmem:[%s7829_s1 + $0x348] ss:$16 sps:$4 sm:$0xff]  }
  0x23   :  { %3634 = vmatpush1.bf16.msra.mxu0 %v5146_v34  ;;  %4003 = vmatpush1.bf16.msra.mxu1 %v5147_v35  ;;  %v5220_v34 = vld [vmem:[%s7829_s1 + $0x2a0] ss:$16 sps:$4 sm:$0xff]   ;;  %v5223_v35 = vld [vmem:[%s7829_s1 + $0x2a8] ss:$16 sps:$4 sm:$0xff]  }
  0x24   :  { %3635 = vmatprep.subr.bf16.mxu0 %v5148_v39  ;;  %4004 = vmatprep.subr.bf16.mxu1 %v5150_v40  ;;  %v5229_v39 = vld [vmem:[%s7829_s1 + $0x2c8] ss:$16 sps:$4 sm:$0xff]   ;;  %v5234_v40 = vld [vmem:[%s7829_s1 + $0x2e4] ss:$16 sps:$4 sm:$0xff]  }
  0x27   :  { %3636 = vmatpush1.bf16.msra.mxu0 %v5152_v41  ;;  %4005 = vmatpush1.bf16.msra.mxu1 %v5153_v44  ;;  %v5237_v41 = vld [vmem:[%s7829_s1 + $0x2ec] ss:$16 sps:$4 sm:$0xff]   ;;  %v5235_v44 = vld [vmem:[%s7829_s1 + $0x2e8] ss:$16 sps:$4 sm:$0xff]  }
  0x28   :  { %3637 = vmatprep.subr.bf16.mxu0 %v5154_v45  ;;  %4006 = vmatprep.subr.bf16.mxu1 %v5156_v46  ;;  %v5240_v45 = vld [vmem:[%s7829_s1 + $0x304] ss:$16 sps:$4 sm:$0xff]   ;;  %v5243_v46 = vld [vmem:[%s7829_s1 + $0x30c] ss:$16 sps:$4 sm:$0xff]  }
  0x2b   :  { %3638 = vmatpush1.bf16.msra.mxu0 %v5158_v47  ;;  %4007 = vmatpush1.bf16.msra.mxu1 %v5159_v48  ;;  %v5238_v47 = vld [vmem:[%s7829_s1 + $0x300] ss:$16 sps:$4 sm:$0xff]   ;;  %v5241_v48 = vld [vmem:[%s7829_s1 + $0x308] ss:$16 sps:$4 sm:$0xff]  }
  0x2c   :  { %3639 = vmatprep.subr.bf16.mxu0 %v5160_v50  ;;  %4008 = vmatprep.subr.bf16.mxu1 %v5162_v51  ;;  %v5246_v50 = vld [vmem:[%s7829_s1 + $0x324] ss:$16 sps:$4 sm:$0xff]   ;;  %v5249_v51 = vld [vmem:[%s7829_s1 + $0x32c] ss:$16 sps:$4 sm:$0xff]  }
  0x2f   :  { %3640 = vmatpush1.bf16.msra.mxu0 %v5164_v53  ;;  %4009 = vmatpush1.bf16.msra.mxu1 %v5165_v55  ;;  %v5244_v53 = vld [vmem:[%s7829_s1 + $0x320] ss:$16 sps:$4 sm:$0xff]   ;;  %v5252_v55 = vld [vmem:[%s7829_s1 + $0x344] ss:$16 sps:$4 sm:$0xff]  }
  0x30   :  { %3641 = vmatprep.subr.bf16.mxu0 %v5166_v56  ;;  %4010 = vmatprep.subr.bf16.mxu1 %v5168_v57  ;;  %v5255_v56 = vld [vmem:[%s7829_s1 + $0x34c] ss:$16 sps:$4 sm:$0xff]   ;;  %v5250_v57 = vld [vmem:[%s7829_s1 + $0x340] ss:$16 sps:$4 sm:$0xff]  }
  0x33   :  { %3642 = vmatpush1.bf16.msra.mxu0 %v5170_v59  ;;  %4011 = vmatpush1.bf16.msra.mxu1 %v5171_v61  ;;  %v5258_v59 = vld [vmem:[%s7829_s1 + $0x364] ss:$16 sps:$4 sm:$0xff]   ;;  %v5256_v61 = vld [vmem:[%s7829_s1 + $0x360] ss:$16 sps:$4 sm:$0xff]  }
  0x34   :  { %3643 = vmatprep.subr.bf16.mxu0 %v5172_v62  ;;  %4012 = vmatprep.subr.bf16.mxu1 %v5174_v63  ;;  %v5259_v62 = vld [vmem:[%s7829_s1 + $0x368] ss:$16 sps:$4 sm:$0xff]   ;;  %v5264_v63 = vld [vmem:[%s7829_s1 + $0x384] ss:$16 sps:$4 sm:$0xff]  }
  0x37   :  { %3644 = vmatpush1.bf16.msra.mxu0 %v5176_v0  ;;  %4013 = vmatpush1.bf16.msra.mxu1 %v5177_v1  ;;  %v5267_v0 = vld [vmem:[%s7829_s1 + $0x38c] ss:$16 sps:$4 sm:$0xff]   ;;  %v5262_v1 = vld [vmem:[%s7829_s1 + $0x380] ss:$16 sps:$4 sm:$0xff]  }
  0x38   :  { %3645 = vmatprep.subr.bf16.mxu0 %v5178_v2  ;;  %4014 = vmatprep.subr.bf16.mxu1 %v5180_v3  ;;  %v5265_v2 = vld [vmem:[%s7829_s1 + $0x388] ss:$16 sps:$4 sm:$0xff]   ;;  %v5270_v3 = vld [vmem:[%s7829_s1 + $0x3a4] ss:$16 sps:$4 sm:$0xff]  }
  0x3b   :  { %3646 = vmatpush1.bf16.msra.mxu0 %v5182_v4  ;;  %4015 = vmatpush1.bf16.msra.mxu1 %v5183_v5  ;;  %v5273_v4 = vld [vmem:[%s7829_s1 + $0x3ac] ss:$16 sps:$4 sm:$0xff]   ;;  %v5268_v5 = vld [vmem:[%s7829_s1 + $0x3a0] ss:$16 sps:$4 sm:$0xff]  }
  0x3c   :  { %3647 = vmatprep.subr.bf16.mxu0 %v5184_v6  ;;  %4016 = vmatprep.subr.bf16.mxu1 %v5186_v7  ;;  %v5271_v6 = vld [vmem:[%s7829_s1 + $0x3a8] ss:$16 sps:$4 sm:$0xff]   ;;  %v5276_v7 = vld [vmem:[%s7829_s1 + $0x3c4] ss:$16 sps:$4 sm:$0xff]  }
  0x3f   :  { %3648 = vmatpush1.bf16.msra.mxu0 %v5188_v8  ;;  %4017 = vmatpush1.bf16.msra.mxu1 %v5189_v9  ;;  %v5279_v8 = vld [vmem:[%s7829_s1 + $0x3cc] ss:$16 sps:$4 sm:$0xff]   ;;  %v599_v9 = vcombine.high %v6132_v52, %v6132_v52 }
  0x40   :  { %3658 = vmatprep.subr.bf16.mxu0 %v5192_v10  ;;  %4027 = vmatprep.subr.bf16.mxu1 %v5195_v11  ;;  %v5274_v10 = vld [vmem:[%s7829_s1 + $0x3c0] ss:$16 sps:$4 sm:$0xff]   ;;  %v5277_v11 = vld [vmem:[%s7829_s1 + $0x3c8] ss:$16 sps:$4 sm:$0xff]   ;;  %v5285_v52 = vld [vmem:[%s7829_s1 + $0x3ec] ss:$16 sps:$4 sm:$0xff]  }
  0x42   :  { %3650 = vmatmul.mubr.bf16.vlgmr.msra.gmra.mrb[0].mxu0 %v6201_v13  ;;  %4019 = vmatmul.mubr.bf16.vlgmr.msra.gmra.mrb[0].mxu1 %v6201_v13 }
  0x43   :  { %3659 = vmatpush1.bf16.msra.mxu0 %v5190_v12  ;;  %4028 = vmatpush1.bf16.msra.mxu1 %v5193_v14  ;;  %v5282_v12 = vld [vmem:[%s7829_s1 + $0x3e4] ss:$16 sps:$4 sm:$0xff]   ;;  %v6385_v14 = vrot.slane %v599_v9, %v6121_v49  ;;  %v5361_v9 = vld [vmem:[%s7829_s1 + $0x588] ss:$16 sps:$4 sm:$0xff]  }
  0x44   :  { %3660 = vmatprep.subr.bf16.mxu0 %v5198_v15  ;;  %4029 = vmatprep.subr.bf16.mxu1 %v5201_v16  ;;  %v5280_v15 = vld [vmem:[%s7829_s1 + $0x3e0] ss:$16 sps:$4 sm:$0xff]   ;;  %v5283_v16 = vld [vmem:[%s7829_s1 + $0x3e8] ss:$16 sps:$4 sm:$0xff]  }
  0x45   :  { %3690 = vmatprep.mubr.bf16.mxu0 %v646_v17  ;;  %4059 = vmatprep.mubr.bf16.mxu1 %v646_v17  ;;  %v5288_v17 = vld [vmem:[%s7829_s1 + $0x404] ss:$16 sps:$4 sm:$0xff]  }
  0x47   :  { %3661 = vmatpush1.bf16.msra.mxu0 %v5196_v18  ;;  %4030 = vmatpush1.bf16.msra.mxu1 %v5199_v19  ;;  %v5291_v18 = vld [vmem:[%s7829_s1 + $0x40c] ss:$16 sps:$4 sm:$0xff]   ;;  %v615_v19 = vcombine.high %v6385_v14, %v6385_v14 }
  0x48   :  { %3662 = vmatprep.subr.bf16.mxu0 %v5204_v20  ;;  %4031 = vmatprep.subr.bf16.mxu1 %v5207_v21  ;;  %v5286_v20 = vld [vmem:[%s7829_s1 + $0x400] ss:$16 sps:$4 sm:$0xff]   ;;  %v644_v21 = vcombine.high %v6201_v13, %v6201_v13 }
  0x49   :  { %v5292_v13 = vld [vmem:[%s7829_s1 + $0x420] ss:$16 sps:$4 sm:$0xff]  }
  0x4b   :  { %3663 = vmatpush1.bf16.msra.mxu0 %v5202_v22  ;;  %4032 = vmatpush1.bf16.msra.mxu1 %v5205_v23  ;;  %v5289_v22 = vld [vmem:[%s7829_s1 + $0x408] ss:$16 sps:$4 sm:$0xff]   ;;  %v5294_v23 = vld [vmem:[%s7829_s1 + $0x424] ss:$16 sps:$4 sm:$0xff]  }
  0x4c   :  { %3664 = vmatprep.subr.bf16.mxu0 %v5210_v24  ;;  %4033 = vmatprep.subr.bf16.mxu1 %v5213_v25  ;;  %v5297_v24 = vld [vmem:[%s7829_s1 + $0x42c] ss:$16 sps:$4 sm:$0xff]   ;;  %v6416_v25 = vrot.slane %v615_v19, %v6121_v49  ;;  %v5378_v19 = vld [vmem:[%s7829_s1 + $0x5e4] ss:$16 sps:$4 sm:$0xff]  }
  0x4f   :  { %3665 = vmatpush1.bf16.msra.mxu0 %v5208_v26  ;;  %4034 = vmatpush1.bf16.msra.mxu1 %v5211_v27  ;;  %v5295_v26 = vld [vmem:[%s7829_s1 + $0x428] ss:$16 sps:$4 sm:$0xff]   ;;  %v5300_v27 = vld [vmem:[%s7829_s1 + $0x444] ss:$16 sps:$4 sm:$0xff]  }
  0x50   :  { %3666 = vmatprep.subr.bf16.mxu0 %v5216_v28  ;;  %4035 = vmatprep.subr.bf16.mxu1 %v5219_v29  ;;  %v5303_v28 = vld [vmem:[%s7829_s1 + $0x44c] ss:$16 sps:$4 sm:$0xff]   ;;  %v5298_v29 = vld [vmem:[%s7829_s1 + $0x440] ss:$16 sps:$4 sm:$0xff]  }
  0x53   :  { %3667 = vmatpush1.bf16.msra.mxu0 %v5214_v30  ;;  %4036 = vmatpush1.bf16.msra.mxu1 %v5217_v31  ;;  %v5301_v30 = vld [vmem:[%s7829_s1 + $0x448] ss:$16 sps:$4 sm:$0xff]   ;;  %v5306_v31 = vld [vmem:[%s7829_s1 + $0x464] ss:$16 sps:$4 sm:$0xff]  }
  0x54   :  { %3668 = vmatprep.subr.bf16.mxu0 %v5222_v32  ;;  %4037 = vmatprep.subr.bf16.mxu1 %v5225_v33  ;;  %v5309_v32 = vld [vmem:[%s7829_s1 + $0x46c] ss:$16 sps:$4 sm:$0xff]   ;;  %v5304_v33 = vld [vmem:[%s7829_s1 + $0x460] ss:$16 sps:$4 sm:$0xff]  }
  0x57   :  { %3669 = vmatpush1.bf16.msra.mxu0 %v5220_v34  ;;  %4038 = vmatpush1.bf16.msra.mxu1 %v5223_v35  ;;  %v5307_v34 = vld [vmem:[%s7829_s1 + $0x468] ss:$16 sps:$4 sm:$0xff]   ;;  %v5312_v35 = vld [vmem:[%s7829_s1 + $0x484] ss:$16 sps:$4 sm:$0xff]  }
  0x58   :  { %3670 = vmatprep.subr.bf16.mxu0 %v5228_v36  ;;  %4039 = vmatprep.subr.bf16.mxu1 %v5231_v37  ;;  %v5315_v36 = vld [vmem:[%s7829_s1 + $0x48c] ss:$16 sps:$4 sm:$0xff]   ;;  %v5310_v37 = vld [vmem:[%s7829_s1 + $0x480] ss:$16 sps:$4 sm:$0xff]  }
  0x5b   :  { %3671 = vmatpush1.bf16.msra.mxu0 %v5226_v38  ;;  %4040 = vmatpush1.bf16.msra.mxu1 %v5229_v39  ;;  %v5313_v38 = vld [vmem:[%s7829_s1 + $0x488] ss:$16 sps:$4 sm:$0xff]   ;;  %v5318_v39 = vld [vmem:[%s7829_s1 + $0x4a4] ss:$16 sps:$4 sm:$0xff]  }
  0x5c   :  { %3672 = vmatprep.subr.bf16.mxu0 %v5234_v40  ;;  %4041 = vmatprep.subr.bf16.mxu1 %v5237_v41  ;;  %v5321_v40 = vld [vmem:[%s7829_s1 + $0x4ac] ss:$16 sps:$4 sm:$0xff]   ;;  %v5316_v41 = vld [vmem:[%s7829_s1 + $0x4a0] ss:$16 sps:$4 sm:$0xff]  }
  0x5f   :  { %3673 = vmatpush1.bf16.msra.mxu0 %v5232_v42  ;;  %4042 = vmatpush1.bf16.msra.mxu1 %v5235_v44  ;;  %v5319_v42 = vld [vmem:[%s7829_s1 + $0x4a8] ss:$16 sps:$4 sm:$0xff]   ;;  %v5324_v44 = vld [vmem:[%s7829_s1 + $0x4c4] ss:$16 sps:$4 sm:$0xff]  }
  0x60   :  { %3674 = vmatprep.subr.bf16.mxu0 %v5240_v45  ;;  %4043 = vmatprep.subr.bf16.mxu1 %v5243_v46  ;;  %v5327_v45 = vld [vmem:[%s7829_s1 + $0x4cc] ss:$16 sps:$4 sm:$0xff]   ;;  %v5322_v46 = vld [vmem:[%s7829_s1 + $0x4c0] ss:$16 sps:$4 sm:$0xff]  }
  0x63   :  { %3675 = vmatpush1.bf16.msra.mxu0 %v5238_v47  ;;  %4044 = vmatpush1.bf16.msra.mxu1 %v5241_v48  ;;  %v5325_v47 = vld [vmem:[%s7829_s1 + $0x4c8] ss:$16 sps:$4 sm:$0xff]   ;;  %v5330_v48 = vld [vmem:[%s7829_s1 + $0x4e4] ss:$16 sps:$4 sm:$0xff]  }
  0x64   :  { %3676 = vmatprep.subr.bf16.mxu0 %v5246_v50  ;;  %4045 = vmatprep.subr.bf16.mxu1 %v5249_v51  ;;  %v5333_v50 = vld [vmem:[%s7829_s1 + $0x4ec] ss:$16 sps:$4 sm:$0xff]   ;;  %v5328_v51 = vld [vmem:[%s7829_s1 + $0x4e0] ss:$16 sps:$4 sm:$0xff]  }
  0x67   :  { %3677 = vmatpush1.bf16.msra.mxu0 %v5244_v53  ;;  %4046 = vmatpush1.bf16.msra.mxu1 %v5247_v54  ;;  %v5331_v53 = vld [vmem:[%s7829_s1 + $0x4e8] ss:$16 sps:$4 sm:$0xff]   ;;  %v5336_v54 = vld [vmem:[%s7829_s1 + $0x504] ss:$16 sps:$4 sm:$0xff]  }
  0x68   :  { %3678 = vmatprep.subr.bf16.mxu0 %v5252_v55  ;;  %4047 = vmatprep.subr.bf16.mxu1 %v5255_v56  ;;  %v5339_v55 = vld [vmem:[%s7829_s1 + $0x50c] ss:$16 sps:$4 sm:$0xff]   ;;  %v5334_v56 = vld [vmem:[%s7829_s1 + $0x500] ss:$16 sps:$4 sm:$0xff]  }
  0x6b   :  { %3679 = vmatpush1.bf16.msra.mxu0 %v5250_v57  ;;  %4048 = vmatpush1.bf16.msra.mxu1 %v5253_v58  ;;  %v5337_v57 = vld [vmem:[%s7829_s1 + $0x508] ss:$16 sps:$4 sm:$0xff]   ;;  %v5342_v58 = vld [vmem:[%s7829_s1 + $0x524] ss:$16 sps:$4 sm:$0xff]  }
  0x6c   :  { %3680 = vmatprep.subr.bf16.mxu0 %v5258_v59  ;;  %4049 = vmatprep.subr.bf16.mxu1 %v5261_v60  ;;  %v5345_v59 = vld [vmem:[%s7829_s1 + $0x52c] ss:$16 sps:$4 sm:$0xff]   ;;  %v5340_v60 = vld [vmem:[%s7829_s1 + $0x520] ss:$16 sps:$4 sm:$0xff]  }
  0x6f   :  { %3681 = vmatpush1.bf16.msra.mxu0 %v5256_v61  ;;  %4050 = vmatpush1.bf16.msra.mxu1 %v5259_v62  ;;  %v5343_v61 = vld [vmem:[%s7829_s1 + $0x528] ss:$16 sps:$4 sm:$0xff]   ;;  %v5348_v62 = vld [vmem:[%s7829_s1 + $0x544] ss:$16 sps:$4 sm:$0xff]  }
  0x70   :  { %3682 = vmatprep.subr.bf16.mxu0 %v5264_v63  ;;  %4051 = vmatprep.subr.bf16.mxu1 %v5267_v0  ;;  %v5351_v63 = vld [vmem:[%s7829_s1 + $0x54c] ss:$16 sps:$4 sm:$0xff]   ;;  %v5346_v0 = vld [vmem:[%s7829_s1 + $0x540] ss:$16 sps:$4 sm:$0xff]  }
  0x73   :  { %3683 = vmatpush1.bf16.msra.mxu0 %v5262_v1  ;;  %4052 = vmatpush1.bf16.msra.mxu1 %v5265_v2  ;;  %v5349_v1 = vld [vmem:[%s7829_s1 + $0x548] ss:$16 sps:$4 sm:$0xff]   ;;  %v5354_v2 = vld [vmem:[%s7829_s1 + $0x564] ss:$16 sps:$4 sm:$0xff]  }
  0x74   :  { %3684 = vmatprep.subr.bf16.mxu0 %v5270_v3  ;;  %4053 = vmatprep.subr.bf16.mxu1 %v5273_v4  ;;  %v5357_v3 = vld [vmem:[%s7829_s1 + $0x56c] ss:$16 sps:$4 sm:$0xff]   ;;  %v5352_v4 = vld [vmem:[%s7829_s1 + $0x560] ss:$16 sps:$4 sm:$0xff]  }
  0x77   :  { %3685 = vmatpush1.bf16.msra.mxu0 %v5268_v5  ;;  %4054 = vmatpush1.bf16.msra.mxu1 %v5271_v6  ;;  %v5355_v5 = vld [vmem:[%s7829_s1 + $0x568] ss:$16 sps:$4 sm:$0xff]   ;;  %v5360_v6 = vld [vmem:[%s7829_s1 + $0x584] ss:$16 sps:$4 sm:$0xff]  }
  0x78   :  { %3686 = vmatprep.subr.bf16.mxu0 %v5276_v7  ;;  %4055 = vmatprep.subr.bf16.mxu1 %v5279_v8  ;;  %v5363_v7 = vld [vmem:[%s7829_s1 + $0x58c] ss:$16 sps:$4 sm:$0xff]   ;;  %v5358_v8 = vld [vmem:[%s7829_s1 + $0x580] ss:$16 sps:$4 sm:$0xff]  }
  0x7b   :  { %3687 = vmatpush1.bf16.msra.mxu0 %v5274_v10  ;;  %4056 = vmatpush1.bf16.msra.mxu1 %v5277_v11  ;;  %v5366_v10 = vld [vmem:[%s7829_s1 + $0x5a4] ss:$16 sps:$4 sm:$0xff]   ;;  %v5369_v11 = vld [vmem:[%s7829_s1 + $0x5ac] ss:$16 sps:$4 sm:$0xff]  }
  0x7c   :  { %3688 = vmatprep.subr.bf16.mxu0 %v5282_v12  ;;  %4057 = vmatprep.subr.bf16.mxu1 %v5285_v52  ;;  %v5364_v12 = vld [vmem:[%s7829_s1 + $0x5a0] ss:$16 sps:$4 sm:$0xff]   ;;  %v5367_v52 = vld [vmem:[%s7829_s1 + $0x5a8] ss:$16 sps:$4 sm:$0xff]  }
  0x7f   :  { %3689 = vmatpush1.bf16.msra.mxu0 %v5280_v15  ;;  %4058 = vmatpush1.bf16.msra.mxu1 %v5283_v16  ;;  %v5372_v15 = vld [vmem:[%s7829_s1 + $0x5c4] ss:$16 sps:$4 sm:$0xff]   ;;  %v5375_v16 = vld [vmem:[%s7829_s1 + $0x5cc] ss:$16 sps:$4 sm:$0xff]  }
  0x80   :  { %3699 = vmatprep.subr.bf16.mxu0 %v5288_v17  ;;  %4068 = vmatprep.subr.bf16.mxu1 %v5291_v18  ;;  %v5370_v17 = vld [vmem:[%s7829_s1 + $0x5c0] ss:$16 sps:$4 sm:$0xff]   ;;  %v5373_v18 = vld [vmem:[%s7829_s1 + $0x5c8] ss:$16 sps:$4 sm:$0xff]  }
  0x82   :  { %3691 = vmatmul.mubr.bf16.vlgmr.msra.gmra.mrb[0].mxu0 %v644_v21  ;;  %4060 = vmatmul.mubr.bf16.vlgmr.msra.gmra.mrb[0].mxu1 %v644_v21  ;;  %v5376_v21 = vld [vmem:[%s7829_s1 + $0x5e0] ss:$16 sps:$4 sm:$0xff]  }
  0x83   :  { %3700 = vmatpush1.bf16.msra.mxu0 %v5286_v20  ;;  %4069 = vmatpush1.bf16.msra.mxu1 %v5289_v22  ;;  %v5381_v20 = vld [vmem:[%s7829_s1 + $0x5ec] ss:$16 sps:$4 sm:$0xff]   ;;  %v5379_v22 = vld [vmem:[%s7829_s1 + $0x5e8] ss:$16 sps:$4 sm:$0xff]  }
  0x84   :  { %3701 = vmatprep.subr.bf16.mxu0 %v5294_v23  ;;  %4070 = vmatprep.subr.bf16.mxu1 %v5297_v24  ;;  %v5385_v23 = vld [vmem:[%s7829_s1 + $0x604] ss:$16 sps:$4 sm:$0xff]   ;;  %v5388_v24 = vld [vmem:[%s7829_s1 + $0x60c] ss:$16 sps:$4 sm:$0xff]  }
  0x85   :  { %3731 = vmatprep.mubr.bf16.mxu0 %v6416_v25  ;;  %4100 = vmatprep.mubr.bf16.mxu1 %v6416_v25 }
  0x87   :  { %3702 = vmatpush1.bf16.msra.mxu0 %v5292_v13  ;;  %4071 = vmatpush1.bf16.msra.mxu1 %v5295_v26  ;;  %v5383_v13 = vld [vmem:[%s7829_s1 + $0x600] ss:$16 sps:$4 sm:$0xff]   ;;  %v6605_v26 = vrot.slane %v6385_v14, %v6121_v49  ;;  %v647_v14 = vcombine.high %v6416_v25, %v6416_v25  ;;  %v5397_v25 = vld [vmem:[%s7829_s1 + $0x644] ss:$16 sps:$4 sm:$0xff]  }
  0x88   :  { %3703 = vmatprep.subr.bf16.mxu0 %v5300_v27  ;;  %4072 = vmatprep.subr.bf16.mxu1 %v5303_v28  ;;  %v5386_v27 = vld [vmem:[%s7829_s1 + $0x608] ss:$16 sps:$4 sm:$0xff]   ;;  %v5391_v28 = vld [vmem:[%s7829_s1 + $0x624] ss:$16 sps:$4 sm:$0xff]  }
  0x8b   :  { %3704 = vmatpush1.bf16.msra.mxu0 %v5298_v29  ;;  %4073 = vmatpush1.bf16.msra.mxu1 %v5301_v30  ;;  %v5394_v29 = vld [vmem:[%s7829_s1 + $0x62c] ss:$16 sps:$4 sm:$0xff]   ;;  %v5389_v30 = vld [vmem:[%s7829_s1 + $0x620] ss:$16 sps:$4 sm:$0xff]  }
  0x8c   :  { %3705 = vmatprep.subr.bf16.mxu0 %v5306_v31  ;;  %4074 = vmatprep.subr.bf16.mxu1 %v5309_v32  ;;  %v5392_v31 = vld [vmem:[%s7829_s1 + $0x628] ss:$16 sps:$4 sm:$0xff]   ;;  %v5400_v32 = vld [vmem:[%s7829_s1 + $0x64c] ss:$16 sps:$4 sm:$0xff]  }
  0x8f   :  { %3706 = vmatpush1.bf16.msra.mxu0 %v5304_v33  ;;  %4075 = vmatpush1.bf16.msra.mxu1 %v5307_v34  ;;  %v5395_v33 = vld [vmem:[%s7829_s1 + $0x640] ss:$16 sps:$4 sm:$0xff]   ;;  %v5398_v34 = vld [vmem:[%s7829_s1 + $0x648] ss:$16 sps:$4 sm:$0xff]  }
  0x90   :  { %3707 = vmatprep.subr.bf16.mxu0 %v5312_v35  ;;  %4076 = vmatprep.subr.bf16.mxu1 %v5315_v36  ;;  %v5403_v35 = vld [vmem:[%s7829_s1 + $0x664] ss:$16 sps:$4 sm:$0xff]   ;;  %v5406_v36 = vld [vmem:[%s7829_s1 + $0x66c] ss:$16 sps:$4 sm:$0xff]  }
  0x93   :  { %3708 = vmatpush1.bf16.msra.mxu0 %v5310_v37  ;;  %4077 = vmatpush1.bf16.msra.mxu1 %v5313_v38  ;;  %v5401_v37 = vld [vmem:[%s7829_s1 + $0x660] ss:$16 sps:$4 sm:$0xff]   ;;  %v5404_v38 = vld [vmem:[%s7829_s1 + $0x668] ss:$16 sps:$4 sm:$0xff]  }
  0x94   :  { %3709 = vmatprep.subr.bf16.mxu0 %v5318_v39  ;;  %4078 = vmatprep.subr.bf16.mxu1 %v5321_v40  ;;  %v5409_v39 = vld [vmem:[%s7829_s1 + $0x684] ss:$16 sps:$4 sm:$0xff]   ;;  %v5412_v40 = vld [vmem:[%s7829_s1 + $0x68c] ss:$16 sps:$4 sm:$0xff]  }
  0x97   :  { %3710 = vmatpush1.bf16.msra.mxu0 %v5316_v41  ;;  %4079 = vmatpush1.bf16.msra.mxu1 %v5319_v42  ;;  %v5407_v41 = vld [vmem:[%s7829_s1 + $0x680] ss:$16 sps:$4 sm:$0xff]   ;;  %v5410_v42 = vld [vmem:[%s7829_s1 + $0x688] ss:$16 sps:$4 sm:$0xff]  }
  0x98   :  { %3711 = vmatprep.subr.bf16.mxu0 %v5324_v44  ;;  %4080 = vmatprep.subr.bf16.mxu1 %v5327_v45  ;;  %v5415_v44 = vld [vmem:[%s7829_s1 + $0x6a4] ss:$16 sps:$4 sm:$0xff]   ;;  %v5418_v45 = vld [vmem:[%s7829_s1 + $0x6ac] ss:$16 sps:$4 sm:$0xff]  }
  0x9b   :  { %3712 = vmatpush1.bf16.msra.mxu0 %v5322_v46  ;;  %4081 = vmatpush1.bf16.msra.mxu1 %v5325_v47  ;;  %v5413_v46 = vld [vmem:[%s7829_s1 + $0x6a0] ss:$16 sps:$4 sm:$0xff]   ;;  %v5416_v47 = vld [vmem:[%s7829_s1 + $0x6a8] ss:$16 sps:$4 sm:$0xff]  }
  0x9c   :  { %3713 = vmatprep.subr.bf16.mxu0 %v5330_v48  ;;  %4082 = vmatprep.subr.bf16.mxu1 %v5333_v50  ;;  %v5421_v48 = vld [vmem:[%s7829_s1 + $0x6c4] ss:$16 sps:$4 sm:$0xff]   ;;  %v5424_v50 = vld [vmem:[%s7829_s1 + $0x6cc] ss:$16 sps:$4 sm:$0xff]  }
  0x9f   :  { %3714 = vmatpush1.bf16.msra.mxu0 %v5328_v51  ;;  %4083 = vmatpush1.bf16.msra.mxu1 %v5331_v53  ;;  %v5419_v51 = vld [vmem:[%s7829_s1 + $0x6c0] ss:$16 sps:$4 sm:$0xff]   ;;  %v5422_v53 = vld [vmem:[%s7829_s1 + $0x6c8] ss:$16 sps:$4 sm:$0xff]  }
  0xa0   :  { %3715 = vmatprep.subr.bf16.mxu0 %v5336_v54  ;;  %4084 = vmatprep.subr.bf16.mxu1 %v5339_v55  ;;  %v5427_v54 = vld [vmem:[%s7829_s1 + $0x6e4] ss:$16 sps:$4 sm:$0xff]   ;;  %v5430_v55 = vld [vmem:[%s7829_s1 + $0x6ec] ss:$16 sps:$4 sm:$0xff]  }
  0xa3   :  { %3716 = vmatpush1.bf16.msra.mxu0 %v5334_v56  ;;  %4085 = vmatpush1.bf16.msra.mxu1 %v5337_v57  ;;  %v5425_v56 = vld [vmem:[%s7829_s1 + $0x6e0] ss:$16 sps:$4 sm:$0xff]   ;;  %v5428_v57 = vld [vmem:[%s7829_s1 + $0x6e8] ss:$16 sps:$4 sm:$0xff]  }
  0xa4   :  { %3717 = vmatprep.subr.bf16.mxu0 %v5342_v58  ;;  %4086 = vmatprep.subr.bf16.mxu1 %v5345_v59  ;;  %v5433_v58 = vld [vmem:[%s7829_s1 + $0x704] ss:$16 sps:$4 sm:$0xff]   ;;  %v5436_v59 = vld [vmem:[%s7829_s1 + $0x70c] ss:$16 sps:$4 sm:$0xff]  }
  0xa7   :  { %3718 = vmatpush1.bf16.msra.mxu0 %v5340_v60  ;;  %4087 = vmatpush1.bf16.msra.mxu1 %v5343_v61  ;;  %v5431_v60 = vld [vmem:[%s7829_s1 + $0x700] ss:$16 sps:$4 sm:$0xff]   ;;  %v5434_v61 = vld [vmem:[%s7829_s1 + $0x708] ss:$16 sps:$4 sm:$0xff]  }
  0xa8   :  { %3719 = vmatprep.subr.bf16.mxu0 %v5348_v62  ;;  %4088 = vmatprep.subr.bf16.mxu1 %v5351_v63  ;;  %v5439_v62 = vld [vmem:[%s7829_s1 + $0x724] ss:$16 sps:$4 sm:$0xff]   ;;  %v5442_v63 = vld [vmem:[%s7829_s1 + $0x72c] ss:$16 sps:$4 sm:$0xff]  }
  0xab   :  { %3720 = vmatpush1.bf16.msra.mxu0 %v5346_v0  ;;  %4089 = vmatpush1.bf16.msra.mxu1 %v5349_v1  ;;  %v5437_v0 = vld [vmem:[%s7829_s1 + $0x720] ss:$16 sps:$4 sm:$0xff]   ;;  %v5440_v1 = vld [vmem:[%s7829_s1 + $0x728] ss:$16 sps:$4 sm:$0xff]  }
  0xac   :  { %3721 = vmatprep.subr.bf16.mxu0 %v5354_v2  ;;  %4090 = vmatprep.subr.bf16.mxu1 %v5357_v3  ;;  %v5445_v2 = vld [vmem:[%s7829_s1 + $0x744] ss:$16 sps:$4 sm:$0xff]   ;;  %v5448_v3 = vld [vmem:[%s7829_s1 + $0x74c] ss:$16 sps:$4 sm:$0xff]  }
  0xaf   :  { %3722 = vmatpush1.bf16.msra.mxu0 %v5352_v4  ;;  %4091 = vmatpush1.bf16.msra.mxu1 %v5355_v5  ;;  %v5443_v4 = vld [vmem:[%s7829_s1 + $0x740] ss:$16 sps:$4 sm:$0xff]   ;;  %v5446_v5 = vld [vmem:[%s7829_s1 + $0x748] ss:$16 sps:$4 sm:$0xff]  }
  0xb0   :  { %3723 = vmatprep.subr.bf16.mxu0 %v5360_v6  ;;  %4092 = vmatprep.subr.bf16.mxu1 %v5363_v7  ;;  %v5451_v6 = vld [vmem:[%s7829_s1 + $0x764] ss:$16 sps:$4 sm:$0xff]   ;;  %v5454_v7 = vld [vmem:[%s7829_s1 + $0x76c] ss:$16 sps:$4 sm:$0xff]  }
  0xb3   :  { %3724 = vmatpush1.bf16.msra.mxu0 %v5358_v8  ;;  %4093 = vmatpush1.bf16.msra.mxu1 %v5361_v9  ;;  %v5449_v8 = vld [vmem:[%s7829_s1 + $0x760] ss:$16 sps:$4 sm:$0xff]   ;;  %v5452_v9 = vld [vmem:[%s7829_s1 + $0x768] ss:$16 sps:$4 sm:$0xff]  }
  0xb4   :  { %3725 = vmatprep.subr.bf16.mxu0 %v5366_v10  ;;  %4094 = vmatprep.subr.bf16.mxu1 %v5369_v11  ;;  %v5457_v10 = vld [vmem:[%s7829_s1 + $0x784] ss:$16 sps:$4 sm:$0xff]   ;;  %v5460_v11 = vld [vmem:[%s7829_s1 + $0x78c] ss:$16 sps:$4 sm:$0xff]  }
  0xb7   :  { %3726 = vmatpush1.bf16.msra.mxu0 %v5364_v12  ;;  %4095 = vmatpush1.bf16.msra.mxu1 %v5367_v52  ;;  %v5455_v12 = vld [vmem:[%s7829_s1 + $0x780] ss:$16 sps:$4 sm:$0xff]   ;;  %v5458_v52 = vld [vmem:[%s7829_s1 + $0x788] ss:$16 sps:$4 sm:$0xff]  }
  0xb8   :  { %3727 = vmatprep.subr.bf16.mxu0 %v5372_v15  ;;  %4096 = vmatprep.subr.bf16.mxu1 %v5375_v16  ;;  %v5463_v15 = vld [vmem:[%s7829_s1 + $0x7a4] ss:$16 sps:$4 sm:$0xff]   ;;  %v5466_v16 = vld [vmem:[%s7829_s1 + $0x7ac] ss:$16 sps:$4 sm:$0xff]  }
  0xbb   :  { %3728 = vmatpush1.bf16.msra.mxu0 %v5370_v17  ;;  %4097 = vmatpush1.bf16.msra.mxu1 %v5373_v18  ;;  %v5461_v17 = vld [vmem:[%s7829_s1 + $0x7a0] ss:$16 sps:$4 sm:$0xff]   ;;  %v5464_v18 = vld [vmem:[%s7829_s1 + $0x7a8] ss:$16 sps:$4 sm:$0xff]  }
  0xbc   :  { %3729 = vmatprep.subr.bf16.mxu0 %v5378_v19  ;;  %4098 = vmatprep.subr.bf16.mxu1 %v5381_v20  ;;  %v5469_v19 = vld [vmem:[%s7829_s1 + $0x7c4] ss:$16 sps:$4 sm:$0xff]   ;;  %v5472_v20 = vld [vmem:[%s7829_s1 + $0x7cc] ss:$16 sps:$4 sm:$0xff]  }
  0xbf   :  { %3730 = vmatpush1.bf16.msra.mxu0 %v5376_v21  ;;  %4099 = vmatpush1.bf16.msra.mxu1 %v5379_v22  ;;  %v6779_v21 = vld [vmem:[%s7830_s0 + $0x8] sm:$0xff]  ;;  %v5467_v22 = vld [vmem:[%s7829_s1 + $0x7c0] ss:$16 sps:$4 sm:$0xff]  }
  0xc0   :  { %3740 = vmatprep.subr.bf16.mxu0 %v5385_v23  ;;  %4109 = vmatprep.subr.bf16.mxu1 %v5388_v24  ;;  %v5470_v23 = vld [vmem:[%s7829_s1 + $0x7c8] ss:$16 sps:$4 sm:$0xff]   ;;  %v5475_v24 = vld [vmem:[%s7829_s1 + $0x7e4] ss:$16 sps:$4 sm:$0xff]  }
  0xc2   :  { %3732 = vmatmul.mubr.bf16.vlgmr.msra.gmra.mrb[0].mxu0 %v6605_v26  ;;  %4101 = vmatmul.mubr.bf16.vlgmr.msra.gmra.mrb[0].mxu1 %v6605_v26 }
  0xc3   :  { %3741 = vmatpush1.bf16.msra.mxu0 %v5383_v13  ;;  %4110 = vmatpush1.bf16.msra.mxu1 %v5386_v27  ;;  %v5478_v13 = vld [vmem:[%s7829_s1 + $0x7ec] ss:$16 sps:$4 sm:$0xff]   ;;  %v6795_v27 = vrot.slane %v6779_v21, %v6121_v49 }
  0xc4   :  { %3742 = vmatprep.subr.bf16.mxu0 %v5391_v28  ;;  %4111 = vmatprep.subr.bf16.mxu1 %v5394_v29  ;;  %v5473_v28 = vld [vmem:[%s7829_s1 + $0x7e0] ss:$16 sps:$4 sm:$0xff]   ;;  %v5476_v29 = vld [vmem:[%s7829_s1 + $0x7e8] ss:$16 sps:$4 sm:$0xff]  }
  0xc5   :  { %3772 = vmatprep.mubr.bf16.mxu0 %v647_v14  ;;  %4141 = vmatprep.mubr.bf16.mxu1 %v647_v14  ;;  %v5481_v14 = vld [vmem:[%s7829_s1 + $0x804] ss:$16 sps:$4 sm:$0xff]  }
  0xc7   :  { %3743 = vmatpush1.bf16.msra.mxu0 %v5389_v30  ;;  %4112 = vmatpush1.bf16.msra.mxu1 %v5392_v31  ;;  %v5484_v30 = vld [vmem:[%s7829_s1 + $0x80c] ss:$16 sps:$4 sm:$0xff]   ;;  %v663_v31 = vcombine.high %v6795_v27, %v6795_v27 }
  0xc8   :  { %3744 = vmatprep.subr.bf16.mxu0 %v5397_v25  ;;  %4113 = vmatprep.subr.bf16.mxu1 %v5400_v32  ;;  %v645_v25 = vcombine.high %v6605_v26, %v6605_v26  ;;  %v5479_v32 = vld [vmem:[%s7829_s1 + $0x800] ss:$16 sps:$4 sm:$0xff]   ;;  %v5490_v26 = vld [vmem:[%s7829_s1 + $0x82c] ss:$16 sps:$4 sm:$0xff]  }
  0xcb   :  { %3745 = vmatpush1.bf16.msra.mxu0 %v5395_v33  ;;  %4114 = vmatpush1.bf16.msra.mxu1 %v5398_v34  ;;  %v5482_v33 = vld [vmem:[%s7829_s1 + $0x808] ss:$16 sps:$4 sm:$0xff]   ;;  %v5487_v34 = vld [vmem:[%s7829_s1 + $0x824] ss:$16 sps:$4 sm:$0xff]  }
  0xcc   :  { %3746 = vmatprep.subr.bf16.mxu0 %v5403_v35  ;;  %4115 = vmatprep.subr.bf16.mxu1 %v5406_v36  ;;  %v6826_v35 = vrot.slane %v663_v31, %v6121_v49  ;;  %v5485_v36 = vld [vmem:[%s7829_s1 + $0x820] ss:$16 sps:$4 sm:$0xff]   ;;  %v5566_v31 = vld [vmem:[%s7829_s1 + $0x9c8] ss:$16 sps:$4 sm:$0xff]  }
  0xcf   :  { %3747 = vmatpush1.bf16.msra.mxu0 %v5401_v37  ;;  %4116 = vmatpush1.bf16.msra.mxu1 %v5404_v38  ;;  %v5488_v37 = vld [vmem:[%s7829_s1 + $0x828] ss:$16 sps:$4 sm:$0xff]   ;;  %v5493_v38 = vld [vmem:[%s7829_s1 + $0x844] ss:$16 sps:$4 sm:$0xff]  }
  0xd0   :  { %3748 = vmatprep.subr.bf16.mxu0 %v5409_v39  ;;  %4117 = vmatprep.subr.bf16.mxu1 %v5412_v40  ;;  %v5496_v39 = vld [vmem:[%s7829_s1 + $0x84c] ss:$16 sps:$4 sm:$0xff]   ;;  %v5491_v40 = vld [vmem:[%s7829_s1 + $0x840] ss:$16 sps:$4 sm:$0xff]  }
  0xd3   :  { %3749 = vmatpush1.bf16.msra.mxu0 %v5407_v41  ;;  %4118 = vmatpush1.bf16.msra.mxu1 %v5410_v42  ;;  %v5494_v41 = vld [vmem:[%s7829_s1 + $0x848] ss:$16 sps:$4 sm:$0xff]   ;;  %v5499_v42 = vld [vmem:[%s7829_s1 + $0x864] ss:$16 sps:$4 sm:$0xff]  }
  0xd4   :  { %3750 = vmatprep.subr.bf16.mxu0 %v5415_v44  ;;  %4119 = vmatprep.subr.bf16.mxu1 %v5418_v45  ;;  %v5502_v44 = vld [vmem:[%s7829_s1 + $0x86c] ss:$16 sps:$4 sm:$0xff]   ;;  %v5497_v45 = vld [vmem:[%s7829_s1 + $0x860] ss:$16 sps:$4 sm:$0xff]  }
  0xd7   :  { %3751 = vmatpush1.bf16.msra.mxu0 %v5413_v46  ;;  %4120 = vmatpush1.bf16.msra.mxu1 %v5416_v47  ;;  %v5500_v46 = vld [vmem:[%s7829_s1 + $0x868] ss:$16 sps:$4 sm:$0xff]   ;;  %v5505_v47 = vld [vmem:[%s7829_s1 + $0x884] ss:$16 sps:$4 sm:$0xff]  }
  0xd8   :  { %3752 = vmatprep.subr.bf16.mxu0 %v5421_v48  ;;  %4121 = vmatprep.subr.bf16.mxu1 %v5424_v50  ;;  %v5508_v48 = vld [vmem:[%s7829_s1 + $0x88c] ss:$16 sps:$4 sm:$0xff]   ;;  %v5503_v50 = vld [vmem:[%s7829_s1 + $0x880] ss:$16 sps:$4 sm:$0xff]  }
  0xdb   :  { %3753 = vmatpush1.bf16.msra.mxu0 %v5419_v51  ;;  %4122 = vmatpush1.bf16.msra.mxu1 %v5422_v53  ;;  %v5506_v51 = vld [vmem:[%s7829_s1 + $0x888] ss:$16 sps:$4 sm:$0xff]   ;;  %v5511_v53 = vld [vmem:[%s7829_s1 + $0x8a4] ss:$16 sps:$4 sm:$0xff]  }
  0xdc   :  { %3754 = vmatprep.subr.bf16.mxu0 %v5427_v54  ;;  %4123 = vmatprep.subr.bf16.mxu1 %v5430_v55  ;;  %v5514_v54 = vld [vmem:[%s7829_s1 + $0x8ac] ss:$16 sps:$4 sm:$0xff]   ;;  %v5509_v55 = vld [vmem:[%s7829_s1 + $0x8a0] ss:$16 sps:$4 sm:$0xff]  }
  0xdf   :  { %3755 = vmatpush1.bf16.msra.mxu0 %v5425_v56  ;;  %4124 = vmatpush1.bf16.msra.mxu1 %v5428_v57  ;;  %v5512_v56 = vld [vmem:[%s7829_s1 + $0x8a8] ss:$16 sps:$4 sm:$0xff]   ;;  %v5517_v57 = vld [vmem:[%s7829_s1 + $0x8c4] ss:$16 sps:$4 sm:$0xff]  }
  0xe0   :  { %3756 = vmatprep.subr.bf16.mxu0 %v5433_v58  ;;  %4125 = vmatprep.subr.bf16.mxu1 %v5436_v59  ;;  %v5520_v58 = vld [vmem:[%s7829_s1 + $0x8cc] ss:$16 sps:$4 sm:$0xff]   ;;  %v5515_v59 = vld [vmem:[%s7829_s1 + $0x8c0] ss:$16 sps:$4 sm:$0xff]  }
  0xe3   :  { %3757 = vmatpush1.bf16.msra.mxu0 %v5431_v60  ;;  %4126 = vmatpush1.bf16.msra.mxu1 %v5434_v61  ;;  %v5518_v60 = vld [vmem:[%s7829_s1 + $0x8c8] ss:$16 sps:$4 sm:$0xff]   ;;  %v5523_v61 = vld [vmem:[%s7829_s1 + $0x8e4] ss:$16 sps:$4 sm:$0xff]  }
  0xe4   :  { %3758 = vmatprep.subr.bf16.mxu0 %v5439_v62  ;;  %4127 = vmatprep.subr.bf16.mxu1 %v5442_v63  ;;  %v5526_v62 = vld [vmem:[%s7829_s1 + $0x8ec] ss:$16 sps:$4 sm:$0xff]   ;;  %v5521_v63 = vld [vmem:[%s7829_s1 + $0x8e0] ss:$16 sps:$4 sm:$0xff]  }
  0xe7   :  { %3759 = vmatpush1.bf16.msra.mxu0 %v5437_v0  ;;  %4128 = vmatpush1.bf16.msra.mxu1 %v5440_v1  ;;  %v5524_v0 = vld [vmem:[%s7829_s1 + $0x8e8] ss:$16 sps:$4 sm:$0xff]   ;;  %v5529_v1 = vld [vmem:[%s7829_s1 + $0x904] ss:$16 sps:$4 sm:$0xff]  }
  0xe8   :  { %3760 = vmatprep.subr.bf16.mxu0 %v5445_v2  ;;  %4129 = vmatprep.subr.bf16.mxu1 %v5448_v3  ;;  %v5532_v2 = vld [vmem:[%s7829_s1 + $0x90c] ss:$16 sps:$4 sm:$0xff]   ;;  %v5527_v3 = vld [vmem:[%s7829_s1 + $0x900] ss:$16 sps:$4 sm:$0xff]  }
  0xeb   :  { %3761 = vmatpush1.bf16.msra.mxu0 %v5443_v4  ;;  %4130 = vmatpush1.bf16.msra.mxu1 %v5446_v5  ;;  %v5530_v4 = vld [vmem:[%s7829_s1 + $0x908] ss:$16 sps:$4 sm:$0xff]   ;;  %v5535_v5 = vld [vmem:[%s7829_s1 + $0x924] ss:$16 sps:$4 sm:$0xff]  }
  0xec   :  { %3762 = vmatprep.subr.bf16.mxu0 %v5451_v6  ;;  %4131 = vmatprep.subr.bf16.mxu1 %v5454_v7  ;;  %v5538_v6 = vld [vmem:[%s7829_s1 + $0x92c] ss:$16 sps:$4 sm:$0xff]   ;;  %v5533_v7 = vld [vmem:[%s7829_s1 + $0x920] ss:$16 sps:$4 sm:$0xff]  }
  0xef   :  { %3763 = vmatpush1.bf16.msra.mxu0 %v5449_v8  ;;  %4132 = vmatpush1.bf16.msra.mxu1 %v5452_v9  ;;  %v5536_v8 = vld [vmem:[%s7829_s1 + $0x928] ss:$16 sps:$4 sm:$0xff]   ;;  %v5541_v9 = vld [vmem:[%s7829_s1 + $0x944] ss:$16 sps:$4 sm:$0xff]  }
  0xf0   :  { %3764 = vmatprep.subr.bf16.mxu0 %v5457_v10  ;;  %4133 = vmatprep.subr.bf16.mxu1 %v5460_v11  ;;  %v5544_v10 = vld [vmem:[%s7829_s1 + $0x94c] ss:$16 sps:$4 sm:$0xff]   ;;  %v5539_v11 = vld [vmem:[%s7829_s1 + $0x940] ss:$16 sps:$4 sm:$0xff]  }
  0xf3   :  { %3765 = vmatpush1.bf16.msra.mxu0 %v5455_v12  ;;  %4134 = vmatpush1.bf16.msra.mxu1 %v5458_v52  ;;  %v5542_v12 = vld [vmem:[%s7829_s1 + $0x948] ss:$16 sps:$4 sm:$0xff]   ;;  %v5547_v52 = vld [vmem:[%s7829_s1 + $0x964] ss:$16 sps:$4 sm:$0xff]  }
  0xf4   :  { %3766 = vmatprep.subr.bf16.mxu0 %v5463_v15  ;;  %4135 = vmatprep.subr.bf16.mxu1 %v5466_v16  ;;  %v5550_v15 = vld [vmem:[%s7829_s1 + $0x96c] ss:$16 sps:$4 sm:$0xff]   ;;  %v5545_v16 = vld [vmem:[%s7829_s1 + $0x960] ss:$16 sps:$4 sm:$0xff]  }
  0xf7   :  { %3767 = vmatpush1.bf16.msra.mxu0 %v5461_v17  ;;  %4136 = vmatpush1.bf16.msra.mxu1 %v5464_v18  ;;  %v5548_v17 = vld [vmem:[%s7829_s1 + $0x968] ss:$16 sps:$4 sm:$0xff]   ;;  %v5553_v18 = vld [vmem:[%s7829_s1 + $0x984] ss:$16 sps:$4 sm:$0xff]  }
  0xf8   :  { %3768 = vmatprep.subr.bf16.mxu0 %v5469_v19  ;;  %4137 = vmatprep.subr.bf16.mxu1 %v5472_v20  ;;  %v5556_v19 = vld [vmem:[%s7829_s1 + $0x98c] ss:$16 sps:$4 sm:$0xff]   ;;  %v5551_v20 = vld [vmem:[%s7829_s1 + $0x980] ss:$16 sps:$4 sm:$0xff]  }
  0xfb   :  { %3769 = vmatpush1.bf16.msra.mxu0 %v5467_v22  ;;  %4138 = vmatpush1.bf16.msra.mxu1 %v5470_v23  ;;  %v5554_v22 = vld [vmem:[%s7829_s1 + $0x988] ss:$16 sps:$4 sm:$0xff]   ;;  %v5559_v23 = vld [vmem:[%s7829_s1 + $0x9a4] ss:$16 sps:$4 sm:$0xff]  }
  0xfc   :  { %3770 = vmatprep.subr.bf16.mxu0 %v5475_v24  ;;  %4139 = vmatprep.subr.bf16.mxu1 %v5478_v13  ;;  %v5562_v24 = vld [vmem:[%s7829_s1 + $0x9ac] ss:$16 sps:$4 sm:$0xff]   ;;  %v5557_v13 = vld [vmem:[%s7829_s1 + $0x9a0] ss:$16 sps:$4 sm:$0xff]  }
  0xff   :  { %3771 = vmatpush1.bf16.msra.mxu0 %v5473_v28  ;;  %4140 = vmatpush1.bf16.msra.mxu1 %v5476_v29  ;;  %v5560_v28 = vld [vmem:[%s7829_s1 + $0x9a8] ss:$16 sps:$4 sm:$0xff]   ;;  %v5565_v29 = vld [vmem:[%s7829_s1 + $0x9c4] ss:$16 sps:$4 sm:$0xff]  }
 0x100   :  { %3781 = vmatprep.subr.bf16.mxu0 %v5481_v14  ;;  %4150 = vmatprep.subr.bf16.mxu1 %v5484_v30  ;;  %v5568_v14 = vld [vmem:[%s7829_s1 + $0x9cc] ss:$16 sps:$4 sm:$0xff]   ;;  %v5563_v30 = vld [vmem:[%s7829_s1 + $0x9c0] ss:$16 sps:$4 sm:$0xff]  }
 0x102   :  { %3773 = vmatmul.mubr.bf16.vlgmr.msra.gmra.mrb[0].mxu0 %v645_v25  ;;  %4142 = vmatmul.mubr.bf16.vlgmr.msra.gmra.mrb[0].mxu1 %v645_v25  ;;  %v5571_v25 = vld [vmem:[%s7829_s1 + $0x9e4] ss:$16 sps:$4 sm:$0xff]  }
 0x103   :  { %3782 = vmatpush1.bf16.msra.mxu0 %v5479_v32  ;;  %4151 = vmatpush1.bf16.msra.mxu1 %v5482_v33  ;;  %v5574_v32 = vld [vmem:[%s7829_s1 + $0x9ec] ss:$16 sps:$4 sm:$0xff]   ;;  %v5569_v33 = vld [vmem:[%s7829_s1 + $0x9e0] ss:$16 sps:$4 sm:$0xff]  }
 0x104   :  { %3783 = vmatprep.subr.bf16.mxu0 %v5487_v34  ;;  %4152 = vmatprep.subr.bf16.mxu1 %v5490_v26  ;;  %v5572_v34 = vld [vmem:[%s7829_s1 + $0x9e8] ss:$16 sps:$4 sm:$0xff]   ;;  %v5577_v26 = vld [vmem:[%s7829_s1 + $0xa04] ss:$16 sps:$4 sm:$0xff]  }
 0x105   :  { %3813 = vmatprep.mubr.bf16.mxu0 %v6826_v35  ;;  %4182 = vmatprep.mubr.bf16.mxu1 %v6826_v35 }
 0x107   :  { %3784 = vmatpush1.bf16.msra.mxu0 %v5485_v36  ;;  %4153 = vmatpush1.bf16.msra.mxu1 %v5488_v37  ;;  %v5580_v36 = vld [vmem:[%s7829_s1 + $0xa0c] ss:$16 sps:$4 sm:$0xff]   ;;  %v7012_v37 = vrot.slane %v6795_v27, %v6121_v49 }
 0x108   :  { %3785 = vmatprep.subr.bf16.mxu0 %v5493_v38  ;;  %4154 = vmatprep.subr.bf16.mxu1 %v5496_v39  ;;  %v5575_v38 = vld [vmem:[%s7829_s1 + $0xa00] ss:$16 sps:$4 sm:$0xff]   ;;  %v5578_v39 = vld [vmem:[%s7829_s1 + $0xa08] ss:$16 sps:$4 sm:$0xff]   ;;  %v5586_v27 = vld [vmem:[%s7829_s1 + $0xa2c] ss:$16 sps:$4 sm:$0xff]  }
 0x10b   :  { %3786 = vmatpush1.bf16.msra.mxu0 %v5491_v40  ;;  %4155 = vmatpush1.bf16.msra.mxu1 %v5494_v41  ;;  %v5583_v40 = vld [vmem:[%s7829_s1 + $0xa24] ss:$16 sps:$4 sm:$0xff]   ;;  %v695_v41 = vcombine.high %v6826_v35, %v6826_v35 }
 0x10c   :  { %3787 = vmatprep.subr.bf16.mxu0 %v5499_v42  ;;  %4156 = vmatprep.subr.bf16.mxu1 %v5502_v44  ;;  %v5581_v42 = vld [vmem:[%s7829_s1 + $0xa20] ss:$16 sps:$4 sm:$0xff]   ;;  %v5584_v44 = vld [vmem:[%s7829_s1 + $0xa28] ss:$16 sps:$4 sm:$0xff]   ;;  %v5589_v35 = vld [vmem:[%s7829_s1 + $0xa44] ss:$16 sps:$4 sm:$0xff]  }
 0x10f   :  { %3788 = vmatpush1.bf16.msra.mxu0 %v5497_v45  ;;  %4157 = vmatpush1.bf16.msra.mxu1 %v5500_v46  ;;  %v5592_v45 = vld [vmem:[%s7829_s1 + $0xa4c] ss:$16 sps:$4 sm:$0xff]   ;;  %v5587_v46 = vld [vmem:[%s7829_s1 + $0xa40] ss:$16 sps:$4 sm:$0xff]  }
 0x110   :  { %3789 = vmatprep.subr.bf16.mxu0 %v5505_v47  ;;  %4158 = vmatprep.subr.bf16.mxu1 %v5508_v48  ;;  %v5590_v47 = vld [vmem:[%s7829_s1 + $0xa48] ss:$16 sps:$4 sm:$0xff]   ;;  %v5595_v48 = vld [vmem:[%s7829_s1 + $0xa64] ss:$16 sps:$4 sm:$0xff]  }
 0x113   :  { %3790 = vmatpush1.bf16.msra.mxu0 %v5503_v50  ;;  %4159 = vmatpush1.bf16.msra.mxu1 %v5506_v51  ;;  %v5598_v50 = vld [vmem:[%s7829_s1 + $0xa6c] ss:$16 sps:$4 sm:$0xff]   ;;  %v5593_v51 = vld [vmem:[%s7829_s1 + $0xa60] ss:$16 sps:$4 sm:$0xff]  }
 0x114   :  { %3791 = vmatprep.subr.bf16.mxu0 %v5511_v53  ;;  %4160 = vmatprep.subr.bf16.mxu1 %v5514_v54  ;;  %v5596_v53 = vld [vmem:[%s7829_s1 + $0xa68] ss:$16 sps:$4 sm:$0xff]   ;;  %v5601_v54 = vld [vmem:[%s7829_s1 + $0xa84] ss:$16 sps:$4 sm:$0xff]  }
 0x117   :  { %3792 = vmatpush1.bf16.msra.mxu0 %v5509_v55  ;;  %4161 = vmatpush1.bf16.msra.mxu1 %v5512_v56  ;;  %v5604_v55 = vld [vmem:[%s7829_s1 + $0xa8c] ss:$16 sps:$4 sm:$0xff]   ;;  %v5599_v56 = vld [vmem:[%s7829_s1 + $0xa80] ss:$16 sps:$4 sm:$0xff]  }
 0x118   :  { %3793 = vmatprep.subr.bf16.mxu0 %v5517_v57  ;;  %4162 = vmatprep.subr.bf16.mxu1 %v5520_v58  ;;  %v5602_v57 = vld [vmem:[%s7829_s1 + $0xa88] ss:$16 sps:$4 sm:$0xff]   ;;  %v5607_v58 = vld [vmem:[%s7829_s1 + $0xaa4] ss:$16 sps:$4 sm:$0xff]  }
 0x11b   :  { %3794 = vmatpush1.bf16.msra.mxu0 %v5515_v59  ;;  %4163 = vmatpush1.bf16.msra.mxu1 %v5518_v60  ;;  %v5610_v59 = vld [vmem:[%s7829_s1 + $0xaac] ss:$16 sps:$4 sm:$0xff]   ;;  %v5605_v60 = vld [vmem:[%s7829_s1 + $0xaa0] ss:$16 sps:$4 sm:$0xff]  }
 0x11c   :  { %3795 = vmatprep.subr.bf16.mxu0 %v5523_v61  ;;  %4164 = vmatprep.subr.bf16.mxu1 %v5526_v62  ;;  %v5608_v61 = vld [vmem:[%s7829_s1 + $0xaa8] ss:$16 sps:$4 sm:$0xff]   ;;  %v5613_v62 = vld [vmem:[%s7829_s1 + $0xac4] ss:$16 sps:$4 sm:$0xff]  }
 0x11f   :  { %3796 = vmatpush1.bf16.msra.mxu0 %v5521_v63  ;;  %4165 = vmatpush1.bf16.msra.mxu1 %v5524_v0  ;;  %v5616_v63 = vld [vmem:[%s7829_s1 + $0xacc] ss:$16 sps:$4 sm:$0xff]   ;;  %v5611_v0 = vld [vmem:[%s7829_s1 + $0xac0] ss:$16 sps:$4 sm:$0xff]  }
 0x120   :  { %3797 = vmatprep.subr.bf16.mxu0 %v5529_v1  ;;  %4166 = vmatprep.subr.bf16.mxu1 %v5532_v2  ;;  %v5614_v1 = vld [vmem:[%s7829_s1 + $0xac8] ss:$16 sps:$4 sm:$0xff]   ;;  %v5619_v2 = vld [vmem:[%s7829_s1 + $0xae4] ss:$16 sps:$4 sm:$0xff]  }
 0x123   :  { %3798 = vmatpush1.bf16.msra.mxu0 %v5527_v3  ;;  %4167 = vmatpush1.bf16.msra.mxu1 %v5530_v4  ;;  %v5622_v3 = vld [vmem:[%s7829_s1 + $0xaec] ss:$16 sps:$4 sm:$0xff]   ;;  %v5617_v4 = vld [vmem:[%s7829_s1 + $0xae0] ss:$16 sps:$4 sm:$0xff]  }
 0x124   :  { %3799 = vmatprep.subr.bf16.mxu0 %v5535_v5  ;;  %4168 = vmatprep.subr.bf16.mxu1 %v5538_v6  ;;  %v5620_v5 = vld [vmem:[%s7829_s1 + $0xae8] ss:$16 sps:$4 sm:$0xff]   ;;  %v5625_v6 = vld [vmem:[%s7829_s1 + $0xb04] ss:$16 sps:$4 sm:$0xff]  }
 0x127   :  { %3800 = vmatpush1.bf16.msra.mxu0 %v5533_v7  ;;  %4169 = vmatpush1.bf16.msra.mxu1 %v5536_v8  ;;  %v5628_v7 = vld [vmem:[%s7829_s1 + $0xb0c] ss:$16 sps:$4 sm:$0xff]   ;;  %v5623_v8 = vld [vmem:[%s7829_s1 + $0xb00] ss:$16 sps:$4 sm:$0xff]  }
 0x128   :  { %3801 = vmatprep.subr.bf16.mxu0 %v5541_v9  ;;  %4170 = vmatprep.subr.bf16.mxu1 %v5544_v10  ;;  %v5626_v9 = vld [vmem:[%s7829_s1 + $0xb08] ss:$16 sps:$4 sm:$0xff]   ;;  %v5631_v10 = vld [vmem:[%s7829_s1 + $0xb24] ss:$16 sps:$4 sm:$0xff]  }
 0x12b   :  { %3802 = vmatpush1.bf16.msra.mxu0 %v5539_v11  ;;  %4171 = vmatpush1.bf16.msra.mxu1 %v5542_v12  ;;  %v5634_v11 = vld [vmem:[%s7829_s1 + $0xb2c] ss:$16 sps:$4 sm:$0xff]   ;;  %v5629_v12 = vld [vmem:[%s7829_s1 + $0xb20] ss:$16 sps:$4 sm:$0xff]  }
 0x12c   :  { %3803 = vmatprep.subr.bf16.mxu0 %v5547_v52  ;;  %4172 = vmatprep.subr.bf16.mxu1 %v5550_v15  ;;  %v5632_v52 = vld [vmem:[%s7829_s1 + $0xb28] ss:$16 sps:$4 sm:$0xff]   ;;  %v5637_v15 = vld [vmem:[%s7829_s1 + $0xb44] ss:$16 sps:$4 sm:$0xff]  }
 0x12f   :  { %3804 = vmatpush1.bf16.msra.mxu0 %v5545_v16  ;;  %4173 = vmatpush1.bf16.msra.mxu1 %v5548_v17  ;;  %v5640_v16 = vld [vmem:[%s7829_s1 + $0xb4c] ss:$16 sps:$4 sm:$0xff]   ;;  %v5635_v17 = vld [vmem:[%s7829_s1 + $0xb40] ss:$16 sps:$4 sm:$0xff]  }
 0x130   :  { %3805 = vmatprep.subr.bf16.mxu0 %v5553_v18  ;;  %4174 = vmatprep.subr.bf16.mxu1 %v5556_v19  ;;  %v5638_v18 = vld [vmem:[%s7829_s1 + $0xb48] ss:$16 sps:$4 sm:$0xff]   ;;  %v5643_v19 = vld [vmem:[%s7829_s1 + $0xb64] ss:$16 sps:$4 sm:$0xff]  }
 0x133   :  { %3806 = vmatpush1.bf16.msra.mxu0 %v5551_v20  ;;  %4175 = vmatpush1.bf16.msra.mxu1 %v5554_v22  ;;  %v5646_v20 = vld [vmem:[%s7829_s1 + $0xb6c] ss:$16 sps:$4 sm:$0xff]   ;;  %v5641_v22 = vld [vmem:[%s7829_s1 + $0xb60] ss:$16 sps:$4 sm:$0xff]  }
 0x134   :  { %3807 = vmatprep.subr.bf16.mxu0 %v5559_v23  ;;  %4176 = vmatprep.subr.bf16.mxu1 %v5562_v24  ;;  %v5644_v23 = vld [vmem:[%s7829_s1 + $0xb68] ss:$16 sps:$4 sm:$0xff]   ;;  %v5649_v24 = vld [vmem:[%s7829_s1 + $0xb84] ss:$16 sps:$4 sm:$0xff]  }
 0x137   :  { %3808 = vmatpush1.bf16.msra.mxu0 %v5557_v13  ;;  %4177 = vmatpush1.bf16.msra.mxu1 %v5560_v28  ;;  %v5652_v13 = vld [vmem:[%s7829_s1 + $0xb8c] ss:$16 sps:$4 sm:$0xff]   ;;  %v5647_v28 = vld [vmem:[%s7829_s1 + $0xb80] ss:$16 sps:$4 sm:$0xff]  }
 0x138   :  { %3809 = vmatprep.subr.bf16.mxu0 %v5565_v29  ;;  %4178 = vmatprep.subr.bf16.mxu1 %v5568_v14  ;;  %v5650_v29 = vld [vmem:[%s7829_s1 + $0xb88] ss:$16 sps:$4 sm:$0xff]   ;;  %v5655_v14 = vld [vmem:[%s7829_s1 + $0xba4] ss:$16 sps:$4 sm:$0xff]  }
 0x13b   :  { %3810 = vmatpush1.bf16.msra.mxu0 %v5563_v30  ;;  %4179 = vmatpush1.bf16.msra.mxu1 %v5566_v31  ;;  %v5658_v30 = vld [vmem:[%s7829_s1 + $0xbac] ss:$16 sps:$4 sm:$0xff]   ;;  %v5653_v31 = vld [vmem:[%s7829_s1 + $0xba0] ss:$16 sps:$4 sm:$0xff]  }
 0x13c   :  { %3811 = vmatprep.subr.bf16.mxu0 %v5571_v25  ;;  %4180 = vmatprep.subr.bf16.mxu1 %v5574_v32  ;;  %v5656_v25 = vld [vmem:[%s7829_s1 + $0xba8] ss:$16 sps:$4 sm:$0xff]   ;;  %v5661_v32 = vld [vmem:[%s7829_s1 + $0xbc4] ss:$16 sps:$4 sm:$0xff]  }
 0x13f   :  { %3812 = vmatpush1.bf16.msra.mxu0 %v5569_v33  ;;  %4181 = vmatpush1.bf16.msra.mxu1 %v5572_v34  ;;  %v5664_v33 = vld [vmem:[%s7829_s1 + $0xbcc] ss:$16 sps:$4 sm:$0xff]   ;;  %v648_v34 = vcombine.high %v6779_v21, %v6779_v21 }
 0x140   :  { %3822 = vmatprep.subr.bf16.mxu0 %v5577_v26  ;;  %4191 = vmatprep.subr.bf16.mxu1 %v5580_v36  ;;  %v5659_v26 = vld [vmem:[%s7829_s1 + $0xbc0] ss:$16 sps:$4 sm:$0xff]   ;;  %v5662_v36 = vld [vmem:[%s7829_s1 + $0xbc8] ss:$16 sps:$4 sm:$0xff]   ;;  %v5670_v21 = vld [vmem:[%s7829_s1 + $0xbec] ss:$16 sps:$4 sm:$0xff]  }
 0x142   :  { %3814 = vmatmul.mubr.bf16.vlgmr.msra.gmra.mrb[0].mxu0 %v7012_v37  ;;  %4183 = vmatmul.mubr.bf16.vlgmr.msra.gmra.mrb[0].mxu1 %v7012_v37 }
 0x143   :  { %3823 = vmatpush1.bf16.msra.mxu0 %v5575_v38  ;;  %4192 = vmatpush1.bf16.msra.mxu1 %v5578_v39  ;;  %v5667_v38 = vld [vmem:[%s7829_s1 + $0xbe4] ss:$16 sps:$4 sm:$0xff]   ;;  %v7201_v39 = vrot.slane %v648_v34, %v6121_v49  ;;  %v5746_v34 = vld [vmem:[%s7829_s1 + $0xd88] ss:$16 sps:$4 sm:$0xff]  }
 0x144   :  { %3824 = vmatprep.subr.bf16.mxu0 %v5583_v40  ;;  %4193 = vmatprep.subr.bf16.mxu1 %v5586_v27  ;;  %v5665_v40 = vld [vmem:[%s7829_s1 + $0xbe0] ss:$16 sps:$4 sm:$0xff]   ;;  %v5668_v27 = vld [vmem:[%s7829_s1 + $0xbe8] ss:$16 sps:$4 sm:$0xff]  }
 0x145   :  { %3854 = vmatprep.mubr.bf16.mxu0 %v695_v41  ;;  %4223 = vmatprep.mubr.bf16.mxu1 %v695_v41  ;;  %v5673_v41 = vld [vmem:[%s7829_s1 + $0xc04] ss:$16 sps:$4 sm:$0xff]  }
 0x147   :  { %3825 = vmatpush1.bf16.msra.mxu0 %v5581_v42  ;;  %4194 = vmatpush1.bf16.msra.mxu1 %v5584_v44  ;;  %v5676_v42 = vld [vmem:[%s7829_s1 + $0xc0c] ss:$16 sps:$4 sm:$0xff]   ;;  %v664_v44 = vcombine.high %v7201_v39, %v7201_v39 }
 0x148   :  { %3826 = vmatprep.subr.bf16.mxu0 %v5589_v35  ;;  %4195 = vmatprep.subr.bf16.mxu1 %v5592_v45  ;;  %v693_v35 = vcombine.high %v7012_v37, %v7012_v37  ;;  %v5671_v45 = vld [vmem:[%s7829_s1 + $0xc00] ss:$16 sps:$4 sm:$0xff]   ;;  %v5682_v37 = vld [vmem:[%s7829_s1 + $0xc2c] ss:$16 sps:$4 sm:$0xff]  }
 0x14b   :  { %3827 = vmatpush1.bf16.msra.mxu0 %v5587_v46  ;;  %4196 = vmatpush1.bf16.msra.mxu1 %v5590_v47  ;;  %v5674_v46 = vld [vmem:[%s7829_s1 + $0xc08] ss:$16 sps:$4 sm:$0xff]   ;;  %v5679_v47 = vld [vmem:[%s7829_s1 + $0xc24] ss:$16 sps:$4 sm:$0xff]  }
 0x14c   :  { %3828 = vmatprep.subr.bf16.mxu0 %v5595_v48  ;;  %4197 = vmatprep.subr.bf16.mxu1 %v5598_v50  ;;  %v7232_v48 = vrot.slane %v664_v44, %v6121_v49  ;;  %v5677_v50 = vld [vmem:[%s7829_s1 + $0xc20] ss:$16 sps:$4 sm:$0xff]   ;;  %v5763_v44 = vld [vmem:[%s7829_s1 + $0xde4] ss:$16 sps:$4 sm:$0xff]  }
 0x14f   :  { %3829 = vmatpush1.bf16.msra.mxu0 %v5593_v51  ;;  %4198 = vmatpush1.bf16.msra.mxu1 %v5596_v53  ;;  %v5680_v51 = vld [vmem:[%s7829_s1 + $0xc28] ss:$16 sps:$4 sm:$0xff]   ;;  %v5685_v53 = vld [vmem:[%s7829_s1 + $0xc44] ss:$16 sps:$4 sm:$0xff]  }
 0x150   :  { %3830 = vmatprep.subr.bf16.mxu0 %v5601_v54  ;;  %4199 = vmatprep.subr.bf16.mxu1 %v5604_v55  ;;  %v5688_v54 = vld [vmem:[%s7829_s1 + $0xc4c] ss:$16 sps:$4 sm:$0xff]   ;;  %v5683_v55 = vld [vmem:[%s7829_s1 + $0xc40] ss:$16 sps:$4 sm:$0xff]  }
 0x153   :  { %3831 = vmatpush1.bf16.msra.mxu0 %v5599_v56  ;;  %4200 = vmatpush1.bf16.msra.mxu1 %v5602_v57  ;;  %v5686_v56 = vld [vmem:[%s7829_s1 + $0xc48] ss:$16 sps:$4 sm:$0xff]   ;;  %v5691_v57 = vld [vmem:[%s7829_s1 + $0xc64] ss:$16 sps:$4 sm:$0xff]  }
 0x154   :  { %3832 = vmatprep.subr.bf16.mxu0 %v5607_v58  ;;  %4201 = vmatprep.subr.bf16.mxu1 %v5610_v59  ;;  %v5694_v58 = vld [vmem:[%s7829_s1 + $0xc6c] ss:$16 sps:$4 sm:$0xff]   ;;  %v5689_v59 = vld [vmem:[%s7829_s1 + $0xc60] ss:$16 sps:$4 sm:$0xff]  }
 0x157   :  { %3833 = vmatpush1.bf16.msra.mxu0 %v5605_v60  ;;  %4202 = vmatpush1.bf16.msra.mxu1 %v5608_v61  ;;  %v5692_v60 = vld [vmem:[%s7829_s1 + $0xc68] ss:$16 sps:$4 sm:$0xff]   ;;  %v5697_v61 = vld [vmem:[%s7829_s1 + $0xc84] ss:$16 sps:$4 sm:$0xff]  }
 0x158   :  { %3834 = vmatprep.subr.bf16.mxu0 %v5613_v62  ;;  %4203 = vmatprep.subr.bf16.mxu1 %v5616_v63  ;;  %v5700_v62 = vld [vmem:[%s7829_s1 + $0xc8c] ss:$16 sps:$4 sm:$0xff]   ;;  %v5695_v63 = vld [vmem:[%s7829_s1 + $0xc80] ss:$16 sps:$4 sm:$0xff]  }
 0x15b   :  { %3835 = vmatpush1.bf16.msra.mxu0 %v5611_v0  ;;  %4204 = vmatpush1.bf16.msra.mxu1 %v5614_v1  ;;  %v5698_v0 = vld [vmem:[%s7829_s1 + $0xc88] ss:$16 sps:$4 sm:$0xff]   ;;  %v5703_v1 = vld [vmem:[%s7829_s1 + $0xca4] ss:$16 sps:$4 sm:$0xff]  }
 0x15c   :  { %3836 = vmatprep.subr.bf16.mxu0 %v5619_v2  ;;  %4205 = vmatprep.subr.bf16.mxu1 %v5622_v3  ;;  %v5706_v2 = vld [vmem:[%s7829_s1 + $0xcac] ss:$16 sps:$4 sm:$0xff]   ;;  %v5701_v3 = vld [vmem:[%s7829_s1 + $0xca0] ss:$16 sps:$4 sm:$0xff]  }
 0x15f   :  { %3837 = vmatpush1.bf16.msra.mxu0 %v5617_v4  ;;  %4206 = vmatpush1.bf16.msra.mxu1 %v5620_v5  ;;  %v5704_v4 = vld [vmem:[%s7829_s1 + $0xca8] ss:$16 sps:$4 sm:$0xff]   ;;  %v5709_v5 = vld [vmem:[%s7829_s1 + $0xcc4] ss:$16 sps:$4 sm:$0xff]  }
 0x160   :  { %3838 = vmatprep.subr.bf16.mxu0 %v5625_v6  ;;  %4207 = vmatprep.subr.bf16.mxu1 %v5628_v7  ;;  %v5712_v6 = vld [vmem:[%s7829_s1 + $0xccc] ss:$16 sps:$4 sm:$0xff]   ;;  %v5707_v7 = vld [vmem:[%s7829_s1 + $0xcc0] ss:$16 sps:$4 sm:$0xff]  }
 0x163   :  { %3839 = vmatpush1.bf16.msra.mxu0 %v5623_v8  ;;  %4208 = vmatpush1.bf16.msra.mxu1 %v5626_v9  ;;  %v5710_v8 = vld [vmem:[%s7829_s1 + $0xcc8] ss:$16 sps:$4 sm:$0xff]   ;;  %v5715_v9 = vld [vmem:[%s7829_s1 + $0xce4] ss:$16 sps:$4 sm:$0xff]  }
 0x164   :  { %3840 = vmatprep.subr.bf16.mxu0 %v5631_v10  ;;  %4209 = vmatprep.subr.bf16.mxu1 %v5634_v11  ;;  %v5718_v10 = vld [vmem:[%s7829_s1 + $0xcec] ss:$16 sps:$4 sm:$0xff]   ;;  %v5713_v11 = vld [vmem:[%s7829_s1 + $0xce0] ss:$16 sps:$4 sm:$0xff]  }
 0x167   :  { %3841 = vmatpush1.bf16.msra.mxu0 %v5629_v12  ;;  %4210 = vmatpush1.bf16.msra.mxu1 %v5632_v52  ;;  %v5716_v12 = vld [vmem:[%s7829_s1 + $0xce8] ss:$16 sps:$4 sm:$0xff]   ;;  %v5721_v52 = vld [vmem:[%s7829_s1 + $0xd04] ss:$16 sps:$4 sm:$0xff]  }
 0x168   :  { %3842 = vmatprep.subr.bf16.mxu0 %v5637_v15  ;;  %4211 = vmatprep.subr.bf16.mxu1 %v5640_v16  ;;  %v5724_v15 = vld [vmem:[%s7829_s1 + $0xd0c] ss:$16 sps:$4 sm:$0xff]   ;;  %v5719_v16 = vld [vmem:[%s7829_s1 + $0xd00] ss:$16 sps:$4 sm:$0xff]  }
 0x16b   :  { %3843 = vmatpush1.bf16.msra.mxu0 %v5635_v17  ;;  %4212 = vmatpush1.bf16.msra.mxu1 %v5638_v18  ;;  %v5722_v17 = vld [vmem:[%s7829_s1 + $0xd08] ss:$16 sps:$4 sm:$0xff]   ;;  %v5727_v18 = vld [vmem:[%s7829_s1 + $0xd24] ss:$16 sps:$4 sm:$0xff]  }
 0x16c   :  { %3844 = vmatprep.subr.bf16.mxu0 %v5643_v19  ;;  %4213 = vmatprep.subr.bf16.mxu1 %v5646_v20  ;;  %v5730_v19 = vld [vmem:[%s7829_s1 + $0xd2c] ss:$16 sps:$4 sm:$0xff]   ;;  %v5725_v20 = vld [vmem:[%s7829_s1 + $0xd20] ss:$16 sps:$4 sm:$0xff]  }
 0x16f   :  { %3845 = vmatpush1.bf16.msra.mxu0 %v5641_v22  ;;  %4214 = vmatpush1.bf16.msra.mxu1 %v5644_v23  ;;  %v5728_v22 = vld [vmem:[%s7829_s1 + $0xd28] ss:$16 sps:$4 sm:$0xff]   ;;  %v5733_v23 = vld [vmem:[%s7829_s1 + $0xd44] ss:$16 sps:$4 sm:$0xff]  }
 0x170   :  { %3846 = vmatprep.subr.bf16.mxu0 %v5649_v24  ;;  %4215 = vmatprep.subr.bf16.mxu1 %v5652_v13  ;;  %v5736_v24 = vld [vmem:[%s7829_s1 + $0xd4c] ss:$16 sps:$4 sm:$0xff]   ;;  %v5731_v13 = vld [vmem:[%s7829_s1 + $0xd40] ss:$16 sps:$4 sm:$0xff]  }
 0x173   :  { %3847 = vmatpush1.bf16.msra.mxu0 %v5647_v28  ;;  %4216 = vmatpush1.bf16.msra.mxu1 %v5650_v29  ;;  %v5734_v28 = vld [vmem:[%s7829_s1 + $0xd48] ss:$16 sps:$4 sm:$0xff]   ;;  %v5739_v29 = vld [vmem:[%s7829_s1 + $0xd64] ss:$16 sps:$4 sm:$0xff]  }
 0x174   :  { %3848 = vmatprep.subr.bf16.mxu0 %v5655_v14  ;;  %4217 = vmatprep.subr.bf16.mxu1 %v5658_v30  ;;  %v5742_v14 = vld [vmem:[%s7829_s1 + $0xd6c] ss:$16 sps:$4 sm:$0xff]   ;;  %v5737_v30 = vld [vmem:[%s7829_s1 + $0xd60] ss:$16 sps:$4 sm:$0xff]  }
 0x177   :  { %3849 = vmatpush1.bf16.msra.mxu0 %v5653_v31  ;;  %4218 = vmatpush1.bf16.msra.mxu1 %v5656_v25  ;;  %v5740_v31 = vld [vmem:[%s7829_s1 + $0xd68] ss:$16 sps:$4 sm:$0xff]   ;;  %v5745_v25 = vld [vmem:[%s7829_s1 + $0xd84] ss:$16 sps:$4 sm:$0xff]  }
 0x178   :  { %3850 = vmatprep.subr.bf16.mxu0 %v5661_v32  ;;  %4219 = vmatprep.subr.bf16.mxu1 %v5664_v33  ;;  %v5748_v32 = vld [vmem:[%s7829_s1 + $0xd8c] ss:$16 sps:$4 sm:$0xff]   ;;  %v5743_v33 = vld [vmem:[%s7829_s1 + $0xd80] ss:$16 sps:$4 sm:$0xff]  }
 0x17b   :  { %3851 = vmatpush1.bf16.msra.mxu0 %v5659_v26  ;;  %4220 = vmatpush1.bf16.msra.mxu1 %v5662_v36  ;;  %v5751_v26 = vld [vmem:[%s7829_s1 + $0xda4] ss:$16 sps:$4 sm:$0xff]   ;;  %v5754_v36 = vld [vmem:[%s7829_s1 + $0xdac] ss:$16 sps:$4 sm:$0xff]  }
 0x17c   :  { %3852 = vmatprep.subr.bf16.mxu0 %v5667_v38  ;;  %4221 = vmatprep.subr.bf16.mxu1 %v5670_v21  ;;  %v5749_v38 = vld [vmem:[%s7829_s1 + $0xda0] ss:$16 sps:$4 sm:$0xff]   ;;  %v5752_v21 = vld [vmem:[%s7829_s1 + $0xda8] ss:$16 sps:$4 sm:$0xff]  }
 0x17f   :  { %3853 = vmatpush1.bf16.msra.mxu0 %v5665_v40  ;;  %4222 = vmatpush1.bf16.msra.mxu1 %v5668_v27  ;;  %v5757_v40 = vld [vmem:[%s7829_s1 + $0xdc4] ss:$16 sps:$4 sm:$0xff]   ;;  %v5760_v27 = vld [vmem:[%s7829_s1 + $0xdcc] ss:$16 sps:$4 sm:$0xff]  }
 0x180   :  { %3863 = vmatprep.subr.bf16.mxu0 %v5673_v41  ;;  %4232 = vmatprep.subr.bf16.mxu1 %v5676_v42  ;;  %v5755_v41 = vld [vmem:[%s7829_s1 + $0xdc0] ss:$16 sps:$4 sm:$0xff]   ;;  %v5758_v42 = vld [vmem:[%s7829_s1 + $0xdc8] ss:$16 sps:$4 sm:$0xff]  }
 0x182   :  { %3855 = vmatmul.mubr.bf16.vlgmr.msra.gmra.mrb[0].mxu0 %v693_v35  ;;  %4224 = vmatmul.mubr.bf16.vlgmr.msra.gmra.mrb[0].mxu1 %v693_v35  ;;  %v5766_v35 = vld [vmem:[%s7829_s1 + $0xdec] ss:$16 sps:$4 sm:$0xff]  }
 0x183   :  { %3864 = vmatpush1.bf16.msra.mxu0 %v5671_v45  ;;  %4233 = vmatpush1.bf16.msra.mxu1 %v5674_v46  ;;  %v5761_v45 = vld [vmem:[%s7829_s1 + $0xde0] ss:$16 sps:$4 sm:$0xff]   ;;  %v5764_v46 = vld [vmem:[%s7829_s1 + $0xde8] ss:$16 sps:$4 sm:$0xff]  }
 0x184   :  { %3865 = vmatprep.subr.bf16.mxu0 %v5679_v47  ;;  %4234 = vmatprep.subr.bf16.mxu1 %v5682_v37  ;;  %v5770_v47 = vld [vmem:[%s7829_s1 + $0xe04] ss:$16 sps:$4 sm:$0xff]   ;;  %v5773_v37 = vld [vmem:[%s7829_s1 + $0xe0c] ss:$16 sps:$4 sm:$0xff]  }
 0x185   :  { %3895 = vmatprep.mubr.bf16.mxu0 %v7232_v48  ;;  %4264 = vmatprep.mubr.bf16.mxu1 %v7232_v48 }
 0x187   :  { %3866 = vmatpush1.bf16.msra.mxu0 %v5677_v50  ;;  %4235 = vmatpush1.bf16.msra.mxu1 %v5680_v51  ;;  %v7418_v50 = vrot.slane %v7201_v39, %v6121_v49  ;;  %v5768_v51 = vld [vmem:[%s7829_s1 + $0xe00] ss:$16 sps:$4 sm:$0xff]   ;;  %v5779_v39 = vld [vmem:[%s7829_s1 + $0xe2c] ss:$16 sps:$4 sm:$0xff]  }
 0x188   :  { %3867 = vmatprep.subr.bf16.mxu0 %v5685_v53  ;;  %4236 = vmatprep.subr.bf16.mxu1 %v5688_v54  ;;  %v5771_v53 = vld [vmem:[%s7829_s1 + $0xe08] ss:$16 sps:$4 sm:$0xff]   ;;  %v5776_v54 = vld [vmem:[%s7829_s1 + $0xe24] ss:$16 sps:$4 sm:$0xff]  }
 0x18b   :  { %3868 = vmatpush1.bf16.msra.mxu0 %v5683_v55  ;;  %4237 = vmatpush1.bf16.msra.mxu1 %v5686_v56  ;;  %v696_v55 = vcombine.high %v7232_v48, %v7232_v48  ;;  %v5774_v56 = vld [vmem:[%s7829_s1 + $0xe20] ss:$16 sps:$4 sm:$0xff]   ;;  %v5782_v48 = vld [vmem:[%s7829_s1 + $0xe44] ss:$16 sps:$4 sm:$0xff]  }
 0x18c   :  { %3869 = vmatprep.subr.bf16.mxu0 %v5691_v57  ;;  %4238 = vmatprep.subr.bf16.mxu1 %v5694_v58  ;;  %v5777_v57 = vld [vmem:[%s7829_s1 + $0xe28] ss:$16 sps:$4 sm:$0xff]   ;;  %v5785_v58 = vld [vmem:[%s7829_s1 + $0xe4c] ss:$16 sps:$4 sm:$0xff]  }
 0x18f   :  { %3870 = vmatpush1.bf16.msra.mxu0 %v5689_v59  ;;  %4239 = vmatpush1.bf16.msra.mxu1 %v5692_v60  ;;  %v5780_v59 = vld [vmem:[%s7829_s1 + $0xe40] ss:$16 sps:$4 sm:$0xff]   ;;  %v5783_v60 = vld [vmem:[%s7829_s1 + $0xe48] ss:$16 sps:$4 sm:$0xff]  }
 0x190   :  { %3871 = vmatprep.subr.bf16.mxu0 %v5697_v61  ;;  %4240 = vmatprep.subr.bf16.mxu1 %v5700_v62  ;;  %v5788_v61 = vld [vmem:[%s7829_s1 + $0xe64] ss:$16 sps:$4 sm:$0xff]   ;;  %v5791_v62 = vld [vmem:[%s7829_s1 + $0xe6c] ss:$16 sps:$4 sm:$0xff]  }
 0x193   :  { %3872 = vmatpush1.bf16.msra.mxu0 %v5695_v63  ;;  %4241 = vmatpush1.bf16.msra.mxu1 %v5698_v0  ;;  %v5786_v63 = vld [vmem:[%s7829_s1 + $0xe60] ss:$16 sps:$4 sm:$0xff]   ;;  %v5789_v0 = vld [vmem:[%s7829_s1 + $0xe68] ss:$16 sps:$4 sm:$0xff]  }
 0x194   :  { %3873 = vmatprep.subr.bf16.mxu0 %v5703_v1  ;;  %4242 = vmatprep.subr.bf16.mxu1 %v5706_v2  ;;  %v5794_v1 = vld [vmem:[%s7829_s1 + $0xe84] ss:$16 sps:$4 sm:$0xff]   ;;  %v5797_v2 = vld [vmem:[%s7829_s1 + $0xe8c] ss:$16 sps:$4 sm:$0xff]  }
 0x197   :  { %3874 = vmatpush1.bf16.msra.mxu0 %v5701_v3  ;;  %4243 = vmatpush1.bf16.msra.mxu1 %v5704_v4  ;;  %v5792_v3 = vld [vmem:[%s7829_s1 + $0xe80] ss:$16 sps:$4 sm:$0xff]   ;;  %v5795_v4 = vld [vmem:[%s7829_s1 + $0xe88] ss:$16 sps:$4 sm:$0xff]  }
 0x198   :  { %3875 = vmatprep.subr.bf16.mxu0 %v5709_v5  ;;  %4244 = vmatprep.subr.bf16.mxu1 %v5712_v6  ;;  %v5800_v5 = vld [vmem:[%s7829_s1 + $0xea4] ss:$16 sps:$4 sm:$0xff]   ;;  %v5803_v6 = vld [vmem:[%s7829_s1 + $0xeac] ss:$16 sps:$4 sm:$0xff]  }
 0x19b   :  { %3876 = vmatpush1.bf16.msra.mxu0 %v5707_v7  ;;  %4245 = vmatpush1.bf16.msra.mxu1 %v5710_v8  ;;  %v5798_v7 = vld [vmem:[%s7829_s1 + $0xea0] ss:$16 sps:$4 sm:$0xff]   ;;  %v5801_v8 = vld [vmem:[%s7829_s1 + $0xea8] ss:$16 sps:$4 sm:$0xff]  }
 0x19c   :  { %3877 = vmatprep.subr.bf16.mxu0 %v5715_v9  ;;  %4246 = vmatprep.subr.bf16.mxu1 %v5718_v10  ;;  %v5806_v9 = vld [vmem:[%s7829_s1 + $0xec4] ss:$16 sps:$4 sm:$0xff]   ;;  %v5809_v10 = vld [vmem:[%s7829_s1 + $0xecc] ss:$16 sps:$4 sm:$0xff]  }
 0x19f   :  { %3878 = vmatpush1.bf16.msra.mxu0 %v5713_v11  ;;  %4247 = vmatpush1.bf16.msra.mxu1 %v5716_v12  ;;  %v5804_v11 = vld [vmem:[%s7829_s1 + $0xec0] ss:$16 sps:$4 sm:$0xff]   ;;  %v5807_v12 = vld [vmem:[%s7829_s1 + $0xec8] ss:$16 sps:$4 sm:$0xff]  }
 0x1a0   :  { %3879 = vmatprep.subr.bf16.mxu0 %v5721_v52  ;;  %4248 = vmatprep.subr.bf16.mxu1 %v5724_v15  ;;  %v5812_v52 = vld [vmem:[%s7829_s1 + $0xee4] ss:$16 sps:$4 sm:$0xff]   ;;  %v5815_v15 = vld [vmem:[%s7829_s1 + $0xeec] ss:$16 sps:$4 sm:$0xff]  }
 0x1a3   :  { %3880 = vmatpush1.bf16.msra.mxu0 %v5719_v16  ;;  %4249 = vmatpush1.bf16.msra.mxu1 %v5722_v17  ;;  %v5810_v16 = vld [vmem:[%s7829_s1 + $0xee0] ss:$16 sps:$4 sm:$0xff]   ;;  %v5813_v17 = vld [vmem:[%s7829_s1 + $0xee8] ss:$16 sps:$4 sm:$0xff]  }
 0x1a4   :  { %3881 = vmatprep.subr.bf16.mxu0 %v5727_v18  ;;  %4250 = vmatprep.subr.bf16.mxu1 %v5730_v19  ;;  %v5818_v18 = vld [vmem:[%s7829_s1 + $0xf04] ss:$16 sps:$4 sm:$0xff]   ;;  %v5821_v19 = vld [vmem:[%s7829_s1 + $0xf0c] ss:$16 sps:$4 sm:$0xff]  }
 0x1a7   :  { %3882 = vmatpush1.bf16.msra.mxu0 %v5725_v20  ;;  %4251 = vmatpush1.bf16.msra.mxu1 %v5728_v22  ;;  %v5816_v20 = vld [vmem:[%s7829_s1 + $0xf00] ss:$16 sps:$4 sm:$0xff]   ;;  %v5819_v22 = vld [vmem:[%s7829_s1 + $0xf08] ss:$16 sps:$4 sm:$0xff]  }
 0x1a8   :  { %3883 = vmatprep.subr.bf16.mxu0 %v5733_v23  ;;  %4252 = vmatprep.subr.bf16.mxu1 %v5736_v24  ;;  %v5824_v23 = vld [vmem:[%s7829_s1 + $0xf24] ss:$16 sps:$4 sm:$0xff]   ;;  %v5827_v24 = vld [vmem:[%s7829_s1 + $0xf2c] ss:$16 sps:$4 sm:$0xff]  }
 0x1ab   :  { %3884 = vmatpush1.bf16.msra.mxu0 %v5731_v13  ;;  %4253 = vmatpush1.bf16.msra.mxu1 %v5734_v28  ;;  %v5822_v13 = vld [vmem:[%s7829_s1 + $0xf20] ss:$16 sps:$4 sm:$0xff]   ;;  %v5825_v28 = vld [vmem:[%s7829_s1 + $0xf28] ss:$16 sps:$4 sm:$0xff]  }
 0x1ac   :  { %3885 = vmatprep.subr.bf16.mxu0 %v5739_v29  ;;  %4254 = vmatprep.subr.bf16.mxu1 %v5742_v14  ;;  %v5830_v29 = vld [vmem:[%s7829_s1 + $0xf44] ss:$16 sps:$4 sm:$0xff]   ;;  %v5833_v14 = vld [vmem:[%s7829_s1 + $0xf4c] ss:$16 sps:$4 sm:$0xff]  }
 0x1af   :  { %3886 = vmatpush1.bf16.msra.mxu0 %v5737_v30  ;;  %4255 = vmatpush1.bf16.msra.mxu1 %v5740_v31  ;;  %v5828_v30 = vld [vmem:[%s7829_s1 + $0xf40] ss:$16 sps:$4 sm:$0xff]   ;;  %v5831_v31 = vld [vmem:[%s7829_s1 + $0xf48] ss:$16 sps:$4 sm:$0xff]  }
 0x1b0   :  { %3887 = vmatprep.subr.bf16.mxu0 %v5745_v25  ;;  %4256 = vmatprep.subr.bf16.mxu1 %v5748_v32  ;;  %v5836_v25 = vld [vmem:[%s7829_s1 + $0xf64] ss:$16 sps:$4 sm:$0xff]   ;;  %v5839_v32 = vld [vmem:[%s7829_s1 + $0xf6c] ss:$16 sps:$4 sm:$0xff]  }
 0x1b3   :  { %3888 = vmatpush1.bf16.msra.mxu0 %v5743_v33  ;;  %4257 = vmatpush1.bf16.msra.mxu1 %v5746_v34  ;;  %v5834_v33 = vld [vmem:[%s7829_s1 + $0xf60] ss:$16 sps:$4 sm:$0xff]   ;;  %v5837_v34 = vld [vmem:[%s7829_s1 + $0xf68] ss:$16 sps:$4 sm:$0xff]  }
 0x1b4   :  { %3889 = vmatprep.subr.bf16.mxu0 %v5751_v26  ;;  %4258 = vmatprep.subr.bf16.mxu1 %v5754_v36  ;;  %v5842_v26 = vld [vmem:[%s7829_s1 + $0xf84] ss:$16 sps:$4 sm:$0xff]   ;;  %v5845_v36 = vld [vmem:[%s7829_s1 + $0xf8c] ss:$16 sps:$4 sm:$0xff]  }
 0x1b7   :  { %3890 = vmatpush1.bf16.msra.mxu0 %v5749_v38  ;;  %4259 = vmatpush1.bf16.msra.mxu1 %v5752_v21  ;;  %v5840_v38 = vld [vmem:[%s7829_s1 + $0xf80] ss:$16 sps:$4 sm:$0xff]   ;;  %v5843_v21 = vld [vmem:[%s7829_s1 + $0xf88] ss:$16 sps:$4 sm:$0xff]  }
 0x1b8   :  { %3891 = vmatprep.subr.bf16.mxu0 %v5757_v40  ;;  %4260 = vmatprep.subr.bf16.mxu1 %v5760_v27  ;;  %v5848_v40 = vld [vmem:[%s7829_s1 + $0xfa4] ss:$16 sps:$4 sm:$0xff]   ;;  %v5851_v27 = vld [vmem:[%s7829_s1 + $0xfac] ss:$16 sps:$4 sm:$0xff]  }
 0x1bb   :  { %3892 = vmatpush1.bf16.msra.mxu0 %v5755_v41  ;;  %4261 = vmatpush1.bf16.msra.mxu1 %v5758_v42  ;;  %v5846_v41 = vld [vmem:[%s7829_s1 + $0xfa0] ss:$16 sps:$4 sm:$0xff]   ;;  %v5849_v42 = vld [vmem:[%s7829_s1 + $0xfa8] ss:$16 sps:$4 sm:$0xff]  }
 0x1bc   :  { %3893 = vmatprep.subr.bf16.mxu0 %v5763_v44  ;;  %4262 = vmatprep.subr.bf16.mxu1 %v5766_v35  ;;  %v5854_v44 = vld [vmem:[%s7829_s1 + $0xfc4] ss:$16 sps:$4 sm:$0xff]   ;;  %v5857_v35 = vld [vmem:[%s7829_s1 + $0xfcc] ss:$16 sps:$4 sm:$0xff]  }
 0x1bf   :  { %3894 = vmatpush1.bf16.msra.mxu0 %v5761_v45  ;;  %4263 = vmatpush1.bf16.msra.mxu1 %v5764_v46  ;;  %v5852_v45 = vld [vmem:[%s7829_s1 + $0xfc0] ss:$16 sps:$4 sm:$0xff]   ;;  %v5855_v46 = vld [vmem:[%s7829_s1 + $0xfc8] ss:$16 sps:$4 sm:$0xff]  }
 0x1c0   :  { %3904 = vmatprep.subr.bf16.mxu0 %v5770_v47  ;;  %4273 = vmatprep.subr.bf16.mxu1 %v5773_v37  ;;  %v5860_v47 = vld [vmem:[%s7829_s1 + $0xfe4] ss:$16 sps:$4 sm:$0xff]   ;;  %v5863_v37 = vld [vmem:[%s7829_s1 + $0xfec] ss:$16 sps:$4 sm:$0xff]  }
 0x1c2   :  { %3896 = vmatmul.mubr.bf16.vlgmr.msra.gmra.mrb[0].mxu0 %v7418_v50  ;;  %4265 = vmatmul.mubr.bf16.vlgmr.msra.gmra.mrb[0].mxu1 %v7418_v50 }
 0x1c3   :  { %3905 = vmatpush1.bf16.msra.mxu0 %v5768_v51  ;;  %4274 = vmatpush1.bf16.msra.mxu1 %v5771_v53  ;;  %v7607_v51 = vld.sshfl [vmem:[%s7830_s0 + $0x10] sm:$0x11 pattern:$0x75316420] }
 0x1c4   :  { %3906 = vmatprep.subr.bf16.mxu0 %v5776_v54  ;;  %4275 = vmatprep.subr.bf16.mxu1 %v5779_v39  ;;  %v5858_v53 = vld [vmem:[%s7829_s1 + $0xfe0] ss:$16 sps:$4 sm:$0xff]   ;;  %v5861_v54 = vld [vmem:[%s7829_s1 + $0xfe8] ss:$16 sps:$4 sm:$0xff]   ;;  %v5866_v39 = vld [vmem:[%s7829_s1 + $0x1004] ss:$16 sps:$4 sm:$0xff]  }
 0x1c5   :  { %3936 = vmatprep.mubr.bf16.mxu0 %v696_v55  ;;  %4305 = vmatprep.mubr.bf16.mxu1 %v696_v55  ;;  %v5869_v55 = vld [vmem:[%s7829_s1 + $0x100c] ss:$16 sps:$4 sm:$0xff]  }
 0x1c7   :  { %3907 = vmatpush1.bf16.msra.mxu0 %v5774_v56  ;;  %4276 = vmatpush1.bf16.msra.mxu1 %v5777_v57  ;;  %v704_v56 = vcombine.high %v7607_v51, %v7607_v51  ;;  %v694_v57 = vcombine.high %v7418_v50, %v7418_v50  ;;  %v5875_v50 = vld [vmem:[%s7829_s1 + $0x102c] ss:$16 sps:$4 sm:$0xff]  }
 0x1c8   :  { %3908 = vmatprep.subr.bf16.mxu0 %v5782_v48  ;;  %4277 = vmatprep.subr.bf16.mxu1 %v5785_v58  ;;  %v5864_v48 = vld [vmem:[%s7829_s1 + $0x1000] ss:$16 sps:$4 sm:$0xff]   ;;  %v5867_v58 = vld [vmem:[%s7829_s1 + $0x1008] ss:$16 sps:$4 sm:$0xff]  }
 0x1cb   :  { %3909 = vmatpush1.bf16.msra.mxu0 %v5780_v59  ;;  %4278 = vmatpush1.bf16.msra.mxu1 %v5783_v60  ;;  %v5872_v59 = vld [vmem:[%s7829_s1 + $0x1024] ss:$16 sps:$4 sm:$0xff]   ;;  %v718_v60 = vrot.slane %v704_v56, %v6121_v49 }
 0x1cc   :  { %3910 = vmatprep.subr.bf16.mxu0 %v5788_v61  ;;  %4279 = vmatprep.subr.bf16.mxu1 %v5791_v62  ;;  %v5870_v61 = vld [vmem:[%s7829_s1 + $0x1020] ss:$16 sps:$4 sm:$0xff]   ;;  %v5873_v62 = vld [vmem:[%s7829_s1 + $0x1028] ss:$16 sps:$4 sm:$0xff]   ;;  %v5956_v56 = vld [vmem:[%s7829_s1 + $0x11e4] ss:$16 sps:$4 sm:$0xff]  }
 0x1cf   :  { %3911 = vmatpush1.bf16.msra.mxu0 %v5786_v63  ;;  %4280 = vmatpush1.bf16.msra.mxu1 %v5789_v0  ;;  %v5878_v63 = vld [vmem:[%s7829_s1 + $0x1044] ss:$16 sps:$4 sm:$0xff]   ;;  %v5881_v0 = vld [vmem:[%s7829_s1 + $0x104c] ss:$16 sps:$4 sm:$0xff]  }
 0x1d0   :  { %3912 = vmatprep.subr.bf16.mxu0 %v5794_v1  ;;  %4281 = vmatprep.subr.bf16.mxu1 %v5797_v2  ;;  %v5876_v1 = vld [vmem:[%s7829_s1 + $0x1040] ss:$16 sps:$4 sm:$0xff]   ;;  %v5879_v2 = vld [vmem:[%s7829_s1 + $0x1048] ss:$16 sps:$4 sm:$0xff]  }
 0x1d3   :  { %3913 = vmatpush1.bf16.msra.mxu0 %v5792_v3  ;;  %4282 = vmatpush1.bf16.msra.mxu1 %v5795_v4  ;;  %v5884_v3 = vld [vmem:[%s7829_s1 + $0x1064] ss:$16 sps:$4 sm:$0xff]   ;;  %v5887_v4 = vld [vmem:[%s7829_s1 + $0x106c] ss:$16 sps:$4 sm:$0xff]  }
 0x1d4   :  { %3914 = vmatprep.subr.bf16.mxu0 %v5800_v5  ;;  %4283 = vmatprep.subr.bf16.mxu1 %v5803_v6  ;;  %v5882_v5 = vld [vmem:[%s7829_s1 + $0x1060] ss:$16 sps:$4 sm:$0xff]   ;;  %v5885_v6 = vld [vmem:[%s7829_s1 + $0x1068] ss:$16 sps:$4 sm:$0xff]  }
 0x1d7   :  { %3915 = vmatpush1.bf16.msra.mxu0 %v5798_v7  ;;  %4284 = vmatpush1.bf16.msra.mxu1 %v5801_v8  ;;  %v5890_v7 = vld [vmem:[%s7829_s1 + $0x1084] ss:$16 sps:$4 sm:$0xff]   ;;  %v5893_v8 = vld [vmem:[%s7829_s1 + $0x108c] ss:$16 sps:$4 sm:$0xff]  }
 0x1d8   :  { %3916 = vmatprep.subr.bf16.mxu0 %v5806_v9  ;;  %4285 = vmatprep.subr.bf16.mxu1 %v5809_v10  ;;  %v5888_v9 = vld [vmem:[%s7829_s1 + $0x1080] ss:$16 sps:$4 sm:$0xff]   ;;  %v5891_v10 = vld [vmem:[%s7829_s1 + $0x1088] ss:$16 sps:$4 sm:$0xff]  }
 0x1db   :  { %3917 = vmatpush1.bf16.msra.mxu0 %v5804_v11  ;;  %4286 = vmatpush1.bf16.msra.mxu1 %v5807_v12  ;;  %v5896_v11 = vld [vmem:[%s7829_s1 + $0x10a4] ss:$16 sps:$4 sm:$0xff]   ;;  %v5899_v12 = vld [vmem:[%s7829_s1 + $0x10ac] ss:$16 sps:$4 sm:$0xff]  }
 0x1dc   :  { %3918 = vmatprep.subr.bf16.mxu0 %v5812_v52  ;;  %4287 = vmatprep.subr.bf16.mxu1 %v5815_v15  ;;  %v5894_v52 = vld [vmem:[%s7829_s1 + $0x10a0] ss:$16 sps:$4 sm:$0xff]   ;;  %v5897_v15 = vld [vmem:[%s7829_s1 + $0x10a8] ss:$16 sps:$4 sm:$0xff]  }
 0x1df   :  { %3919 = vmatpush1.bf16.msra.mxu0 %v5810_v16  ;;  %4288 = vmatpush1.bf16.msra.mxu1 %v5813_v17  ;;  %v5902_v16 = vld [vmem:[%s7829_s1 + $0x10c4] ss:$16 sps:$4 sm:$0xff]   ;;  %v5905_v17 = vld [vmem:[%s7829_s1 + $0x10cc] ss:$16 sps:$4 sm:$0xff]  }
 0x1e0   :  { %3920 = vmatprep.subr.bf16.mxu0 %v5818_v18  ;;  %4289 = vmatprep.subr.bf16.mxu1 %v5821_v19  ;;  %v5900_v18 = vld [vmem:[%s7829_s1 + $0x10c0] ss:$16 sps:$4 sm:$0xff]   ;;  %v5903_v19 = vld [vmem:[%s7829_s1 + $0x10c8] ss:$16 sps:$4 sm:$0xff]  }
 0x1e3   :  { %3921 = vmatpush1.bf16.msra.mxu0 %v5816_v20  ;;  %4290 = vmatpush1.bf16.msra.mxu1 %v5819_v22  ;;  %v5908_v20 = vld [vmem:[%s7829_s1 + $0x10e4] ss:$16 sps:$4 sm:$0xff]   ;;  %v5911_v22 = vld [vmem:[%s7829_s1 + $0x10ec] ss:$16 sps:$4 sm:$0xff]  }
 0x1e4   :  { %3922 = vmatprep.subr.bf16.mxu0 %v5824_v23  ;;  %4291 = vmatprep.subr.bf16.mxu1 %v5827_v24  ;;  %v5906_v23 = vld [vmem:[%s7829_s1 + $0x10e0] ss:$16 sps:$4 sm:$0xff]   ;;  %v5909_v24 = vld [vmem:[%s7829_s1 + $0x10e8] ss:$16 sps:$4 sm:$0xff]  }
 0x1e7   :  { %3923 = vmatpush1.bf16.msra.mxu0 %v5822_v13  ;;  %4292 = vmatpush1.bf16.msra.mxu1 %v5825_v28  ;;  %v5914_v13 = vld [vmem:[%s7829_s1 + $0x1104] ss:$16 sps:$4 sm:$0xff]   ;;  %v5917_v28 = vld [vmem:[%s7829_s1 + $0x110c] ss:$16 sps:$4 sm:$0xff]  }
 0x1e8   :  { %3924 = vmatprep.subr.bf16.mxu0 %v5830_v29  ;;  %4293 = vmatprep.subr.bf16.mxu1 %v5833_v14  ;;  %v5912_v29 = vld [vmem:[%s7829_s1 + $0x1100] ss:$16 sps:$4 sm:$0xff]   ;;  %v5915_v14 = vld [vmem:[%s7829_s1 + $0x1108] ss:$16 sps:$4 sm:$0xff]  }
 0x1eb   :  { %3925 = vmatpush1.bf16.msra.mxu0 %v5828_v30  ;;  %4294 = vmatpush1.bf16.msra.mxu1 %v5831_v31  ;;  %v5920_v30 = vld [vmem:[%s7829_s1 + $0x1124] ss:$16 sps:$4 sm:$0xff]   ;;  %v5923_v31 = vld [vmem:[%s7829_s1 + $0x112c] ss:$16 sps:$4 sm:$0xff]  }
 0x1ec   :  { %3926 = vmatprep.subr.bf16.mxu0 %v5836_v25  ;;  %4295 = vmatprep.subr.bf16.mxu1 %v5839_v32  ;;  %v5918_v25 = vld [vmem:[%s7829_s1 + $0x1120] ss:$16 sps:$4 sm:$0xff]   ;;  %v5921_v32 = vld [vmem:[%s7829_s1 + $0x1128] ss:$16 sps:$4 sm:$0xff]  }
 0x1ef   :  { %3927 = vmatpush1.bf16.msra.mxu0 %v5834_v33  ;;  %4296 = vmatpush1.bf16.msra.mxu1 %v5837_v34  ;;  %v5926_v33 = vld [vmem:[%s7829_s1 + $0x1144] ss:$16 sps:$4 sm:$0xff]   ;;  %v5929_v34 = vld [vmem:[%s7829_s1 + $0x114c] ss:$16 sps:$4 sm:$0xff]  }
 0x1f0   :  { %3928 = vmatprep.subr.bf16.mxu0 %v5842_v26  ;;  %4297 = vmatprep.subr.bf16.mxu1 %v5845_v36  ;;  %v5924_v26 = vld [vmem:[%s7829_s1 + $0x1140] ss:$16 sps:$4 sm:$0xff]   ;;  %v5927_v36 = vld [vmem:[%s7829_s1 + $0x1148] ss:$16 sps:$4 sm:$0xff]  }
 0x1f3   :  { %3929 = vmatpush1.bf16.msra.mxu0 %v5840_v38  ;;  %4298 = vmatpush1.bf16.msra.mxu1 %v5843_v21  ;;  %v5932_v38 = vld [vmem:[%s7829_s1 + $0x1164] ss:$16 sps:$4 sm:$0xff]   ;;  %v5935_v21 = vld [vmem:[%s7829_s1 + $0x116c] ss:$16 sps:$4 sm:$0xff]  }
 0x1f4   :  { %3930 = vmatprep.subr.bf16.mxu0 %v5848_v40  ;;  %4299 = vmatprep.subr.bf16.mxu1 %v5851_v27  ;;  %v5930_v40 = vld [vmem:[%s7829_s1 + $0x1160] ss:$16 sps:$4 sm:$0xff]   ;;  %v5933_v27 = vld [vmem:[%s7829_s1 + $0x1168] ss:$16 sps:$4 sm:$0xff]  }
 0x1f7   :  { %3931 = vmatpush1.bf16.msra.mxu0 %v5846_v41  ;;  %4300 = vmatpush1.bf16.msra.mxu1 %v5849_v42  ;;  %v5938_v41 = vld [vmem:[%s7829_s1 + $0x1184] ss:$16 sps:$4 sm:$0xff]   ;;  %v5941_v42 = vld [vmem:[%s7829_s1 + $0x118c] ss:$16 sps:$4 sm:$0xff]  }
 0x1f8   :  { %3932 = vmatprep.subr.bf16.mxu0 %v5854_v44  ;;  %4301 = vmatprep.subr.bf16.mxu1 %v5857_v35  ;;  %v5936_v44 = vld [vmem:[%s7829_s1 + $0x1180] ss:$16 sps:$4 sm:$0xff]   ;;  %v5939_v35 = vld [vmem:[%s7829_s1 + $0x1188] ss:$16 sps:$4 sm:$0xff]  }
 0x1fb   :  { %3933 = vmatpush1.bf16.msra.mxu0 %v5852_v45  ;;  %4302 = vmatpush1.bf16.msra.mxu1 %v5855_v46  ;;  %v5944_v45 = vld [vmem:[%s7829_s1 + $0x11a4] ss:$16 sps:$4 sm:$0xff]   ;;  %v5947_v46 = vld [vmem:[%s7829_s1 + $0x11ac] ss:$16 sps:$4 sm:$0xff]  }
 0x1fc   :  { %3934 = vmatprep.subr.bf16.mxu0 %v5860_v47  ;;  %4303 = vmatprep.subr.bf16.mxu1 %v5863_v37  ;;  %v5942_v47 = vld [vmem:[%s7829_s1 + $0x11a0] ss:$16 sps:$4 sm:$0xff]   ;;  %v5945_v37 = vld [vmem:[%s7829_s1 + $0x11a8] ss:$16 sps:$4 sm:$0xff]  }
 0x1ff   :  { %3935 = vmatpush1.bf16.msra.mxu0 %v5858_v53  ;;  %4304 = vmatpush1.bf16.msra.mxu1 %v5861_v54  ;;  %v5950_v53 = vld [vmem:[%s7829_s1 + $0x11c4] ss:$16 sps:$4 sm:$0xff]   ;;  %v5953_v54 = vld [vmem:[%s7829_s1 + $0x11cc] ss:$16 sps:$4 sm:$0xff]  }
 0x200   :  { %3945 = vmatprep.subr.bf16.mxu0 %v5866_v39  ;;  %4314 = vmatprep.subr.bf16.mxu1 %v5869_v55  ;;  %v5948_v39 = vld [vmem:[%s7829_s1 + $0x11c0] ss:$16 sps:$4 sm:$0xff]   ;;  %v5951_v55 = vld [vmem:[%s7829_s1 + $0x11c8] ss:$16 sps:$4 sm:$0xff]  }
 0x202   :  { %3937 = vmatmul.mubr.bf16.vlgmr.msra.gmra.mrb[0].mxu0 %v694_v57  ;;  %4306 = vmatmul.mubr.bf16.vlgmr.msra.gmra.mrb[0].mxu1 %v694_v57  ;;  %v5959_v57 = vld [vmem:[%s7829_s1 + $0x11ec] ss:$16 sps:$4 sm:$0xff]  }
 0x203   :  { %3946 = vmatpush1.bf16.msra.mxu0 %v5864_v48  ;;  %4315 = vmatpush1.bf16.msra.mxu1 %v5867_v58  ;;  %v5954_v48 = vld [vmem:[%s7829_s1 + $0x11e0] ss:$16 sps:$4 sm:$0xff]   ;;  %v5957_v58 = vld [vmem:[%s7829_s1 + $0x11e8] ss:$16 sps:$4 sm:$0xff]  }
 0x204   :  { %3947 = vmatprep.subr.bf16.mxu0 %v5872_v59  ;;  %4316 = vmatprep.subr.bf16.mxu1 %v5875_v50  ;;  %v711_v59 = vrot.slane %v7607_v51, %v6121_v49  ;;  %v4359_v50 = vsub.s32 0, %v6103_v43  ;;  %v4381_v51 = vld [vmem:[%s7832_s3] sm:$0xf] }
 0x205   :  { %3977 = vmatprep.mubr.bf16.mxu0 %v718_v60  ;;  %4346 = vmatprep.mubr.bf16.mxu1 %v718_v60  ;;  %v4367_v60 = vsub.s32 2, %v6103_v43 }
 0x207   :  { %3948 = vmatpush1.bf16.msra.mxu0 %v5870_v61  ;;  %4317 = vmatpush1.bf16.msra.mxu1 %v5873_v62  ;;  %v4355_v61 = vld [vmem:[%s7831_s2] sm:$0xf]  ;;  %v4363_v62 = vsub.s32 1, %v6103_v43 }
 0x208   :  { %3949 = vmatprep.subr.bf16.mxu0 %v5878_v63  ;;  %4318 = vmatprep.subr.bf16.mxu1 %v5881_v0  ;;  %v4371_v63 = vsub.s32 3, %v6103_v43  ;;  %v4360_v0 = vrot.slane %v4355_v61, %v4359_v50 }
 0x20b   :  { %3950 = vmatpush1.bf16.msra.mxu0 %v5876_v1  ;;  %4319 = vmatpush1.bf16.msra.mxu1 %v5879_v2  ;;  %v4368_v1 = vrot.slane %v4355_v61, %v4367_v60  ;;  %v4364_v2 = vrot.slane %v4355_v61, %v4363_v62 }
 0x20c   :  { %3951 = vmatprep.subr.bf16.mxu0 %v5884_v3  ;;  %4320 = vmatprep.subr.bf16.mxu1 %v5887_v4  ;;  %v4372_v3 = vrot.slane %v4355_v61, %v4371_v63  ;;  %v4386_v4 = vrot.slane %v4381_v51, %v4359_v50 }
 0x20f   :  { %3952 = vmatpush1.bf16.msra.mxu0 %v5882_v5  ;;  %4321 = vmatpush1.bf16.msra.mxu1 %v5885_v6  ;;  %v4394_v5 = vrot.slane %v4381_v51, %v4367_v60 }
 0x210   :  { %3953 = vmatprep.subr.bf16.mxu0 %v5890_v7  ;;  %4322 = vmatprep.subr.bf16.mxu1 %v5893_v8  ;;  %v4390_v8 = vrot.slane %v4381_v51, %v4363_v62 }
 0x213   :  { %3954 = vmatpush1.bf16.msra.mxu0 %v5888_v9  ;;  %4323 = vmatpush1.bf16.msra.mxu1 %v5891_v10  ;;  %v4398_v9 = vrot.slane %v4381_v51, %v4371_v63 }
 0x214   :  { %3955 = vmatprep.subr.bf16.mxu0 %v5896_v11  ;;  %4324 = vmatprep.subr.bf16.mxu1 %v5899_v12 }
 0x217   :  { %3956 = vmatpush1.bf16.msra.mxu0 %v5894_v52  ;;  %4325 = vmatpush1.bf16.msra.mxu1 %v5897_v15 }
 0x218   :  { %3957 = vmatprep.subr.bf16.mxu0 %v5902_v16  ;;  %4326 = vmatprep.subr.bf16.mxu1 %v5905_v17 }
 0x21b   :  { %3958 = vmatpush1.bf16.msra.mxu0 %v5900_v18  ;;  %4327 = vmatpush1.bf16.msra.mxu1 %v5903_v19 }
 0x21c   :  { %3959 = vmatprep.subr.bf16.mxu0 %v5908_v20  ;;  %4328 = vmatprep.subr.bf16.mxu1 %v5911_v22 }
 0x21f   :  { %3960 = vmatpush1.bf16.msra.mxu0 %v5906_v23  ;;  %4329 = vmatpush1.bf16.msra.mxu1 %v5909_v24 }
 0x220   :  { %3961 = vmatprep.subr.bf16.mxu0 %v5914_v13  ;;  %4330 = vmatprep.subr.bf16.mxu1 %v5917_v28 }
 0x223   :  { %3962 = vmatpush1.bf16.msra.mxu0 %v5912_v29  ;;  %4331 = vmatpush1.bf16.msra.mxu1 %v5915_v14 }
 0x224   :  { %3963 = vmatprep.subr.bf16.mxu0 %v5920_v30  ;;  %4332 = vmatprep.subr.bf16.mxu1 %v5923_v31 }
 0x227   :  { %3964 = vmatpush1.bf16.msra.mxu0 %v5918_v25  ;;  %4333 = vmatpush1.bf16.msra.mxu1 %v5921_v32 }
 0x228   :  { %3965 = vmatprep.subr.bf16.mxu0 %v5926_v33  ;;  %4334 = vmatprep.subr.bf16.mxu1 %v5929_v34 }
 0x22b   :  { %3966 = vmatpush1.bf16.msra.mxu0 %v5924_v26  ;;  %4335 = vmatpush1.bf16.msra.mxu1 %v5927_v36 }
 0x22c   :  { %3967 = vmatprep.subr.bf16.mxu0 %v5932_v38  ;;  %4336 = vmatprep.subr.bf16.mxu1 %v5935_v21 }
 0x22f   :  { %3968 = vmatpush1.bf16.msra.mxu0 %v5930_v40  ;;  %4337 = vmatpush1.bf16.msra.mxu1 %v5933_v27 }
 0x230   :  { %3969 = vmatprep.subr.bf16.mxu0 %v5938_v41  ;;  %4338 = vmatprep.subr.bf16.mxu1 %v5941_v42 }
 0x233   :  { %3970 = vmatpush1.bf16.msra.mxu0 %v5936_v44  ;;  %4339 = vmatpush1.bf16.msra.mxu1 %v5939_v35 }
 0x234   :  { %3971 = vmatprep.subr.bf16.mxu0 %v5944_v45  ;;  %4340 = vmatprep.subr.bf16.mxu1 %v5947_v46 }
 0x237   :  { %3972 = vmatpush1.bf16.msra.mxu0 %v5942_v47  ;;  %4341 = vmatpush1.bf16.msra.mxu1 %v5945_v37 }
 0x238   :  { %3973 = vmatprep.subr.bf16.mxu0 %v5950_v53  ;;  %4342 = vmatprep.subr.bf16.mxu1 %v5953_v54 }
 0x23b   :  { %3974 = vmatpush1.bf16.msra.mxu0 %v5948_v39  ;;  %4343 = vmatpush1.bf16.msra.mxu1 %v5951_v55 }
 0x23c   :  { %3975 = vmatprep.subr.bf16.mxu0 %v5956_v56  ;;  %4344 = vmatprep.subr.bf16.mxu1 %v5959_v57 }
 0x23f   :  { %3976 = vmatpush1.bf16.msra.mxu0 %v5954_v48  ;;  %4345 = vmatpush1.bf16.msra.mxu1 %v5957_v58 }
 0x242   :  { %3978 = vmatmul.mubr.bf16.vlgmr.msra.gmra.mrb[0].mxu0 %v711_v59  ;;  %4347 = vmatmul.mubr.bf16.vlgmr.msra.gmra.mrb[0].mxu1 %v711_v59 }
 0x315   :  { %v3979_v6 = vpop.f32.mrb[0].mxu0  ;;  %v4348_v7 = vpop.f32.mrb[0].mxu1 }
 0x316   :  { %v4377_v10 = vmul.f32 %v4360_v0, %v3979_v6  ;;  %v4379_v11 = vmul.f32 %v4368_v1, %v4348_v7  ;;  %v3981_v12 = vpop.f32.mrb[1].mxu0  ;;  %v4350_v52 = vpop.f32.mrb[1].mxu1 }
 0x317   :  { %v4378_v15 = vmul.f32 %v4364_v2, %v3981_v12  ;;  %v4380_v43 = vmul.f32 %v4372_v3, %v4350_v52  ;;  %v3983_v16 = vpop.f32.mrb[2].mxu0  ;;  %v4352_v17 = vpop.f32.mrb[2].mxu1 }
 0x318   :  { %v4403_v18 = vadd.f32 %v4386_v4, %v4377_v10  ;;  %v4405_v19 = vadd.f32 %v4394_v5, %v4379_v11  ;;  %v3984_v20 = vpop.f32.mrb[3].mxu0  ;;  %v4353_v22 = vpop.f32.mrb[3].mxu1 }
 0x319   :  { %v4404_v23 = vadd.f32 %v4390_v8, %v4378_v15  ;;  %v4406_v24 = vadd.f32 %v4398_v9, %v4380_v43 }
 0x31a   :  { %v4407_v13 = vmax.f32 %v4403_v18, 0.0  ;;  %v4409_v28 = vmax.f32 %v4405_v19, 0.0 }
 0x31b   :  { %v4408_v29 = vmax.f32 %v4404_v23, 0.0  ;;  %v4410_v14 = vmax.f32 %v4406_v24, 0.0 }
 0x31d   :  { %v5026_v30 = vpack.c.bf16 %v4408_v29, %v4407_v13  ;;  %v5027_v31 = vpack.c.bf16 %v4410_v14, %v4409_v28 }
 0x31f   :  { %v4427_v25 = vrot.slane %v5026_v30, %v6121_v49  ;;  %v4434_v32 = vrot.slane %v5027_v31, %v6121_v49 }
 0x321   :  { %v4435_v33 = vcombine.low %v4427_v25, %v4434_v32 }
 0x323   :  { %5028 = vst.sshfl [vmem:[%s7833_s4] sm:$0x55 pattern:$0x73625140] %v4435_v33 }

// kernel: resnet_forward.26
= control target key start
LH: loop header
LB: loop body
LE: loop exit
PB: predicated region body
PF: predicated region fallthrough
CT: control target
= control target key end

     0   :  { %s297_s6 = smov 0   ;;  %s299_s7 = smov 0   ;;  %s351_s0 = inlined_call_operand.vmem [shape: bf16[2,1,512], index: 0, kind: input, shape index: {}]   ;;  %s352_s1 = inlined_call_operand.vmem [shape: f32[2,512], index: 1, kind: output, shape index: {}]  }
   0x1   :  { %s301_s8 = smov 0  }
   0x2 LB: > { %s229_s9 = sadd.s32 4294967295, %s285_s8   ;;  %s314_s10 = sadd.s32 1, %s285_s8   ;;  %s285_s8 = sphi %s301_s8, %s355_s8   ;;  %s281_s7 = sphi %s299_s7, %s354_s7   ;;  %s277_s6 = sphi %s297_s6, %s353_s6  }
   0x3   : > { %s15_s11 = ssub.s32 %s285_s8, %s314_s10  ;;  %s18_s12 = sadd.s32 1, %s281_s7 }
   0x4   : > { %p16_p0 = scmp.eq.s32.totalorder %s15_s11, 0  ;;  %p25_p1 = scmp.ne.s32.totalorder %s281_s7, %s277_s6 }
   0x5   : > { %p26_p2 = scmp.eq.s32.totalorder %s285_s8, 0  ;;  %p232_p4 = scmp.ge.s32.totalorder %s285_s8, 4 }
   0x6   : > { %s323_s13 = scalar_select %p16_p0, %s281_s7, %s18_s12  }
   0x7   : > { %p27_p3 = por %p26_p2, %p25_p1  ;;  %77 = sbr.rel (%p232_p4) target bundleno = 21 (0x15), region = 16 }
   0xe   : > { %80 = sbr.rel (!%p27_p3) target bundleno = 21 (0x15), region = 20  ;;  %s82_s14 = sand.u32 (%p27_p3), 1, %s281_s7  }
   0xf   : > { %s85_s17 = scalar_lea.vmem (%p27_p3), %s351_s0, %s285_s8  ;;  %s233_s18 = sshll.u32 (%p27_p3), %s82_s14, 1 }
  0x10   : > { %v101_v0 = vld [vmem:[%s85_s17] sm:$0x1] (%p27_p3)  ;;  %v103_v1 = vld [vmem:[%s85_s17 + $0x4] sm:$0x1] (%p27_p3)  ;;  %s84_s19 = scalar_lea.vmem (%p27_p3), [#allocation2], %s233_s18 }
  0x11   : > { %102 = vst [vmem:[%s84_s19] sm:$0x1] (%p27_p3), %v101_v0  ;;  %104 = vst [vmem:[%s84_s19 + $0x1] sm:$0x1] (%p27_p3), %v103_v1 }
  0x15 PF: > { %p234_p5 = scmp.ge.s32.totalorder %s285_s8, 1  ;;  %p122_p6 = scmp.lt.s32.totalorder %s285_s8, 5 }
  0x17   : > { %p123_p7 = pnand %p234_p5, %p122_p6 }
  0x18   : > { %s129_s20 = sand.u32 (!%p123_p7), 1, %s277_s6   ;;  %p147_p8 = scmp.lt.s32.totalorder (!%p123_p7), %s229_s9, 3  ;;  %v159_v2 = vlaneseq (!%p123_p7)  ;;  %vm167_vm0 = vcmask (!%p123_p7), 1041409  }
  0x19   : > { %126 = sbr.rel (%p123_p7) target bundleno = 36 (0x24), region = 54  ;;  %s235_s21 = sshll.u32 (!%p123_p7), %s129_s20, 1 }
  0x1a   : > { %v160_v3 = vshrl.u32 (!%p123_p7), %v159_v2, 7  ;;  %s131_s22 = scalar_lea.vmem (!%p123_p7), [#allocation2], %s235_s21 }
  0x1b   : > { %v151_v4 = vld [vmem:[%s131_s22] sm:$0x1] (!%p123_p7)  ;;  %v152_v5 = vld [vmem:[%s131_s22 + $0x1] sm:$0x1] (!%p123_p7) }
  0x1c   : > { %v153_v6 = vunpack.c.l.bf16 (!%p123_p7), %v151_v4  ;;  %v154_v7 = vunpack.c.l.bf16 (!%p123_p7), %v152_v5  ;;  %v161_v8 = vsub.s32 (!%p123_p7), 0, %v160_v3 }
  0x1e   : > { %v162_v9 = vrot.slane (!%p123_p7), %v153_v6, %v161_v8  ;;  %v166_v10 = vrot.slane (!%p123_p7), %v154_v7, %v161_v8 }
  0x20   : > { %s357_s9 = smov (!%p147_p8, %s229_s9), 3  ;;  %v168_v11 = vsel %vm167_vm0, %v166_v10, %v162_v9 }
  0x21   : > { %s236_s23 = sshll.u32 %s357_s9, 1 }
  0x22   : > { %s150_s26 = scalar_lea.vmem %s352_s1, %s236_s23 }
  0x23   : > { %170 = vst [vmem:[%s150_s26] sm:$0x3] %v168_v11 }
  0x24 PF: > { %p8_p9 = scmp.ge.s32.totalorder %s314_s10, 6   ;;  %s353_s6 = smov %s281_s7 }
  0x25   : > { %s354_s7 = smov %s323_s13  ;;  %s355_s8 = smov %s314_s10 }
  0x26   :  { %10 = sbr.rel (!%p8_p9) target bundleno = 2 (0x2), region = 93 }

// kernel: resnet_forward.27
= control target key start
LH: loop header
LB: loop body
LE: loop exit
PB: predicated region body
PF: predicated region fallthrough
CT: control target
= control target key end

     0   :  { %v440_v47 = vmov 1983009808   ;;  %v88_v49 = vlaneseq  ;;  %s680_s0 = inlined_call_operand.vmem [shape: f32[2,512], index: 0, kind: input, shape index: {}]   ;;  %s681_s1 = inlined_call_operand.vmem [shape: f32[512,10], index: 1, kind: input, shape index: {}]   ;;  %s682_s2 = inlined_call_operand.vmem [shape: f32[1,10], index: 2, kind: input, shape index: {}]   ;;  %s683_s3 = inlined_call_operand.vmem [shape: f32[1,10], index: 3, kind: input, shape index: {}]   ;;  %s684_s4 = inlined_call_operand.hbm [shape: f32[2,10], index: 4, kind: output, shape index: {}]  }
   0x1   :  { %v35_v0 = vld [vmem:[%s681_s1 + $0x80] sm:$0xff]  ;;  %v36_v1 = vld [vmem:[%s681_s1 + $0x88] sm:$0xff]  ;;  %v37_v11 = vld [vmem:[%s681_s1 + $0x90] sm:$0xff]  ;;  %v86_v48 = vunpack.c.l.s4 %v440_v47 }
   0x2   :  { %v67_v2 = vld [vmem:[%s681_s1 + $0x180] sm:$0xff]  ;;  %v349_v3 = vpack.c.bf16 %v36_v1, %v35_v0  ;;  %v68_v4 = vld [vmem:[%s681_s1 + $0x188] sm:$0xff]  ;;  %v38_v13 = vld [vmem:[%s681_s1 + $0x98] sm:$0xff]  ;;  %v89_v0 = vshrl.u32 %v88_v49, 7 }
   0x3   :  { %v19_v5 = vld [vmem:[%s681_s1] sm:$0xff]  ;;  %v20_v6 = vld [vmem:[%s681_s1 + $0x8] sm:$0xff]  ;;  %v381_v7 = vpack.c.bf16 %v68_v4, %v67_v2  ;;  %v69_v14 = vld [vmem:[%s681_s1 + $0x190] sm:$0xff]  ;;  %v353_v16 = vpack.c.bf16 %v38_v13, %v37_v11  ;;  %v87_v63 = vunpack.c.0.s8 %v86_v48 }
   0x4   :  { %v351_v8 = vpack.c.bf16 %v20_v6, %v19_v5  ;;  %v51_v9 = vld [vmem:[%s681_s1 + $0x100] sm:$0xff]  ;;  %v52_v10 = vld [vmem:[%s681_s1 + $0x108] sm:$0xff]  ;;  %350 = vmatprep.subr.bf16.mxu0 %v349_v3  ;;  %v70_v15 = vld [vmem:[%s681_s1 + $0x198] sm:$0xff] }
   0x5   :  { %v383_v12 = vpack.c.bf16 %v52_v10, %v51_v9  ;;  %382 = vmatprep.subr.bf16.mxu1 %v381_v7  ;;  %v385_v17 = vpack.c.bf16 %v70_v15, %v69_v14  ;;  %v21_v18 = vld [vmem:[%s681_s1 + $0x10] sm:$0xff]  ;;  %v22_v19 = vld [vmem:[%s681_s1 + $0x18] sm:$0xff]  ;;  %v39_v23 = vld [vmem:[%s681_s1 + $0xa0] sm:$0xff]  ;;  %v90_v13 = vsub.s32 %v87_v63, %v89_v0 }
   0x6   :  { %352 = vmatpush3.bf16.msra.mxu0 %v351_v8  ;;  %v53_v20 = vld [vmem:[%s681_s1 + $0x110] sm:$0xff]  ;;  %v355_v21 = vpack.c.bf16 %v22_v19, %v21_v18  ;;  %v54_v22 = vld [vmem:[%s681_s1 + $0x118] sm:$0xff]  ;;  %v40_v24 = vld [vmem:[%s681_s1 + $0xa8] sm:$0xff] }
   0x7   :  { %384 = vmatpush3.bf16.msra.mxu1 %v383_v12  ;;  %354 = vmatprep.subr.bf16.mxu0 %v353_v16  ;;  %v387_v25 = vpack.c.bf16 %v54_v22, %v53_v20  ;;  %v357_v26 = vpack.c.bf16 %v40_v24, %v39_v23  ;;  %v71_v27 = vld [vmem:[%s681_s1 + $0x1a0] sm:$0xff]  ;;  %v72_v28 = vld [vmem:[%s681_s1 + $0x1a8] sm:$0xff]  ;;  %v41_v35 = vld [vmem:[%s681_s1 + $0xb0] sm:$0xff] }
   0x8   :  { %386 = vmatprep.subr.bf16.mxu1 %v385_v17  ;;  %v23_v29 = vld [vmem:[%s681_s1 + $0x20] sm:$0xff]  ;;  %v389_v30 = vpack.c.bf16 %v72_v28, %v71_v27  ;;  %v24_v31 = vld [vmem:[%s681_s1 + $0x28] sm:$0xff]  ;;  %v42_v36 = vld [vmem:[%s681_s1 + $0xb8] sm:$0xff] }
   0x9   :  { %v55_v32 = vld [vmem:[%s681_s1 + $0x120] sm:$0xff]  ;;  %v56_v33 = vld [vmem:[%s681_s1 + $0x128] sm:$0xff]  ;;  %v359_v34 = vpack.c.bf16 %v24_v31, %v23_v29  ;;  %v73_v37 = vld [vmem:[%s681_s1 + $0x1b0] sm:$0xff]  ;;  %v361_v39 = vpack.c.bf16 %v42_v36, %v41_v35 }
   0xa   :  { %356 = vmatpush3.bf16.msra.mxu0 %v355_v21  ;;  %v391_v38 = vpack.c.bf16 %v56_v33, %v55_v32  ;;  %v74_v40 = vld [vmem:[%s681_s1 + $0x1b8] sm:$0xff]  ;;  %v25_v41 = vld [vmem:[%s681_s1 + $0x30] sm:$0xff]  ;;  %v43_v46 = vld [vmem:[%s681_s1 + $0xc0] sm:$0xff] }
   0xb   :  { %388 = vmatpush3.bf16.msra.mxu1 %v387_v25  ;;  %358 = vmatprep.subr.bf16.mxu0 %v357_v26  ;;  %v26_v42 = vld [vmem:[%s681_s1 + $0x38] sm:$0xff]  ;;  %v393_v43 = vpack.c.bf16 %v74_v40, %v73_v37  ;;  %v57_v44 = vld [vmem:[%s681_s1 + $0x130] sm:$0xff]  ;;  %v44_v50 = vld [vmem:[%s681_s1 + $0xc8] sm:$0xff] }
   0xc   :  { %390 = vmatprep.subr.bf16.mxu1 %v389_v30  ;;  %v58_v45 = vld [vmem:[%s681_s1 + $0x138] sm:$0xff]  ;;  %v75_v51 = vld [vmem:[%s681_s1 + $0x1c0] sm:$0xff]  ;;  %v76_v52 = vld [vmem:[%s681_s1 + $0x1c8] sm:$0xff]  ;;  %v363_v53 = vpack.c.bf16 %v26_v42, %v25_v41  ;;  %v365_v55 = vpack.c.bf16 %v44_v50, %v43_v46 }
   0xd   :  { %v395_v54 = vpack.c.bf16 %v58_v45, %v57_v44  ;;  %v27_v56 = vld [vmem:[%s681_s1 + $0x40] sm:$0xff]  ;;  %v28_v57 = vld [vmem:[%s681_s1 + $0x48] sm:$0xff]  ;;  %v397_v59 = vpack.c.bf16 %v76_v52, %v75_v51  ;;  %v45_v61 = vld [vmem:[%s681_s1 + $0xd0] sm:$0xff] }
   0xe   :  { %360 = vmatpush3.bf16.msra.mxu0 %v359_v34  ;;  %v59_v58 = vld [vmem:[%s681_s1 + $0x140] sm:$0xff]  ;;  %v60_v60 = vld [vmem:[%s681_s1 + $0x148] sm:$0xff]  ;;  %v46_v62 = vld [vmem:[%s681_s1 + $0xd8] sm:$0xff]  ;;  %v367_v3 = vpack.c.bf16 %v28_v57, %v27_v56 }
   0xf   :  { %392 = vmatpush3.bf16.msra.mxu1 %v391_v38  ;;  %362 = vmatprep.subr.bf16.mxu0 %v361_v39  ;;  %v77_v1 = vld [vmem:[%s681_s1 + $0x1d0] sm:$0xff]  ;;  %v78_v2 = vld [vmem:[%s681_s1 + $0x1d8] sm:$0xff]  ;;  %v399_v4 = vpack.c.bf16 %v60_v60, %v59_v58  ;;  %v369_v5 = vpack.c.bf16 %v46_v62, %v45_v61  ;;  %v47_v11 = vld [vmem:[%s681_s1 + $0xe0] sm:$0xff] }
  0x10   :  { %394 = vmatprep.subr.bf16.mxu1 %v393_v43  ;;  %v29_v6 = vld [vmem:[%s681_s1 + $0x50] sm:$0xff]  ;;  %v30_v7 = vld [vmem:[%s681_s1 + $0x58] sm:$0xff]  ;;  %v401_v9 = vpack.c.bf16 %v78_v2, %v77_v1  ;;  %v48_v12 = vld [vmem:[%s681_s1 + $0xe8] sm:$0xff] }
  0x11   :  { %v61_v8 = vld [vmem:[%s681_s1 + $0x150] sm:$0xff]  ;;  %v62_v10 = vld [vmem:[%s681_s1 + $0x158] sm:$0xff]  ;;  %v79_v14 = vld [vmem:[%s681_s1 + $0x1e0] sm:$0xff]  ;;  %v371_v16 = vpack.c.bf16 %v30_v7, %v29_v6  ;;  %v373_v20 = vpack.c.bf16 %v48_v12, %v47_v11 }
  0x12   :  { %364 = vmatpush3.bf16.msra.mxu0 %v363_v53  ;;  %v80_v15 = vld [vmem:[%s681_s1 + $0x1e8] sm:$0xff]  ;;  %v31_v17 = vld [vmem:[%s681_s1 + $0x60] sm:$0xff]  ;;  %v403_v19 = vpack.c.bf16 %v62_v10, %v61_v8 }
  0x13   :  { %396 = vmatpush3.bf16.msra.mxu1 %v395_v54  ;;  %366 = vmatprep.subr.bf16.mxu0 %v365_v55  ;;  %v32_v18 = vld [vmem:[%s681_s1 + $0x68] sm:$0xff]  ;;  %v63_v21 = vld [vmem:[%s681_s1 + $0x160] sm:$0xff] }
  0x14   :  { %398 = vmatprep.subr.bf16.mxu1 %v397_v59  ;;  %v18_v22 = vld [vmem:[%s680_s0] sm:$0xff] }
  0x16   :  { %368 = vmatpush3.bf16.msra.mxu0 %v367_v3 }
  0x17   :  { %400 = vmatpush3.bf16.msra.mxu1 %v399_v4  ;;  %370 = vmatprep.subr.bf16.mxu0 %v369_v5 }
  0x18   :  { %9 = vsyncpa [#allocation3], 0  ;;  %402 = vmatprep.subr.bf16.mxu1 %v401_v9  ;;  %v405_v23 = vpack.c.bf16 %v80_v15, %v79_v14  ;;  %v64_v24 = vld [vmem:[%s681_s1 + $0x168] sm:$0xff]  ;;  %v49_v25 = vld [vmem:[%s681_s1 + $0xf0] sm:$0xff]  ;;  %v91_v27 = vrot.slane %v18_v22, %v90_v13  ;;  %v84_v28 = vcombine.high %v18_v22, %v18_v22  ;;  %v375_v31 = vpack.c.bf16 %v32_v18, %v31_v17  ;;  %s441_s17 = smov [#allocation2]  }
  0x19   :  { %v50_v26 = vld [vmem:[%s681_s1 + $0xf8] sm:$0xff]  ;;  %v81_v29 = vld [vmem:[%s681_s1 + $0x1f0] sm:$0xff]  ;;  %v407_v34 = vpack.c.bf16 %v64_v24, %v63_v21  ;;  %v277_v50 = vld [vmem:[%s682_s2] ss:$0 sm:$0xff]  ;;  %s269_s18 = sshll.u32 %s441_s17, 4  ;;  %vm261_vm0 = vcmask 74752   ;;  %s270_s18 = int_to_ptr.vmem [resolvable:$true] %s269_s18 }
  0x1a   :  { %v82_v30 = vld [vmem:[%s681_s1 + $0x1f8] sm:$0xff]  ;;  %372 = vmatpush3.bf16.msra.mxu0 %v371_v16  ;;  %v99_v32 = vcombine.high %v91_v27, %v91_v27  ;;  %v98_v33 = vrot.slane %v84_v28, %v90_v13  ;;  %v377_v35 = vpack.c.bf16 %v50_v26, %v49_v25  ;;  %v33_v36 = vld [vmem:[%s681_s1 + $0x70] sm:$0xff]  ;;  %v278_v52 = vld [vmem:[%s683_s3] ss:$0 sm:$0xff]  ;;  %s416_s19 = scalar_lea.vmem %s270_s18, 32  ;;  %p421_p1 = scmp.lt.s32.totalorder %s270_s18, %s270_s18 }
  0x1b   :  { %404 = vmatpush3.bf16.msra.mxu1 %v403_v19  ;;  %374 = vmatprep.subr.bf16.mxu0 %v373_v20  ;;  %v34_v37 = vld [vmem:[%s681_s1 + $0x78] sm:$0xff]  ;;  %v409_v38 = vpack.c.bf16 %v82_v30, %v81_v29  ;;  %v65_v39 = vld [vmem:[%s681_s1 + $0x170] sm:$0xff]  ;;  %p417_p0 = scmp.ne.s32.totalorder %s270_s18, %s416_s19  ;;  %p422_p2 = scmp.lt.s32.totalorder %s416_s19, %s416_s19 }
  0x1c   :  { %406 = vmatprep.subr.bf16.mxu1 %v405_v23  ;;  %v66_v40 = vld [vmem:[%s681_s1 + $0x178] sm:$0xff]  ;;  %169 = vmatprep.mubr.f32.mxu0 %v99_v32  ;;  %v100_v41 = vcombine.high %v98_v33, %v98_v33  ;;  %v379_v42 = vpack.c.bf16 %v34_v37, %v33_v36 }
  0x1d   :  { %v411_v43 = vpack.c.bf16 %v66_v40, %v65_v39  ;;  %p423_p3 = por %p422_p2, %p421_p1 }
  0x1e   :  { %376 = vmatpush3.bf16.msra.mxu0 %v375_v31  ;;  %239 = vmatprep.mubr.f32.mxu1 %v100_v41 }
  0x1f   :  { %408 = vmatpush3.bf16.msra.mxu1 %v407_v34  ;;  %378 = vmatprep.subr.bf16.mxu0 %v377_v35  ;;  %p424_p4 = pnand %p423_p3, %p417_p0 }
  0x20   :  { %410 = vmatprep.subr.bf16.mxu1 %v409_v38 }
  0x22   :  { %380 = vmatpush3.bf16.msra.mxu0 %v379_v42 }
  0x23   :  { %412 = vmatpush3.bf16.msra.mxu1 %v411_v43 }
  0x25   :  { %170 = vmatmul.mubr.f32.vlgmr.msra.gmra.mrb[0].mxu0 %v91_v27 }
  0x26   :  { %240 = vmatmul.mubr.f32.vlgmr.msra.gmra.mrb[0].mxu1 %v98_v33 }
  0xf8   :  { %v311_v44 = vpop.f32.mrb[0].mxu0 }
  0xf9   :  { %v346_v45 = vpop.f32.mrb[0].mxu1  ;;  %v312_v46 = vpop.f32.mrb[1].mxu0 }
  0xfa   :  { %v313_v47 = vadd.f32 %v312_v46, %v311_v44  ;;  %v347_v48 = vpop.f32.mrb[1].mxu1 }
  0xfb   :  { %v348_v49 = vadd.f32 %v347_v48, %v346_v45 }
  0xfd   :  { %v242_v51 = vadd.f32 %v348_v49, %v313_v47 }
  0xff   :  { %v252_v53 = vmul.f32 %v277_v50, %v242_v51 }
 0x101   :  { %v260_v54 = vadd.f32 %v278_v52, %v252_v53 }
 0x103   :  { %262 = vst.msk [vmem:[#allocation2] sm:$0x3] %vm261_vm0, %v260_v54 }
 0x104   :  { %427 = shalt.err (!%p424_p4)
}
 0x105   :  { %s428_s21 = scalar_lea.hbm %s684_s4, 32 }
 0x106   :  { %p429_p5 = scmp.ne.s32.totalorder %s684_s4, %s428_s21  ;;  %p432_p6 = scmp.lt.u32.totalorder %s428_s21, %s684_s4 }
 0x108   :  { %p434_p7 = pnand %p432_p6, %p429_p5 }
 0x10a   :  { %437 = shalt.err (!%p434_p7)
}
 0x10b   :  { %272 = dma.vmem_to_hbm [thread:$0]  %s270_s18, 32, %s684_s4, [#allocation3]  }
 0x10c   :  { %438 = dma.done.wait [#allocation3], 32  }
 0x10d   :  { %439 = vsyncadd [#allocation3], 4294967264 }
 0x10e   :  { %276 = vsyncpa [#allocation3], 1 }

</bundles_post_ra>
